<compile_context>
chip_gen: v7x
topology: tpu7x:2x2x1
jax: 0.10.0
libtpu: 0.0.40
codegen_flags: <defaults>
</compile_context>

<pallas_src>
import functools

import jax
import jax.numpy as jnp
from jax import lax
from jax.experimental import pallas as pl
from jax.experimental.pallas import tpu as pltpu

LRELU_SLOPE = 0.01   # nn.LeakyReLU default
LN_EPS = 1e-5        # nn.LayerNorm default
BN_EPS = 1e-5        # nn.BatchNorm1d default

# PyTorch LSTM gate order is [i, f, g, o]; pre-permute to [i, f, o, g] so one
# sigmoid covers columns 0:9 and one tanh covers columns 9:12 per chain.
GATE_PERM = jnp.array([0, 1, 2, 3, 4, 5, 9, 10, 11, 6, 7, 8], dtype=jnp.int32)


def convert_lstm_layer(wih, whh, bih, bhh):
    """PyTorch (4H,in)/(4H,H) weights, gate order [i,f,g,o]  ->
    transposed (in,12)/(3,12) with gate order [i,f,o,g] and fused bias."""
    return (wih[GATE_PERM].T, whh[GATE_PERM].T,
            ((bih + bhh)[GATE_PERM]).reshape(1, 12))


# ----------------------------------------------------------------------------
# Kernel 1: Conv1d+BN(eval)+LeakyReLU fused with x_all@main and x_all@side.
# ----------------------------------------------------------------------------
def front_kernel(xsh_ref, w_ref, scale_ref, shift_ref, main_ref, side_ref,
                 om_ref, os_ref):
    # xsh_ref: (1, 9, L) pre-shifted conv taps (tap-major, then in-channel)
    acc = jnp.dot(w_ref[...], xsh_ref[0], preferred_element_type=jnp.float32)
    acc = acc * scale_ref[...] + shift_ref[...]          # conv bias + BN folded
    x_all = jnp.where(acc >= 0, acc, LRELU_SLOPE * acc)  # LeakyReLU
    om_ref[0] = jnp.dot(x_all, main_ref[0], preferred_element_type=jnp.float32)
    os_ref[0] = jnp.dot(x_all, side_ref[0], preferred_element_type=jnp.float32)


def front(xsh, wmat, scale, shift, main, side):
    B, _, L = xsh.shape
    M = main.shape[2]
    S = side.shape[2]
    return pl.pallas_call(
        front_kernel,
        out_shape=(jax.ShapeDtypeStruct((B, 3, M), jnp.float32),
                   jax.ShapeDtypeStruct((B, 3, S), jnp.float32)),
        grid=(B,),
        in_specs=[
            pl.BlockSpec((1, 9, L), lambda i: (i, 0, 0)),
            pl.BlockSpec((3, 9), lambda i: (0, 0)),
            pl.BlockSpec((3, 1), lambda i: (0, 0)),
            pl.BlockSpec((3, 1), lambda i: (0, 0)),
            pl.BlockSpec((1, L, M), lambda i: (i, 0, 0)),
            pl.BlockSpec((1, L, S), lambda i: (i, 0, 0)),
        ],
        out_specs=(pl.BlockSpec((1, 3, M), lambda i: (i, 0, 0)),
                   pl.BlockSpec((1, 3, S), lambda i: (i, 0, 0))),
        compiler_params=pltpu.CompilerParams(dimension_semantics=("parallel",)),
    )(xsh, wmat, scale, shift, main, side)


# ----------------------------------------------------------------------------
# Kernel 2: multi-chain 2-layer LSTM + fused LayerNorm, lane-dense output.
# Chains live on sublanes: state (n,3), gates (n,12), per-chain weights.
# ----------------------------------------------------------------------------
def lstm_ln_kernel(x_ref, wih0_ref, b0_ref, whh0_ref, wih1_ref, whh1_ref,
                   b1_ref, gamma_ref, beta_ref, o_ref, g_scr, y_scr,
                   *, ln_lens, unroll):
    n = x_ref.shape[0]
    T = x_ref.shape[2]

    # --- prologue: hoisted layer-0 input projection (off the serial path) ---
    # g_scr[j] = x[j]^T @ Wih0[j] + b0[j]    (one tiny MXU matmul per chain)
    for j in range(n):
        xt = jnp.transpose(x_ref[j])                        # (T, 3)
        g_scr[j] = (jnp.dot(xt, wih0_ref[j],
                            preferred_element_type=jnp.float32) + b0_ref[j])

    o_ref[...] = jnp.zeros_like(o_ref)                      # deterministic pad

    whh0 = whh0_ref[...]                                    # (3, n, 12)
    wih1 = wih1_ref[...]
    whh1 = whh1_ref[...]
    b1 = b1_ref[...]                                        # (n, 12)

    def matvec(h, w):
        # (n,3) x per-chain (3,12) as 3 broadcast FMAs on (n,12) tiles: lower
        # latency than an MXU round trip on the serial recurrence (H=3).
        return h[:, 0:1] * w[0] + h[:, 1:2] * w[1] + h[:, 2:3] * w[2]

    def cell(g, c_prev):
        # gate columns [i(0:3), f(3:6), o(6:9) | g(9:12)] -> 1 sigmoid + 2 tanh
        s = jax.nn.sigmoid(g[:, 0:9])
        gg = jnp.tanh(g[:, 9:12])
        c_new = s[:, 3:6] * c_prev + s[:, 0:3] * gg
        h_new = s[:, 6:9] * jnp.tanh(c_new)
        return h_new, c_new

    def one_step(t, carry):
        h1, c1, h2, c2 = carry
        g0 = jnp.concatenate(
            [g_scr[j, pl.ds(t, 1), :] for j in range(n)], axis=0)   # (n, 12)
        h1, c1 = cell(g0 + matvec(h1, whh0), c1)
        # inter-layer dropout (p=0.3) is the identity in eval mode
        h2, c2 = cell(b1 + matvec(h1, wih1) + matvec(h2, whh1), c2)
        for j in range(n):                      # VMEM scratch, off dep path
            y_scr[j, pl.ds(t, 1), :] = h2[j:j + 1, :]
        return h1, c1, h2, c2

    def body(i, carry):
        # manual unroll: gives the LLO scheduler visibility to overlap the
        # independent gate loads / EUP pushes across adjacent steps.
        for u in range(unroll):
            carry = one_step(i * unroll + u, carry)
        return carry

    z = jnp.zeros((n, 3), jnp.float32)
    lax.fori_loop(0, T // unroll, body, (z, z, z, z))

    # --- epilogue: fused LayerNorm over (Tc,3), written lane-dense (3,T) ---
    for j in range(n):
        Tc = ln_lens[j]                                      # static python int
        yt = jnp.transpose(y_scr[j, 0:Tc, :])                # (3, Tc)
        inv = 1.0 / (3 * Tc)
        mu = jnp.sum(yt) * inv
        xc = yt - mu
        var = jnp.sum(xc * xc) * inv
        yn = xc * lax.rsqrt(var + LN_EPS)
        o_ref[j, :, 0:Tc] = yn * gamma_ref[j, :, 0:Tc] + beta_ref[j, :, 0:Tc]


def lstm_ln(x, cp, ln_lens):
    # x: (n_chains, 3, T) lane-dense branch inputs.  Single grid step
    # (t_chunk = T): the whole working set is < 2 MiB of VMEM on every
    # generation, so there is nothing to pipeline.
    n, C, T = x.shape
    assert C == 3
    unroll = 4 if T % 4 == 0 else (2 if T % 2 == 0 else 1)
    kernel = functools.partial(lstm_ln_kernel,
                               ln_lens=tuple(int(v) for v in ln_lens),
                               unroll=unroll)
    return pl.pallas_call(
        kernel,
        out_shape=jax.ShapeDtypeStruct((n, C, T), jnp.float32),
        grid=(1,),
        in_specs=[
            pl.BlockSpec((n, C, T), lambda i: (0, 0, 0)),     # x
            pl.BlockSpec((n, 3, 12), lambda i: (0, 0, 0)),    # wih0 (per chain)
            pl.BlockSpec((n, 1, 12), lambda i: (0, 0, 0)),    # b0
            pl.BlockSpec((3, n, 12), lambda i: (0, 0, 0)),    # whh0
            pl.BlockSpec((3, n, 12), lambda i: (0, 0, 0)),    # wih1
            pl.BlockSpec((3, n, 12), lambda i: (0, 0, 0)),    # whh1
            pl.BlockSpec((n, 12), lambda i: (0, 0)),          # b1
            pl.BlockSpec((n, C, T), lambda i: (0, 0, 0)),     # LN gamma (3,T)
            pl.BlockSpec((n, C, T), lambda i: (0, 0, 0)),     # LN beta  (3,T)
        ],
        out_specs=pl.BlockSpec((n, C, T), lambda i: (0, 0, 0)),
        scratch_shapes=[pltpu.VMEM((n, T, 12), jnp.float32),  # gate pre-acts
                        pltpu.VMEM((n, T, 3), jnp.float32)],  # h2 history
        compiler_params=pltpu.CompilerParams(
            dimension_semantics=("arbitrary",)),
    )(x, cp["wih0"], cp["b0"], cp["whh0"], cp["wih1"], cp["whh1"], cp["b1"],
      cp["gamma"], cp["beta"])


# ----------------------------------------------------------------------------
# Kernel 3: x_main @ main^T + x_side @ side^T in natural MXU orientation.
# ----------------------------------------------------------------------------
def fuse_kernel(ym_ref, ys_ref, main_ref, side_ref, o_ref):
    # Compute main@(y_main)^T + side@(y_side)^T = (y_main@main^T+y_side@side^T)^T
    # so the big (L,M)/(L,L) operands stay un-transposed; only the tiny
    # (3,T)<->(T,3) activations and the (L,3) result go through the XLU.
    ym_t = jnp.transpose(ym_ref[0])                          # (M, 3)
    ys_t = jnp.transpose(ys_ref[0])                          # (L, 3)
    acc = jnp.dot(main_ref[0], ym_t, preferred_element_type=jnp.float32)
    acc = acc + jnp.dot(side_ref[0], ys_t, preferred_element_type=jnp.float32)
    o_ref[0] = jnp.transpose(acc)                            # (3, L) lane-dense


def fuse(ym, ys, main, side):
    B, _, M = ym.shape
    L = main.shape[1]
    return pl.pallas_call(
        fuse_kernel,
        out_shape=jax.ShapeDtypeStruct((B, 3, L), jnp.float32),
        grid=(B,),
        in_specs=[pl.BlockSpec((1, 3, M), lambda i: (i, 0, 0)),
                  pl.BlockSpec((1, 3, L), lambda i: (i, 0, 0)),
                  pl.BlockSpec((1, L, M), lambda i: (i, 0, 0)),
                  pl.BlockSpec((1, L, L), lambda i: (i, 0, 0))],
        out_specs=pl.BlockSpec((1, 3, L), lambda i: (i, 0, 0)),
        compiler_params=pltpu.CompilerParams(dimension_semantics=("parallel",)),
    )(ym, ys, main, side)


# ----------------------------------------------------------------------------
# Parameters (deterministic PyTorch-default-like uniform init, converted to
# kernel layouts: transposed LSTM weights, [i,f,o,g] gate order, fused biases,
# transposed LayerNorm affine params).
# ----------------------------------------------------------------------------
def init_params(key):
    keys = iter(jax.random.split(key, 40))

    def u(shape, fan):
        bound = 1.0 / (fan ** 0.5)
        return jax.random.uniform(next(keys), shape, jnp.float32, -bound, bound)

    p = {}
    # Conv1d(3, 3, kernel_size=3) + BatchNorm1d(3) (fresh running stats)
    p["conv_w"] = u((3, 3, 3), 3 * 3)          # (Cout, Cin, k)
    p["conv_b"] = u((3,), 3 * 3)
    p["bn_gamma"] = jnp.ones((3,), jnp.float32)
    p["bn_beta"] = jnp.zeros((3,), jnp.float32)
    p["bn_mean"] = jnp.zeros((3,), jnp.float32)
    p["bn_var"] = jnp.ones((3,), jnp.float32)

    def lstm_params():
        lp = {}
        for layer in (0, 1):
            wih = u((12, 3), 3)                # PyTorch (4H, in)
            whh = u((12, 3), 3)                # PyTorch (4H, H)
            bih = u((12,), 3)
            bhh = u((12,), 3)
            wih_t, whh_t, b = convert_lstm_layer(wih, whh, bih, bhh)
            lp[f"wih{layer}_t"] = wih_t        # (3, 12), gates [i,f,o,g]
            lp[f"whh{layer}_t"] = whh_t        # (3, 12)
            lp[f"b{layer}"] = b                # (1, 12)
        return lp

    p["main_lstm"] = lstm_params()
    p["side_lstm"] = lstm_params()
    p["all_lstm"] = lstm_params()
    # LayerNorm affine params stored pre-transposed to (3, T)
    p["main_ln_g_t"] = jnp.ones((3, 150), jnp.float32)
    p["main_ln_b_t"] = jnp.zeros((3, 150), jnp.float32)
    p["side_ln_g_t"] = jnp.ones((3, 400), jnp.float32)
    p["side_ln_b_t"] = jnp.zeros((3, 400), jnp.float32)
    p["all_ln_g_t"] = jnp.ones((3, 400), jnp.float32)
    p["all_ln_b_t"] = jnp.zeros((3, 400), jnp.float32)
    return p


def _stack_chain_params(branches, ln_gs, ln_bs, T):
    """Stack per-chain LSTM weights / LN affines for the multi-chain kernel."""
    def padT(a):                                # (3, Tc) -> (3, T)
        return jnp.pad(a, ((0, 0), (0, T - a.shape[1])))
    return dict(
        wih0=jnp.stack([b["wih0_t"] for b in branches], axis=0),    # (n,3,12)
        b0=jnp.stack([b["b0"] for b in branches], axis=0),          # (n,1,12)
        whh0=jnp.stack([b["whh0_t"] for b in branches], axis=1),    # (3,n,12)
        wih1=jnp.stack([b["wih1_t"] for b in branches], axis=1),    # (3,n,12)
        whh1=jnp.stack([b["whh1_t"] for b in branches], axis=1),    # (3,n,12)
        b1=jnp.stack([b["b1"][0] for b in branches], axis=0),       # (n,12)
        gamma=jnp.stack([padT(g) for g in ln_gs], axis=0),          # (n,3,T)
        beta=jnp.stack([padT(b) for b in ln_bs], axis=0),           # (n,3,T)
    )


# ----------------------------------------------------------------------------
# Forward pass (mirrors cmodel.forward; all branch tensors stay in (B,3,T)).
# ----------------------------------------------------------------------------
def cmodel_forward(params, x, main, side):
    main = main.astype(jnp.float32)
    side = side.astype(jnp.float32)
    B, _, L = x.shape
    M = main.shape[2]

    # Fold conv bias + BatchNorm (eval) into a scale/shift; reshape conv
    # weights so the whole conv is one (3,9)@(9,L) matmul over shifted taps.
    wmat = jnp.transpose(params["conv_w"], (0, 2, 1)).reshape(3, 9)
    scale = params["bn_gamma"] / jnp.sqrt(params["bn_var"] + BN_EPS)
    shift = (params["conv_b"] - params["bn_mean"]) * scale + params["bn_beta"]

    xp = jnp.pad(x, ((0, 0), (0, 0), (1, 1)))
    xsh = jnp.stack([xp[:, :, 0:L], xp[:, :, 1:L + 1], xp[:, :, 2:L + 2]],
                    axis=1).reshape(B, 9, L)    # tiny (B,9,L) tap tensor

    # Fused conv+BN+LReLU + both projections (x_all never leaves the chip).
    p_main, p_side = front(xsh, wmat, scale.reshape(3, 1), shift.reshape(3, 1),
                           main, side)                    # (B,3,150), (B,3,400)

    # Merged main+side 2-layer LSTM + fused LayerNorm: 4 chains advance
    # together (main chains are zero-padded to 400 steps; their tail outputs
    # are never read), wall time ~400 serial steps instead of 150+400.
    lm, ls = params["main_lstm"], params["side_lstm"]
    x_ms = jnp.concatenate(
        [jnp.pad(p_main, ((0, 0), (0, 0), (0, L - M))), p_side], axis=0)
    cp_ms = _stack_chain_params(
        [lm] * B + [ls] * B,
        [params["main_ln_g_t"]] * B + [params["side_ln_g_t"]] * B,
        [params["main_ln_b_t"]] * B + [params["side_ln_b_t"]] * B, L)
    y_ms = lstm_ln(x_ms, cp_ms, (M,) * B + (L,) * B)      # (2B, 3, 400)
    y_main = y_ms[:B, :, :M]                              # (B, 3, 150)
    y_side = y_ms[B:, :, :]                               # (B, 3, 400)

    # fusion branch: y_main @ main^T + y_side @ side^T (trans_b in-kernel)
    x2 = fuse(y_main, y_side, main, side)                 # (B, 3, 400)

    la = params["all_lstm"]
    cp_all = _stack_chain_params([la] * B,
                                 [params["all_ln_g_t"]] * B,
                                 [params["all_ln_b_t"]] * B, L)
    y_all = lstm_ln(x2, cp_all, (L,) * B)                 # (B, 3, 400)

    return y_main, y_side, y_all


if __name__ == "__main__":
    key = jax.random.PRNGKey(0)
    kp, kx, km, ks = jax.random.split(key, 4)
    params = init_params(kp)

    # Shapes implied by the module: LayerNorm((150,3)) / ((400,3)) fix the
    # sequence lengths; batch kept small.
    B, C, L, M = 2, 3, 400, 150
    x = jax.random.normal(kx, (B, C, L), jnp.float32)     # conv input (NCL)
    main = jax.random.normal(km, (B, L, M), jnp.float32)
    side = jax.random.normal(ks, (B, L, L), jnp.float32)

    fwd = jax.jit(cmodel_forward)
    y_main, y_side, y_all = fwd(params, x, main, side)
    jax.block_until_ready((y_main, y_side, y_all))

    assert y_main.shape == (B, C, M)
    assert y_side.shape == (B, C, L)
    assert y_all.shape == (B, C, L)
    assert bool(jnp.isfinite(y_main).all())
    assert bool(jnp.isfinite(y_side).all())
    assert bool(jnp.isfinite(y_all).all())
    print("KERNEL_OK")
</pallas_src>

<mosaic_0001>
module attributes {stable_mosaic.version = 11 : i64} {
  func.func @front_kernel(%arg0: i32, %arg1: memref<1x9x400xf32, #tpu.memory_space<vmem>>, %arg2: memref<3x9xf32, #tpu.memory_space<vmem>>, %arg3: memref<3x1xf32, #tpu.memory_space<vmem>>, %arg4: memref<3x1xf32, #tpu.memory_space<vmem>>, %arg5: memref<1x400x150xf32, #tpu.memory_space<vmem>>, %arg6: memref<1x400x400xf32, #tpu.memory_space<vmem>>, %arg7: memref<1x3x150xf32, #tpu.memory_space<vmem>>, %arg8: memref<1x3x400xf32, #tpu.memory_space<vmem>>) attributes {dimension_semantics = [#tpu.dimension_semantics<parallel>], iteration_bounds = array<i64: 2>, scalar_prefetch = 0 : i64, scratch_operands = 0 : i64, tpu.core_type = #tpu.core_type<tc>, window_params = [{transform_indices = @transform_0, window_bounds = array<i64: 1, 9, 400>}, {pipeline_mode = #tpu.pipeline_mode<synchronous>, transform_indices = @transform_1, window_bounds = array<i64: 3, 9>}, {pipeline_mode = #tpu.pipeline_mode<synchronous>, transform_indices = @transform_2, window_bounds = array<i64: 3, 1>}, {pipeline_mode = #tpu.pipeline_mode<synchronous>, transform_indices = @transform_3, window_bounds = array<i64: 3, 1>}, {transform_indices = @transform_4, window_bounds = array<i64: 1, 400, 150>}, {transform_indices = @transform_5, window_bounds = array<i64: 1, 400, 400>}, {transform_indices = @transform_6, window_bounds = array<i64: 1, 3, 150>}, {transform_indices = @transform_7, window_bounds = array<i64: 1, 3, 400>}]} {
    %c0 = arith.constant 0 : index
    %c0_0 = arith.constant 0 : index
    %0 = vector.load %arg2[%c0, %c0_0] : memref<3x9xf32, #tpu.memory_space<vmem>>, vector<3x9xf32>
    %c0_1 = arith.constant 0 : index
    %c0_2 = arith.constant 0 : index
    %c0_3 = arith.constant 0 : index
    %1 = vector.load %arg1[%c0_1, %c0_2, %c0_3] : memref<1x9x400xf32, #tpu.memory_space<vmem>>, vector<1x9x400xf32>
    %2 = vector.shape_cast %1 : vector<1x9x400xf32> to vector<9x400xf32>
    %cst = arith.constant dense<0.000000e+00> : vector<3x400xf32>
    %3 = tpu.matmul %0, %2, %cst {dimension_numbers = #tpu.dot_dimension_numbers<[1], [0], [0], [1], [0, 0, 1, 1], [], []>} : vector<3x9xf32>, vector<9x400xf32>, vector<3x400xf32> -> vector<3x400xf32>
    %c0_4 = arith.constant 0 : index
    %c0_5 = arith.constant 0 : index
    %4 = vector.load %arg3[%c0_4, %c0_5] : memref<3x1xf32, #tpu.memory_space<vmem>>, vector<3x1xf32>
    %5 = vector.broadcast %4 : vector<3x1xf32> to vector<3x400xf32>
    %6 = arith.mulf %3, %5 : vector<3x400xf32>
    %c0_6 = arith.constant 0 : index
    %c0_7 = arith.constant 0 : index
    %7 = vector.load %arg4[%c0_6, %c0_7] : memref<3x1xf32, #tpu.memory_space<vmem>>, vector<3x1xf32>
    %8 = vector.broadcast %7 : vector<3x1xf32> to vector<3x400xf32>
    %9 = arith.addf %6, %8 : vector<3x400xf32>
    %cst_8 = arith.constant 0.000000e+00 : f32
    %10 = vector.broadcast %cst_8 : f32 to vector<3x400xf32>
    %11 = arith.cmpf oge, %9, %10 : vector<3x400xf32>
    %cst_9 = arith.constant 0.00999999977 : f32
    %12 = vector.broadcast %cst_9 : f32 to vector<3x400xf32>
    %13 = arith.mulf %12, %9 : vector<3x400xf32>
    %14 = arith.select %11, %9, %13 : vector<3x400xi1>, vector<3x400xf32>
    %c0_10 = arith.constant 0 : index
    %c0_11 = arith.constant 0 : index
    %c0_12 = arith.constant 0 : index
    %15 = vector.load %arg5[%c0_10, %c0_11, %c0_12] : memref<1x400x150xf32, #tpu.memory_space<vmem>>, vector<1x400x150xf32>
    %16 = vector.shape_cast %15 : vector<1x400x150xf32> to vector<400x150xf32>
    %cst_13 = arith.constant dense<0.000000e+00> : vector<3x150xf32>
    %17 = tpu.matmul %14, %16, %cst_13 {dimension_numbers = #tpu.dot_dimension_numbers<[1], [0], [0], [1], [0, 0, 1, 1], [], []>} : vector<3x400xf32>, vector<400x150xf32>, vector<3x150xf32> -> vector<3x150xf32>
    %c0_14 = arith.constant 0 : index
    %c0_15 = arith.constant 0 : index
    %c0_16 = arith.constant 0 : index
    %18 = vector.load %arg7[%c0_14, %c0_15, %c0_16] : memref<1x3x150xf32, #tpu.memory_space<vmem>>, vector<1x3x150xf32>
    %19 = vector.shape_cast %18 : vector<1x3x150xf32> to vector<3x150xf32>
    %20 = vector.shape_cast %17 : vector<3x150xf32> to vector<1x3x150xf32>
    tpu.vector_store %arg7[%c0_14, %c0_15, %c0_16], %20 {strides = array<i32>} : memref<1x3x150xf32, #tpu.memory_space<vmem>>, vector<1x3x150xf32>,
    %c0_17 = arith.constant 0 : index
    %c0_18 = arith.constant 0 : index
    %c0_19 = arith.constant 0 : index
    %21 = vector.load %arg6[%c0_17, %c0_18, %c0_19] : memref<1x400x400xf32, #tpu.memory_space<vmem>>, vector<1x400x400xf32>
    %22 = vector.shape_cast %21 : vector<1x400x400xf32> to vector<400x400xf32>
    %cst_20 = arith.constant dense<0.000000e+00> : vector<3x400xf32>
    %23 = tpu.matmul %14, %22, %cst_20 {dimension_numbers = #tpu.dot_dimension_numbers<[1], [0], [0], [1], [0, 0, 1, 1], [], []>} : vector<3x400xf32>, vector<400x400xf32>, vector<3x400xf32> -> vector<3x400xf32>
    %c0_21 = arith.constant 0 : index
    %c0_22 = arith.constant 0 : index
    %c0_23 = arith.constant 0 : index
    %24 = vector.load %arg8[%c0_21, %c0_22, %c0_23] : memref<1x3x400xf32, #tpu.memory_space<vmem>>, vector<1x3x400xf32>
    %25 = vector.shape_cast %24 : vector<1x3x400xf32> to vector<3x400xf32>
    %26 = vector.shape_cast %23 : vector<3x400xf32> to vector<1x3x400xf32>
    tpu.vector_store %arg8[%c0_21, %c0_22, %c0_23], %26 {strides = array<i32>} : memref<1x3x400xf32, #tpu.memory_space<vmem>>, vector<1x3x400xf32>,
    return
  }
  func.func @transform_0(%arg0: i32) -> (i32, i32, i32) {
    %c0_i32 = arith.constant 0 : i32
    %c0_i32_0 = arith.constant 0 : i32
    %c0_i32_1 = arith.constant 0 : i32
    return %arg0, %c0_i32, %c0_i32_0 : i32, i32, i32
  }
  func.func @transform_1(%arg0: i32) -> (i32, i32) {
    %c0_i32 = arith.constant 0 : i32
    %c0_i32_0 = arith.constant 0 : i32
    %c0_i32_1 = arith.constant 0 : i32
    return %c0_i32, %c0_i32_0 : i32, i32
  }
  func.func @transform_2(%arg0: i32) -> (i32, i32) {
    %c0_i32 = arith.constant 0 : i32
    %c0_i32_0 = arith.constant 0 : i32
    %c0_i32_1 = arith.constant 0 : i32
    return %c0_i32, %c0_i32_0 : i32, i32
  }
  func.func @transform_3(%arg0: i32) -> (i32, i32) {
    %c0_i32 = arith.constant 0 : i32
    %c0_i32_0 = arith.constant 0 : i32
    %c0_i32_1 = arith.constant 0 : i32
    return %c0_i32, %c0_i32_0 : i32, i32
  }
  func.func @transform_4(%arg0: i32) -> (i32, i32, i32) {
    %c0_i32 = arith.constant 0 : i32
    %c0_i32_0 = arith.constant 0 : i32
    %c0_i32_1 = arith.constant 0 : i32
    return %arg0, %c0_i32, %c0_i32_0 : i32, i32, i32
  }
  func.func @transform_5(%arg0: i32) -> (i32, i32, i32) {
    %c0_i32 = arith.constant 0 : i32
    %c0_i32_0 = arith.constant 0 : i32
    %c0_i32_1 = arith.constant 0 : i32
    return %arg0, %c0_i32, %c0_i32_0 : i32, i32, i32
  }
  func.func @transform_6(%arg0: i32) -> (i32, i32, i32) {
    %c0_i32 = arith.constant 0 : i32
    %c0_i32_0 = arith.constant 0 : i32
    %c0_i32_1 = arith.constant 0 : i32
    return %arg0, %c0_i32, %c0_i32_0 : i32, i32, i32
  }
  func.func @transform_7(%arg0: i32) -> (i32, i32, i32) {
    %c0_i32 = arith.constant 0 : i32
    %c0_i32_0 = arith.constant 0 : i32
    %c0_i32_1 = arith.constant 0 : i32
    return %arg0, %c0_i32, %c0_i32_0 : i32, i32, i32
  }
}

module attributes {stable_mosaic.version = 11 : i64} {
  func.func @lstm_ln_kernel(%arg0: i32, %arg1: memref<2x3x400xf32, #tpu.memory_space<vmem>>, %arg2: memref<2x3x12xf32, #tpu.memory_space<vmem>>, %arg3: memref<2x1x12xf32, #tpu.memory_space<vmem>>, %arg4: memref<3x2x12xf32, #tpu.memory_space<vmem>>, %arg5: memref<3x2x12xf32, #tpu.memory_space<vmem>>, %arg6: memref<3x2x12xf32, #tpu.memory_space<vmem>>, %arg7: memref<2x12xf32, #tpu.memory_space<vmem>>, %arg8: memref<2x3x400xf32, #tpu.memory_space<vmem>>, %arg9: memref<2x3x400xf32, #tpu.memory_space<vmem>>, %arg10: memref<2x3x400xf32, #tpu.memory_space<vmem>>, %arg11: memref<2x400x12xf32, #tpu.memory_space<vmem>>, %arg12: memref<2x400x3xf32, #tpu.memory_space<vmem>>) attributes {dimension_semantics = [#tpu.dimension_semantics<arbitrary>], iteration_bounds = array<i64: 1>, scalar_prefetch = 0 : i64, scratch_operands = 2 : i64, tpu.core_type = #tpu.core_type<tc>, window_params = [{pipeline_mode = #tpu.pipeline_mode<synchronous>, transform_indices = @transform_0, window_bounds = array<i64: 2, 3, 400>}, {pipeline_mode = #tpu.pipeline_mode<synchronous>, transform_indices = @transform_1, window_bounds = array<i64: 2, 3, 12>}, {pipeline_mode = #tpu.pipeline_mode<synchronous>, transform_indices = @transform_2, window_bounds = array<i64: 2, 1, 12>}, {pipeline_mode = #tpu.pipeline_mode<synchronous>, transform_indices = @transform_3, window_bounds = array<i64: 3, 2, 12>}, {pipeline_mode = #tpu.pipeline_mode<synchronous>, transform_indices = @transform_4, window_bounds = array<i64: 3, 2, 12>}, {pipeline_mode = #tpu.pipeline_mode<synchronous>, transform_indices = @transform_5, window_bounds = array<i64: 3, 2, 12>}, {pipeline_mode = #tpu.pipeline_mode<synchronous>, transform_indices = @transform_6, window_bounds = array<i64: 2, 12>}, {pipeline_mode = #tpu.pipeline_mode<synchronous>, transform_indices = @transform_7, window_bounds = array<i64: 2, 3, 400>}, {pipeline_mode = #tpu.pipeline_mode<synchronous>, transform_indices = @transform_8, window_bounds = array<i64: 2, 3, 400>}, {pipeline_mode = #tpu.pipeline_mode<synchronous>, transform_indices = @transform_9, window_bounds = array<i64: 2, 3, 400>}]} {
    %c0 = arith.constant 0 : index
    %c0_0 = arith.constant 0 : index
    %c0_1 = arith.constant 0 : index
    %0 = vector.load %arg1[%c0, %c0_0, %c0_1] : memref<2x3x400xf32, #tpu.memory_space<vmem>>, vector<1x3x400xf32>
    %1 = vector.shape_cast %0 : vector<1x3x400xf32> to vector<3x400xf32>
    %2 = tpu.transpose %1, [1, 0] : vector<3x400xf32> -> vector<400x3xf32>
    %c0_2 = arith.constant 0 : index
    %c0_3 = arith.constant 0 : index
    %c0_4 = arith.constant 0 : index
    %3 = vector.load %arg2[%c0_2, %c0_3, %c0_4] : memref<2x3x12xf32, #tpu.memory_space<vmem>>, vector<1x3x12xf32>
    %4 = vector.shape_cast %3 : vector<1x3x12xf32> to vector<3x12xf32>
    %cst = arith.constant dense<0.000000e+00> : vector<400x12xf32>
    %5 = tpu.matmul %2, %4, %cst {dimension_numbers = #tpu.dot_dimension_numbers<[1], [0], [0], [1], [0, 0, 1, 1], [], []>} : vector<400x3xf32>, vector<3x12xf32>, vector<400x12xf32> -> vector<400x12xf32>
    %c0_5 = arith.constant 0 : index
    %c0_6 = arith.constant 0 : index
    %c0_7 = arith.constant 0 : index
    %6 = vector.load %arg3[%c0_5, %c0_6, %c0_7] : memref<2x1x12xf32, #tpu.memory_space<vmem>>, vector<1x1x12xf32>
    %7 = vector.shape_cast %6 : vector<1x1x12xf32> to vector<1x12xf32>
    %8 = vector.broadcast %7 : vector<1x12xf32> to vector<400x12xf32>
    %9 = arith.addf %5, %8 : vector<400x12xf32>
    %c0_8 = arith.constant 0 : index
    %c0_9 = arith.constant 0 : index
    %c0_10 = arith.constant 0 : index
    %10 = vector.load %arg11[%c0_8, %c0_9, %c0_10] : memref<2x400x12xf32, #tpu.memory_space<vmem>>, vector<1x400x12xf32>
    %11 = vector.shape_cast %10 : vector<1x400x12xf32> to vector<400x12xf32>
    %12 = vector.shape_cast %9 : vector<400x12xf32> to vector<1x400x12xf32>
    tpu.vector_store %arg11[%c0_8, %c0_9, %c0_10], %12 {strides = array<i32>} : memref<2x400x12xf32, #tpu.memory_space<vmem>>, vector<1x400x12xf32>,
    %c1 = arith.constant 1 : index
    %c0_11 = arith.constant 0 : index
    %c0_12 = arith.constant 0 : index
    %13 = vector.load %arg1[%c1, %c0_11, %c0_12] : memref<2x3x400xf32, #tpu.memory_space<vmem>>, vector<1x3x400xf32>
    %14 = vector.shape_cast %13 : vector<1x3x400xf32> to vector<3x400xf32>
    %15 = tpu.transpose %14, [1, 0] : vector<3x400xf32> -> vector<400x3xf32>
    %c1_13 = arith.constant 1 : index
    %c0_14 = arith.constant 0 : index
    %c0_15 = arith.constant 0 : index
    %16 = vector.load %arg2[%c1_13, %c0_14, %c0_15] : memref<2x3x12xf32, #tpu.memory_space<vmem>>, vector<1x3x12xf32>
    %17 = vector.shape_cast %16 : vector<1x3x12xf32> to vector<3x12xf32>
    %cst_16 = arith.constant dense<0.000000e+00> : vector<400x12xf32>
    %18 = tpu.matmul %15, %17, %cst_16 {dimension_numbers = #tpu.dot_dimension_numbers<[1], [0], [0], [1], [0, 0, 1, 1], [], []>} : vector<400x3xf32>, vector<3x12xf32>, vector<400x12xf32> -> vector<400x12xf32>
    %c1_17 = arith.constant 1 : index
    %c0_18 = arith.constant 0 : index
    %c0_19 = arith.constant 0 : index
    %19 = vector.load %arg3[%c1_17, %c0_18, %c0_19] : memref<2x1x12xf32, #tpu.memory_space<vmem>>, vector<1x1x12xf32>
    %20 = vector.shape_cast %19 : vector<1x1x12xf32> to vector<1x12xf32>
    %21 = vector.broadcast %20 : vector<1x12xf32> to vector<400x12xf32>
    %22 = arith.addf %18, %21 : vector<400x12xf32>
    %c1_20 = arith.constant 1 : index
    %c0_21 = arith.constant 0 : index
    %c0_22 = arith.constant 0 : index
    %23 = vector.load %arg11[%c1_20, %c0_21, %c0_22] : memref<2x400x12xf32, #tpu.memory_space<vmem>>, vector<1x400x12xf32>
    %24 = vector.shape_cast %23 : vector<1x400x12xf32> to vector<400x12xf32>
    %25 = vector.shape_cast %22 : vector<400x12xf32> to vector<1x400x12xf32>
    tpu.vector_store %arg11[%c1_20, %c0_21, %c0_22], %25 {strides = array<i32>} : memref<2x400x12xf32, #tpu.memory_space<vmem>>, vector<1x400x12xf32>,
    %cst_23 = arith.constant 0.000000e+00 : f32
    %26 = vector.broadcast %cst_23 : f32 to vector<2x3x400xf32>
    %c0_24 = arith.constant 0 : index
    %c0_25 = arith.constant 0 : index
    %c0_26 = arith.constant 0 : index
    %27 = vector.load %arg10[%c0_24, %c0_25, %c0_26] : memref<2x3x400xf32, #tpu.memory_space<vmem>>, vector<2x3x400xf32>
    tpu.vector_store %arg10[%c0_24, %c0_25, %c0_26], %26 {strides = array<i32>} : memref<2x3x400xf32, #tpu.memory_space<vmem>>, vector<2x3x400xf32>,
    %c0_27 = arith.constant 0 : index
    %c0_28 = arith.constant 0 : index
    %c0_29 = arith.constant 0 : index
    %28 = vector.load %arg4[%c0_27, %c0_28, %c0_29] : memref<3x2x12xf32, #tpu.memory_space<vmem>>, vector<3x2x12xf32>
    %c0_30 = arith.constant 0 : index
    %c0_31 = arith.constant 0 : index
    %c0_32 = arith.constant 0 : index
    %29 = vector.load %arg5[%c0_30, %c0_31, %c0_32] : memref<3x2x12xf32, #tpu.memory_space<vmem>>, vector<3x2x12xf32>
    %c0_33 = arith.constant 0 : index
    %c0_34 = arith.constant 0 : index
    %c0_35 = arith.constant 0 : index
    %30 = vector.load %arg6[%c0_33, %c0_34, %c0_35] : memref<3x2x12xf32, #tpu.memory_space<vmem>>, vector<3x2x12xf32>
    %c0_36 = arith.constant 0 : index
    %c0_37 = arith.constant 0 : index
    %31 = vector.load %arg7[%c0_36, %c0_37] : memref<2x12xf32, #tpu.memory_space<vmem>>, vector<2x12xf32>
    %cst_38 = arith.constant 0.000000e+00 : f32
    %32 = vector.broadcast %cst_38 : f32 to vector<2x3xf32>
    %c0_i32 = arith.constant 0 : i32
    %c100_i32 = arith.constant 100 : i32
    %33 = arith.addi %c0_i32, %c100_i32 : i32
    %c1_i32 = arith.constant 1 : i32
    %34:4 = scf.for %arg13 = %c0_i32 to %33 step %c1_i32 iter_args(%arg14 = %32, %arg15 = %32, %arg16 = %32, %arg17 = %32) -> (vector<2x3xf32>, vector<2x3xf32>, vector<2x3xf32>, vector<2x3xf32>)  : i32 {
      %c4_i32 = arith.constant 4 : i32
      %93 = arith.muli %arg13, %c4_i32 : i32
      %c0_i32_74 = arith.constant 0 : i32
      %94 = arith.addi %93, %c0_i32_74 : i32
      %c0_75 = arith.constant 0 : index
      %95 = arith.index_cast %94 : i32 to index
      %c0_76 = arith.constant 0 : index
      %96 = vector.load %arg11[%c0_75, %95, %c0_76] : memref<2x400x12xf32, #tpu.memory_space<vmem>>, vector<1x1x12xf32>
      %97 = vector.shape_cast %96 : vector<1x1x12xf32> to vector<1x12xf32>
      %c1_77 = arith.constant 1 : index
      %98 = arith.index_cast %94 : i32 to index
      %c0_78 = arith.constant 0 : index
      %99 = vector.load %arg11[%c1_77, %98, %c0_78] : memref<2x400x12xf32, #tpu.memory_space<vmem>>, vector<1x1x12xf32>
      %100 = vector.shape_cast %99 : vector<1x1x12xf32> to vector<1x12xf32>
      %101 = tpu.concatenate %97, %100 in 0 : vector<1x12xf32>, vector<1x12xf32> -> vector<2x12xf32>
      %102 = vector.extract_strided_slice %arg14 {offsets = [0, 0], sizes = [2, 1], strides = [1, 1]} : vector<2x3xf32> to vector<2x1xf32>
      %103 = vector.extract_strided_slice %28 {offsets = [0, 0, 0], sizes = [1, 2, 12], strides = [1, 1, 1]} : vector<3x2x12xf32> to vector<1x2x12xf32>
      %104 = vector.shape_cast %103 : vector<1x2x12xf32> to vector<2x12xf32>
      %105 = vector.broadcast %102 : vector<2x1xf32> to vector<2x12xf32>
      %106 = arith.mulf %105, %104 : vector<2x12xf32>
      %107 = vector.extract_strided_slice %arg14 {offsets = [0, 1], sizes = [2, 1], strides = [1, 1]} : vector<2x3xf32> to vector<2x1xf32>
      %108 = vector.extract_strided_slice %28 {offsets = [1, 0, 0], sizes = [1, 2, 12], strides = [1, 1, 1]} : vector<3x2x12xf32> to vector<1x2x12xf32>
      %109 = vector.shape_cast %108 : vector<1x2x12xf32> to vector<2x12xf32>
      %110 = vector.broadcast %107 : vector<2x1xf32> to vector<2x12xf32>
      %111 = arith.mulf %110, %109 : vector<2x12xf32>
      %112 = arith.addf %106, %111 : vector<2x12xf32>
      %113 = vector.extract_strided_slice %arg14 {offsets = [0, 2], sizes = [2, 1], strides = [1, 1]} : vector<2x3xf32> to vector<2x1xf32>
      %114 = vector.extract_strided_slice %28 {offsets = [2, 0, 0], sizes = [1, 2, 12], strides = [1, 1, 1]} : vector<3x2x12xf32> to vector<1x2x12xf32>
      %115 = vector.shape_cast %114 : vector<1x2x12xf32> to vector<2x12xf32>
      %116 = vector.broadcast %113 : vector<2x1xf32> to vector<2x12xf32>
      %117 = arith.mulf %116, %115 : vector<2x12xf32>
      %118 = arith.addf %112, %117 : vector<2x12xf32>
      %119 = arith.addf %101, %118 : vector<2x12xf32>
      %120 = vector.extract_strided_slice %119 {offsets = [0, 0], sizes = [2, 9], strides = [1, 1]} : vector<2x12xf32> to vector<2x9xf32>
      %121 = arith.negf %120 : vector<2x9xf32>
      %122 = math.exp %121 : vector<2x9xf32>
      %cst_79 = arith.constant 1.000000e+00 : f32
      %123 = vector.broadcast %cst_79 : f32 to vector<2x9xf32>
      %124 = arith.addf %123, %122 : vector<2x9xf32>
      %125 = arith.divf %123, %124 : vector<2x9xf32>
      %126 = vector.extract_strided_slice %119 {offsets = [0, 9], sizes = [2, 3], strides = [1, 1]} : vector<2x12xf32> to vector<2x3xf32>
      %127 = math.tanh %126 : vector<2x3xf32>
      %128 = vector.extract_strided_slice %125 {offsets = [0, 3], sizes = [2, 3], strides = [1, 1]} : vector<2x9xf32> to vector<2x3xf32>
      %129 = arith.mulf %128, %arg15 : vector<2x3xf32>
      %130 = vector.extract_strided_slice %125 {offsets = [0, 0], sizes = [2, 3], strides = [1, 1]} : vector<2x9xf32> to vector<2x3xf32>
      %131 = arith.mulf %130, %127 : vector<2x3xf32>
      %132 = arith.addf %129, %131 : vector<2x3xf32>
      %133 = vector.extract_strided_slice %125 {offsets = [0, 6], sizes = [2, 3], strides = [1, 1]} : vector<2x9xf32> to vector<2x3xf32>
      %134 = math.tanh %132 : vector<2x3xf32>
      %135 = arith.mulf %133, %134 : vector<2x3xf32>
      %136 = vector.extract_strided_slice %135 {offsets = [0, 0], sizes = [2, 1], strides = [1, 1]} : vector<2x3xf32> to vector<2x1xf32>
      %137 = vector.extract_strided_slice %29 {offsets = [0, 0, 0], sizes = [1, 2, 12], strides = [1, 1, 1]} : vector<3x2x12xf32> to vector<1x2x12xf32>
      %138 = vector.shape_cast %137 : vector<1x2x12xf32> to vector<2x12xf32>
      %139 = vector.broadcast %136 : vector<2x1xf32> to vector<2x12xf32>
      %140 = arith.mulf %139, %138 : vector<2x12xf32>
      %141 = vector.extract_strided_slice %135 {offsets = [0, 1], sizes = [2, 1], strides = [1, 1]} : vector<2x3xf32> to vector<2x1xf32>
      %142 = vector.extract_strided_slice %29 {offsets = [1, 0, 0], sizes = [1, 2, 12], strides = [1, 1, 1]} : vector<3x2x12xf32> to vector<1x2x12xf32>
      %143 = vector.shape_cast %142 : vector<1x2x12xf32> to vector<2x12xf32>
      %144 = vector.broadcast %141 : vector<2x1xf32> to vector<2x12xf32>
      %145 = arith.mulf %144, %143 : vector<2x12xf32>
      %146 = arith.addf %140, %145 : vector<2x12xf32>
      %147 = vector.extract_strided_slice %135 {offsets = [0, 2], sizes = [2, 1], strides = [1, 1]} : vector<2x3xf32> to vector<2x1xf32>
      %148 = vector.extract_strided_slice %29 {offsets = [2, 0, 0], sizes = [1, 2, 12], strides = [1, 1, 1]} : vector<3x2x12xf32> to vector<1x2x12xf32>
      %149 = vector.shape_cast %148 : vector<1x2x12xf32> to vector<2x12xf32>
      %150 = vector.broadcast %147 : vector<2x1xf32> to vector<2x12xf32>
      %151 = arith.mulf %150, %149 : vector<2x12xf32>
      %152 = arith.addf %146, %151 : vector<2x12xf32>
      %153 = arith.addf %31, %152 : vector<2x12xf32>
      %154 = vector.extract_strided_slice %arg16 {offsets = [0, 0], sizes = [2, 1], strides = [1, 1]} : vector<2x3xf32> to vector<2x1xf32>
      %155 = vector.extract_strided_slice %30 {offsets = [0, 0, 0], sizes = [1, 2, 12], strides = [1, 1, 1]} : vector<3x2x12xf32> to vector<1x2x12xf32>
      %156 = vector.shape_cast %155 : vector<1x2x12xf32> to vector<2x12xf32>
      %157 = vector.broadcast %154 : vector<2x1xf32> to vector<2x12xf32>
      %158 = arith.mulf %157, %156 : vector<2x12xf32>
      %159 = vector.extract_strided_slice %arg16 {offsets = [0, 1], sizes = [2, 1], strides = [1, 1]} : vector<2x3xf32> to vector<2x1xf32>
      %160 = vector.extract_strided_slice %30 {offsets = [1, 0, 0], sizes = [1, 2, 12], strides = [1, 1, 1]} : vector<3x2x12xf32> to vector<1x2x12xf32>
      %161 = vector.shape_cast %160 : vector<1x2x12xf32> to vector<2x12xf32>
      %162 = vector.broadcast %159 : vector<2x1xf32> to vector<2x12xf32>
      %163 = arith.mulf %162, %161 : vector<2x12xf32>
      %164 = arith.addf %158, %163 : vector<2x12xf32>
      %165 = vector.extract_strided_slice %arg16 {offsets = [0, 2], sizes = [2, 1], strides = [1, 1]} : vector<2x3xf32> to vector<2x1xf32>
      %166 = vector.extract_strided_slice %30 {offsets = [2, 0, 0], sizes = [1, 2, 12], strides = [1, 1, 1]} : vector<3x2x12xf32> to vector<1x2x12xf32>
      %167 = vector.shape_cast %166 : vector<1x2x12xf32> to vector<2x12xf32>
      %168 = vector.broadcast %165 : vector<2x1xf32> to vector<2x12xf32>
      %169 = arith.mulf %168, %167 : vector<2x12xf32>
      %170 = arith.addf %164, %169 : vector<2x12xf32>
      %171 = arith.addf %153, %170 : vector<2x12xf32>
      %172 = vector.extract_strided_slice %171 {offsets = [0, 0], sizes = [2, 9], strides = [1, 1]} : vector<2x12xf32> to vector<2x9xf32>
      %173 = arith.negf %172 : vector<2x9xf32>
      %174 = math.exp %173 : vector<2x9xf32>
      %cst_80 = arith.constant 1.000000e+00 : f32
      %175 = vector.broadcast %cst_80 : f32 to vector<2x9xf32>
      %176 = arith.addf %175, %174 : vector<2x9xf32>
      %177 = arith.divf %175, %176 : vector<2x9xf32>
      %178 = vector.extract_strided_slice %171 {offsets = [0, 9], sizes = [2, 3], strides = [1, 1]} : vector<2x12xf32> to vector<2x3xf32>
      %179 = math.tanh %178 : vector<2x3xf32>
      %180 = vector.extract_strided_slice %177 {offsets = [0, 3], sizes = [2, 3], strides = [1, 1]} : vector<2x9xf32> to vector<2x3xf32>
      %181 = arith.mulf %180, %arg17 : vector<2x3xf32>
      %182 = vector.extract_strided_slice %177 {offsets = [0, 0], sizes = [2, 3], strides = [1, 1]} : vector<2x9xf32> to vector<2x3xf32>
      %183 = arith.mulf %182, %179 : vector<2x3xf32>
      %184 = arith.addf %181, %183 : vector<2x3xf32>
      %185 = vector.extract_strided_slice %177 {offsets = [0, 6], sizes = [2, 3], strides = [1, 1]} : vector<2x9xf32> to vector<2x3xf32>
      %186 = math.tanh %184 : vector<2x3xf32>
      %187 = arith.mulf %185, %186 : vector<2x3xf32>
      %188 = vector.extract_strided_slice %187 {offsets = [0, 0], sizes = [1, 3], strides = [1, 1]} : vector<2x3xf32> to vector<1x3xf32>
      %c0_81 = arith.constant 0 : index
      %189 = arith.index_cast %94 : i32 to index
      %c0_82 = arith.constant 0 : index
      %190 = vector.load %arg12[%c0_81, %189, %c0_82] : memref<2x400x3xf32, #tpu.memory_space<vmem>>, vector<1x1x3xf32>
      %191 = vector.shape_cast %190 : vector<1x1x3xf32> to vector<1x3xf32>
      %192 = vector.shape_cast %188 : vector<1x3xf32> to vector<1x1x3xf32>
      tpu.vector_store %arg12[%c0_81, %189, %c0_82], %192 {strides = array<i32>} : memref<2x400x3xf32, #tpu.memory_space<vmem>>, vector<1x1x3xf32>,
      %193 = vector.extract_strided_slice %187 {offsets = [1, 0], sizes = [1, 3], strides = [1, 1]} : vector<2x3xf32> to vector<1x3xf32>
      %c1_83 = arith.constant 1 : index
      %194 = arith.index_cast %94 : i32 to index
      %c0_84 = arith.constant 0 : index
      %195 = vector.load %arg12[%c1_83, %194, %c0_84] : memref<2x400x3xf32, #tpu.memory_space<vmem>>, vector<1x1x3xf32>
      %196 = vector.shape_cast %195 : vector<1x1x3xf32> to vector<1x3xf32>
      %197 = vector.shape_cast %193 : vector<1x3xf32> to vector<1x1x3xf32>
      tpu.vector_store %arg12[%c1_83, %194, %c0_84], %197 {strides = array<i32>} : memref<2x400x3xf32, #tpu.memory_space<vmem>>, vector<1x1x3xf32>,
      %c4_i32_85 = arith.constant 4 : i32
      %198 = arith.muli %arg13, %c4_i32_85 : i32
      %c1_i32_86 = arith.constant 1 : i32
      %199 = arith.addi %198, %c1_i32_86 : i32
      %c0_87 = arith.constant 0 : index
      %200 = arith.index_cast %199 : i32 to index
      %c0_88 = arith.constant 0 : index
      %201 = vector.load %arg11[%c0_87, %200, %c0_88] : memref<2x400x12xf32, #tpu.memory_space<vmem>>, vector<1x1x12xf32>
      %202 = vector.shape_cast %201 : vector<1x1x12xf32> to vector<1x12xf32>
      %c1_89 = arith.constant 1 : index
      %203 = arith.index_cast %199 : i32 to index
      %c0_90 = arith.constant 0 : index
      %204 = vector.load %arg11[%c1_89, %203, %c0_90] : memref<2x400x12xf32, #tpu.memory_space<vmem>>, vector<1x1x12xf32>
      %205 = vector.shape_cast %204 : vector<1x1x12xf32> to vector<1x12xf32>
      %206 = tpu.concatenate %202, %205 in 0 : vector<1x12xf32>, vector<1x12xf32> -> vector<2x12xf32>
      %207 = vector.extract_strided_slice %135 {offsets = [0, 0], sizes = [2, 1], strides = [1, 1]} : vector<2x3xf32> to vector<2x1xf32>
      %208 = vector.extract_strided_slice %28 {offsets = [0, 0, 0], sizes = [1, 2, 12], strides = [1, 1, 1]} : vector<3x2x12xf32> to vector<1x2x12xf32>
      %209 = vector.shape_cast %208 : vector<1x2x12xf32> to vector<2x12xf32>
      %210 = vector.broadcast %207 : vector<2x1xf32> to vector<2x12xf32>
      %211 = arith.mulf %210, %209 : vector<2x12xf32>
      %212 = vector.extract_strided_slice %135 {offsets = [0, 1], sizes = [2, 1], strides = [1, 1]} : vector<2x3xf32> to vector<2x1xf32>
      %213 = vector.extract_strided_slice %28 {offsets = [1, 0, 0], sizes = [1, 2, 12], strides = [1, 1, 1]} : vector<3x2x12xf32> to vector<1x2x12xf32>
      %214 = vector.shape_cast %213 : vector<1x2x12xf32> to vector<2x12xf32>
      %215 = vector.broadcast %212 : vector<2x1xf32> to vector<2x12xf32>
      %216 = arith.mulf %215, %214 : vector<2x12xf32>
      %217 = arith.addf %211, %216 : vector<2x12xf32>
      %218 = vector.extract_strided_slice %135 {offsets = [0, 2], sizes = [2, 1], strides = [1, 1]} : vector<2x3xf32> to vector<2x1xf32>
      %219 = vector.extract_strided_slice %28 {offsets = [2, 0, 0], sizes = [1, 2, 12], strides = [1, 1, 1]} : vector<3x2x12xf32> to vector<1x2x12xf32>
      %220 = vector.shape_cast %219 : vector<1x2x12xf32> to vector<2x12xf32>
      %221 = vector.broadcast %218 : vector<2x1xf32> to vector<2x12xf32>
      %222 = arith.mulf %221, %220 : vector<2x12xf32>
      %223 = arith.addf %217, %222 : vector<2x12xf32>
      %224 = arith.addf %206, %223 : vector<2x12xf32>
      %225 = vector.extract_strided_slice %224 {offsets = [0, 0], sizes = [2, 9], strides = [1, 1]} : vector<2x12xf32> to vector<2x9xf32>
      %226 = arith.negf %225 : vector<2x9xf32>
      %227 = math.exp %226 : vector<2x9xf32>
      %cst_91 = arith.constant 1.000000e+00 : f32
      %228 = vector.broadcast %cst_91 : f32 to vector<2x9xf32>
      %229 = arith.addf %228, %227 : vector<2x9xf32>
      %230 = arith.divf %228, %229 : vector<2x9xf32>
      %231 = vector.extract_strided_slice %224 {offsets = [0, 9], sizes = [2, 3], strides = [1, 1]} : vector<2x12xf32> to vector<2x3xf32>
      %232 = math.tanh %231 : vector<2x3xf32>
      %233 = vector.extract_strided_slice %230 {offsets = [0, 3], sizes = [2, 3], strides = [1, 1]} : vector<2x9xf32> to vector<2x3xf32>
      %234 = arith.mulf %233, %132 : vector<2x3xf32>
      %235 = vector.extract_strided_slice %230 {offsets = [0, 0], sizes = [2, 3], strides = [1, 1]} : vector<2x9xf32> to vector<2x3xf32>
      %236 = arith.mulf %235, %232 : vector<2x3xf32>
      %237 = arith.addf %234, %236 : vector<2x3xf32>
      %238 = vector.extract_strided_slice %230 {offsets = [0, 6], sizes = [2, 3], strides = [1, 1]} : vector<2x9xf32> to vector<2x3xf32>
      %239 = math.tanh %237 : vector<2x3xf32>
      %240 = arith.mulf %238, %239 : vector<2x3xf32>
      %241 = vector.extract_strided_slice %240 {offsets = [0, 0], sizes = [2, 1], strides = [1, 1]} : vector<2x3xf32> to vector<2x1xf32>
      %242 = vector.extract_strided_slice %29 {offsets = [0, 0, 0], sizes = [1, 2, 12], strides = [1, 1, 1]} : vector<3x2x12xf32> to vector<1x2x12xf32>
      %243 = vector.shape_cast %242 : vector<1x2x12xf32> to vector<2x12xf32>
      %244 = vector.broadcast %241 : vector<2x1xf32> to vector<2x12xf32>
      %245 = arith.mulf %244, %243 : vector<2x12xf32>
      %246 = vector.extract_strided_slice %240 {offsets = [0, 1], sizes = [2, 1], strides = [1, 1]} : vector<2x3xf32> to vector<2x1xf32>
      %247 = vector.extract_strided_slice %29 {offsets = [1, 0, 0], sizes = [1, 2, 12], strides = [1, 1, 1]} : vector<3x2x12xf32> to vector<1x2x12xf32>
      %248 = vector.shape_cast %247 : vector<1x2x12xf32> to vector<2x12xf32>
      %249 = vector.broadcast %246 : vector<2x1xf32> to vector<2x12xf32>
      %250 = arith.mulf %249, %248 : vector<2x12xf32>
      %251 = arith.addf %245, %250 : vector<2x12xf32>
      %252 = vector.extract_strided_slice %240 {offsets = [0, 2], sizes = [2, 1], strides = [1, 1]} : vector<2x3xf32> to vector<2x1xf32>
      %253 = vector.extract_strided_slice %29 {offsets = [2, 0, 0], sizes = [1, 2, 12], strides = [1, 1, 1]} : vector<3x2x12xf32> to vector<1x2x12xf32>
      %254 = vector.shape_cast %253 : vector<1x2x12xf32> to vector<2x12xf32>
      %255 = vector.broadcast %252 : vector<2x1xf32> to vector<2x12xf32>
      %256 = arith.mulf %255, %254 : vector<2x12xf32>
      %257 = arith.addf %251, %256 : vector<2x12xf32>
      %258 = arith.addf %31, %257 : vector<2x12xf32>
      %259 = vector.extract_strided_slice %187 {offsets = [0, 0], sizes = [2, 1], strides = [1, 1]} : vector<2x3xf32> to vector<2x1xf32>
      %260 = vector.extract_strided_slice %30 {offsets = [0, 0, 0], sizes = [1, 2, 12], strides = [1, 1, 1]} : vector<3x2x12xf32> to vector<1x2x12xf32>
      %261 = vector.shape_cast %260 : vector<1x2x12xf32> to vector<2x12xf32>
      %262 = vector.broadcast %259 : vector<2x1xf32> to vector<2x12xf32>
      %263 = arith.mulf %262, %261 : vector<2x12xf32>
      %264 = vector.extract_strided_slice %187 {offsets = [0, 1], sizes = [2, 1], strides = [1, 1]} : vector<2x3xf32> to vector<2x1xf32>
      %265 = vector.extract_strided_slice %30 {offsets = [1, 0, 0], sizes = [1, 2, 12], strides = [1, 1, 1]} : vector<3x2x12xf32> to vector<1x2x12xf32>
      %266 = vector.shape_cast %265 : vector<1x2x12xf32> to vector<2x12xf32>
      %267 = vector.broadcast %264 : vector<2x1xf32> to vector<2x12xf32>
      %268 = arith.mulf %267, %266 : vector<2x12xf32>
      %269 = arith.addf %263, %268 : vector<2x12xf32>
      %270 = vector.extract_strided_slice %187 {offsets = [0, 2], sizes = [2, 1], strides = [1, 1]} : vector<2x3xf32> to vector<2x1xf32>
      %271 = vector.extract_strided_slice %30 {offsets = [2, 0, 0], sizes = [1, 2, 12], strides = [1, 1, 1]} : vector<3x2x12xf32> to vector<1x2x12xf32>
      %272 = vector.shape_cast %271 : vector<1x2x12xf32> to vector<2x12xf32>
      %273 = vector.broadcast %270 : vector<2x1xf32> to vector<2x12xf32>
      %274 = arith.mulf %273, %272 : vector<2x12xf32>
      %275 = arith.addf %269, %274 : vector<2x12xf32>
      %276 = arith.addf %258, %275 : vector<2x12xf32>
      %277 = vector.extract_strided_slice %276 {offsets = [0, 0], sizes = [2, 9], strides = [1, 1]} : vector<2x12xf32> to vector<2x9xf32>
      %278 = arith.negf %277 : vector<2x9xf32>
      %279 = math.exp %278 : vector<2x9xf32>
      %cst_92 = arith.constant 1.000000e+00 : f32
      %280 = vector.broadcast %cst_92 : f32 to vector<2x9xf32>
      %281 = arith.addf %280, %279 : vector<2x9xf32>
      %282 = arith.divf %280, %281 : vector<2x9xf32>
      %283 = vector.extract_strided_slice %276 {offsets = [0, 9], sizes = [2, 3], strides = [1, 1]} : vector<2x12xf32> to vector<2x3xf32>
      %284 = math.tanh %283 : vector<2x3xf32>
      %285 = vector.extract_strided_slice %282 {offsets = [0, 3], sizes = [2, 3], strides = [1, 1]} : vector<2x9xf32> to vector<2x3xf32>
      %286 = arith.mulf %285, %184 : vector<2x3xf32>
      %287 = vector.extract_strided_slice %282 {offsets = [0, 0], sizes = [2, 3], strides = [1, 1]} : vector<2x9xf32> to vector<2x3xf32>
      %288 = arith.mulf %287, %284 : vector<2x3xf32>
      %289 = arith.addf %286, %288 : vector<2x3xf32>
      %290 = vector.extract_strided_slice %282 {offsets = [0, 6], sizes = [2, 3], strides = [1, 1]} : vector<2x9xf32> to vector<2x3xf32>
      %291 = math.tanh %289 : vector<2x3xf32>
      %292 = arith.mulf %290, %291 : vector<2x3xf32>
      %293 = vector.extract_strided_slice %292 {offsets = [0, 0], sizes = [1, 3], strides = [1, 1]} : vector<2x3xf32> to vector<1x3xf32>
      %c0_93 = arith.constant 0 : index
      %294 = arith.index_cast %199 : i32 to index
      %c0_94 = arith.constant 0 : index
      %295 = vector.load %arg12[%c0_93, %294, %c0_94] : memref<2x400x3xf32, #tpu.memory_space<vmem>>, vector<1x1x3xf32>
      %296 = vector.shape_cast %295 : vector<1x1x3xf32> to vector<1x3xf32>
      %297 = vector.shape_cast %293 : vector<1x3xf32> to vector<1x1x3xf32>
      tpu.vector_store %arg12[%c0_93, %294, %c0_94], %297 {strides = array<i32>} : memref<2x400x3xf32, #tpu.memory_space<vmem>>, vector<1x1x3xf32>,
      %298 = vector.extract_strided_slice %292 {offsets = [1, 0], sizes = [1, 3], strides = [1, 1]} : vector<2x3xf32> to vector<1x3xf32>
      %c1_95 = arith.constant 1 : index
      %299 = arith.index_cast %199 : i32 to index
      %c0_96 = arith.constant 0 : index
      %300 = vector.load %arg12[%c1_95, %299, %c0_96] : memref<2x400x3xf32, #tpu.memory_space<vmem>>, vector<1x1x3xf32>
      %301 = vector.shape_cast %300 : vector<1x1x3xf32> to vector<1x3xf32>
      %302 = vector.shape_cast %298 : vector<1x3xf32> to vector<1x1x3xf32>
      tpu.vector_store %arg12[%c1_95, %299, %c0_96], %302 {strides = array<i32>} : memref<2x400x3xf32, #tpu.memory_space<vmem>>, vector<1x1x3xf32>,
      %c4_i32_97 = arith.constant 4 : i32
      %303 = arith.muli %arg13, %c4_i32_97 : i32
      %c2_i32 = arith.constant 2 : i32
      %304 = arith.addi %303, %c2_i32 : i32
      %c0_98 = arith.constant 0 : index
      %305 = arith.index_cast %304 : i32 to index
      %c0_99 = arith.constant 0 : index
      %306 = vector.load %arg11[%c0_98, %305, %c0_99] : memref<2x400x12xf32, #tpu.memory_space<vmem>>, vector<1x1x12xf32>
      %307 = vector.shape_cast %306 : vector<1x1x12xf32> to vector<1x12xf32>
      %c1_100 = arith.constant 1 : index
      %308 = arith.index_cast %304 : i32 to index
      %c0_101 = arith.constant 0 : index
      %309 = vector.load %arg11[%c1_100, %308, %c0_101] : memref<2x400x12xf32, #tpu.memory_space<vmem>>, vector<1x1x12xf32>
      %310 = vector.shape_cast %309 : vector<1x1x12xf32> to vector<1x12xf32>
      %311 = tpu.concatenate %307, %310 in 0 : vector<1x12xf32>, vector<1x12xf32> -> vector<2x12xf32>
      %312 = vector.extract_strided_slice %240 {offsets = [0, 0], sizes = [2, 1], strides = [1, 1]} : vector<2x3xf32> to vector<2x1xf32>
      %313 = vector.extract_strided_slice %28 {offsets = [0, 0, 0], sizes = [1, 2, 12], strides = [1, 1, 1]} : vector<3x2x12xf32> to vector<1x2x12xf32>
      %314 = vector.shape_cast %313 : vector<1x2x12xf32> to vector<2x12xf32>
      %315 = vector.broadcast %312 : vector<2x1xf32> to vector<2x12xf32>
      %316 = arith.mulf %315, %314 : vector<2x12xf32>
      %317 = vector.extract_strided_slice %240 {offsets = [0, 1], sizes = [2, 1], strides = [1, 1]} : vector<2x3xf32> to vector<2x1xf32>
      %318 = vector.extract_strided_slice %28 {offsets = [1, 0, 0], sizes = [1, 2, 12], strides = [1, 1, 1]} : vector<3x2x12xf32> to vector<1x2x12xf32>
      %319 = vector.shape_cast %318 : vector<1x2x12xf32> to vector<2x12xf32>
      %320 = vector.broadcast %317 : vector<2x1xf32> to vector<2x12xf32>
      %321 = arith.mulf %320, %319 : vector<2x12xf32>
      %322 = arith.addf %316, %321 : vector<2x12xf32>
      %323 = vector.extract_strided_slice %240 {offsets = [0, 2], sizes = [2, 1], strides = [1, 1]} : vector<2x3xf32> to vector<2x1xf32>
      %324 = vector.extract_strided_slice %28 {offsets = [2, 0, 0], sizes = [1, 2, 12], strides = [1, 1, 1]} : vector<3x2x12xf32> to vector<1x2x12xf32>
      %325 = vector.shape_cast %324 : vector<1x2x12xf32> to vector<2x12xf32>
      %326 = vector.broadcast %323 : vector<2x1xf32> to vector<2x12xf32>
      %327 = arith.mulf %326, %325 : vector<2x12xf32>
      %328 = arith.addf %322, %327 : vector<2x12xf32>
      %329 = arith.addf %311, %328 : vector<2x12xf32>
      %330 = vector.extract_strided_slice %329 {offsets = [0, 0], sizes = [2, 9], strides = [1, 1]} : vector<2x12xf32> to vector<2x9xf32>
      %331 = arith.negf %330 : vector<2x9xf32>
      %332 = math.exp %331 : vector<2x9xf32>
      %cst_102 = arith.constant 1.000000e+00 : f32
      %333 = vector.broadcast %cst_102 : f32 to vector<2x9xf32>
      %334 = arith.addf %333, %332 : vector<2x9xf32>
      %335 = arith.divf %333, %334 : vector<2x9xf32>
      %336 = vector.extract_strided_slice %329 {offsets = [0, 9], sizes = [2, 3], strides = [1, 1]} : vector<2x12xf32> to vector<2x3xf32>
      %337 = math.tanh %336 : vector<2x3xf32>
      %338 = vector.extract_strided_slice %335 {offsets = [0, 3], sizes = [2, 3], strides = [1, 1]} : vector<2x9xf32> to vector<2x3xf32>
      %339 = arith.mulf %338, %237 : vector<2x3xf32>
      %340 = vector.extract_strided_slice %335 {offsets = [0, 0], sizes = [2, 3], strides = [1, 1]} : vector<2x9xf32> to vector<2x3xf32>
      %341 = arith.mulf %340, %337 : vector<2x3xf32>
      %342 = arith.addf %339, %341 : vector<2x3xf32>
      %343 = vector.extract_strided_slice %335 {offsets = [0, 6], sizes = [2, 3], strides = [1, 1]} : vector<2x9xf32> to vector<2x3xf32>
      %344 = math.tanh %342 : vector<2x3xf32>
      %345 = arith.mulf %343, %344 : vector<2x3xf32>
      %346 = vector.extract_strided_slice %345 {offsets = [0, 0], sizes = [2, 1], strides = [1, 1]} : vector<2x3xf32> to vector<2x1xf32>
      %347 = vector.extract_strided_slice %29 {offsets = [0, 0, 0], sizes = [1, 2, 12], strides = [1, 1, 1]} : vector<3x2x12xf32> to vector<1x2x12xf32>
      %348 = vector.shape_cast %347 : vector<1x2x12xf32> to vector<2x12xf32>
      %349 = vector.broadcast %346 : vector<2x1xf32> to vector<2x12xf32>
      %350 = arith.mulf %349, %348 : vector<2x12xf32>
      %351 = vector.extract_strided_slice %345 {offsets = [0, 1], sizes = [2, 1], strides = [1, 1]} : vector<2x3xf32> to vector<2x1xf32>
      %352 = vector.extract_strided_slice %29 {offsets = [1, 0, 0], sizes = [1, 2, 12], strides = [1, 1, 1]} : vector<3x2x12xf32> to vector<1x2x12xf32>
      %353 = vector.shape_cast %352 : vector<1x2x12xf32> to vector<2x12xf32>
      %354 = vector.broadcast %351 : vector<2x1xf32> to vector<2x12xf32>
      %355 = arith.mulf %354, %353 : vector<2x12xf32>
      %356 = arith.addf %350, %355 : vector<2x12xf32>
      %357 = vector.extract_strided_slice %345 {offsets = [0, 2], sizes = [2, 1], strides = [1, 1]} : vector<2x3xf32> to vector<2x1xf32>
      %358 = vector.extract_strided_slice %29 {offsets = [2, 0, 0], sizes = [1, 2, 12], strides = [1, 1, 1]} : vector<3x2x12xf32> to vector<1x2x12xf32>
      %359 = vector.shape_cast %358 : vector<1x2x12xf32> to vector<2x12xf32>
      %360 = vector.broadcast %357 : vector<2x1xf32> to vector<2x12xf32>
      %361 = arith.mulf %360, %359 : vector<2x12xf32>
      %362 = arith.addf %356, %361 : vector<2x12xf32>
      %363 = arith.addf %31, %362 : vector<2x12xf32>
      %364 = vector.extract_strided_slice %292 {offsets = [0, 0], sizes = [2, 1], strides = [1, 1]} : vector<2x3xf32> to vector<2x1xf32>
      %365 = vector.extract_strided_slice %30 {offsets = [0, 0, 0], sizes = [1, 2, 12], strides = [1, 1, 1]} : vector<3x2x12xf32> to vector<1x2x12xf32>
      %366 = vector.shape_cast %365 : vector<1x2x12xf32> to vector<2x12xf32>
      %367 = vector.broadcast %364 : vector<2x1xf32> to vector<2x12xf32>
      %368 = arith.mulf %367, %366 : vector<2x12xf32>
      %369 = vector.extract_strided_slice %292 {offsets = [0, 1], sizes = [2, 1], strides = [1, 1]} : vector<2x3xf32> to vector<2x1xf32>
      %370 = vector.extract_strided_slice %30 {offsets = [1, 0, 0], sizes = [1, 2, 12], strides = [1, 1, 1]} : vector<3x2x12xf32> to vector<1x2x12xf32>
      %371 = vector.shape_cast %370 : vector<1x2x12xf32> to vector<2x12xf32>
      %372 = vector.broadcast %369 : vector<2x1xf32> to vector<2x12xf32>
      %373 = arith.mulf %372, %371 : vector<2x12xf32>
      %374 = arith.addf %368, %373 : vector<2x12xf32>
      %375 = vector.extract_strided_slice %292 {offsets = [0, 2], sizes = [2, 1], strides = [1, 1]} : vector<2x3xf32> to vector<2x1xf32>
      %376 = vector.extract_strided_slice %30 {offsets = [2, 0, 0], sizes = [1, 2, 12], strides = [1, 1, 1]} : vector<3x2x12xf32> to vector<1x2x12xf32>
      %377 = vector.shape_cast %376 : vector<1x2x12xf32> to vector<2x12xf32>
      %378 = vector.broadcast %375 : vector<2x1xf32> to vector<2x12xf32>
      %379 = arith.mulf %378, %377 : vector<2x12xf32>
      %380 = arith.addf %374, %379 : vector<2x12xf32>
      %381 = arith.addf %363, %380 : vector<2x12xf32>
      %382 = vector.extract_strided_slice %381 {offsets = [0, 0], sizes = [2, 9], strides = [1, 1]} : vector<2x12xf32> to vector<2x9xf32>
      %383 = arith.negf %382 : vector<2x9xf32>
      %384 = math.exp %383 : vector<2x9xf32>
      %cst_103 = arith.constant 1.000000e+00 : f32
      %385 = vector.broadcast %cst_103 : f32 to vector<2x9xf32>
      %386 = arith.addf %385, %384 : vector<2x9xf32>
      %387 = arith.divf %385, %386 : vector<2x9xf32>
      %388 = vector.extract_strided_slice %381 {offsets = [0, 9], sizes = [2, 3], strides = [1, 1]} : vector<2x12xf32> to vector<2x3xf32>
      %389 = math.tanh %388 : vector<2x3xf32>
      %390 = vector.extract_strided_slice %387 {offsets = [0, 3], sizes = [2, 3], strides = [1, 1]} : vector<2x9xf32> to vector<2x3xf32>
      %391 = arith.mulf %390, %289 : vector<2x3xf32>
      %392 = vector.extract_strided_slice %387 {offsets = [0, 0], sizes = [2, 3], strides = [1, 1]} : vector<2x9xf32> to vector<2x3xf32>
      %393 = arith.mulf %392, %389 : vector<2x3xf32>
      %394 = arith.addf %391, %393 : vector<2x3xf32>
      %395 = vector.extract_strided_slice %387 {offsets = [0, 6], sizes = [2, 3], strides = [1, 1]} : vector<2x9xf32> to vector<2x3xf32>
      %396 = math.tanh %394 : vector<2x3xf32>
      %397 = arith.mulf %395, %396 : vector<2x3xf32>
      %398 = vector.extract_strided_slice %397 {offsets = [0, 0], sizes = [1, 3], strides = [1, 1]} : vector<2x3xf32> to vector<1x3xf32>
      %c0_104 = arith.constant 0 : index
      %399 = arith.index_cast %304 : i32 to index
      %c0_105 = arith.constant 0 : index
      %400 = vector.load %arg12[%c0_104, %399, %c0_105] : memref<2x400x3xf32, #tpu.memory_space<vmem>>, vector<1x1x3xf32>
      %401 = vector.shape_cast %400 : vector<1x1x3xf32> to vector<1x3xf32>
      %402 = vector.shape_cast %398 : vector<1x3xf32> to vector<1x1x3xf32>
      tpu.vector_store %arg12[%c0_104, %399, %c0_105], %402 {strides = array<i32>} : memref<2x400x3xf32, #tpu.memory_space<vmem>>, vector<1x1x3xf32>,
      %403 = vector.extract_strided_slice %397 {offsets = [1, 0], sizes = [1, 3], strides = [1, 1]} : vector<2x3xf32> to vector<1x3xf32>
      %c1_106 = arith.constant 1 : index
      %404 = arith.index_cast %304 : i32 to index
      %c0_107 = arith.constant 0 : index
      %405 = vector.load %arg12[%c1_106, %404, %c0_107] : memref<2x400x3xf32, #tpu.memory_space<vmem>>, vector<1x1x3xf32>
      %406 = vector.shape_cast %405 : vector<1x1x3xf32> to vector<1x3xf32>
      %407 = vector.shape_cast %403 : vector<1x3xf32> to vector<1x1x3xf32>
      tpu.vector_store %arg12[%c1_106, %404, %c0_107], %407 {strides = array<i32>} : memref<2x400x3xf32, #tpu.memory_space<vmem>>, vector<1x1x3xf32>,
      %c4_i32_108 = arith.constant 4 : i32
      %408 = arith.muli %arg13, %c4_i32_108 : i32
      %c3_i32 = arith.constant 3 : i32
      %409 = arith.addi %408, %c3_i32 : i32
      %c0_109 = arith.constant 0 : index
      %410 = arith.index_cast %409 : i32 to index
      %c0_110 = arith.constant 0 : index
      %411 = vector.load %arg11[%c0_109, %410, %c0_110] : memref<2x400x12xf32, #tpu.memory_space<vmem>>, vector<1x1x12xf32>
      %412 = vector.shape_cast %411 : vector<1x1x12xf32> to vector<1x12xf32>
      %c1_111 = arith.constant 1 : index
      %413 = arith.index_cast %409 : i32 to index
      %c0_112 = arith.constant 0 : index
      %414 = vector.load %arg11[%c1_111, %413, %c0_112] : memref<2x400x12xf32, #tpu.memory_space<vmem>>, vector<1x1x12xf32>
      %415 = vector.shape_cast %414 : vector<1x1x12xf32> to vector<1x12xf32>
      %416 = tpu.concatenate %412, %415 in 0 : vector<1x12xf32>, vector<1x12xf32> -> vector<2x12xf32>
      %417 = vector.extract_strided_slice %345 {offsets = [0, 0], sizes = [2, 1], strides = [1, 1]} : vector<2x3xf32> to vector<2x1xf32>
      %418 = vector.extract_strided_slice %28 {offsets = [0, 0, 0], sizes = [1, 2, 12], strides = [1, 1, 1]} : vector<3x2x12xf32> to vector<1x2x12xf32>
      %419 = vector.shape_cast %418 : vector<1x2x12xf32> to vector<2x12xf32>
      %420 = vector.broadcast %417 : vector<2x1xf32> to vector<2x12xf32>
      %421 = arith.mulf %420, %419 : vector<2x12xf32>
      %422 = vector.extract_strided_slice %345 {offsets = [0, 1], sizes = [2, 1], strides = [1, 1]} : vector<2x3xf32> to vector<2x1xf32>
      %423 = vector.extract_strided_slice %28 {offsets = [1, 0, 0], sizes = [1, 2, 12], strides = [1, 1, 1]} : vector<3x2x12xf32> to vector<1x2x12xf32>
      %424 = vector.shape_cast %423 : vector<1x2x12xf32> to vector<2x12xf32>
      %425 = vector.broadcast %422 : vector<2x1xf32> to vector<2x12xf32>
      %426 = arith.mulf %425, %424 : vector<2x12xf32>
      %427 = arith.addf %421, %426 : vector<2x12xf32>
      %428 = vector.extract_strided_slice %345 {offsets = [0, 2], sizes = [2, 1], strides = [1, 1]} : vector<2x3xf32> to vector<2x1xf32>
      %429 = vector.extract_strided_slice %28 {offsets = [2, 0, 0], sizes = [1, 2, 12], strides = [1, 1, 1]} : vector<3x2x12xf32> to vector<1x2x12xf32>
      %430 = vector.shape_cast %429 : vector<1x2x12xf32> to vector<2x12xf32>
      %431 = vector.broadcast %428 : vector<2x1xf32> to vector<2x12xf32>
      %432 = arith.mulf %431, %430 : vector<2x12xf32>
      %433 = arith.addf %427, %432 : vector<2x12xf32>
      %434 = arith.addf %416, %433 : vector<2x12xf32>
      %435 = vector.extract_strided_slice %434 {offsets = [0, 0], sizes = [2, 9], strides = [1, 1]} : vector<2x12xf32> to vector<2x9xf32>
      %436 = arith.negf %435 : vector<2x9xf32>
      %437 = math.exp %436 : vector<2x9xf32>
      %cst_113 = arith.constant 1.000000e+00 : f32
      %438 = vector.broadcast %cst_113 : f32 to vector<2x9xf32>
      %439 = arith.addf %438, %437 : vector<2x9xf32>
      %440 = arith.divf %438, %439 : vector<2x9xf32>
      %441 = vector.extract_strided_slice %434 {offsets = [0, 9], sizes = [2, 3], strides = [1, 1]} : vector<2x12xf32> to vector<2x3xf32>
      %442 = math.tanh %441 : vector<2x3xf32>
      %443 = vector.extract_strided_slice %440 {offsets = [0, 3], sizes = [2, 3], strides = [1, 1]} : vector<2x9xf32> to vector<2x3xf32>
      %444 = arith.mulf %443, %342 : vector<2x3xf32>
      %445 = vector.extract_strided_slice %440 {offsets = [0, 0], sizes = [2, 3], strides = [1, 1]} : vector<2x9xf32> to vector<2x3xf32>
      %446 = arith.mulf %445, %442 : vector<2x3xf32>
      %447 = arith.addf %444, %446 : vector<2x3xf32>
      %448 = vector.extract_strided_slice %440 {offsets = [0, 6], sizes = [2, 3], strides = [1, 1]} : vector<2x9xf32> to vector<2x3xf32>
      %449 = math.tanh %447 : vector<2x3xf32>
      %450 = arith.mulf %448, %449 : vector<2x3xf32>
      %451 = vector.extract_strided_slice %450 {offsets = [0, 0], sizes = [2, 1], strides = [1, 1]} : vector<2x3xf32> to vector<2x1xf32>
      %452 = vector.extract_strided_slice %29 {offsets = [0, 0, 0], sizes = [1, 2, 12], strides = [1, 1, 1]} : vector<3x2x12xf32> to vector<1x2x12xf32>
      %453 = vector.shape_cast %452 : vector<1x2x12xf32> to vector<2x12xf32>
      %454 = vector.broadcast %451 : vector<2x1xf32> to vector<2x12xf32>
      %455 = arith.mulf %454, %453 : vector<2x12xf32>
      %456 = vector.extract_strided_slice %450 {offsets = [0, 1], sizes = [2, 1], strides = [1, 1]} : vector<2x3xf32> to vector<2x1xf32>
      %457 = vector.extract_strided_slice %29 {offsets = [1, 0, 0], sizes = [1, 2, 12], strides = [1, 1, 1]} : vector<3x2x12xf32> to vector<1x2x12xf32>
      %458 = vector.shape_cast %457 : vector<1x2x12xf32> to vector<2x12xf32>
      %459 = vector.broadcast %456 : vector<2x1xf32> to vector<2x12xf32>
      %460 = arith.mulf %459, %458 : vector<2x12xf32>
      %461 = arith.addf %455, %460 : vector<2x12xf32>
      %462 = vector.extract_strided_slice %450 {offsets = [0, 2], sizes = [2, 1], strides = [1, 1]} : vector<2x3xf32> to vector<2x1xf32>
      %463 = vector.extract_strided_slice %29 {offsets = [2, 0, 0], sizes = [1, 2, 12], strides = [1, 1, 1]} : vector<3x2x12xf32> to vector<1x2x12xf32>
      %464 = vector.shape_cast %463 : vector<1x2x12xf32> to vector<2x12xf32>
      %465 = vector.broadcast %462 : vector<2x1xf32> to vector<2x12xf32>
      %466 = arith.mulf %465, %464 : vector<2x12xf32>
      %467 = arith.addf %461, %466 : vector<2x12xf32>
      %468 = arith.addf %31, %467 : vector<2x12xf32>
      %469 = vector.extract_strided_slice %397 {offsets = [0, 0], sizes = [2, 1], strides = [1, 1]} : vector<2x3xf32> to vector<2x1xf32>
      %470 = vector.extract_strided_slice %30 {offsets = [0, 0, 0], sizes = [1, 2, 12], strides = [1, 1, 1]} : vector<3x2x12xf32> to vector<1x2x12xf32>
      %471 = vector.shape_cast %470 : vector<1x2x12xf32> to vector<2x12xf32>
      %472 = vector.broadcast %469 : vector<2x1xf32> to vector<2x12xf32>
      %473 = arith.mulf %472, %471 : vector<2x12xf32>
      %474 = vector.extract_strided_slice %397 {offsets = [0, 1], sizes = [2, 1], strides = [1, 1]} : vector<2x3xf32> to vector<2x1xf32>
      %475 = vector.extract_strided_slice %30 {offsets = [1, 0, 0], sizes = [1, 2, 12], strides = [1, 1, 1]} : vector<3x2x12xf32> to vector<1x2x12xf32>
      %476 = vector.shape_cast %475 : vector<1x2x12xf32> to vector<2x12xf32>
      %477 = vector.broadcast %474 : vector<2x1xf32> to vector<2x12xf32>
      %478 = arith.mulf %477, %476 : vector<2x12xf32>
      %479 = arith.addf %473, %478 : vector<2x12xf32>
      %480 = vector.extract_strided_slice %397 {offsets = [0, 2], sizes = [2, 1], strides = [1, 1]} : vector<2x3xf32> to vector<2x1xf32>
      %481 = vector.extract_strided_slice %30 {offsets = [2, 0, 0], sizes = [1, 2, 12], strides = [1, 1, 1]} : vector<3x2x12xf32> to vector<1x2x12xf32>
      %482 = vector.shape_cast %481 : vector<1x2x12xf32> to vector<2x12xf32>
      %483 = vector.broadcast %480 : vector<2x1xf32> to vector<2x12xf32>
      %484 = arith.mulf %483, %482 : vector<2x12xf32>
      %485 = arith.addf %479, %484 : vector<2x12xf32>
      %486 = arith.addf %468, %485 : vector<2x12xf32>
      %487 = vector.extract_strided_slice %486 {offsets = [0, 0], sizes = [2, 9], strides = [1, 1]} : vector<2x12xf32> to vector<2x9xf32>
      %488 = arith.negf %487 : vector<2x9xf32>
      %489 = math.exp %488 : vector<2x9xf32>
      %cst_114 = arith.constant 1.000000e+00 : f32
      %490 = vector.broadcast %cst_114 : f32 to vector<2x9xf32>
      %491 = arith.addf %490, %489 : vector<2x9xf32>
      %492 = arith.divf %490, %491 : vector<2x9xf32>
      %493 = vector.extract_strided_slice %486 {offsets = [0, 9], sizes = [2, 3], strides = [1, 1]} : vector<2x12xf32> to vector<2x3xf32>
      %494 = math.tanh %493 : vector<2x3xf32>
      %495 = vector.extract_strided_slice %492 {offsets = [0, 3], sizes = [2, 3], strides = [1, 1]} : vector<2x9xf32> to vector<2x3xf32>
      %496 = arith.mulf %495, %394 : vector<2x3xf32>
      %497 = vector.extract_strided_slice %492 {offsets = [0, 0], sizes = [2, 3], strides = [1, 1]} : vector<2x9xf32> to vector<2x3xf32>
      %498 = arith.mulf %497, %494 : vector<2x3xf32>
      %499 = arith.addf %496, %498 : vector<2x3xf32>
      %500 = vector.extract_strided_slice %492 {offsets = [0, 6], sizes = [2, 3], strides = [1, 1]} : vector<2x9xf32> to vector<2x3xf32>
      %501 = math.tanh %499 : vector<2x3xf32>
      %502 = arith.mulf %500, %501 : vector<2x3xf32>
      %503 = vector.extract_strided_slice %502 {offsets = [0, 0], sizes = [1, 3], strides = [1, 1]} : vector<2x3xf32> to vector<1x3xf32>
      %c0_115 = arith.constant 0 : index
      %504 = arith.index_cast %409 : i32 to index
      %c0_116 = arith.constant 0 : index
      %505 = vector.load %arg12[%c0_115, %504, %c0_116] : memref<2x400x3xf32, #tpu.memory_space<vmem>>, vector<1x1x3xf32>
      %506 = vector.shape_cast %505 : vector<1x1x3xf32> to vector<1x3xf32>
      %507 = vector.shape_cast %503 : vector<1x3xf32> to vector<1x1x3xf32>
      tpu.vector_store %arg12[%c0_115, %504, %c0_116], %507 {strides = array<i32>} : memref<2x400x3xf32, #tpu.memory_space<vmem>>, vector<1x1x3xf32>,
      %508 = vector.extract_strided_slice %502 {offsets = [1, 0], sizes = [1, 3], strides = [1, 1]} : vector<2x3xf32> to vector<1x3xf32>
      %c1_117 = arith.constant 1 : index
      %509 = arith.index_cast %409 : i32 to index
      %c0_118 = arith.constant 0 : index
      %510 = vector.load %arg12[%c1_117, %509, %c0_118] : memref<2x400x3xf32, #tpu.memory_space<vmem>>, vector<1x1x3xf32>
      %511 = vector.shape_cast %510 : vector<1x1x3xf32> to vector<1x3xf32>
      %512 = vector.shape_cast %508 : vector<1x3xf32> to vector<1x1x3xf32>
      tpu.vector_store %arg12[%c1_117, %509, %c0_118], %512 {strides = array<i32>} : memref<2x400x3xf32, #tpu.memory_space<vmem>>, vector<1x1x3xf32>,
      scf.yield %450, %447, %502, %499 : vector<2x3xf32>, vector<2x3xf32>, vector<2x3xf32>, vector<2x3xf32>
    }
    %c100_i32_39 = arith.constant 100 : i32
    %c0_40 = arith.constant 0 : index
    %c0_41 = arith.constant 0 : index
    %c0_42 = arith.constant 0 : index
    %35 = vector.load %arg12[%c0_40, %c0_41, %c0_42] : memref<2x400x3xf32, #tpu.memory_space<vmem>>, vector<1x400x3xf32>
    %36 = vector.shape_cast %35 : vector<1x400x3xf32> to vector<400x3xf32>
    %37 = tpu.transpose %36, [1, 0] : vector<400x3xf32> -> vector<3x400xf32>
    %38 = vector.shape_cast %37 : vector<3x400xf32> to vector<1x3x400xf32>
    %cst_43 = arith.constant dense<0.000000e+00> : vector<1xf32>
    %39 = vector.multi_reduction <add>, %38, %cst_43 [1, 2] : vector<1x3x400xf32> to vector<1xf32>
    %40 = vector.shape_cast %39 : vector<1xf32> to vector<1x1x1xf32>
    %41 = vector.extract %40[0, 0, 0] : f32 from vector<1x1x1xf32>
    %cst_44 = arith.constant 8.33333353E-4 : f32
    %42 = arith.mulf %41, %cst_44 : f32
    %43 = vector.broadcast %42 : f32 to vector<3x400xf32>
    %44 = arith.subf %37, %43 : vector<3x400xf32>
    %45 = arith.mulf %44, %44 : vector<3x400xf32>
    %46 = vector.shape_cast %45 : vector<3x400xf32> to vector<1x3x400xf32>
    %cst_45 = arith.constant dense<0.000000e+00> : vector<1xf32>
    %47 = vector.multi_reduction <add>, %46, %cst_45 [1, 2] : vector<1x3x400xf32> to vector<1xf32>
    %48 = vector.shape_cast %47 : vector<1xf32> to vector<1x1x1xf32>
    %49 = vector.extract %48[0, 0, 0] : f32 from vector<1x1x1xf32>
    %cst_46 = arith.constant 8.33333353E-4 : f32
    %50 = arith.mulf %49, %cst_46 : f32
    %cst_47 = arith.constant 9.99999974E-6 : f32
    %51 = arith.addf %50, %cst_47 : f32
    %52 = math.rsqrt %51 : f32
    %53 = vector.broadcast %52 : f32 to vector<3x400xf32>
    %54 = arith.mulf %44, %53 : vector<3x400xf32>
    %c0_48 = arith.constant 0 : index
    %c0_49 = arith.constant 0 : index
    %c0_50 = arith.constant 0 : index
    %55 = vector.load %arg8[%c0_48, %c0_49, %c0_50] : memref<2x3x400xf32, #tpu.memory_space<vmem>>, vector<1x3x400xf32>
    %56 = vector.shape_cast %55 : vector<1x3x400xf32> to vector<3x400xf32>
    %57 = arith.mulf %54, %56 : vector<3x400xf32>
    %c0_51 = arith.constant 0 : index
    %c0_52 = arith.constant 0 : index
    %c0_53 = arith.constant 0 : index
    %58 = vector.load %arg9[%c0_51, %c0_52, %c0_53] : memref<2x3x400xf32, #tpu.memory_space<vmem>>, vector<1x3x400xf32>
    %59 = vector.shape_cast %58 : vector<1x3x400xf32> to vector<3x400xf32>
    %60 = arith.addf %57, %59 : vector<3x400xf32>
    %c0_54 = arith.constant 0 : index
    %c0_55 = arith.constant 0 : index
    %c0_56 = arith.constant 0 : index
    %61 = vector.load %arg10[%c0_54, %c0_55, %c0_56] : memref<2x3x400xf32, #tpu.memory_space<vmem>>, vector<1x3x400xf32>
    %62 = vector.shape_cast %61 : vector<1x3x400xf32> to vector<3x400xf32>
    %63 = vector.shape_cast %60 : vector<3x400xf32> to vector<1x3x400xf32>
    tpu.vector_store %arg10[%c0_54, %c0_55, %c0_56], %63 {strides = array<i32>} : memref<2x3x400xf32, #tpu.memory_space<vmem>>, vector<1x3x400xf32>,
    %c1_57 = arith.constant 1 : index
    %c0_58 = arith.constant 0 : index
    %c0_59 = arith.constant 0 : index
    %64 = vector.load %arg12[%c1_57, %c0_58, %c0_59] : memref<2x400x3xf32, #tpu.memory_space<vmem>>, vector<1x400x3xf32>
    %65 = vector.shape_cast %64 : vector<1x400x3xf32> to vector<400x3xf32>
    %66 = tpu.transpose %65, [1, 0] : vector<400x3xf32> -> vector<3x400xf32>
    %67 = vector.shape_cast %66 : vector<3x400xf32> to vector<1x3x400xf32>
    %cst_60 = arith.constant dense<0.000000e+00> : vector<1xf32>
    %68 = vector.multi_reduction <add>, %67, %cst_60 [1, 2] : vector<1x3x400xf32> to vector<1xf32>
    %69 = vector.shape_cast %68 : vector<1xf32> to vector<1x1x1xf32>
    %70 = vector.extract %69[0, 0, 0] : f32 from vector<1x1x1xf32>
    %cst_61 = arith.constant 8.33333353E-4 : f32
    %71 = arith.mulf %70, %cst_61 : f32
    %72 = vector.broadcast %71 : f32 to vector<3x400xf32>
    %73 = arith.subf %66, %72 : vector<3x400xf32>
    %74 = arith.mulf %73, %73 : vector<3x400xf32>
    %75 = vector.shape_cast %74 : vector<3x400xf32> to vector<1x3x400xf32>
    %cst_62 = arith.constant dense<0.000000e+00> : vector<1xf32>
    %76 = vector.multi_reduction <add>, %75, %cst_62 [1, 2] : vector<1x3x400xf32> to vector<1xf32>
    %77 = vector.shape_cast %76 : vector<1xf32> to vector<1x1x1xf32>
    %78 = vector.extract %77[0, 0, 0] : f32 from vector<1x1x1xf32>
    %cst_63 = arith.constant 8.33333353E-4 : f32
    %79 = arith.mulf %78, %cst_63 : f32
    %cst_64 = arith.constant 9.99999974E-6 : f32
    %80 = arith.addf %79, %cst_64 : f32
    %81 = math.rsqrt %80 : f32
    %82 = vector.broadcast %81 : f32 to vector<3x400xf32>
    %83 = arith.mulf %73, %82 : vector<3x400xf32>
    %c1_65 = arith.constant 1 : index
    %c0_66 = arith.constant 0 : index
    %c0_67 = arith.constant 0 : index
    %84 = vector.load %arg8[%c1_65, %c0_66, %c0_67] : memref<2x3x400xf32, #tpu.memory_space<vmem>>, vector<1x3x400xf32>
    %85 = vector.shape_cast %84 : vector<1x3x400xf32> to vector<3x400xf32>
    %86 = arith.mulf %83, %85 : vector<3x400xf32>
    %c1_68 = arith.constant 1 : index
    %c0_69 = arith.constant 0 : index
    %c0_70 = arith.constant 0 : index
    %87 = vector.load %arg9[%c1_68, %c0_69, %c0_70] : memref<2x3x400xf32, #tpu.memory_space<vmem>>, vector<1x3x400xf32>
    %88 = vector.shape_cast %87 : vector<1x3x400xf32> to vector<3x400xf32>
    %89 = arith.addf %86, %88 : vector<3x400xf32>
    %c1_71 = arith.constant 1 : index
    %c0_72 = arith.constant 0 : index
    %c0_73 = arith.constant 0 : index
    %90 = vector.load %arg10[%c1_71, %c0_72, %c0_73] : memref<2x3x400xf32, #tpu.memory_space<vmem>>, vector<1x3x400xf32>
    %91 = vector.shape_cast %90 : vector<1x3x400xf32> to vector<3x400xf32>
    %92 = vector.shape_cast %89 : vector<3x400xf32> to vector<1x3x400xf32>
    tpu.vector_store %arg10[%c1_71, %c0_72, %c0_73], %92 {strides = array<i32>} : memref<2x3x400xf32, #tpu.memory_space<vmem>>, vector<1x3x400xf32>,
    return
  }
  func.func @transform_0(%arg0: i32) -> (i32, i32, i32) {
    %c0_i32 = arith.constant 0 : i32
    %c0_i32_0 = arith.constant 0 : i32
    %c0_i32_1 = arith.constant 0 : i32
    %c0_i32_2 = arith.constant 0 : i32
    return %c0_i32, %c0_i32_0, %c0_i32_1 : i32, i32, i32
  }
  func.func @transform_1(%arg0: i32) -> (i32, i32, i32) {
    %c0_i32 = arith.constant 0 : i32
    %c0_i32_0 = arith.constant 0 : i32
    %c0_i32_1 = arith.constant 0 : i32
    %c0_i32_2 = arith.constant 0 : i32
    return %c0_i32, %c0_i32_0, %c0_i32_1 : i32, i32, i32
  }
  func.func @transform_2(%arg0: i32) -> (i32, i32, i32) {
    %c0_i32 = arith.constant 0 : i32
    %c0_i32_0 = arith.constant 0 : i32
    %c0_i32_1 = arith.constant 0 : i32
    %c0_i32_2 = arith.constant 0 : i32
    return %c0_i32, %c0_i32_0, %c0_i32_1 : i32, i32, i32
  }
  func.func @transform_3(%arg0: i32) -> (i32, i32, i32) {
    %c0_i32 = arith.constant 0 : i32
    %c0_i32_0 = arith.constant 0 : i32
    %c0_i32_1 = arith.constant 0 : i32
    %c0_i32_2 = arith.constant 0 : i32
    return %c0_i32, %c0_i32_0, %c0_i32_1 : i32, i32, i32
  }
  func.func @transform_4(%arg0: i32) -> (i32, i32, i32) {
    %c0_i32 = arith.constant 0 : i32
    %c0_i32_0 = arith.constant 0 : i32
    %c0_i32_1 = arith.constant 0 : i32
    %c0_i32_2 = arith.constant 0 : i32
    return %c0_i32, %c0_i32_0, %c0_i32_1 : i32, i32, i32
  }
  func.func @transform_5(%arg0: i32) -> (i32, i32, i32) {
    %c0_i32 = arith.constant 0 : i32
    %c0_i32_0 = arith.constant 0 : i32
    %c0_i32_1 = arith.constant 0 : i32
    %c0_i32_2 = arith.constant 0 : i32
    return %c0_i32, %c0_i32_0, %c0_i32_1 : i32, i32, i32
  }
  func.func @transform_6(%arg0: i32) -> (i32, i32) {
    %c0_i32 = arith.constant 0 : i32
    %c0_i32_0 = arith.constant 0 : i32
    %c0_i32_1 = arith.constant 0 : i32
    return %c0_i32, %c0_i32_0 : i32, i32
  }
  func.func @transform_7(%arg0: i32) -> (i32, i32, i32) {
    %c0_i32 = arith.constant 0 : i32
    %c0_i32_0 = arith.constant 0 : i32
    %c0_i32_1 = arith.constant 0 : i32
    %c0_i32_2 = arith.constant 0 : i32
    return %c0_i32, %c0_i32_0, %c0_i32_1 : i32, i32, i32
  }
  func.func @transform_8(%arg0: i32) -> (i32, i32, i32) {
    %c0_i32 = arith.constant 0 : i32
    %c0_i32_0 = arith.constant 0 : i32
    %c0_i32_1 = arith.constant 0 : i32
    %c0_i32_2 = arith.constant 0 : i32
    return %c0_i32, %c0_i32_0, %c0_i32_1 : i32, i32, i32
  }
  func.func @transform_9(%arg0: i32) -> (i32, i32, i32) {
    %c0_i32 = arith.constant 0 : i32
    %c0_i32_0 = arith.constant 0 : i32
    %c0_i32_1 = arith.constant 0 : i32
    %c0_i32_2 = arith.constant 0 : i32
    return %c0_i32, %c0_i32_0, %c0_i32_1 : i32, i32, i32
  }
}

module attributes {stable_mosaic.version = 11 : i64} {
  func.func @fuse_kernel(%arg0: i32, %arg1: memref<1x3x150xf32, #tpu.memory_space<vmem>>, %arg2: memref<1x3x400xf32, #tpu.memory_space<vmem>>, %arg3: memref<1x400x150xf32, #tpu.memory_space<vmem>>, %arg4: memref<1x400x400xf32, #tpu.memory_space<vmem>>, %arg5: memref<1x3x400xf32, #tpu.memory_space<vmem>>) attributes {dimension_semantics = [#tpu.dimension_semantics<parallel>], iteration_bounds = array<i64: 2>, scalar_prefetch = 0 : i64, scratch_operands = 0 : i64, tpu.core_type = #tpu.core_type<tc>, window_params = [{transform_indices = @transform_0, window_bounds = array<i64: 1, 3, 150>}, {transform_indices = @transform_1, window_bounds = array<i64: 1, 3, 400>}, {transform_indices = @transform_2, window_bounds = array<i64: 1, 400, 150>}, {transform_indices = @transform_3, window_bounds = array<i64: 1, 400, 400>}, {transform_indices = @transform_4, window_bounds = array<i64: 1, 3, 400>}]} {
    %c0 = arith.constant 0 : index
    %c0_0 = arith.constant 0 : index
    %c0_1 = arith.constant 0 : index
    %0 = vector.load %arg1[%c0, %c0_0, %c0_1] : memref<1x3x150xf32, #tpu.memory_space<vmem>>, vector<1x3x150xf32>
    %1 = vector.shape_cast %0 : vector<1x3x150xf32> to vector<3x150xf32>
    %2 = tpu.transpose %1, [1, 0] : vector<3x150xf32> -> vector<150x3xf32>
    %c0_2 = arith.constant 0 : index
    %c0_3 = arith.constant 0 : index
    %c0_4 = arith.constant 0 : index
    %3 = vector.load %arg2[%c0_2, %c0_3, %c0_4] : memref<1x3x400xf32, #tpu.memory_space<vmem>>, vector<1x3x400xf32>
    %4 = vector.shape_cast %3 : vector<1x3x400xf32> to vector<3x400xf32>
    %5 = tpu.transpose %4, [1, 0] : vector<3x400xf32> -> vector<400x3xf32>
    %c0_5 = arith.constant 0 : index
    %c0_6 = arith.constant 0 : index
    %c0_7 = arith.constant 0 : index
    %6 = vector.load %arg3[%c0_5, %c0_6, %c0_7] : memref<1x400x150xf32, #tpu.memory_space<vmem>>, vector<1x400x150xf32>
    %7 = vector.shape_cast %6 : vector<1x400x150xf32> to vector<400x150xf32>
    %cst = arith.constant dense<0.000000e+00> : vector<400x3xf32>
    %8 = tpu.matmul %7, %2, %cst {dimension_numbers = #tpu.dot_dimension_numbers<[1], [0], [0], [1], [0, 0, 1, 1], [], []>} : vector<400x150xf32>, vector<150x3xf32>, vector<400x3xf32> -> vector<400x3xf32>
    %c0_8 = arith.constant 0 : index
    %c0_9 = arith.constant 0 : index
    %c0_10 = arith.constant 0 : index
    %9 = vector.load %arg4[%c0_8, %c0_9, %c0_10] : memref<1x400x400xf32, #tpu.memory_space<vmem>>, vector<1x400x400xf32>
    %10 = vector.shape_cast %9 : vector<1x400x400xf32> to vector<400x400xf32>
    %cst_11 = arith.constant dense<0.000000e+00> : vector<400x3xf32>
    %11 = tpu.matmul %10, %5, %cst_11 {dimension_numbers = #tpu.dot_dimension_numbers<[1], [0], [0], [1], [0, 0, 1, 1], [], []>} : vector<400x400xf32>, vector<400x3xf32>, vector<400x3xf32> -> vector<400x3xf32>
    %12 = arith.addf %8, %11 : vector<400x3xf32>
    %13 = tpu.transpose %12, [1, 0] : vector<400x3xf32> -> vector<3x400xf32>
    %c0_12 = arith.constant 0 : index
    %c0_13 = arith.constant 0 : index
    %c0_14 = arith.constant 0 : index
    %14 = vector.load %arg5[%c0_12, %c0_13, %c0_14] : memref<1x3x400xf32, #tpu.memory_space<vmem>>, vector<1x3x400xf32>
    %15 = vector.shape_cast %14 : vector<1x3x400xf32> to vector<3x400xf32>
    %16 = vector.shape_cast %13 : vector<3x400xf32> to vector<1x3x400xf32>
    tpu.vector_store %arg5[%c0_12, %c0_13, %c0_14], %16 {strides = array<i32>} : memref<1x3x400xf32, #tpu.memory_space<vmem>>, vector<1x3x400xf32>,
    return
  }
  func.func @transform_0(%arg0: i32) -> (i32, i32, i32) {
    %c0_i32 = arith.constant 0 : i32
    %c0_i32_0 = arith.constant 0 : i32
    %c0_i32_1 = arith.constant 0 : i32
    return %arg0, %c0_i32, %c0_i32_0 : i32, i32, i32
  }
  func.func @transform_1(%arg0: i32) -> (i32, i32, i32) {
    %c0_i32 = arith.constant 0 : i32
    %c0_i32_0 = arith.constant 0 : i32
    %c0_i32_1 = arith.constant 0 : i32
    return %arg0, %c0_i32, %c0_i32_0 : i32, i32, i32
  }
  func.func @transform_2(%arg0: i32) -> (i32, i32, i32) {
    %c0_i32 = arith.constant 0 : i32
    %c0_i32_0 = arith.constant 0 : i32
    %c0_i32_1 = arith.constant 0 : i32
    return %arg0, %c0_i32, %c0_i32_0 : i32, i32, i32
  }
  func.func @transform_3(%arg0: i32) -> (i32, i32, i32) {
    %c0_i32 = arith.constant 0 : i32
    %c0_i32_0 = arith.constant 0 : i32
    %c0_i32_1 = arith.constant 0 : i32
    return %arg0, %c0_i32, %c0_i32_0 : i32, i32, i32
  }
  func.func @transform_4(%arg0: i32) -> (i32, i32, i32) {
    %c0_i32 = arith.constant 0 : i32
    %c0_i32_0 = arith.constant 0 : i32
    %c0_i32_1 = arith.constant 0 : i32
    return %arg0, %c0_i32, %c0_i32_0 : i32, i32, i32
  }
}

module attributes {stable_mosaic.version = 11 : i64} {
  func.func @lstm_ln_kernel(%arg0: i32, %arg1: memref<4x3x400xf32, #tpu.memory_space<vmem>>, %arg2: memref<4x3x12xf32, #tpu.memory_space<vmem>>, %arg3: memref<4x1x12xf32, #tpu.memory_space<vmem>>, %arg4: memref<3x4x12xf32, #tpu.memory_space<vmem>>, %arg5: memref<3x4x12xf32, #tpu.memory_space<vmem>>, %arg6: memref<3x4x12xf32, #tpu.memory_space<vmem>>, %arg7: memref<4x12xf32, #tpu.memory_space<vmem>>, %arg8: memref<4x3x400xf32, #tpu.memory_space<vmem>>, %arg9: memref<4x3x400xf32, #tpu.memory_space<vmem>>, %arg10: memref<4x3x400xf32, #tpu.memory_space<vmem>>, %arg11: memref<4x400x12xf32, #tpu.memory_space<vmem>>, %arg12: memref<4x400x3xf32, #tpu.memory_space<vmem>>) attributes {dimension_semantics = [#tpu.dimension_semantics<arbitrary>], iteration_bounds = array<i64: 1>, scalar_prefetch = 0 : i64, scratch_operands = 2 : i64, tpu.core_type = #tpu.core_type<tc>, window_params = [{pipeline_mode = #tpu.pipeline_mode<synchronous>, transform_indices = @transform_0, window_bounds = array<i64: 4, 3, 400>}, {pipeline_mode = #tpu.pipeline_mode<synchronous>, transform_indices = @transform_1, window_bounds = array<i64: 4, 3, 12>}, {pipeline_mode = #tpu.pipeline_mode<synchronous>, transform_indices = @transform_2, window_bounds = array<i64: 4, 1, 12>}, {pipeline_mode = #tpu.pipeline_mode<synchronous>, transform_indices = @transform_3, window_bounds = array<i64: 3, 4, 12>}, {pipeline_mode = #tpu.pipeline_mode<synchronous>, transform_indices = @transform_4, window_bounds = array<i64: 3, 4, 12>}, {pipeline_mode = #tpu.pipeline_mode<synchronous>, transform_indices = @transform_5, window_bounds = array<i64: 3, 4, 12>}, {pipeline_mode = #tpu.pipeline_mode<synchronous>, transform_indices = @transform_6, window_bounds = array<i64: 4, 12>}, {pipeline_mode = #tpu.pipeline_mode<synchronous>, transform_indices = @transform_7, window_bounds = array<i64: 4, 3, 400>}, {pipeline_mode = #tpu.pipeline_mode<synchronous>, transform_indices = @transform_8, window_bounds = array<i64: 4, 3, 400>}, {pipeline_mode = #tpu.pipeline_mode<synchronous>, transform_indices = @transform_9, window_bounds = array<i64: 4, 3, 400>}]} {
    %c0 = arith.constant 0 : index
    %c0_0 = arith.constant 0 : index
    %c0_1 = arith.constant 0 : index
    %0 = vector.load %arg1[%c0, %c0_0, %c0_1] : memref<4x3x400xf32, #tpu.memory_space<vmem>>, vector<1x3x400xf32>
    %1 = vector.shape_cast %0 : vector<1x3x400xf32> to vector<3x400xf32>
    %2 = tpu.transpose %1, [1, 0] : vector<3x400xf32> -> vector<400x3xf32>
    %c0_2 = arith.constant 0 : index
    %c0_3 = arith.constant 0 : index
    %c0_4 = arith.constant 0 : index
    %3 = vector.load %arg2[%c0_2, %c0_3, %c0_4] : memref<4x3x12xf32, #tpu.memory_space<vmem>>, vector<1x3x12xf32>
    %4 = vector.shape_cast %3 : vector<1x3x12xf32> to vector<3x12xf32>
    %cst = arith.constant dense<0.000000e+00> : vector<400x12xf32>
    %5 = tpu.matmul %2, %4, %cst {dimension_numbers = #tpu.dot_dimension_numbers<[1], [0], [0], [1], [0, 0, 1, 1], [], []>} : vector<400x3xf32>, vector<3x12xf32>, vector<400x12xf32> -> vector<400x12xf32>
    %c0_5 = arith.constant 0 : index
    %c0_6 = arith.constant 0 : index
    %c0_7 = arith.constant 0 : index
    %6 = vector.load %arg3[%c0_5, %c0_6, %c0_7] : memref<4x1x12xf32, #tpu.memory_space<vmem>>, vector<1x1x12xf32>
    %7 = vector.shape_cast %6 : vector<1x1x12xf32> to vector<1x12xf32>
    %8 = vector.broadcast %7 : vector<1x12xf32> to vector<400x12xf32>
    %9 = arith.addf %5, %8 : vector<400x12xf32>
    %c0_8 = arith.constant 0 : index
    %c0_9 = arith.constant 0 : index
    %c0_10 = arith.constant 0 : index
    %10 = vector.load %arg11[%c0_8, %c0_9, %c0_10] : memref<4x400x12xf32, #tpu.memory_space<vmem>>, vector<1x400x12xf32>
    %11 = vector.shape_cast %10 : vector<1x400x12xf32> to vector<400x12xf32>
    %12 = vector.shape_cast %9 : vector<400x12xf32> to vector<1x400x12xf32>
    tpu.vector_store %arg11[%c0_8, %c0_9, %c0_10], %12 {strides = array<i32>} : memref<4x400x12xf32, #tpu.memory_space<vmem>>, vector<1x400x12xf32>,
    %c1 = arith.constant 1 : index
    %c0_11 = arith.constant 0 : index
    %c0_12 = arith.constant 0 : index
    %13 = vector.load %arg1[%c1, %c0_11, %c0_12] : memref<4x3x400xf32, #tpu.memory_space<vmem>>, vector<1x3x400xf32>
    %14 = vector.shape_cast %13 : vector<1x3x400xf32> to vector<3x400xf32>
    %15 = tpu.transpose %14, [1, 0] : vector<3x400xf32> -> vector<400x3xf32>
    %c1_13 = arith.constant 1 : index
    %c0_14 = arith.constant 0 : index
    %c0_15 = arith.constant 0 : index
    %16 = vector.load %arg2[%c1_13, %c0_14, %c0_15] : memref<4x3x12xf32, #tpu.memory_space<vmem>>, vector<1x3x12xf32>
    %17 = vector.shape_cast %16 : vector<1x3x12xf32> to vector<3x12xf32>
    %cst_16 = arith.constant dense<0.000000e+00> : vector<400x12xf32>
    %18 = tpu.matmul %15, %17, %cst_16 {dimension_numbers = #tpu.dot_dimension_numbers<[1], [0], [0], [1], [0, 0, 1, 1], [], []>} : vector<400x3xf32>, vector<3x12xf32>, vector<400x12xf32> -> vector<400x12xf32>
    %c1_17 = arith.constant 1 : index
    %c0_18 = arith.constant 0 : index
    %c0_19 = arith.constant 0 : index
    %19 = vector.load %arg3[%c1_17, %c0_18, %c0_19] : memref<4x1x12xf32, #tpu.memory_space<vmem>>, vector<1x1x12xf32>
    %20 = vector.shape_cast %19 : vector<1x1x12xf32> to vector<1x12xf32>
    %21 = vector.broadcast %20 : vector<1x12xf32> to vector<400x12xf32>
    %22 = arith.addf %18, %21 : vector<400x12xf32>
    %c1_20 = arith.constant 1 : index
    %c0_21 = arith.constant 0 : index
    %c0_22 = arith.constant 0 : index
    %23 = vector.load %arg11[%c1_20, %c0_21, %c0_22] : memref<4x400x12xf32, #tpu.memory_space<vmem>>, vector<1x400x12xf32>
    %24 = vector.shape_cast %23 : vector<1x400x12xf32> to vector<400x12xf32>
    %25 = vector.shape_cast %22 : vector<400x12xf32> to vector<1x400x12xf32>
    tpu.vector_store %arg11[%c1_20, %c0_21, %c0_22], %25 {strides = array<i32>} : memref<4x400x12xf32, #tpu.memory_space<vmem>>, vector<1x400x12xf32>,
    %c2 = arith.constant 2 : index
    %c0_23 = arith.constant 0 : index
    %c0_24 = arith.constant 0 : index
    %26 = vector.load %arg1[%c2, %c0_23, %c0_24] : memref<4x3x400xf32, #tpu.memory_space<vmem>>, vector<1x3x400xf32>
    %27 = vector.shape_cast %26 : vector<1x3x400xf32> to vector<3x400xf32>
    %28 = tpu.transpose %27, [1, 0] : vector<3x400xf32> -> vector<400x3xf32>
    %c2_25 = arith.constant 2 : index
    %c0_26 = arith.constant 0 : index
    %c0_27 = arith.constant 0 : index
    %29 = vector.load %arg2[%c2_25, %c0_26, %c0_27] : memref<4x3x12xf32, #tpu.memory_space<vmem>>, vector<1x3x12xf32>
    %30 = vector.shape_cast %29 : vector<1x3x12xf32> to vector<3x12xf32>
    %cst_28 = arith.constant dense<0.000000e+00> : vector<400x12xf32>
    %31 = tpu.matmul %28, %30, %cst_28 {dimension_numbers = #tpu.dot_dimension_numbers<[1], [0], [0], [1], [0, 0, 1, 1], [], []>} : vector<400x3xf32>, vector<3x12xf32>, vector<400x12xf32> -> vector<400x12xf32>
    %c2_29 = arith.constant 2 : index
    %c0_30 = arith.constant 0 : index
    %c0_31 = arith.constant 0 : index
    %32 = vector.load %arg3[%c2_29, %c0_30, %c0_31] : memref<4x1x12xf32, #tpu.memory_space<vmem>>, vector<1x1x12xf32>
    %33 = vector.shape_cast %32 : vector<1x1x12xf32> to vector<1x12xf32>
    %34 = vector.broadcast %33 : vector<1x12xf32> to vector<400x12xf32>
    %35 = arith.addf %31, %34 : vector<400x12xf32>
    %c2_32 = arith.constant 2 : index
    %c0_33 = arith.constant 0 : index
    %c0_34 = arith.constant 0 : index
    %36 = vector.load %arg11[%c2_32, %c0_33, %c0_34] : memref<4x400x12xf32, #tpu.memory_space<vmem>>, vector<1x400x12xf32>
    %37 = vector.shape_cast %36 : vector<1x400x12xf32> to vector<400x12xf32>
    %38 = vector.shape_cast %35 : vector<400x12xf32> to vector<1x400x12xf32>
    tpu.vector_store %arg11[%c2_32, %c0_33, %c0_34], %38 {strides = array<i32>} : memref<4x400x12xf32, #tpu.memory_space<vmem>>, vector<1x400x12xf32>,
    %c3 = arith.constant 3 : index
    %c0_35 = arith.constant 0 : index
    %c0_36 = arith.constant 0 : index
    %39 = vector.load %arg1[%c3, %c0_35, %c0_36] : memref<4x3x400xf32, #tpu.memory_space<vmem>>, vector<1x3x400xf32>
    %40 = vector.shape_cast %39 : vector<1x3x400xf32> to vector<3x400xf32>
    %41 = tpu.transpose %40, [1, 0] : vector<3x400xf32> -> vector<400x3xf32>
    %c3_37 = arith.constant 3 : index
    %c0_38 = arith.constant 0 : index
    %c0_39 = arith.constant 0 : index
    %42 = vector.load %arg2[%c3_37, %c0_38, %c0_39] : memref<4x3x12xf32, #tpu.memory_space<vmem>>, vector<1x3x12xf32>
    %43 = vector.shape_cast %42 : vector<1x3x12xf32> to vector<3x12xf32>
    %cst_40 = arith.constant dense<0.000000e+00> : vector<400x12xf32>
    %44 = tpu.matmul %41, %43, %cst_40 {dimension_numbers = #tpu.dot_dimension_numbers<[1], [0], [0], [1], [0, 0, 1, 1], [], []>} : vector<400x3xf32>, vector<3x12xf32>, vector<400x12xf32> -> vector<400x12xf32>
    %c3_41 = arith.constant 3 : index
    %c0_42 = arith.constant 0 : index
    %c0_43 = arith.constant 0 : index
    %45 = vector.load %arg3[%c3_41, %c0_42, %c0_43] : memref<4x1x12xf32, #tpu.memory_space<vmem>>, vector<1x1x12xf32>
    %46 = vector.shape_cast %45 : vector<1x1x12xf32> to vector<1x12xf32>
    %47 = vector.broadcast %46 : vector<1x12xf32> to vector<400x12xf32>
    %48 = arith.addf %44, %47 : vector<400x12xf32>
    %c3_44 = arith.constant 3 : index
    %c0_45 = arith.constant 0 : index
    %c0_46 = arith.constant 0 : index
    %49 = vector.load %arg11[%c3_44, %c0_45, %c0_46] : memref<4x400x12xf32, #tpu.memory_space<vmem>>, vector<1x400x12xf32>
    %50 = vector.shape_cast %49 : vector<1x400x12xf32> to vector<400x12xf32>
    %51 = vector.shape_cast %48 : vector<400x12xf32> to vector<1x400x12xf32>
    tpu.vector_store %arg11[%c3_44, %c0_45, %c0_46], %51 {strides = array<i32>} : memref<4x400x12xf32, #tpu.memory_space<vmem>>, vector<1x400x12xf32>,
    %cst_47 = arith.constant 0.000000e+00 : f32
    %52 = vector.broadcast %cst_47 : f32 to vector<4x3x400xf32>
    %c0_48 = arith.constant 0 : index
    %c0_49 = arith.constant 0 : index
    %c0_50 = arith.constant 0 : index
    %53 = vector.load %arg10[%c0_48, %c0_49, %c0_50] : memref<4x3x400xf32, #tpu.memory_space<vmem>>, vector<4x3x400xf32>
    tpu.vector_store %arg10[%c0_48, %c0_49, %c0_50], %52 {strides = array<i32>} : memref<4x3x400xf32, #tpu.memory_space<vmem>>, vector<4x3x400xf32>,
    %c0_51 = arith.constant 0 : index
    %c0_52 = arith.constant 0 : index
    %c0_53 = arith.constant 0 : index
    %54 = vector.load %arg4[%c0_51, %c0_52, %c0_53] : memref<3x4x12xf32, #tpu.memory_space<vmem>>, vector<3x4x12xf32>
    %c0_54 = arith.constant 0 : index
    %c0_55 = arith.constant 0 : index
    %c0_56 = arith.constant 0 : index
    %55 = vector.load %arg5[%c0_54, %c0_55, %c0_56] : memref<3x4x12xf32, #tpu.memory_space<vmem>>, vector<3x4x12xf32>
    %c0_57 = arith.constant 0 : index
    %c0_58 = arith.constant 0 : index
    %c0_59 = arith.constant 0 : index
    %56 = vector.load %arg6[%c0_57, %c0_58, %c0_59] : memref<3x4x12xf32, #tpu.memory_space<vmem>>, vector<3x4x12xf32>
    %c0_60 = arith.constant 0 : index
    %c0_61 = arith.constant 0 : index
    %57 = vector.load %arg7[%c0_60, %c0_61] : memref<4x12xf32, #tpu.memory_space<vmem>>, vector<4x12xf32>
    %cst_62 = arith.constant 0.000000e+00 : f32
    %58 = vector.broadcast %cst_62 : f32 to vector<4x3xf32>
    %c0_i32 = arith.constant 0 : i32
    %c100_i32 = arith.constant 100 : i32
    %59 = arith.addi %c0_i32, %c100_i32 : i32
    %c1_i32 = arith.constant 1 : i32
    %60:4 = scf.for %arg13 = %c0_i32 to %59 step %c1_i32 iter_args(%arg14 = %58, %arg15 = %58, %arg16 = %58, %arg17 = %58) -> (vector<4x3xf32>, vector<4x3xf32>, vector<4x3xf32>, vector<4x3xf32>)  : i32 {
      %c4_i32 = arith.constant 4 : i32
      %177 = arith.muli %arg13, %c4_i32 : i32
      %c0_i32_132 = arith.constant 0 : i32
      %178 = arith.addi %177, %c0_i32_132 : i32
      %c0_133 = arith.constant 0 : index
      %179 = arith.index_cast %178 : i32 to index
      %c0_134 = arith.constant 0 : index
      %180 = vector.load %arg11[%c0_133, %179, %c0_134] : memref<4x400x12xf32, #tpu.memory_space<vmem>>, vector<1x1x12xf32>
      %181 = vector.shape_cast %180 : vector<1x1x12xf32> to vector<1x12xf32>
      %c1_135 = arith.constant 1 : index
      %182 = arith.index_cast %178 : i32 to index
      %c0_136 = arith.constant 0 : index
      %183 = vector.load %arg11[%c1_135, %182, %c0_136] : memref<4x400x12xf32, #tpu.memory_space<vmem>>, vector<1x1x12xf32>
      %184 = vector.shape_cast %183 : vector<1x1x12xf32> to vector<1x12xf32>
      %c2_137 = arith.constant 2 : index
      %185 = arith.index_cast %178 : i32 to index
      %c0_138 = arith.constant 0 : index
      %186 = vector.load %arg11[%c2_137, %185, %c0_138] : memref<4x400x12xf32, #tpu.memory_space<vmem>>, vector<1x1x12xf32>
      %187 = vector.shape_cast %186 : vector<1x1x12xf32> to vector<1x12xf32>
      %c3_139 = arith.constant 3 : index
      %188 = arith.index_cast %178 : i32 to index
      %c0_140 = arith.constant 0 : index
      %189 = vector.load %arg11[%c3_139, %188, %c0_140] : memref<4x400x12xf32, #tpu.memory_space<vmem>>, vector<1x1x12xf32>
      %190 = vector.shape_cast %189 : vector<1x1x12xf32> to vector<1x12xf32>
      %191 = tpu.concatenate %181, %184, %187, %190 in 0 : vector<1x12xf32>, vector<1x12xf32>, vector<1x12xf32>, vector<1x12xf32> -> vector<4x12xf32>
      %192 = vector.extract_strided_slice %arg14 {offsets = [0, 0], sizes = [4, 1], strides = [1, 1]} : vector<4x3xf32> to vector<4x1xf32>
      %193 = vector.extract_strided_slice %54 {offsets = [0, 0, 0], sizes = [1, 4, 12], strides = [1, 1, 1]} : vector<3x4x12xf32> to vector<1x4x12xf32>
      %194 = vector.shape_cast %193 : vector<1x4x12xf32> to vector<4x12xf32>
      %195 = vector.broadcast %192 : vector<4x1xf32> to vector<4x12xf32>
      %196 = arith.mulf %195, %194 : vector<4x12xf32>
      %197 = vector.extract_strided_slice %arg14 {offsets = [0, 1], sizes = [4, 1], strides = [1, 1]} : vector<4x3xf32> to vector<4x1xf32>
      %198 = vector.extract_strided_slice %54 {offsets = [1, 0, 0], sizes = [1, 4, 12], strides = [1, 1, 1]} : vector<3x4x12xf32> to vector<1x4x12xf32>
      %199 = vector.shape_cast %198 : vector<1x4x12xf32> to vector<4x12xf32>
      %200 = vector.broadcast %197 : vector<4x1xf32> to vector<4x12xf32>
      %201 = arith.mulf %200, %199 : vector<4x12xf32>
      %202 = arith.addf %196, %201 : vector<4x12xf32>
      %203 = vector.extract_strided_slice %arg14 {offsets = [0, 2], sizes = [4, 1], strides = [1, 1]} : vector<4x3xf32> to vector<4x1xf32>
      %204 = vector.extract_strided_slice %54 {offsets = [2, 0, 0], sizes = [1, 4, 12], strides = [1, 1, 1]} : vector<3x4x12xf32> to vector<1x4x12xf32>
      %205 = vector.shape_cast %204 : vector<1x4x12xf32> to vector<4x12xf32>
      %206 = vector.broadcast %203 : vector<4x1xf32> to vector<4x12xf32>
      %207 = arith.mulf %206, %205 : vector<4x12xf32>
      %208 = arith.addf %202, %207 : vector<4x12xf32>
      %209 = arith.addf %191, %208 : vector<4x12xf32>
      %210 = vector.extract_strided_slice %209 {offsets = [0, 0], sizes = [4, 9], strides = [1, 1]} : vector<4x12xf32> to vector<4x9xf32>
      %211 = arith.negf %210 : vector<4x9xf32>
      %212 = math.exp %211 : vector<4x9xf32>
      %cst_141 = arith.constant 1.000000e+00 : f32
      %213 = vector.broadcast %cst_141 : f32 to vector<4x9xf32>
      %214 = arith.addf %213, %212 : vector<4x9xf32>
      %215 = arith.divf %213, %214 : vector<4x9xf32>
      %216 = vector.extract_strided_slice %209 {offsets = [0, 9], sizes = [4, 3], strides = [1, 1]} : vector<4x12xf32> to vector<4x3xf32>
      %217 = math.tanh %216 : vector<4x3xf32>
      %218 = vector.extract_strided_slice %215 {offsets = [0, 3], sizes = [4, 3], strides = [1, 1]} : vector<4x9xf32> to vector<4x3xf32>
      %219 = arith.mulf %218, %arg15 : vector<4x3xf32>
      %220 = vector.extract_strided_slice %215 {offsets = [0, 0], sizes = [4, 3], strides = [1, 1]} : vector<4x9xf32> to vector<4x3xf32>
      %221 = arith.mulf %220, %217 : vector<4x3xf32>
      %222 = arith.addf %219, %221 : vector<4x3xf32>
      %223 = vector.extract_strided_slice %215 {offsets = [0, 6], sizes = [4, 3], strides = [1, 1]} : vector<4x9xf32> to vector<4x3xf32>
      %224 = math.tanh %222 : vector<4x3xf32>
      %225 = arith.mulf %223, %224 : vector<4x3xf32>
      %226 = vector.extract_strided_slice %225 {offsets = [0, 0], sizes = [4, 1], strides = [1, 1]} : vector<4x3xf32> to vector<4x1xf32>
      %227 = vector.extract_strided_slice %55 {offsets = [0, 0, 0], sizes = [1, 4, 12], strides = [1, 1, 1]} : vector<3x4x12xf32> to vector<1x4x12xf32>
      %228 = vector.shape_cast %227 : vector<1x4x12xf32> to vector<4x12xf32>
      %229 = vector.broadcast %226 : vector<4x1xf32> to vector<4x12xf32>
      %230 = arith.mulf %229, %228 : vector<4x12xf32>
      %231 = vector.extract_strided_slice %225 {offsets = [0, 1], sizes = [4, 1], strides = [1, 1]} : vector<4x3xf32> to vector<4x1xf32>
      %232 = vector.extract_strided_slice %55 {offsets = [1, 0, 0], sizes = [1, 4, 12], strides = [1, 1, 1]} : vector<3x4x12xf32> to vector<1x4x12xf32>
      %233 = vector.shape_cast %232 : vector<1x4x12xf32> to vector<4x12xf32>
      %234 = vector.broadcast %231 : vector<4x1xf32> to vector<4x12xf32>
      %235 = arith.mulf %234, %233 : vector<4x12xf32>
      %236 = arith.addf %230, %235 : vector<4x12xf32>
      %237 = vector.extract_strided_slice %225 {offsets = [0, 2], sizes = [4, 1], strides = [1, 1]} : vector<4x3xf32> to vector<4x1xf32>
      %238 = vector.extract_strided_slice %55 {offsets = [2, 0, 0], sizes = [1, 4, 12], strides = [1, 1, 1]} : vector<3x4x12xf32> to vector<1x4x12xf32>
      %239 = vector.shape_cast %238 : vector<1x4x12xf32> to vector<4x12xf32>
      %240 = vector.broadcast %237 : vector<4x1xf32> to vector<4x12xf32>
      %241 = arith.mulf %240, %239 : vector<4x12xf32>
      %242 = arith.addf %236, %241 : vector<4x12xf32>
      %243 = arith.addf %57, %242 : vector<4x12xf32>
      %244 = vector.extract_strided_slice %arg16 {offsets = [0, 0], sizes = [4, 1], strides = [1, 1]} : vector<4x3xf32> to vector<4x1xf32>
      %245 = vector.extract_strided_slice %56 {offsets = [0, 0, 0], sizes = [1, 4, 12], strides = [1, 1, 1]} : vector<3x4x12xf32> to vector<1x4x12xf32>
      %246 = vector.shape_cast %245 : vector<1x4x12xf32> to vector<4x12xf32>
      %247 = vector.broadcast %244 : vector<4x1xf32> to vector<4x12xf32>
      %248 = arith.mulf %247, %246 : vector<4x12xf32>
      %249 = vector.extract_strided_slice %arg16 {offsets = [0, 1], sizes = [4, 1], strides = [1, 1]} : vector<4x3xf32> to vector<4x1xf32>
      %250 = vector.extract_strided_slice %56 {offsets = [1, 0, 0], sizes = [1, 4, 12], strides = [1, 1, 1]} : vector<3x4x12xf32> to vector<1x4x12xf32>
      %251 = vector.shape_cast %250 : vector<1x4x12xf32> to vector<4x12xf32>
      %252 = vector.broadcast %249 : vector<4x1xf32> to vector<4x12xf32>
      %253 = arith.mulf %252, %251 : vector<4x12xf32>
      %254 = arith.addf %248, %253 : vector<4x12xf32>
      %255 = vector.extract_strided_slice %arg16 {offsets = [0, 2], sizes = [4, 1], strides = [1, 1]} : vector<4x3xf32> to vector<4x1xf32>
      %256 = vector.extract_strided_slice %56 {offsets = [2, 0, 0], sizes = [1, 4, 12], strides = [1, 1, 1]} : vector<3x4x12xf32> to vector<1x4x12xf32>
      %257 = vector.shape_cast %256 : vector<1x4x12xf32> to vector<4x12xf32>
      %258 = vector.broadcast %255 : vector<4x1xf32> to vector<4x12xf32>
      %259 = arith.mulf %258, %257 : vector<4x12xf32>
      %260 = arith.addf %254, %259 : vector<4x12xf32>
      %261 = arith.addf %243, %260 : vector<4x12xf32>
      %262 = vector.extract_strided_slice %261 {offsets = [0, 0], sizes = [4, 9], strides = [1, 1]} : vector<4x12xf32> to vector<4x9xf32>
      %263 = arith.negf %262 : vector<4x9xf32>
      %264 = math.exp %263 : vector<4x9xf32>
      %cst_142 = arith.constant 1.000000e+00 : f32
      %265 = vector.broadcast %cst_142 : f32 to vector<4x9xf32>
      %266 = arith.addf %265, %264 : vector<4x9xf32>
      %267 = arith.divf %265, %266 : vector<4x9xf32>
      %268 = vector.extract_strided_slice %261 {offsets = [0, 9], sizes = [4, 3], strides = [1, 1]} : vector<4x12xf32> to vector<4x3xf32>
      %269 = math.tanh %268 : vector<4x3xf32>
      %270 = vector.extract_strided_slice %267 {offsets = [0, 3], sizes = [4, 3], strides = [1, 1]} : vector<4x9xf32> to vector<4x3xf32>
      %271 = arith.mulf %270, %arg17 : vector<4x3xf32>
      %272 = vector.extract_strided_slice %267 {offsets = [0, 0], sizes = [4, 3], strides = [1, 1]} : vector<4x9xf32> to vector<4x3xf32>
      %273 = arith.mulf %272, %269 : vector<4x3xf32>
      %274 = arith.addf %271, %273 : vector<4x3xf32>
      %275 = vector.extract_strided_slice %267 {offsets = [0, 6], sizes = [4, 3], strides = [1, 1]} : vector<4x9xf32> to vector<4x3xf32>
      %276 = math.tanh %274 : vector<4x3xf32>
      %277 = arith.mulf %275, %276 : vector<4x3xf32>
      %278 = vector.extract_strided_slice %277 {offsets = [0, 0], sizes = [1, 3], strides = [1, 1]} : vector<4x3xf32> to vector<1x3xf32>
      %c0_143 = arith.constant 0 : index
      %279 = arith.index_cast %178 : i32 to index
      %c0_144 = arith.constant 0 : index
      %280 = vector.load %arg12[%c0_143, %279, %c0_144] : memref<4x400x3xf32, #tpu.memory_space<vmem>>, vector<1x1x3xf32>
      %281 = vector.shape_cast %280 : vector<1x1x3xf32> to vector<1x3xf32>
      %282 = vector.shape_cast %278 : vector<1x3xf32> to vector<1x1x3xf32>
      tpu.vector_store %arg12[%c0_143, %279, %c0_144], %282 {strides = array<i32>} : memref<4x400x3xf32, #tpu.memory_space<vmem>>, vector<1x1x3xf32>,
      %283 = vector.extract_strided_slice %277 {offsets = [1, 0], sizes = [1, 3], strides = [1, 1]} : vector<4x3xf32> to vector<1x3xf32>
      %c1_145 = arith.constant 1 : index
      %284 = arith.index_cast %178 : i32 to index
      %c0_146 = arith.constant 0 : index
      %285 = vector.load %arg12[%c1_145, %284, %c0_146] : memref<4x400x3xf32, #tpu.memory_space<vmem>>, vector<1x1x3xf32>
      %286 = vector.shape_cast %285 : vector<1x1x3xf32> to vector<1x3xf32>
      %287 = vector.shape_cast %283 : vector<1x3xf32> to vector<1x1x3xf32>
      tpu.vector_store %arg12[%c1_145, %284, %c0_146], %287 {strides = array<i32>} : memref<4x400x3xf32, #tpu.memory_space<vmem>>, vector<1x1x3xf32>,
      %288 = vector.extract_strided_slice %277 {offsets = [2, 0], sizes = [1, 3], strides = [1, 1]} : vector<4x3xf32> to vector<1x3xf32>
      %c2_147 = arith.constant 2 : index
      %289 = arith.index_cast %178 : i32 to index
      %c0_148 = arith.constant 0 : index
      %290 = vector.load %arg12[%c2_147, %289, %c0_148] : memref<4x400x3xf32, #tpu.memory_space<vmem>>, vector<1x1x3xf32>
      %291 = vector.shape_cast %290 : vector<1x1x3xf32> to vector<1x3xf32>
      %292 = vector.shape_cast %288 : vector<1x3xf32> to vector<1x1x3xf32>
      tpu.vector_store %arg12[%c2_147, %289, %c0_148], %292 {strides = array<i32>} : memref<4x400x3xf32, #tpu.memory_space<vmem>>, vector<1x1x3xf32>,
      %293 = vector.extract_strided_slice %277 {offsets = [3, 0], sizes = [1, 3], strides = [1, 1]} : vector<4x3xf32> to vector<1x3xf32>
      %c3_149 = arith.constant 3 : index
      %294 = arith.index_cast %178 : i32 to index
      %c0_150 = arith.constant 0 : index
      %295 = vector.load %arg12[%c3_149, %294, %c0_150] : memref<4x400x3xf32, #tpu.memory_space<vmem>>, vector<1x1x3xf32>
      %296 = vector.shape_cast %295 : vector<1x1x3xf32> to vector<1x3xf32>
      %297 = vector.shape_cast %293 : vector<1x3xf32> to vector<1x1x3xf32>
      tpu.vector_store %arg12[%c3_149, %294, %c0_150], %297 {strides = array<i32>} : memref<4x400x3xf32, #tpu.memory_space<vmem>>, vector<1x1x3xf32>,
      %c4_i32_151 = arith.constant 4 : i32
      %298 = arith.muli %arg13, %c4_i32_151 : i32
      %c1_i32_152 = arith.constant 1 : i32
      %299 = arith.addi %298, %c1_i32_152 : i32
      %c0_153 = arith.constant 0 : index
      %300 = arith.index_cast %299 : i32 to index
      %c0_154 = arith.constant 0 : index
      %301 = vector.load %arg11[%c0_153, %300, %c0_154] : memref<4x400x12xf32, #tpu.memory_space<vmem>>, vector<1x1x12xf32>
      %302 = vector.shape_cast %301 : vector<1x1x12xf32> to vector<1x12xf32>
      %c1_155 = arith.constant 1 : index
      %303 = arith.index_cast %299 : i32 to index
      %c0_156 = arith.constant 0 : index
      %304 = vector.load %arg11[%c1_155, %303, %c0_156] : memref<4x400x12xf32, #tpu.memory_space<vmem>>, vector<1x1x12xf32>
      %305 = vector.shape_cast %304 : vector<1x1x12xf32> to vector<1x12xf32>
      %c2_157 = arith.constant 2 : index
      %306 = arith.index_cast %299 : i32 to index
      %c0_158 = arith.constant 0 : index
      %307 = vector.load %arg11[%c2_157, %306, %c0_158] : memref<4x400x12xf32, #tpu.memory_space<vmem>>, vector<1x1x12xf32>
      %308 = vector.shape_cast %307 : vector<1x1x12xf32> to vector<1x12xf32>
      %c3_159 = arith.constant 3 : index
      %309 = arith.index_cast %299 : i32 to index
      %c0_160 = arith.constant 0 : index
      %310 = vector.load %arg11[%c3_159, %309, %c0_160] : memref<4x400x12xf32, #tpu.memory_space<vmem>>, vector<1x1x12xf32>
      %311 = vector.shape_cast %310 : vector<1x1x12xf32> to vector<1x12xf32>
      %312 = tpu.concatenate %302, %305, %308, %311 in 0 : vector<1x12xf32>, vector<1x12xf32>, vector<1x12xf32>, vector<1x12xf32> -> vector<4x12xf32>
      %313 = vector.extract_strided_slice %225 {offsets = [0, 0], sizes = [4, 1], strides = [1, 1]} : vector<4x3xf32> to vector<4x1xf32>
      %314 = vector.extract_strided_slice %54 {offsets = [0, 0, 0], sizes = [1, 4, 12], strides = [1, 1, 1]} : vector<3x4x12xf32> to vector<1x4x12xf32>
      %315 = vector.shape_cast %314 : vector<1x4x12xf32> to vector<4x12xf32>
      %316 = vector.broadcast %313 : vector<4x1xf32> to vector<4x12xf32>
      %317 = arith.mulf %316, %315 : vector<4x12xf32>
      %318 = vector.extract_strided_slice %225 {offsets = [0, 1], sizes = [4, 1], strides = [1, 1]} : vector<4x3xf32> to vector<4x1xf32>
      %319 = vector.extract_strided_slice %54 {offsets = [1, 0, 0], sizes = [1, 4, 12], strides = [1, 1, 1]} : vector<3x4x12xf32> to vector<1x4x12xf32>
      %320 = vector.shape_cast %319 : vector<1x4x12xf32> to vector<4x12xf32>
      %321 = vector.broadcast %318 : vector<4x1xf32> to vector<4x12xf32>
      %322 = arith.mulf %321, %320 : vector<4x12xf32>
      %323 = arith.addf %317, %322 : vector<4x12xf32>
      %324 = vector.extract_strided_slice %225 {offsets = [0, 2], sizes = [4, 1], strides = [1, 1]} : vector<4x3xf32> to vector<4x1xf32>
      %325 = vector.extract_strided_slice %54 {offsets = [2, 0, 0], sizes = [1, 4, 12], strides = [1, 1, 1]} : vector<3x4x12xf32> to vector<1x4x12xf32>
      %326 = vector.shape_cast %325 : vector<1x4x12xf32> to vector<4x12xf32>
      %327 = vector.broadcast %324 : vector<4x1xf32> to vector<4x12xf32>
      %328 = arith.mulf %327, %326 : vector<4x12xf32>
      %329 = arith.addf %323, %328 : vector<4x12xf32>
      %330 = arith.addf %312, %329 : vector<4x12xf32>
      %331 = vector.extract_strided_slice %330 {offsets = [0, 0], sizes = [4, 9], strides = [1, 1]} : vector<4x12xf32> to vector<4x9xf32>
      %332 = arith.negf %331 : vector<4x9xf32>
      %333 = math.exp %332 : vector<4x9xf32>
      %cst_161 = arith.constant 1.000000e+00 : f32
      %334 = vector.broadcast %cst_161 : f32 to vector<4x9xf32>
      %335 = arith.addf %334, %333 : vector<4x9xf32>
      %336 = arith.divf %334, %335 : vector<4x9xf32>
      %337 = vector.extract_strided_slice %330 {offsets = [0, 9], sizes = [4, 3], strides = [1, 1]} : vector<4x12xf32> to vector<4x3xf32>
      %338 = math.tanh %337 : vector<4x3xf32>
      %339 = vector.extract_strided_slice %336 {offsets = [0, 3], sizes = [4, 3], strides = [1, 1]} : vector<4x9xf32> to vector<4x3xf32>
      %340 = arith.mulf %339, %222 : vector<4x3xf32>
      %341 = vector.extract_strided_slice %336 {offsets = [0, 0], sizes = [4, 3], strides = [1, 1]} : vector<4x9xf32> to vector<4x3xf32>
      %342 = arith.mulf %341, %338 : vector<4x3xf32>
      %343 = arith.addf %340, %342 : vector<4x3xf32>
      %344 = vector.extract_strided_slice %336 {offsets = [0, 6], sizes = [4, 3], strides = [1, 1]} : vector<4x9xf32> to vector<4x3xf32>
      %345 = math.tanh %343 : vector<4x3xf32>
      %346 = arith.mulf %344, %345 : vector<4x3xf32>
      %347 = vector.extract_strided_slice %346 {offsets = [0, 0], sizes = [4, 1], strides = [1, 1]} : vector<4x3xf32> to vector<4x1xf32>
      %348 = vector.extract_strided_slice %55 {offsets = [0, 0, 0], sizes = [1, 4, 12], strides = [1, 1, 1]} : vector<3x4x12xf32> to vector<1x4x12xf32>
      %349 = vector.shape_cast %348 : vector<1x4x12xf32> to vector<4x12xf32>
      %350 = vector.broadcast %347 : vector<4x1xf32> to vector<4x12xf32>
      %351 = arith.mulf %350, %349 : vector<4x12xf32>
      %352 = vector.extract_strided_slice %346 {offsets = [0, 1], sizes = [4, 1], strides = [1, 1]} : vector<4x3xf32> to vector<4x1xf32>
      %353 = vector.extract_strided_slice %55 {offsets = [1, 0, 0], sizes = [1, 4, 12], strides = [1, 1, 1]} : vector<3x4x12xf32> to vector<1x4x12xf32>
      %354 = vector.shape_cast %353 : vector<1x4x12xf32> to vector<4x12xf32>
      %355 = vector.broadcast %352 : vector<4x1xf32> to vector<4x12xf32>
      %356 = arith.mulf %355, %354 : vector<4x12xf32>
      %357 = arith.addf %351, %356 : vector<4x12xf32>
      %358 = vector.extract_strided_slice %346 {offsets = [0, 2], sizes = [4, 1], strides = [1, 1]} : vector<4x3xf32> to vector<4x1xf32>
      %359 = vector.extract_strided_slice %55 {offsets = [2, 0, 0], sizes = [1, 4, 12], strides = [1, 1, 1]} : vector<3x4x12xf32> to vector<1x4x12xf32>
      %360 = vector.shape_cast %359 : vector<1x4x12xf32> to vector<4x12xf32>
      %361 = vector.broadcast %358 : vector<4x1xf32> to vector<4x12xf32>
      %362 = arith.mulf %361, %360 : vector<4x12xf32>
      %363 = arith.addf %357, %362 : vector<4x12xf32>
      %364 = arith.addf %57, %363 : vector<4x12xf32>
      %365 = vector.extract_strided_slice %277 {offsets = [0, 0], sizes = [4, 1], strides = [1, 1]} : vector<4x3xf32> to vector<4x1xf32>
      %366 = vector.extract_strided_slice %56 {offsets = [0, 0, 0], sizes = [1, 4, 12], strides = [1, 1, 1]} : vector<3x4x12xf32> to vector<1x4x12xf32>
      %367 = vector.shape_cast %366 : vector<1x4x12xf32> to vector<4x12xf32>
      %368 = vector.broadcast %365 : vector<4x1xf32> to vector<4x12xf32>
      %369 = arith.mulf %368, %367 : vector<4x12xf32>
      %370 = vector.extract_strided_slice %277 {offsets = [0, 1], sizes = [4, 1], strides = [1, 1]} : vector<4x3xf32> to vector<4x1xf32>
      %371 = vector.extract_strided_slice %56 {offsets = [1, 0, 0], sizes = [1, 4, 12], strides = [1, 1, 1]} : vector<3x4x12xf32> to vector<1x4x12xf32>
      %372 = vector.shape_cast %371 : vector<1x4x12xf32> to vector<4x12xf32>
      %373 = vector.broadcast %370 : vector<4x1xf32> to vector<4x12xf32>
      %374 = arith.mulf %373, %372 : vector<4x12xf32>
      %375 = arith.addf %369, %374 : vector<4x12xf32>
      %376 = vector.extract_strided_slice %277 {offsets = [0, 2], sizes = [4, 1], strides = [1, 1]} : vector<4x3xf32> to vector<4x1xf32>
      %377 = vector.extract_strided_slice %56 {offsets = [2, 0, 0], sizes = [1, 4, 12], strides = [1, 1, 1]} : vector<3x4x12xf32> to vector<1x4x12xf32>
      %378 = vector.shape_cast %377 : vector<1x4x12xf32> to vector<4x12xf32>
      %379 = vector.broadcast %376 : vector<4x1xf32> to vector<4x12xf32>
      %380 = arith.mulf %379, %378 : vector<4x12xf32>
      %381 = arith.addf %375, %380 : vector<4x12xf32>
      %382 = arith.addf %364, %381 : vector<4x12xf32>
      %383 = vector.extract_strided_slice %382 {offsets = [0, 0], sizes = [4, 9], strides = [1, 1]} : vector<4x12xf32> to vector<4x9xf32>
      %384 = arith.negf %383 : vector<4x9xf32>
      %385 = math.exp %384 : vector<4x9xf32>
      %cst_162 = arith.constant 1.000000e+00 : f32
      %386 = vector.broadcast %cst_162 : f32 to vector<4x9xf32>
      %387 = arith.addf %386, %385 : vector<4x9xf32>
      %388 = arith.divf %386, %387 : vector<4x9xf32>
      %389 = vector.extract_strided_slice %382 {offsets = [0, 9], sizes = [4, 3], strides = [1, 1]} : vector<4x12xf32> to vector<4x3xf32>
      %390 = math.tanh %389 : vector<4x3xf32>
      %391 = vector.extract_strided_slice %388 {offsets = [0, 3], sizes = [4, 3], strides = [1, 1]} : vector<4x9xf32> to vector<4x3xf32>
      %392 = arith.mulf %391, %274 : vector<4x3xf32>
      %393 = vector.extract_strided_slice %388 {offsets = [0, 0], sizes = [4, 3], strides = [1, 1]} : vector<4x9xf32> to vector<4x3xf32>
      %394 = arith.mulf %393, %390 : vector<4x3xf32>
      %395 = arith.addf %392, %394 : vector<4x3xf32>
      %396 = vector.extract_strided_slice %388 {offsets = [0, 6], sizes = [4, 3], strides = [1, 1]} : vector<4x9xf32> to vector<4x3xf32>
      %397 = math.tanh %395 : vector<4x3xf32>
      %398 = arith.mulf %396, %397 : vector<4x3xf32>
      %399 = vector.extract_strided_slice %398 {offsets = [0, 0], sizes = [1, 3], strides = [1, 1]} : vector<4x3xf32> to vector<1x3xf32>
      %c0_163 = arith.constant 0 : index
      %400 = arith.index_cast %299 : i32 to index
      %c0_164 = arith.constant 0 : index
      %401 = vector.load %arg12[%c0_163, %400, %c0_164] : memref<4x400x3xf32, #tpu.memory_space<vmem>>, vector<1x1x3xf32>
      %402 = vector.shape_cast %401 : vector<1x1x3xf32> to vector<1x3xf32>
      %403 = vector.shape_cast %399 : vector<1x3xf32> to vector<1x1x3xf32>
      tpu.vector_store %arg12[%c0_163, %400, %c0_164], %403 {strides = array<i32>} : memref<4x400x3xf32, #tpu.memory_space<vmem>>, vector<1x1x3xf32>,
      %404 = vector.extract_strided_slice %398 {offsets = [1, 0], sizes = [1, 3], strides = [1, 1]} : vector<4x3xf32> to vector<1x3xf32>
      %c1_165 = arith.constant 1 : index
      %405 = arith.index_cast %299 : i32 to index
      %c0_166 = arith.constant 0 : index
      %406 = vector.load %arg12[%c1_165, %405, %c0_166] : memref<4x400x3xf32, #tpu.memory_space<vmem>>, vector<1x1x3xf32>
      %407 = vector.shape_cast %406 : vector<1x1x3xf32> to vector<1x3xf32>
      %408 = vector.shape_cast %404 : vector<1x3xf32> to vector<1x1x3xf32>
      tpu.vector_store %arg12[%c1_165, %405, %c0_166], %408 {strides = array<i32>} : memref<4x400x3xf32, #tpu.memory_space<vmem>>, vector<1x1x3xf32>,
      %409 = vector.extract_strided_slice %398 {offsets = [2, 0], sizes = [1, 3], strides = [1, 1]} : vector<4x3xf32> to vector<1x3xf32>
      %c2_167 = arith.constant 2 : index
      %410 = arith.index_cast %299 : i32 to index
      %c0_168 = arith.constant 0 : index
      %411 = vector.load %arg12[%c2_167, %410, %c0_168] : memref<4x400x3xf32, #tpu.memory_space<vmem>>, vector<1x1x3xf32>
      %412 = vector.shape_cast %411 : vector<1x1x3xf32> to vector<1x3xf32>
      %413 = vector.shape_cast %409 : vector<1x3xf32> to vector<1x1x3xf32>
      tpu.vector_store %arg12[%c2_167, %410, %c0_168], %413 {strides = array<i32>} : memref<4x400x3xf32, #tpu.memory_space<vmem>>, vector<1x1x3xf32>,
      %414 = vector.extract_strided_slice %398 {offsets = [3, 0], sizes = [1, 3], strides = [1, 1]} : vector<4x3xf32> to vector<1x3xf32>
      %c3_169 = arith.constant 3 : index
      %415 = arith.index_cast %299 : i32 to index
      %c0_170 = arith.constant 0 : index
      %416 = vector.load %arg12[%c3_169, %415, %c0_170] : memref<4x400x3xf32, #tpu.memory_space<vmem>>, vector<1x1x3xf32>
      %417 = vector.shape_cast %416 : vector<1x1x3xf32> to vector<1x3xf32>
      %418 = vector.shape_cast %414 : vector<1x3xf32> to vector<1x1x3xf32>
      tpu.vector_store %arg12[%c3_169, %415, %c0_170], %418 {strides = array<i32>} : memref<4x400x3xf32, #tpu.memory_space<vmem>>, vector<1x1x3xf32>,
      %c4_i32_171 = arith.constant 4 : i32
      %419 = arith.muli %arg13, %c4_i32_171 : i32
      %c2_i32 = arith.constant 2 : i32
      %420 = arith.addi %419, %c2_i32 : i32
      %c0_172 = arith.constant 0 : index
      %421 = arith.index_cast %420 : i32 to index
      %c0_173 = arith.constant 0 : index
      %422 = vector.load %arg11[%c0_172, %421, %c0_173] : memref<4x400x12xf32, #tpu.memory_space<vmem>>, vector<1x1x12xf32>
      %423 = vector.shape_cast %422 : vector<1x1x12xf32> to vector<1x12xf32>
      %c1_174 = arith.constant 1 : index
      %424 = arith.index_cast %420 : i32 to index
      %c0_175 = arith.constant 0 : index
      %425 = vector.load %arg11[%c1_174, %424, %c0_175] : memref<4x400x12xf32, #tpu.memory_space<vmem>>, vector<1x1x12xf32>
      %426 = vector.shape_cast %425 : vector<1x1x12xf32> to vector<1x12xf32>
      %c2_176 = arith.constant 2 : index
      %427 = arith.index_cast %420 : i32 to index
      %c0_177 = arith.constant 0 : index
      %428 = vector.load %arg11[%c2_176, %427, %c0_177] : memref<4x400x12xf32, #tpu.memory_space<vmem>>, vector<1x1x12xf32>
      %429 = vector.shape_cast %428 : vector<1x1x12xf32> to vector<1x12xf32>
      %c3_178 = arith.constant 3 : index
      %430 = arith.index_cast %420 : i32 to index
      %c0_179 = arith.constant 0 : index
      %431 = vector.load %arg11[%c3_178, %430, %c0_179] : memref<4x400x12xf32, #tpu.memory_space<vmem>>, vector<1x1x12xf32>
      %432 = vector.shape_cast %431 : vector<1x1x12xf32> to vector<1x12xf32>
      %433 = tpu.concatenate %423, %426, %429, %432 in 0 : vector<1x12xf32>, vector<1x12xf32>, vector<1x12xf32>, vector<1x12xf32> -> vector<4x12xf32>
      %434 = vector.extract_strided_slice %346 {offsets = [0, 0], sizes = [4, 1], strides = [1, 1]} : vector<4x3xf32> to vector<4x1xf32>
      %435 = vector.extract_strided_slice %54 {offsets = [0, 0, 0], sizes = [1, 4, 12], strides = [1, 1, 1]} : vector<3x4x12xf32> to vector<1x4x12xf32>
      %436 = vector.shape_cast %435 : vector<1x4x12xf32> to vector<4x12xf32>
      %437 = vector.broadcast %434 : vector<4x1xf32> to vector<4x12xf32>
      %438 = arith.mulf %437, %436 : vector<4x12xf32>
      %439 = vector.extract_strided_slice %346 {offsets = [0, 1], sizes = [4, 1], strides = [1, 1]} : vector<4x3xf32> to vector<4x1xf32>
      %440 = vector.extract_strided_slice %54 {offsets = [1, 0, 0], sizes = [1, 4, 12], strides = [1, 1, 1]} : vector<3x4x12xf32> to vector<1x4x12xf32>
      %441 = vector.shape_cast %440 : vector<1x4x12xf32> to vector<4x12xf32>
      %442 = vector.broadcast %439 : vector<4x1xf32> to vector<4x12xf32>
      %443 = arith.mulf %442, %441 : vector<4x12xf32>
      %444 = arith.addf %438, %443 : vector<4x12xf32>
      %445 = vector.extract_strided_slice %346 {offsets = [0, 2], sizes = [4, 1], strides = [1, 1]} : vector<4x3xf32> to vector<4x1xf32>
      %446 = vector.extract_strided_slice %54 {offsets = [2, 0, 0], sizes = [1, 4, 12], strides = [1, 1, 1]} : vector<3x4x12xf32> to vector<1x4x12xf32>
      %447 = vector.shape_cast %446 : vector<1x4x12xf32> to vector<4x12xf32>
      %448 = vector.broadcast %445 : vector<4x1xf32> to vector<4x12xf32>
      %449 = arith.mulf %448, %447 : vector<4x12xf32>
      %450 = arith.addf %444, %449 : vector<4x12xf32>
      %451 = arith.addf %433, %450 : vector<4x12xf32>
      %452 = vector.extract_strided_slice %451 {offsets = [0, 0], sizes = [4, 9], strides = [1, 1]} : vector<4x12xf32> to vector<4x9xf32>
      %453 = arith.negf %452 : vector<4x9xf32>
      %454 = math.exp %453 : vector<4x9xf32>
      %cst_180 = arith.constant 1.000000e+00 : f32
      %455 = vector.broadcast %cst_180 : f32 to vector<4x9xf32>
      %456 = arith.addf %455, %454 : vector<4x9xf32>
      %457 = arith.divf %455, %456 : vector<4x9xf32>
      %458 = vector.extract_strided_slice %451 {offsets = [0, 9], sizes = [4, 3], strides = [1, 1]} : vector<4x12xf32> to vector<4x3xf32>
      %459 = math.tanh %458 : vector<4x3xf32>
      %460 = vector.extract_strided_slice %457 {offsets = [0, 3], sizes = [4, 3], strides = [1, 1]} : vector<4x9xf32> to vector<4x3xf32>
      %461 = arith.mulf %460, %343 : vector<4x3xf32>
      %462 = vector.extract_strided_slice %457 {offsets = [0, 0], sizes = [4, 3], strides = [1, 1]} : vector<4x9xf32> to vector<4x3xf32>
      %463 = arith.mulf %462, %459 : vector<4x3xf32>
      %464 = arith.addf %461, %463 : vector<4x3xf32>
      %465 = vector.extract_strided_slice %457 {offsets = [0, 6], sizes = [4, 3], strides = [1, 1]} : vector<4x9xf32> to vector<4x3xf32>
      %466 = math.tanh %464 : vector<4x3xf32>
      %467 = arith.mulf %465, %466 : vector<4x3xf32>
      %468 = vector.extract_strided_slice %467 {offsets = [0, 0], sizes = [4, 1], strides = [1, 1]} : vector<4x3xf32> to vector<4x1xf32>
      %469 = vector.extract_strided_slice %55 {offsets = [0, 0, 0], sizes = [1, 4, 12], strides = [1, 1, 1]} : vector<3x4x12xf32> to vector<1x4x12xf32>
      %470 = vector.shape_cast %469 : vector<1x4x12xf32> to vector<4x12xf32>
      %471 = vector.broadcast %468 : vector<4x1xf32> to vector<4x12xf32>
      %472 = arith.mulf %471, %470 : vector<4x12xf32>
      %473 = vector.extract_strided_slice %467 {offsets = [0, 1], sizes = [4, 1], strides = [1, 1]} : vector<4x3xf32> to vector<4x1xf32>
      %474 = vector.extract_strided_slice %55 {offsets = [1, 0, 0], sizes = [1, 4, 12], strides = [1, 1, 1]} : vector<3x4x12xf32> to vector<1x4x12xf32>
      %475 = vector.shape_cast %474 : vector<1x4x12xf32> to vector<4x12xf32>
      %476 = vector.broadcast %473 : vector<4x1xf32> to vector<4x12xf32>
      %477 = arith.mulf %476, %475 : vector<4x12xf32>
      %478 = arith.addf %472, %477 : vector<4x12xf32>
      %479 = vector.extract_strided_slice %467 {offsets = [0, 2], sizes = [4, 1], strides = [1, 1]} : vector<4x3xf32> to vector<4x1xf32>
      %480 = vector.extract_strided_slice %55 {offsets = [2, 0, 0], sizes = [1, 4, 12], strides = [1, 1, 1]} : vector<3x4x12xf32> to vector<1x4x12xf32>
      %481 = vector.shape_cast %480 : vector<1x4x12xf32> to vector<4x12xf32>
      %482 = vector.broadcast %479 : vector<4x1xf32> to vector<4x12xf32>
      %483 = arith.mulf %482, %481 : vector<4x12xf32>
      %484 = arith.addf %478, %483 : vector<4x12xf32>
      %485 = arith.addf %57, %484 : vector<4x12xf32>
      %486 = vector.extract_strided_slice %398 {offsets = [0, 0], sizes = [4, 1], strides = [1, 1]} : vector<4x3xf32> to vector<4x1xf32>
      %487 = vector.extract_strided_slice %56 {offsets = [0, 0, 0], sizes = [1, 4, 12], strides = [1, 1, 1]} : vector<3x4x12xf32> to vector<1x4x12xf32>
      %488 = vector.shape_cast %487 : vector<1x4x12xf32> to vector<4x12xf32>
      %489 = vector.broadcast %486 : vector<4x1xf32> to vector<4x12xf32>
      %490 = arith.mulf %489, %488 : vector<4x12xf32>
      %491 = vector.extract_strided_slice %398 {offsets = [0, 1], sizes = [4, 1], strides = [1, 1]} : vector<4x3xf32> to vector<4x1xf32>
      %492 = vector.extract_strided_slice %56 {offsets = [1, 0, 0], sizes = [1, 4, 12], strides = [1, 1, 1]} : vector<3x4x12xf32> to vector<1x4x12xf32>
      %493 = vector.shape_cast %492 : vector<1x4x12xf32> to vector<4x12xf32>
      %494 = vector.broadcast %491 : vector<4x1xf32> to vector<4x12xf32>
      %495 = arith.mulf %494, %493 : vector<4x12xf32>
      %496 = arith.addf %490, %495 : vector<4x12xf32>
      %497 = vector.extract_strided_slice %398 {offsets = [0, 2], sizes = [4, 1], strides = [1, 1]} : vector<4x3xf32> to vector<4x1xf32>
      %498 = vector.extract_strided_slice %56 {offsets = [2, 0, 0], sizes = [1, 4, 12], strides = [1, 1, 1]} : vector<3x4x12xf32> to vector<1x4x12xf32>
      %499 = vector.shape_cast %498 : vector<1x4x12xf32> to vector<4x12xf32>
      %500 = vector.broadcast %497 : vector<4x1xf32> to vector<4x12xf32>
      %501 = arith.mulf %500, %499 : vector<4x12xf32>
      %502 = arith.addf %496, %501 : vector<4x12xf32>
      %503 = arith.addf %485, %502 : vector<4x12xf32>
      %504 = vector.extract_strided_slice %503 {offsets = [0, 0], sizes = [4, 9], strides = [1, 1]} : vector<4x12xf32> to vector<4x9xf32>
      %505 = arith.negf %504 : vector<4x9xf32>
      %506 = math.exp %505 : vector<4x9xf32>
      %cst_181 = arith.constant 1.000000e+00 : f32
      %507 = vector.broadcast %cst_181 : f32 to vector<4x9xf32>
      %508 = arith.addf %507, %506 : vector<4x9xf32>
      %509 = arith.divf %507, %508 : vector<4x9xf32>
      %510 = vector.extract_strided_slice %503 {offsets = [0, 9], sizes = [4, 3], strides = [1, 1]} : vector<4x12xf32> to vector<4x3xf32>
      %511 = math.tanh %510 : vector<4x3xf32>
      %512 = vector.extract_strided_slice %509 {offsets = [0, 3], sizes = [4, 3], strides = [1, 1]} : vector<4x9xf32> to vector<4x3xf32>
      %513 = arith.mulf %512, %395 : vector<4x3xf32>
      %514 = vector.extract_strided_slice %509 {offsets = [0, 0], sizes = [4, 3], strides = [1, 1]} : vector<4x9xf32> to vector<4x3xf32>
      %515 = arith.mulf %514, %511 : vector<4x3xf32>
      %516 = arith.addf %513, %515 : vector<4x3xf32>
      %517 = vector.extract_strided_slice %509 {offsets = [0, 6], sizes = [4, 3], strides = [1, 1]} : vector<4x9xf32> to vector<4x3xf32>
      %518 = math.tanh %516 : vector<4x3xf32>
      %519 = arith.mulf %517, %518 : vector<4x3xf32>
      %520 = vector.extract_strided_slice %519 {offsets = [0, 0], sizes = [1, 3], strides = [1, 1]} : vector<4x3xf32> to vector<1x3xf32>
      %c0_182 = arith.constant 0 : index
      %521 = arith.index_cast %420 : i32 to index
      %c0_183 = arith.constant 0 : index
      %522 = vector.load %arg12[%c0_182, %521, %c0_183] : memref<4x400x3xf32, #tpu.memory_space<vmem>>, vector<1x1x3xf32>
      %523 = vector.shape_cast %522 : vector<1x1x3xf32> to vector<1x3xf32>
      %524 = vector.shape_cast %520 : vector<1x3xf32> to vector<1x1x3xf32>
      tpu.vector_store %arg12[%c0_182, %521, %c0_183], %524 {strides = array<i32>} : memref<4x400x3xf32, #tpu.memory_space<vmem>>, vector<1x1x3xf32>,
      %525 = vector.extract_strided_slice %519 {offsets = [1, 0], sizes = [1, 3], strides = [1, 1]} : vector<4x3xf32> to vector<1x3xf32>
      %c1_184 = arith.constant 1 : index
      %526 = arith.index_cast %420 : i32 to index
      %c0_185 = arith.constant 0 : index
      %527 = vector.load %arg12[%c1_184, %526, %c0_185] : memref<4x400x3xf32, #tpu.memory_space<vmem>>, vector<1x1x3xf32>
      %528 = vector.shape_cast %527 : vector<1x1x3xf32> to vector<1x3xf32>
      %529 = vector.shape_cast %525 : vector<1x3xf32> to vector<1x1x3xf32>
      tpu.vector_store %arg12[%c1_184, %526, %c0_185], %529 {strides = array<i32>} : memref<4x400x3xf32, #tpu.memory_space<vmem>>, vector<1x1x3xf32>,
      %530 = vector.extract_strided_slice %519 {offsets = [2, 0], sizes = [1, 3], strides = [1, 1]} : vector<4x3xf32> to vector<1x3xf32>
      %c2_186 = arith.constant 2 : index
      %531 = arith.index_cast %420 : i32 to index
      %c0_187 = arith.constant 0 : index
      %532 = vector.load %arg12[%c2_186, %531, %c0_187] : memref<4x400x3xf32, #tpu.memory_space<vmem>>, vector<1x1x3xf32>
      %533 = vector.shape_cast %532 : vector<1x1x3xf32> to vector<1x3xf32>
      %534 = vector.shape_cast %530 : vector<1x3xf32> to vector<1x1x3xf32>
      tpu.vector_store %arg12[%c2_186, %531, %c0_187], %534 {strides = array<i32>} : memref<4x400x3xf32, #tpu.memory_space<vmem>>, vector<1x1x3xf32>,
      %535 = vector.extract_strided_slice %519 {offsets = [3, 0], sizes = [1, 3], strides = [1, 1]} : vector<4x3xf32> to vector<1x3xf32>
      %c3_188 = arith.constant 3 : index
      %536 = arith.index_cast %420 : i32 to index
      %c0_189 = arith.constant 0 : index
      %537 = vector.load %arg12[%c3_188, %536, %c0_189] : memref<4x400x3xf32, #tpu.memory_space<vmem>>, vector<1x1x3xf32>
      %538 = vector.shape_cast %537 : vector<1x1x3xf32> to vector<1x3xf32>
      %539 = vector.shape_cast %535 : vector<1x3xf32> to vector<1x1x3xf32>
      tpu.vector_store %arg12[%c3_188, %536, %c0_189], %539 {strides = array<i32>} : memref<4x400x3xf32, #tpu.memory_space<vmem>>, vector<1x1x3xf32>,
      %c4_i32_190 = arith.constant 4 : i32
      %540 = arith.muli %arg13, %c4_i32_190 : i32
      %c3_i32 = arith.constant 3 : i32
      %541 = arith.addi %540, %c3_i32 : i32
      %c0_191 = arith.constant 0 : index
      %542 = arith.index_cast %541 : i32 to index
      %c0_192 = arith.constant 0 : index
      %543 = vector.load %arg11[%c0_191, %542, %c0_192] : memref<4x400x12xf32, #tpu.memory_space<vmem>>, vector<1x1x12xf32>
      %544 = vector.shape_cast %543 : vector<1x1x12xf32> to vector<1x12xf32>
      %c1_193 = arith.constant 1 : index
      %545 = arith.index_cast %541 : i32 to index
      %c0_194 = arith.constant 0 : index
      %546 = vector.load %arg11[%c1_193, %545, %c0_194] : memref<4x400x12xf32, #tpu.memory_space<vmem>>, vector<1x1x12xf32>
      %547 = vector.shape_cast %546 : vector<1x1x12xf32> to vector<1x12xf32>
      %c2_195 = arith.constant 2 : index
      %548 = arith.index_cast %541 : i32 to index
      %c0_196 = arith.constant 0 : index
      %549 = vector.load %arg11[%c2_195, %548, %c0_196] : memref<4x400x12xf32, #tpu.memory_space<vmem>>, vector<1x1x12xf32>
      %550 = vector.shape_cast %549 : vector<1x1x12xf32> to vector<1x12xf32>
      %c3_197 = arith.constant 3 : index
      %551 = arith.index_cast %541 : i32 to index
      %c0_198 = arith.constant 0 : index
      %552 = vector.load %arg11[%c3_197, %551, %c0_198] : memref<4x400x12xf32, #tpu.memory_space<vmem>>, vector<1x1x12xf32>
      %553 = vector.shape_cast %552 : vector<1x1x12xf32> to vector<1x12xf32>
      %554 = tpu.concatenate %544, %547, %550, %553 in 0 : vector<1x12xf32>, vector<1x12xf32>, vector<1x12xf32>, vector<1x12xf32> -> vector<4x12xf32>
      %555 = vector.extract_strided_slice %467 {offsets = [0, 0], sizes = [4, 1], strides = [1, 1]} : vector<4x3xf32> to vector<4x1xf32>
      %556 = vector.extract_strided_slice %54 {offsets = [0, 0, 0], sizes = [1, 4, 12], strides = [1, 1, 1]} : vector<3x4x12xf32> to vector<1x4x12xf32>
      %557 = vector.shape_cast %556 : vector<1x4x12xf32> to vector<4x12xf32>
      %558 = vector.broadcast %555 : vector<4x1xf32> to vector<4x12xf32>
      %559 = arith.mulf %558, %557 : vector<4x12xf32>
      %560 = vector.extract_strided_slice %467 {offsets = [0, 1], sizes = [4, 1], strides = [1, 1]} : vector<4x3xf32> to vector<4x1xf32>
      %561 = vector.extract_strided_slice %54 {offsets = [1, 0, 0], sizes = [1, 4, 12], strides = [1, 1, 1]} : vector<3x4x12xf32> to vector<1x4x12xf32>
      %562 = vector.shape_cast %561 : vector<1x4x12xf32> to vector<4x12xf32>
      %563 = vector.broadcast %560 : vector<4x1xf32> to vector<4x12xf32>
      %564 = arith.mulf %563, %562 : vector<4x12xf32>
      %565 = arith.addf %559, %564 : vector<4x12xf32>
      %566 = vector.extract_strided_slice %467 {offsets = [0, 2], sizes = [4, 1], strides = [1, 1]} : vector<4x3xf32> to vector<4x1xf32>
      %567 = vector.extract_strided_slice %54 {offsets = [2, 0, 0], sizes = [1, 4, 12], strides = [1, 1, 1]} : vector<3x4x12xf32> to vector<1x4x12xf32>
      %568 = vector.shape_cast %567 : vector<1x4x12xf32> to vector<4x12xf32>
      %569 = vector.broadcast %566 : vector<4x1xf32> to vector<4x12xf32>
      %570 = arith.mulf %569, %568 : vector<4x12xf32>
      %571 = arith.addf %565, %570 : vector<4x12xf32>
      %572 = arith.addf %554, %571 : vector<4x12xf32>
      %573 = vector.extract_strided_slice %572 {offsets = [0, 0], sizes = [4, 9], strides = [1, 1]} : vector<4x12xf32> to vector<4x9xf32>
      %574 = arith.negf %573 : vector<4x9xf32>
      %575 = math.exp %574 : vector<4x9xf32>
      %cst_199 = arith.constant 1.000000e+00 : f32
      %576 = vector.broadcast %cst_199 : f32 to vector<4x9xf32>
      %577 = arith.addf %576, %575 : vector<4x9xf32>
      %578 = arith.divf %576, %577 : vector<4x9xf32>
      %579 = vector.extract_strided_slice %572 {offsets = [0, 9], sizes = [4, 3], strides = [1, 1]} : vector<4x12xf32> to vector<4x3xf32>
      %580 = math.tanh %579 : vector<4x3xf32>
      %581 = vector.extract_strided_slice %578 {offsets = [0, 3], sizes = [4, 3], strides = [1, 1]} : vector<4x9xf32> to vector<4x3xf32>
      %582 = arith.mulf %581, %464 : vector<4x3xf32>
      %583 = vector.extract_strided_slice %578 {offsets = [0, 0], sizes = [4, 3], strides = [1, 1]} : vector<4x9xf32> to vector<4x3xf32>
      %584 = arith.mulf %583, %580 : vector<4x3xf32>
      %585 = arith.addf %582, %584 : vector<4x3xf32>
      %586 = vector.extract_strided_slice %578 {offsets = [0, 6], sizes = [4, 3], strides = [1, 1]} : vector<4x9xf32> to vector<4x3xf32>
      %587 = math.tanh %585 : vector<4x3xf32>
      %588 = arith.mulf %586, %587 : vector<4x3xf32>
      %589 = vector.extract_strided_slice %588 {offsets = [0, 0], sizes = [4, 1], strides = [1, 1]} : vector<4x3xf32> to vector<4x1xf32>
      %590 = vector.extract_strided_slice %55 {offsets = [0, 0, 0], sizes = [1, 4, 12], strides = [1, 1, 1]} : vector<3x4x12xf32> to vector<1x4x12xf32>
      %591 = vector.shape_cast %590 : vector<1x4x12xf32> to vector<4x12xf32>
      %592 = vector.broadcast %589 : vector<4x1xf32> to vector<4x12xf32>
      %593 = arith.mulf %592, %591 : vector<4x12xf32>
      %594 = vector.extract_strided_slice %588 {offsets = [0, 1], sizes = [4, 1], strides = [1, 1]} : vector<4x3xf32> to vector<4x1xf32>
      %595 = vector.extract_strided_slice %55 {offsets = [1, 0, 0], sizes = [1, 4, 12], strides = [1, 1, 1]} : vector<3x4x12xf32> to vector<1x4x12xf32>
      %596 = vector.shape_cast %595 : vector<1x4x12xf32> to vector<4x12xf32>
      %597 = vector.broadcast %594 : vector<4x1xf32> to vector<4x12xf32>
      %598 = arith.mulf %597, %596 : vector<4x12xf32>
      %599 = arith.addf %593, %598 : vector<4x12xf32>
      %600 = vector.extract_strided_slice %588 {offsets = [0, 2], sizes = [4, 1], strides = [1, 1]} : vector<4x3xf32> to vector<4x1xf32>
      %601 = vector.extract_strided_slice %55 {offsets = [2, 0, 0], sizes = [1, 4, 12], strides = [1, 1, 1]} : vector<3x4x12xf32> to vector<1x4x12xf32>
      %602 = vector.shape_cast %601 : vector<1x4x12xf32> to vector<4x12xf32>
      %603 = vector.broadcast %600 : vector<4x1xf32> to vector<4x12xf32>
      %604 = arith.mulf %603, %602 : vector<4x12xf32>
      %605 = arith.addf %599, %604 : vector<4x12xf32>
      %606 = arith.addf %57, %605 : vector<4x12xf32>
      %607 = vector.extract_strided_slice %519 {offsets = [0, 0], sizes = [4, 1], strides = [1, 1]} : vector<4x3xf32> to vector<4x1xf32>
      %608 = vector.extract_strided_slice %56 {offsets = [0, 0, 0], sizes = [1, 4, 12], strides = [1, 1, 1]} : vector<3x4x12xf32> to vector<1x4x12xf32>
      %609 = vector.shape_cast %608 : vector<1x4x12xf32> to vector<4x12xf32>
      %610 = vector.broadcast %607 : vector<4x1xf32> to vector<4x12xf32>
      %611 = arith.mulf %610, %609 : vector<4x12xf32>
      %612 = vector.extract_strided_slice %519 {offsets = [0, 1], sizes = [4, 1], strides = [1, 1]} : vector<4x3xf32> to vector<4x1xf32>
      %613 = vector.extract_strided_slice %56 {offsets = [1, 0, 0], sizes = [1, 4, 12], strides = [1, 1, 1]} : vector<3x4x12xf32> to vector<1x4x12xf32>
      %614 = vector.shape_cast %613 : vector<1x4x12xf32> to vector<4x12xf32>
      %615 = vector.broadcast %612 : vector<4x1xf32> to vector<4x12xf32>
      %616 = arith.mulf %615, %614 : vector<4x12xf32>
      %617 = arith.addf %611, %616 : vector<4x12xf32>
      %618 = vector.extract_strided_slice %519 {offsets = [0, 2], sizes = [4, 1], strides = [1, 1]} : vector<4x3xf32> to vector<4x1xf32>
      %619 = vector.extract_strided_slice %56 {offsets = [2, 0, 0], sizes = [1, 4, 12], strides = [1, 1, 1]} : vector<3x4x12xf32> to vector<1x4x12xf32>
      %620 = vector.shape_cast %619 : vector<1x4x12xf32> to vector<4x12xf32>
      %621 = vector.broadcast %618 : vector<4x1xf32> to vector<4x12xf32>
      %622 = arith.mulf %621, %620 : vector<4x12xf32>
      %623 = arith.addf %617, %622 : vector<4x12xf32>
      %624 = arith.addf %606, %623 : vector<4x12xf32>
      %625 = vector.extract_strided_slice %624 {offsets = [0, 0], sizes = [4, 9], strides = [1, 1]} : vector<4x12xf32> to vector<4x9xf32>
      %626 = arith.negf %625 : vector<4x9xf32>
      %627 = math.exp %626 : vector<4x9xf32>
      %cst_200 = arith.constant 1.000000e+00 : f32
      %628 = vector.broadcast %cst_200 : f32 to vector<4x9xf32>
      %629 = arith.addf %628, %627 : vector<4x9xf32>
      %630 = arith.divf %628, %629 : vector<4x9xf32>
      %631 = vector.extract_strided_slice %624 {offsets = [0, 9], sizes = [4, 3], strides = [1, 1]} : vector<4x12xf32> to vector<4x3xf32>
      %632 = math.tanh %631 : vector<4x3xf32>
      %633 = vector.extract_strided_slice %630 {offsets = [0, 3], sizes = [4, 3], strides = [1, 1]} : vector<4x9xf32> to vector<4x3xf32>
      %634 = arith.mulf %633, %516 : vector<4x3xf32>
      %635 = vector.extract_strided_slice %630 {offsets = [0, 0], sizes = [4, 3], strides = [1, 1]} : vector<4x9xf32> to vector<4x3xf32>
      %636 = arith.mulf %635, %632 : vector<4x3xf32>
      %637 = arith.addf %634, %636 : vector<4x3xf32>
      %638 = vector.extract_strided_slice %630 {offsets = [0, 6], sizes = [4, 3], strides = [1, 1]} : vector<4x9xf32> to vector<4x3xf32>
      %639 = math.tanh %637 : vector<4x3xf32>
      %640 = arith.mulf %638, %639 : vector<4x3xf32>
      %641 = vector.extract_strided_slice %640 {offsets = [0, 0], sizes = [1, 3], strides = [1, 1]} : vector<4x3xf32> to vector<1x3xf32>
      %c0_201 = arith.constant 0 : index
      %642 = arith.index_cast %541 : i32 to index
      %c0_202 = arith.constant 0 : index
      %643 = vector.load %arg12[%c0_201, %642, %c0_202] : memref<4x400x3xf32, #tpu.memory_space<vmem>>, vector<1x1x3xf32>
      %644 = vector.shape_cast %643 : vector<1x1x3xf32> to vector<1x3xf32>
      %645 = vector.shape_cast %641 : vector<1x3xf32> to vector<1x1x3xf32>
      tpu.vector_store %arg12[%c0_201, %642, %c0_202], %645 {strides = array<i32>} : memref<4x400x3xf32, #tpu.memory_space<vmem>>, vector<1x1x3xf32>,
      %646 = vector.extract_strided_slice %640 {offsets = [1, 0], sizes = [1, 3], strides = [1, 1]} : vector<4x3xf32> to vector<1x3xf32>
      %c1_203 = arith.constant 1 : index
      %647 = arith.index_cast %541 : i32 to index
      %c0_204 = arith.constant 0 : index
      %648 = vector.load %arg12[%c1_203, %647, %c0_204] : memref<4x400x3xf32, #tpu.memory_space<vmem>>, vector<1x1x3xf32>
      %649 = vector.shape_cast %648 : vector<1x1x3xf32> to vector<1x3xf32>
      %650 = vector.shape_cast %646 : vector<1x3xf32> to vector<1x1x3xf32>
      tpu.vector_store %arg12[%c1_203, %647, %c0_204], %650 {strides = array<i32>} : memref<4x400x3xf32, #tpu.memory_space<vmem>>, vector<1x1x3xf32>,
      %651 = vector.extract_strided_slice %640 {offsets = [2, 0], sizes = [1, 3], strides = [1, 1]} : vector<4x3xf32> to vector<1x3xf32>
      %c2_205 = arith.constant 2 : index
      %652 = arith.index_cast %541 : i32 to index
      %c0_206 = arith.constant 0 : index
      %653 = vector.load %arg12[%c2_205, %652, %c0_206] : memref<4x400x3xf32, #tpu.memory_space<vmem>>, vector<1x1x3xf32>
      %654 = vector.shape_cast %653 : vector<1x1x3xf32> to vector<1x3xf32>
      %655 = vector.shape_cast %651 : vector<1x3xf32> to vector<1x1x3xf32>
      tpu.vector_store %arg12[%c2_205, %652, %c0_206], %655 {strides = array<i32>} : memref<4x400x3xf32, #tpu.memory_space<vmem>>, vector<1x1x3xf32>,
      %656 = vector.extract_strided_slice %640 {offsets = [3, 0], sizes = [1, 3], strides = [1, 1]} : vector<4x3xf32> to vector<1x3xf32>
      %c3_207 = arith.constant 3 : index
      %657 = arith.index_cast %541 : i32 to index
      %c0_208 = arith.constant 0 : index
      %658 = vector.load %arg12[%c3_207, %657, %c0_208] : memref<4x400x3xf32, #tpu.memory_space<vmem>>, vector<1x1x3xf32>
      %659 = vector.shape_cast %658 : vector<1x1x3xf32> to vector<1x3xf32>
      %660 = vector.shape_cast %656 : vector<1x3xf32> to vector<1x1x3xf32>
      tpu.vector_store %arg12[%c3_207, %657, %c0_208], %660 {strides = array<i32>} : memref<4x400x3xf32, #tpu.memory_space<vmem>>, vector<1x1x3xf32>,
      scf.yield %588, %585, %640, %637 : vector<4x3xf32>, vector<4x3xf32>, vector<4x3xf32>, vector<4x3xf32>
    }
    %c100_i32_63 = arith.constant 100 : i32
    %c0_64 = arith.constant 0 : index
    %c0_65 = arith.constant 0 : index
    %c0_66 = arith.constant 0 : index
    %61 = vector.load %arg12[%c0_64, %c0_65, %c0_66] : memref<4x400x3xf32, #tpu.memory_space<vmem>>, vector<1x150x3xf32>
    %62 = vector.shape_cast %61 : vector<1x150x3xf32> to vector<150x3xf32>
    %63 = tpu.transpose %62, [1, 0] : vector<150x3xf32> -> vector<3x150xf32>
    %64 = vector.shape_cast %63 : vector<3x150xf32> to vector<1x3x150xf32>
    %cst_67 = arith.constant dense<0.000000e+00> : vector<1xf32>
    %65 = vector.multi_reduction <add>, %64, %cst_67 [1, 2] : vector<1x3x150xf32> to vector<1xf32>
    %66 = vector.shape_cast %65 : vector<1xf32> to vector<1x1x1xf32>
    %67 = vector.extract %66[0, 0, 0] : f32 from vector<1x1x1xf32>
    %cst_68 = arith.constant 0.00222222228 : f32
    %68 = arith.mulf %67, %cst_68 : f32
    %69 = vector.broadcast %68 : f32 to vector<3x150xf32>
    %70 = arith.subf %63, %69 : vector<3x150xf32>
    %71 = arith.mulf %70, %70 : vector<3x150xf32>
    %72 = vector.shape_cast %71 : vector<3x150xf32> to vector<1x3x150xf32>
    %cst_69 = arith.constant dense<0.000000e+00> : vector<1xf32>
    %73 = vector.multi_reduction <add>, %72, %cst_69 [1, 2] : vector<1x3x150xf32> to vector<1xf32>
    %74 = vector.shape_cast %73 : vector<1xf32> to vector<1x1x1xf32>
    %75 = vector.extract %74[0, 0, 0] : f32 from vector<1x1x1xf32>
    %cst_70 = arith.constant 0.00222222228 : f32
    %76 = arith.mulf %75, %cst_70 : f32
    %cst_71 = arith.constant 9.99999974E-6 : f32
    %77 = arith.addf %76, %cst_71 : f32
    %78 = math.rsqrt %77 : f32
    %79 = vector.broadcast %78 : f32 to vector<3x150xf32>
    %80 = arith.mulf %70, %79 : vector<3x150xf32>
    %c0_72 = arith.constant 0 : index
    %c0_73 = arith.constant 0 : index
    %c0_74 = arith.constant 0 : index
    %81 = vector.load %arg8[%c0_72, %c0_73, %c0_74] : memref<4x3x400xf32, #tpu.memory_space<vmem>>, vector<1x3x150xf32>
    %82 = vector.shape_cast %81 : vector<1x3x150xf32> to vector<3x150xf32>
    %83 = arith.mulf %80, %82 : vector<3x150xf32>
    %c0_75 = arith.constant 0 : index
    %c0_76 = arith.constant 0 : index
    %c0_77 = arith.constant 0 : index
    %84 = vector.load %arg9[%c0_75, %c0_76, %c0_77] : memref<4x3x400xf32, #tpu.memory_space<vmem>>, vector<1x3x150xf32>
    %85 = vector.shape_cast %84 : vector<1x3x150xf32> to vector<3x150xf32>
    %86 = arith.addf %83, %85 : vector<3x150xf32>
    %c0_78 = arith.constant 0 : index
    %c0_79 = arith.constant 0 : index
    %c0_80 = arith.constant 0 : index
    %87 = vector.load %arg10[%c0_78, %c0_79, %c0_80] : memref<4x3x400xf32, #tpu.memory_space<vmem>>, vector<1x3x150xf32>
    %88 = vector.shape_cast %87 : vector<1x3x150xf32> to vector<3x150xf32>
    %89 = vector.shape_cast %86 : vector<3x150xf32> to vector<1x3x150xf32>
    tpu.vector_store %arg10[%c0_78, %c0_79, %c0_80], %89 {strides = array<i32>} : memref<4x3x400xf32, #tpu.memory_space<vmem>>, vector<1x3x150xf32>,
    %c1_81 = arith.constant 1 : index
    %c0_82 = arith.constant 0 : index
    %c0_83 = arith.constant 0 : index
    %90 = vector.load %arg12[%c1_81, %c0_82, %c0_83] : memref<4x400x3xf32, #tpu.memory_space<vmem>>, vector<1x150x3xf32>
    %91 = vector.shape_cast %90 : vector<1x150x3xf32> to vector<150x3xf32>
    %92 = tpu.transpose %91, [1, 0] : vector<150x3xf32> -> vector<3x150xf32>
    %93 = vector.shape_cast %92 : vector<3x150xf32> to vector<1x3x150xf32>
    %cst_84 = arith.constant dense<0.000000e+00> : vector<1xf32>
    %94 = vector.multi_reduction <add>, %93, %cst_84 [1, 2] : vector<1x3x150xf32> to vector<1xf32>
    %95 = vector.shape_cast %94 : vector<1xf32> to vector<1x1x1xf32>
    %96 = vector.extract %95[0, 0, 0] : f32 from vector<1x1x1xf32>
    %cst_85 = arith.constant 0.00222222228 : f32
    %97 = arith.mulf %96, %cst_85 : f32
    %98 = vector.broadcast %97 : f32 to vector<3x150xf32>
    %99 = arith.subf %92, %98 : vector<3x150xf32>
    %100 = arith.mulf %99, %99 : vector<3x150xf32>
    %101 = vector.shape_cast %100 : vector<3x150xf32> to vector<1x3x150xf32>
    %cst_86 = arith.constant dense<0.000000e+00> : vector<1xf32>
    %102 = vector.multi_reduction <add>, %101, %cst_86 [1, 2] : vector<1x3x150xf32> to vector<1xf32>
    %103 = vector.shape_cast %102 : vector<1xf32> to vector<1x1x1xf32>
    %104 = vector.extract %103[0, 0, 0] : f32 from vector<1x1x1xf32>
    %cst_87 = arith.constant 0.00222222228 : f32
    %105 = arith.mulf %104, %cst_87 : f32
    %cst_88 = arith.constant 9.99999974E-6 : f32
    %106 = arith.addf %105, %cst_88 : f32
    %107 = math.rsqrt %106 : f32
    %108 = vector.broadcast %107 : f32 to vector<3x150xf32>
    %109 = arith.mulf %99, %108 : vector<3x150xf32>
    %c1_89 = arith.constant 1 : index
    %c0_90 = arith.constant 0 : index
    %c0_91 = arith.constant 0 : index
    %110 = vector.load %arg8[%c1_89, %c0_90, %c0_91] : memref<4x3x400xf32, #tpu.memory_space<vmem>>, vector<1x3x150xf32>
    %111 = vector.shape_cast %110 : vector<1x3x150xf32> to vector<3x150xf32>
    %112 = arith.mulf %109, %111 : vector<3x150xf32>
    %c1_92 = arith.constant 1 : index
    %c0_93 = arith.constant 0 : index
    %c0_94 = arith.constant 0 : index
    %113 = vector.load %arg9[%c1_92, %c0_93, %c0_94] : memref<4x3x400xf32, #tpu.memory_space<vmem>>, vector<1x3x150xf32>
    %114 = vector.shape_cast %113 : vector<1x3x150xf32> to vector<3x150xf32>
    %115 = arith.addf %112, %114 : vector<3x150xf32>
    %c1_95 = arith.constant 1 : index
    %c0_96 = arith.constant 0 : index
    %c0_97 = arith.constant 0 : index
    %116 = vector.load %arg10[%c1_95, %c0_96, %c0_97] : memref<4x3x400xf32, #tpu.memory_space<vmem>>, vector<1x3x150xf32>
    %117 = vector.shape_cast %116 : vector<1x3x150xf32> to vector<3x150xf32>
    %118 = vector.shape_cast %115 : vector<3x150xf32> to vector<1x3x150xf32>
    tpu.vector_store %arg10[%c1_95, %c0_96, %c0_97], %118 {strides = array<i32>} : memref<4x3x400xf32, #tpu.memory_space<vmem>>, vector<1x3x150xf32>,
    %c2_98 = arith.constant 2 : index
    %c0_99 = arith.constant 0 : index
    %c0_100 = arith.constant 0 : index
    %119 = vector.load %arg12[%c2_98, %c0_99, %c0_100] : memref<4x400x3xf32, #tpu.memory_space<vmem>>, vector<1x400x3xf32>
    %120 = vector.shape_cast %119 : vector<1x400x3xf32> to vector<400x3xf32>
    %121 = tpu.transpose %120, [1, 0] : vector<400x3xf32> -> vector<3x400xf32>
    %122 = vector.shape_cast %121 : vector<3x400xf32> to vector<1x3x400xf32>
    %cst_101 = arith.constant dense<0.000000e+00> : vector<1xf32>
    %123 = vector.multi_reduction <add>, %122, %cst_101 [1, 2] : vector<1x3x400xf32> to vector<1xf32>
    %124 = vector.shape_cast %123 : vector<1xf32> to vector<1x1x1xf32>
    %125 = vector.extract %124[0, 0, 0] : f32 from vector<1x1x1xf32>
    %cst_102 = arith.constant 8.33333353E-4 : f32
    %126 = arith.mulf %125, %cst_102 : f32
    %127 = vector.broadcast %126 : f32 to vector<3x400xf32>
    %128 = arith.subf %121, %127 : vector<3x400xf32>
    %129 = arith.mulf %128, %128 : vector<3x400xf32>
    %130 = vector.shape_cast %129 : vector<3x400xf32> to vector<1x3x400xf32>
    %cst_103 = arith.constant dense<0.000000e+00> : vector<1xf32>
    %131 = vector.multi_reduction <add>, %130, %cst_103 [1, 2] : vector<1x3x400xf32> to vector<1xf32>
    %132 = vector.shape_cast %131 : vector<1xf32> to vector<1x1x1xf32>
    %133 = vector.extract %132[0, 0, 0] : f32 from vector<1x1x1xf32>
    %cst_104 = arith.constant 8.33333353E-4 : f32
    %134 = arith.mulf %133, %cst_104 : f32
    %cst_105 = arith.constant 9.99999974E-6 : f32
    %135 = arith.addf %134, %cst_105 : f32
    %136 = math.rsqrt %135 : f32
    %137 = vector.broadcast %136 : f32 to vector<3x400xf32>
    %138 = arith.mulf %128, %137 : vector<3x400xf32>
    %c2_106 = arith.constant 2 : index
    %c0_107 = arith.constant 0 : index
    %c0_108 = arith.constant 0 : index
    %139 = vector.load %arg8[%c2_106, %c0_107, %c0_108] : memref<4x3x400xf32, #tpu.memory_space<vmem>>, vector<1x3x400xf32>
    %140 = vector.shape_cast %139 : vector<1x3x400xf32> to vector<3x400xf32>
    %141 = arith.mulf %138, %140 : vector<3x400xf32>
    %c2_109 = arith.constant 2 : index
    %c0_110 = arith.constant 0 : index
    %c0_111 = arith.constant 0 : index
    %142 = vector.load %arg9[%c2_109, %c0_110, %c0_111] : memref<4x3x400xf32, #tpu.memory_space<vmem>>, vector<1x3x400xf32>
    %143 = vector.shape_cast %142 : vector<1x3x400xf32> to vector<3x400xf32>
    %144 = arith.addf %141, %143 : vector<3x400xf32>
    %c2_112 = arith.constant 2 : index
    %c0_113 = arith.constant 0 : index
    %c0_114 = arith.constant 0 : index
    %145 = vector.load %arg10[%c2_112, %c0_113, %c0_114] : memref<4x3x400xf32, #tpu.memory_space<vmem>>, vector<1x3x400xf32>
    %146 = vector.shape_cast %145 : vector<1x3x400xf32> to vector<3x400xf32>
    %147 = vector.shape_cast %144 : vector<3x400xf32> to vector<1x3x400xf32>
    tpu.vector_store %arg10[%c2_112, %c0_113, %c0_114], %147 {strides = array<i32>} : memref<4x3x400xf32, #tpu.memory_space<vmem>>, vector<1x3x400xf32>,
    %c3_115 = arith.constant 3 : index
    %c0_116 = arith.constant 0 : index
    %c0_117 = arith.constant 0 : index
    %148 = vector.load %arg12[%c3_115, %c0_116, %c0_117] : memref<4x400x3xf32, #tpu.memory_space<vmem>>, vector<1x400x3xf32>
    %149 = vector.shape_cast %148 : vector<1x400x3xf32> to vector<400x3xf32>
    %150 = tpu.transpose %149, [1, 0] : vector<400x3xf32> -> vector<3x400xf32>
    %151 = vector.shape_cast %150 : vector<3x400xf32> to vector<1x3x400xf32>
    %cst_118 = arith.constant dense<0.000000e+00> : vector<1xf32>
    %152 = vector.multi_reduction <add>, %151, %cst_118 [1, 2] : vector<1x3x400xf32> to vector<1xf32>
    %153 = vector.shape_cast %152 : vector<1xf32> to vector<1x1x1xf32>
    %154 = vector.extract %153[0, 0, 0] : f32 from vector<1x1x1xf32>
    %cst_119 = arith.constant 8.33333353E-4 : f32
    %155 = arith.mulf %154, %cst_119 : f32
    %156 = vector.broadcast %155 : f32 to vector<3x400xf32>
    %157 = arith.subf %150, %156 : vector<3x400xf32>
    %158 = arith.mulf %157, %157 : vector<3x400xf32>
    %159 = vector.shape_cast %158 : vector<3x400xf32> to vector<1x3x400xf32>
    %cst_120 = arith.constant dense<0.000000e+00> : vector<1xf32>
    %160 = vector.multi_reduction <add>, %159, %cst_120 [1, 2] : vector<1x3x400xf32> to vector<1xf32>
    %161 = vector.shape_cast %160 : vector<1xf32> to vector<1x1x1xf32>
    %162 = vector.extract %161[0, 0, 0] : f32 from vector<1x1x1xf32>
    %cst_121 = arith.constant 8.33333353E-4 : f32
    %163 = arith.mulf %162, %cst_121 : f32
    %cst_122 = arith.constant 9.99999974E-6 : f32
    %164 = arith.addf %163, %cst_122 : f32
    %165 = math.rsqrt %164 : f32
    %166 = vector.broadcast %165 : f32 to vector<3x400xf32>
    %167 = arith.mulf %157, %166 : vector<3x400xf32>
    %c3_123 = arith.constant 3 : index
    %c0_124 = arith.constant 0 : index
    %c0_125 = arith.constant 0 : index
    %168 = vector.load %arg8[%c3_123, %c0_124, %c0_125] : memref<4x3x400xf32, #tpu.memory_space<vmem>>, vector<1x3x400xf32>
    %169 = vector.shape_cast %168 : vector<1x3x400xf32> to vector<3x400xf32>
    %170 = arith.mulf %167, %169 : vector<3x400xf32>
    %c3_126 = arith.constant 3 : index
    %c0_127 = arith.constant 0 : index
    %c0_128 = arith.constant 0 : index
    %171 = vector.load %arg9[%c3_126, %c0_127, %c0_128] : memref<4x3x400xf32, #tpu.memory_space<vmem>>, vector<1x3x400xf32>
    %172 = vector.shape_cast %171 : vector<1x3x400xf32> to vector<3x400xf32>
    %173 = arith.addf %170, %172 : vector<3x400xf32>
    %c3_129 = arith.constant 3 : index
    %c0_130 = arith.constant 0 : index
    %c0_131 = arith.constant 0 : index
    %174 = vector.load %arg10[%c3_129, %c0_130, %c0_131] : memref<4x3x400xf32, #tpu.memory_space<vmem>>, vector<1x3x400xf32>
    %175 = vector.shape_cast %174 : vector<1x3x400xf32> to vector<3x400xf32>
    %176 = vector.shape_cast %173 : vector<3x400xf32> to vector<1x3x400xf32>
    tpu.vector_store %arg10[%c3_129, %c0_130, %c0_131], %176 {strides = array<i32>} : memref<4x3x400xf32, #tpu.memory_space<vmem>>, vector<1x3x400xf32>,
    return
  }
  func.func @transform_0(%arg0: i32) -> (i32, i32, i32) {
    %c0_i32 = arith.constant 0 : i32
    %c0_i32_0 = arith.constant 0 : i32
    %c0_i32_1 = arith.constant 0 : i32
    %c0_i32_2 = arith.constant 0 : i32
    return %c0_i32, %c0_i32_0, %c0_i32_1 : i32, i32, i32
  }
  func.func @transform_1(%arg0: i32) -> (i32, i32, i32) {
    %c0_i32 = arith.constant 0 : i32
    %c0_i32_0 = arith.constant 0 : i32
    %c0_i32_1 = arith.constant 0 : i32
    %c0_i32_2 = arith.constant 0 : i32
    return %c0_i32, %c0_i32_0, %c0_i32_1 : i32, i32, i32
  }
  func.func @transform_2(%arg0: i32) -> (i32, i32, i32) {
    %c0_i32 = arith.constant 0 : i32
    %c0_i32_0 = arith.constant 0 : i32
    %c0_i32_1 = arith.constant 0 : i32
    %c0_i32_2 = arith.constant 0 : i32
    return %c0_i32, %c0_i32_0, %c0_i32_1 : i32, i32, i32
  }
  func.func @transform_3(%arg0: i32) -> (i32, i32, i32) {
    %c0_i32 = arith.constant 0 : i32
    %c0_i32_0 = arith.constant 0 : i32
    %c0_i32_1 = arith.constant 0 : i32
    %c0_i32_2 = arith.constant 0 : i32
    return %c0_i32, %c0_i32_0, %c0_i32_1 : i32, i32, i32
  }
  func.func @transform_4(%arg0: i32) -> (i32, i32, i32) {
    %c0_i32 = arith.constant 0 : i32
    %c0_i32_0 = arith.constant 0 : i32
    %c0_i32_1 = arith.constant 0 : i32
    %c0_i32_2 = arith.constant 0 : i32
    return %c0_i32, %c0_i32_0, %c0_i32_1 : i32, i32, i32
  }
  func.func @transform_5(%arg0: i32) -> (i32, i32, i32) {
    %c0_i32 = arith.constant 0 : i32
    %c0_i32_0 = arith.constant 0 : i32
    %c0_i32_1 = arith.constant 0 : i32
    %c0_i32_2 = arith.constant 0 : i32
    return %c0_i32, %c0_i32_0, %c0_i32_1 : i32, i32, i32
  }
  func.func @transform_6(%arg0: i32) -> (i32, i32) {
    %c0_i32 = arith.constant 0 : i32
    %c0_i32_0 = arith.constant 0 : i32
    %c0_i32_1 = arith.constant 0 : i32
    return %c0_i32, %c0_i32_0 : i32, i32
  }
  func.func @transform_7(%arg0: i32) -> (i32, i32, i32) {
    %c0_i32 = arith.constant 0 : i32
    %c0_i32_0 = arith.constant 0 : i32
    %c0_i32_1 = arith.constant 0 : i32
    %c0_i32_2 = arith.constant 0 : i32
    return %c0_i32, %c0_i32_0, %c0_i32_1 : i32, i32, i32
  }
  func.func @transform_8(%arg0: i32) -> (i32, i32, i32) {
    %c0_i32 = arith.constant 0 : i32
    %c0_i32_0 = arith.constant 0 : i32
    %c0_i32_1 = arith.constant 0 : i32
    %c0_i32_2 = arith.constant 0 : i32
    return %c0_i32, %c0_i32_0, %c0_i32_1 : i32, i32, i32
  }
  func.func @transform_9(%arg0: i32) -> (i32, i32, i32) {
    %c0_i32 = arith.constant 0 : i32
    %c0_i32_0 = arith.constant 0 : i32
    %c0_i32_1 = arith.constant 0 : i32
    %c0_i32_2 = arith.constant 0 : i32
    return %c0_i32, %c0_i32_0, %c0_i32_1 : i32, i32, i32
  }
}

</mosaic_0001>

<bundles_post_ra>
// kernel: cmodel_forward.4
= control target key start
LH: loop header
LB: loop body
LE: loop exit
PB: predicated region body
PF: predicated region fallthrough
CT: control target
= control target key end

     0   :  { %s1804_s24 = smov 0   ;;  %s2185_s0 = inlined_call_operand.vmem [shape: f32[2,9,400], index: 0, kind: input, shape index: {}]   ;;  %s2186_s1 = inlined_call_operand.vmem [shape: f32[3,9], index: 1, kind: input, shape index: {}]   ;;  %s2187_s2 = inlined_call_operand.vmem [shape: f32[3,1], index: 2, kind: input, shape index: {}]   ;;  %s2188_s3 = inlined_call_operand.vmem [shape: f32[3,1], index: 3, kind: input, shape index: {}]   ;;  %s2189_s4 = inlined_call_operand.vmem [shape: f32[2,400,150], index: 4, kind: input, shape index: {}]   ;;  %s2190_s5 = inlined_call_operand.vmem [shape: f32[2,400,400], index: 5, kind: input, shape index: {}]   ;;  %s2191_s6 = inlined_call_operand.vmem [shape: f32[2,3,150], index: 6, kind: output, shape index: {0}]   ;;  %s2192_s7 = inlined_call_operand.vmem [shape: f32[2,3,400], index: 7, kind: output, shape index: {1}]  }
   0x1 LB: > { %s1394_s25 = sadd.s32 4294967295, %s1759_s24   ;;  %p1398_p0 = scmp.ge.s32.totalorder %s1759_s24, 1  ;;  %s1759_s24 = sphi %s1804_s24, %s18_s24  }
   0x2   : > { %p260_p1 = scmp.lt.s32.totalorder %s1759_s24, 3 }
   0x4   : > { %p261_p2 = pnand %p1398_p0, %p260_p1 }
   0x5   : > { %p307_p3 = scmp.lt.s32.totalorder (!%p261_p2), %s1394_s25, 1  ;;  %v1761_v0 = vmov (!%p261_p2), 0.0   ;;  %v500_v1 = vld [vmem:[%s2187_s2] sm:$0x7] (!%p261_p2)  ;;  %vm345_vm0 = vcmask (!%p261_p2), 1040384   ;;  %v1762_v2 = vmov (!%p261_p2), 0  }
   0x6   : > { %264 = sbr.rel (%p261_p2) target bundleno = 566 (0x236), region = 44  ;;  %422 = vmatprep.mubr.f32.mxu0 (!%p261_p2), %v1761_v0  ;;  %1752 = vset.pattern.permute.xlu0 (!%p261_p2), %v1762_v2  ;;  %v510_v3 = vld [vmem:[%s2188_s3] sm:$0x7] (!%p261_p2)  ;;  %vm1763_vm1 = vmmov (!%p261_p2), 1   ;;  %vm341_vm3 = vcmask (!%p261_p2), 72704   ;;  %vm632_vm6 = vcmask (!%p261_p2), 130048  }
   0x7   : > { %503 = vperm.xlu0 (!%p261_p2), %1752, %v500_v1   ;;  %vm1825_vm2 = vmpackc.low (!%p261_p2), %vm345_vm0, %vm1763_vm1  ;;  %v332_v13 = vld [vmem:[%s2186_s1] sm:$0x7] (!%p261_p2)  ;;  %vm782_vm9 = vcmask (!%p261_p2), 1042432   ;;  %vm783_vm10 = vcmask (!%p261_p2), 178180   ;;  %vm1279_vm12 = vcmask (!%p261_p2), 129028  }
   0x8   : > { %vm784_vm11 = vmor (!%p261_p2), %vm783_vm10, %vm782_vm9 }
   0x9   : > { %vm1280_vm13 = vmor (!%p261_p2), %vm1279_vm12, %vm782_vm9 }
   0xb   : > { %513 = vperm.xlu0 (!%p261_p2), %1752, %v510_v3  }
   0xd   : > { %s2196_s25 = smov (!%p307_p3, %s1394_s25), 1 }
   0xe   : > { %s1418_s28 = sshll.u32 %s2196_s25, 6  ;;  %s1739_s29 = smul.u32 800, %s2196_s25 }
   0xf   : > { %s311_s11 = scalar_lea.vmem %s2185_s0, %s1418_s28  ;;  %s1740_s17 = smul.u32 1600, %s2196_s25 }
  0x10   : > { %s1832_s14 = scalar_lea.vmem %s2189_s4, %s1739_s29  ;;  %v334_v5 = vld [vmem:[%s311_s11 + $0x8] sm:$0xff]  ;;  %v333_v7 = vld [vmem:[%s311_s11] sm:$0xff]  ;;  %v336_v10 = vld [vmem:[%s311_s11 + $0x18] sm:$0xff]  ;;  %s1419_s21 = sshll.u32 %s2196_s25, 3 }
  0x11   : > { %v338_v6 = vld [vmem:[%s311_s11 + $0x28] sm:$0x1]  ;;  %v337_v9 = vld [vmem:[%s311_s11 + $0x20] sm:$0x1]  ;;  %v340_v11 = vld [vmem:[%s311_s11 + $0x38] sm:$0x1]  ;;  %s1942_s20 = scalar_lea.vmem %s2190_s5, %s1740_s17  ;;  %s326_s26 = scalar_lea.vmem %s2191_s6, %s1419_s21 }
  0x12   : > { %v1421_v8 = vpack.c.bf16 %v338_v6, %v334_v5  ;;  %v1424_v12 = vpack.c.bf16 %v337_v9, %v333_v7  ;;  %v1427_v14 = vpack.c.bf16 %v340_v11, %v336_v10  ;;  %v335_v15 = vld [vmem:[%s311_s11 + $0x10] sm:$0xff]  ;;  %v533_v17 = vld [vmem:[%s1832_s14 + $0x8] sm:$0xff]  ;;  %v535_v18 = vld [vmem:[%s1832_s14 + $0x18] sm:$0xff]  ;;  %s1420_s27 = sshll.u32 %s2196_s25, 4 }
  0x13   : > { %v339_v16 = vld [vmem:[%s311_s11 + $0x30] sm:$0x1]  ;;  %v532_v19 = vld [vmem:[%s1832_s14] sm:$0xff]  ;;  %v1433_v22 = vpack.c.bf16 %v535_v18, %v533_v17  ;;  %v537_v24 = vld [vmem:[%s1832_s14 + $0x28] sm:$0xff]  ;;  %s331_s30 = scalar_lea.vmem %s2192_s7, %s1420_s27 }
  0x14   : > { %1423 = vmatprep.subr.msk.bf16.mxu0 %vm1825_vm2, %v1421_v8  ;;  %v534_v20 = vld [vmem:[%s1832_s14 + $0x10] sm:$0xff]  ;;  %v1430_v21 = vpack.c.bf16 %v339_v16, %v335_v15  ;;  %v539_v25 = vld [vmem:[%s1832_s14 + $0x38] sm:$0xff]  ;;  %v536_v26 = vld [vmem:[%s1832_s14 + $0x20] sm:$0xff] }
  0x15   : > { %1426 = vmatpush1.bf16.msk.msra.mxu0 %vm1825_vm2, %v1424_v12  ;;  %v1435_v23 = vpack.c.bf16 %v534_v20, %v532_v19  ;;  %v1437_v27 = vpack.c.bf16 %v539_v25, %v537_v24  ;;  %v538_v28 = vld [vmem:[%s1832_s14 + $0x30] sm:$0xff]  ;;  %v541_v29 = vld [vmem:[%s1832_s14 + $0x48] sm:$0xff]  ;;  %v543_v30 = vld [vmem:[%s1832_s14 + $0x58] sm:$0xff]  ;;  %1434 = vmatprep.subr.bf16.mxu1 %v1433_v22 }
  0x16   : > { %1429 = vmatprep.subr.msk.bf16.mxu0 %vm1825_vm2, %v1427_v14  ;;  %v1439_v31 = vpack.c.bf16 %v538_v28, %v536_v26  ;;  %v1441_v32 = vpack.c.bf16 %v543_v30, %v541_v29  ;;  %v540_v33 = vld [vmem:[%s1832_s14 + $0x40] sm:$0xff]  ;;  %v542_v34 = vld [vmem:[%s1832_s14 + $0x50] sm:$0xff]  ;;  %v545_v35 = vld [vmem:[%s1832_s14 + $0x68] sm:$0xff] }
  0x17   : > { %1436 = vmatpush1.bf16.msra.mxu1 %v1435_v23  ;;  %v547_v36 = vld [vmem:[%s1832_s14 + $0x78] sm:$0xff]  ;;  %v1443_v37 = vpack.c.bf16 %v542_v34, %v540_v33  ;;  %v544_v39 = vld [vmem:[%s1832_s14 + $0x60] sm:$0xff]  ;;  %v546_v40 = vld [vmem:[%s1832_s14 + $0x70] sm:$0xff] }
  0x18   : > { %1409 = vmatmul.mubr.msk.f32.vlgmr.msra.gmra.mrb[0].mxu0 %vm341_vm3, %v332_v13  ;;  %1438 = vmatprep.subr.bf16.mxu1 %v1437_v27  ;;  %v1445_v38 = vpack.c.bf16 %v547_v36, %v545_v35  ;;  %v549_v41 = vld [vmem:[%s1832_s14 + $0x88] sm:$0xff]  ;;  %v551_v42 = vld [vmem:[%s1832_s14 + $0x98] sm:$0xff]  ;;  %v1447_v45 = vpack.c.bf16 %v546_v40, %v544_v39  ;;  %v596_v47 = vld [vmem:[%s1832_s14 + $0x200] sm:$0xff] }
  0x19   : > { %1432 = vmatpush1.bf16.msk.msra.mxu0 %vm1825_vm2, %v1430_v21  ;;  %493 = vmatprep.mubr.f32.mxu0 %v1761_v0  ;;  %v597_v43 = vld [vmem:[%s1832_s14 + $0x208] sm:$0xff]  ;;  %v599_v44 = vld [vmem:[%s1832_s14 + $0x218] sm:$0xff]  ;;  %v598_v48 = vld [vmem:[%s1832_s14 + $0x210] sm:$0xff]  ;;  %v1449_v49 = vpack.c.bf16 %v551_v42, %v549_v41 }
  0x1a   : > { %v1497_v46 = vpack.c.bf16 %v599_v44, %v597_v43  ;;  %v548_v50 = vld [vmem:[%s1832_s14 + $0x80] sm:$0xff]  ;;  %v550_v51 = vld [vmem:[%s1832_s14 + $0x90] sm:$0xff]  ;;  %v1499_v52 = vpack.c.bf16 %v598_v48, %v596_v47  ;;  %v601_v53 = vld [vmem:[%s1832_s14 + $0x228] sm:$0xff] }
  0x1b   : > { %1440 = vmatpush1.bf16.msra.mxu1 %v1439_v31  ;;  %v553_v54 = vld [vmem:[%s1832_s14 + $0xa8] sm:$0xff]  ;;  %v555_v55 = vld [vmem:[%s1832_s14 + $0xb8] sm:$0xff]  ;;  %v600_v58 = vld [vmem:[%s1832_s14 + $0x220] sm:$0xff]  ;;  %v1451_v60 = vpack.c.bf16 %v550_v51, %v548_v50 }
  0x1c   : > { %1412 = vmatmul.mubr.msk.f32.vlgmr.msra.gmra.mrb[2].mxu0 %vm341_vm3, %v332_v13  ;;  %1442 = vmatprep.subr.bf16.mxu1 %v1441_v32  ;;  %v603_v56 = vld [vmem:[%s1832_s14 + $0x238] sm:$0xff]  ;;  %v602_v59 = vld [vmem:[%s1832_s14 + $0x230] sm:$0xff]  ;;  %v605_v62 = vld [vmem:[%s1832_s14 + $0x248] sm:$0xff]  ;;  %v1453_v0 = vpack.c.bf16 %v555_v55, %v553_v54 }
  0x1d   : > { %1498 = vmatprep.subr.bf16.mxu0 %v1497_v46  ;;  %v1501_v57 = vpack.c.bf16 %v603_v56, %v601_v53  ;;  %v1503_v61 = vpack.c.bf16 %v602_v59, %v600_v58  ;;  %v607_v63 = vld [vmem:[%s1832_s14 + $0x258] sm:$0xff]  ;;  %v552_v1 = vld [vmem:[%s1832_s14 + $0xa0] sm:$0xff]  ;;  %v554_v2 = vld [vmem:[%s1832_s14 + $0xb0] sm:$0xff] }
  0x1e   : > { %1500 = vmatpush1.bf16.msra.mxu0 %v1499_v52  ;;  %v1505_v3 = vpack.c.bf16 %v607_v63, %v605_v62  ;;  %v604_v4 = vld [vmem:[%s1832_s14 + $0x240] sm:$0xff]  ;;  %v557_v5 = vld [vmem:[%s1832_s14 + $0xc8] sm:$0xff]  ;;  %v559_v6 = vld [vmem:[%s1832_s14 + $0xd8] sm:$0xff]  ;;  %v1455_v11 = vpack.c.bf16 %v554_v2, %v552_v1 }
  0x1f   : > { %1444 = vmatpush1.bf16.msra.mxu1 %v1443_v37  ;;  %1502 = vmatprep.subr.bf16.mxu0 %v1501_v57  ;;  %v606_v7 = vld [vmem:[%s1832_s14 + $0x250] sm:$0xff]  ;;  %v609_v9 = vld [vmem:[%s1832_s14 + $0x268] sm:$0xff]  ;;  %v611_v10 = vld [vmem:[%s1832_s14 + $0x278] sm:$0xff]  ;;  %v1457_v15 = vpack.c.bf16 %v559_v6, %v557_v5 }
  0x20   : > { %1446 = vmatprep.subr.bf16.mxu1 %v1445_v38  ;;  %v1507_v8 = vpack.c.bf16 %v606_v7, %v604_v4  ;;  %v1509_v12 = vpack.c.bf16 %v611_v10, %v609_v9  ;;  %v608_v13 = vld [vmem:[%s1832_s14 + $0x260] sm:$0xff]  ;;  %v610_v14 = vld [vmem:[%s1832_s14 + $0x270] sm:$0xff]  ;;  %v613_v18 = vld [vmem:[%s1832_s14 + $0x288] sm:$0xff] }
  0x21   : > { %v556_v16 = vld [vmem:[%s1832_s14 + $0xc0] sm:$0xff]  ;;  %v558_v17 = vld [vmem:[%s1832_s14 + $0xd0] sm:$0xff]  ;;  %v561_v19 = vld [vmem:[%s1832_s14 + $0xe8] sm:$0xff]  ;;  %v1511_v22 = vpack.c.bf16 %v610_v14, %v608_v13 }
  0x22   : > { %1504 = vmatpush1.bf16.msra.mxu0 %v1503_v61  ;;  %v563_v20 = vld [vmem:[%s1832_s14 + $0xf8] sm:$0xff]  ;;  %v1459_v23 = vpack.c.bf16 %v558_v17, %v556_v16  ;;  %v560_v24 = vld [vmem:[%s1832_s14 + $0xe0] sm:$0xff]  ;;  %v614_v27 = vld [vmem:[%s1832_s14 + $0x290] sm:$0xff] }
  0x23   : > { %1448 = vmatpush1.bf16.msra.mxu1 %v1447_v45  ;;  %1506 = vmatprep.subr.bf16.mxu0 %v1505_v3  ;;  %v615_v21 = vld [vmem:[%s1832_s14 + $0x298] sm:$0xff]  ;;  %v612_v26 = vld [vmem:[%s1832_s14 + $0x280] sm:$0xff]  ;;  %v1461_v28 = vpack.c.bf16 %v563_v20, %v561_v19  ;;  %v562_v29 = vld [vmem:[%s1832_s14 + $0xf0] sm:$0xff] }
  0x24   : > { %1450 = vmatprep.subr.bf16.mxu1 %v1449_v49  ;;  %v1513_v25 = vpack.c.bf16 %v615_v21, %v613_v18  ;;  %v617_v30 = vld [vmem:[%s1832_s14 + $0x2a8] sm:$0xff]  ;;  %v619_v31 = vld [vmem:[%s1832_s14 + $0x2b8] sm:$0xff]  ;;  %v1515_v34 = vpack.c.bf16 %v614_v27, %v612_v26  ;;  %v1463_v35 = vpack.c.bf16 %v562_v29, %v560_v24  ;;  %v616_v37 = vld [vmem:[%s1832_s14 + $0x2a0] sm:$0xff] }
  0x25   : > { %v565_v32 = vld [vmem:[%s1832_s14 + $0x108] sm:$0xff]  ;;  %v567_v33 = vld [vmem:[%s1832_s14 + $0x118] sm:$0xff]  ;;  %v1517_v36 = vpack.c.bf16 %v619_v31, %v617_v30  ;;  %v618_v38 = vld [vmem:[%s1832_s14 + $0x2b0] sm:$0xff] }
  0x26   : > { %1508 = vmatpush1.bf16.msra.mxu0 %v1507_v8  ;;  %v1465_v39 = vpack.c.bf16 %v567_v33, %v565_v32  ;;  %v564_v40 = vld [vmem:[%s1832_s14 + $0x100] sm:$0xff]  ;;  %v566_v41 = vld [vmem:[%s1832_s14 + $0x110] sm:$0xff]  ;;  %v569_v42 = vld [vmem:[%s1832_s14 + $0x128] sm:$0xff]  ;;  %v1519_v44 = vpack.c.bf16 %v618_v38, %v616_v37 }
  0x27   : > { %1452 = vmatpush1.bf16.msra.mxu1 %v1451_v60  ;;  %1510 = vmatprep.subr.bf16.mxu0 %v1509_v12  ;;  %v571_v43 = vld [vmem:[%s1832_s14 + $0x138] sm:$0xff]  ;;  %v1467_v45 = vpack.c.bf16 %v566_v41, %v564_v40  ;;  %v568_v47 = vld [vmem:[%s1832_s14 + $0x120] sm:$0xff]  ;;  %v570_v48 = vld [vmem:[%s1832_s14 + $0x130] sm:$0xff] }
  0x28   : > { %1454 = vmatprep.subr.bf16.mxu1 %v1453_v0  ;;  %v1469_v46 = vpack.c.bf16 %v571_v43, %v569_v42  ;;  %v573_v49 = vld [vmem:[%s1832_s14 + $0x148] sm:$0xff]  ;;  %v575_v50 = vld [vmem:[%s1832_s14 + $0x158] sm:$0xff]  ;;  %v1471_v51 = vpack.c.bf16 %v570_v48, %v568_v47  ;;  %v572_v53 = vld [vmem:[%s1832_s14 + $0x140] sm:$0xff] }
  0x29   : > { %v1473_v52 = vpack.c.bf16 %v575_v50, %v573_v49  ;;  %v574_v54 = vld [vmem:[%s1832_s14 + $0x150] sm:$0xff]  ;;  %v577_v55 = vld [vmem:[%s1832_s14 + $0x168] sm:$0xff]  ;;  %v579_v56 = vld [vmem:[%s1832_s14 + $0x178] sm:$0xff] }
  0x2a   : > { %1512 = vmatpush1.bf16.msra.mxu0 %v1511_v22  ;;  %v1475_v57 = vpack.c.bf16 %v574_v54, %v572_v53  ;;  %v1477_v58 = vpack.c.bf16 %v579_v56, %v577_v55  ;;  %v576_v59 = vld [vmem:[%s1832_s14 + $0x160] sm:$0xff]  ;;  %v578_v60 = vld [vmem:[%s1832_s14 + $0x170] sm:$0xff]  ;;  %v581_v61 = vld [vmem:[%s1832_s14 + $0x188] sm:$0xff] }
  0x2b   : > { %1456 = vmatpush1.bf16.msra.mxu1 %v1455_v11  ;;  %1514 = vmatprep.subr.bf16.mxu0 %v1513_v25  ;;  %v583_v62 = vld [vmem:[%s1832_s14 + $0x198] sm:$0xff]  ;;  %v1479_v63 = vpack.c.bf16 %v578_v60, %v576_v59  ;;  %v580_v1 = vld [vmem:[%s1832_s14 + $0x180] sm:$0xff]  ;;  %v582_v2 = vld [vmem:[%s1832_s14 + $0x190] sm:$0xff] }
  0x2c   : > { %1458 = vmatprep.subr.bf16.mxu1 %v1457_v15  ;;  %v1481_v0 = vpack.c.bf16 %v583_v62, %v581_v61  ;;  %v585_v3 = vld [vmem:[%s1832_s14 + $0x1a8] sm:$0xff]  ;;  %v587_v4 = vld [vmem:[%s1832_s14 + $0x1b8] sm:$0xff]  ;;  %v1483_v5 = vpack.c.bf16 %v582_v2, %v580_v1  ;;  %v584_v7 = vld [vmem:[%s1832_s14 + $0x1a0] sm:$0xff] }
  0x2d   : > { %v1485_v6 = vpack.c.bf16 %v587_v4, %v585_v3  ;;  %v586_v8 = vld [vmem:[%s1832_s14 + $0x1b0] sm:$0xff]  ;;  %v589_v10 = vld [vmem:[%s1832_s14 + $0x1c8] sm:$0xff]  ;;  %v591_v11 = vld [vmem:[%s1832_s14 + $0x1d8] sm:$0xff] }
  0x2e   : > { %1516 = vmatpush1.bf16.msra.mxu0 %v1515_v34  ;;  %v1487_v9 = vpack.c.bf16 %v586_v8, %v584_v7  ;;  %v621_v12 = vld [vmem:[%s1832_s14 + $0x2c8] sm:$0xff]  ;;  %v1489_v13 = vpack.c.bf16 %v591_v11, %v589_v10  ;;  %v623_v14 = vld [vmem:[%s1832_s14 + $0x2d8] sm:$0xff]  ;;  %v588_v15 = vld [vmem:[%s1832_s14 + $0x1c0] sm:$0xff] }
  0x2f   : > { %1460 = vmatpush1.bf16.msra.mxu1 %v1459_v23  ;;  %1518 = vmatprep.subr.bf16.mxu0 %v1517_v36  ;;  %v590_v16 = vld [vmem:[%s1832_s14 + $0x1d0] sm:$0xff]  ;;  %v1521_v17 = vpack.c.bf16 %v623_v14, %v621_v12  ;;  %v620_v19 = vld [vmem:[%s1832_s14 + $0x2c0] sm:$0xff]  ;;  %v593_v22 = vld [vmem:[%s1832_s14 + $0x1e8] sm:$0xff] }
  0x30   : > { %1462 = vmatprep.subr.bf16.mxu1 %v1461_v28  ;;  %v1491_v18 = vpack.c.bf16 %v590_v16, %v588_v15  ;;  %v622_v20 = vld [vmem:[%s1832_s14 + $0x2d0] sm:$0xff]  ;;  %v595_v23 = vld [vmem:[%s1832_s14 + $0x1f8] sm:$0xff]  ;;  %v625_v24 = vld [vmem:[%s1832_s14 + $0x2e8] sm:$0xff] }
  0x31   : > { %v1523_v21 = vpack.c.bf16 %v622_v20, %v620_v19  ;;  %v1493_v25 = vpack.c.bf16 %v595_v23, %v593_v22  ;;  %v627_v26 = vld [vmem:[%s1832_s14 + $0x2f8] sm:$0xff]  ;;  %v592_v27 = vld [vmem:[%s1832_s14 + $0x1e0] sm:$0xff]  ;;  %v594_v28 = vld [vmem:[%s1832_s14 + $0x1f0] sm:$0xff] }
  0x32   : > { %1520 = vmatpush1.bf16.msra.mxu0 %v1519_v44  ;;  %v1525_v29 = vpack.c.bf16 %v627_v26, %v625_v24  ;;  %v1495_v30 = vpack.c.bf16 %v594_v28, %v592_v27  ;;  %v624_v31 = vld [vmem:[%s1832_s14 + $0x2e0] sm:$0xff]  ;;  %v626_v32 = vld [vmem:[%s1832_s14 + $0x2f0] sm:$0xff]  ;;  %v629_v34 = vld [vmem:[%s1832_s14 + $0x308] sm:$0xff] }
  0x33   : > { %1464 = vmatpush1.bf16.msra.mxu1 %v1463_v35  ;;  %1522 = vmatprep.subr.bf16.mxu0 %v1521_v17  ;;  %v1527_v33 = vpack.c.bf16 %v626_v32, %v624_v31  ;;  %v631_v35 = vld [vmem:[%s1832_s14 + $0x318] sm:$0xff]  ;;  %v787_v36 = vld [vmem:[%s1942_s20 + $0x8] sm:$0xff]  ;;  %v630_v40 = vld [vmem:[%s1832_s14 + $0x310] sm:$0xff] }
  0x34   : > { %1466 = vmatprep.subr.bf16.mxu1 %v1465_v39  ;;  %v1529_v37 = vpack.c.bf16 %v631_v35, %v629_v34  ;;  %v791_v38 = vld [vmem:[%s1942_s20 + $0x28] sm:$0xff]  ;;  %v628_v39 = vld [vmem:[%s1832_s14 + $0x300] sm:$0xff]  ;;  %v789_v43 = vld [vmem:[%s1942_s20 + $0x18] sm:$0xff] }
  0x35   : > { %v1533_v41 = vpack.c.bf16 %v791_v38, %v787_v36  ;;  %v1531_v42 = vpack.c.bf16 %v630_v40, %v628_v39  ;;  %v793_v44 = vld [vmem:[%s1942_s20 + $0x38] sm:$0xff]  ;;  %v786_v55 = vld [vmem:[%s1942_s20] sm:$0xff]  ;;  %v795_v60 = vld [vmem:[%s1942_s20 + $0x48] sm:$0xff] }
  0x36   : > { %1524 = vmatpush1.bf16.msra.mxu0 %v1523_v21  ;;  %v790_v56 = vld [vmem:[%s1942_s20 + $0x20] sm:$0xff]  ;;  %v799_v61 = vld [vmem:[%s1942_s20 + $0x68] sm:$0xff]  ;;  %v788_v7 = vld [vmem:[%s1942_s20 + $0x10] sm:$0xff] }
  0x37   : > { %1468 = vmatpush1.bf16.msra.mxu1 %v1467_v45  ;;  %1526 = vmatprep.subr.bf16.mxu0 %v1525_v29  ;;  %v1633_v45 = vpack.c.bf16 %v793_v44, %v789_v43  ;;  %v1535_v1 = vpack.c.bf16 %v790_v56, %v786_v55  ;;  %v794_v2 = vld [vmem:[%s1942_s20 + $0x40] sm:$0xff]  ;;  %v792_v8 = vld [vmem:[%s1942_s20 + $0x30] sm:$0xff]  ;;  %v803_v11 = vld [vmem:[%s1942_s20 + $0x88] sm:$0xff] }
  0x38   : > { %1470 = vmatprep.subr.bf16.mxu1 %v1469_v46  ;;  %v807_v12 = vld [vmem:[%s1942_s20 + $0xa8] sm:$0xff]  ;;  %v797_v14 = vld [vmem:[%s1942_s20 + $0x58] sm:$0xff]  ;;  %v1635_v17 = vpack.c.bf16 %v792_v8, %v788_v7  ;;  %v806_v19 = vld [vmem:[%s1942_s20 + $0xa0] sm:$0xff] }
  0x39   : > { %v801_v15 = vld [vmem:[%s1942_s20 + $0x78] sm:$0xff]  ;;  %v1541_v21 = vpack.c.bf16 %v807_v12, %v803_v11  ;;  %v796_v22 = vld [vmem:[%s1942_s20 + $0x50] sm:$0xff]  ;;  %v811_v24 = vld [vmem:[%s1942_s20 + $0xc8] sm:$0xff] }
  0x3a   : > { %1528 = vmatpush1.bf16.msra.mxu0 %v1527_v33  ;;  %v800_v23 = vld [vmem:[%s1942_s20 + $0x70] sm:$0xff]  ;;  %v1637_v26 = vpack.c.bf16 %v801_v15, %v797_v14  ;;  %v815_v27 = vld [vmem:[%s1942_s20 + $0xe8] sm:$0xff]  ;;  %v805_v28 = vld [vmem:[%s1942_s20 + $0x98] sm:$0xff] }
  0x3b   : > { %1472 = vmatpush1.bf16.msra.mxu1 %v1471_v51  ;;  %1530 = vmatprep.subr.bf16.mxu0 %v1529_v37  ;;  %v809_v29 = vld [vmem:[%s1942_s20 + $0xb8] sm:$0xff]  ;;  %v1639_v31 = vpack.c.bf16 %v800_v23, %v796_v22  ;;  %v810_v32 = vld [vmem:[%s1942_s20 + $0xc0] sm:$0xff]  ;;  %v1545_v34 = vpack.c.bf16 %v815_v27, %v811_v24  ;;  %v804_v36 = vld [vmem:[%s1942_s20 + $0x90] sm:$0xff] }
  0x3c   : > { %1474 = vmatprep.subr.bf16.mxu1 %v1473_v52  ;;  %v814_v33 = vld [vmem:[%s1942_s20 + $0xe0] sm:$0xff]  ;;  %v1641_v35 = vpack.c.bf16 %v809_v29, %v805_v28  ;;  %v808_v37 = vld [vmem:[%s1942_s20 + $0xb0] sm:$0xff]  ;;  %v819_v38 = vld [vmem:[%s1942_s20 + $0x108] sm:$0xff] }
  0x3d   : > { %v823_v39 = vld [vmem:[%s1942_s20 + $0x128] sm:$0xff]  ;;  %v813_v40 = vld [vmem:[%s1942_s20 + $0xd8] sm:$0xff]  ;;  %v1643_v43 = vpack.c.bf16 %v808_v37, %v804_v36  ;;  %v818_v44 = vld [vmem:[%s1942_s20 + $0x100] sm:$0xff] }
  0x3e   : > { %1532 = vmatpush1.bf16.msra.mxu0 %v1531_v42  ;;  %v1547_v42 = vpack.c.bf16 %v814_v33, %v810_v32  ;;  %v826_v56 = vld [vmem:[%s1942_s20 + $0x140] sm:$0xff]  ;;  %v828_v8 = vld [vmem:[%s1942_s20 + $0x150] sm:$0xff]  ;;  %v843_v11 = vld [vmem:[%s1942_s20 + $0x1c8] sm:$0xff] }
  0x3f   : > { %1476 = vmatpush1.bf16.msra.mxu1 %v1475_v57  ;;  %1634 = vmatprep.subr.bf16.mxu0 %v1633_v45  ;;  %v822_v45 = vld [vmem:[%s1942_s20 + $0x120] sm:$0xff]  ;;  %v847_v12 = vld [vmem:[%s1942_s20 + $0x1e8] sm:$0xff]  ;;  %v841_v14 = vld [vmem:[%s1942_s20 + $0x1b8] sm:$0xff] }
  0x40   : > { %1478 = vmatprep.subr.bf16.mxu1 %v1477_v58  ;;  %v836_v22 = vld [vmem:[%s1942_s20 + $0x190] sm:$0xff]  ;;  %v851_v24 = vld [vmem:[%s1942_s20 + $0x208] sm:$0xff]  ;;  %v845_v27 = vld [vmem:[%s1942_s20 + $0x1d8] sm:$0xff] }
  0x41   : > { %v840_v23 = vld [vmem:[%s1942_s20 + $0x1b0] sm:$0xff]  ;;  %v849_v28 = vld [vmem:[%s1942_s20 + $0x1f8] sm:$0xff]  ;;  %v854_v32 = vld [vmem:[%s1942_s20 + $0x220] sm:$0xff] }
  0x42   : > { %v848_v36 = vld [vmem:[%s1942_s20 + $0x1f0] sm:$0xff]  ;;  %v859_v37 = vld [vmem:[%s1942_s20 + $0x248] sm:$0xff] }
  0x43   : > { %1480 = vmatpush1.bf16.msra.mxu1 %v1479_v63 }
  0x44   : > { %1482 = vmatprep.subr.bf16.mxu1 %v1481_v0 }
  0x47   : > { %1484 = vmatpush1.bf16.msra.mxu1 %v1483_v5  ;;  %v1537_v5 = vpack.c.bf16 %v799_v61, %v795_v60  ;;  %v820_v60 = vld [vmem:[%s1942_s20 + $0x110] sm:$0xff] }
  0x48   : > { %1486 = vmatprep.subr.bf16.mxu1 %v1485_v6  ;;  %v798_v6 = vld [vmem:[%s1942_s20 + $0x60] sm:$0xff]  ;;  %v824_v61 = vld [vmem:[%s1942_s20 + $0x130] sm:$0xff] }
  0x49   : > { %v1539_v16 = vpack.c.bf16 %v798_v6, %v794_v2 }
  0x4b   : > { %1488 = vmatpush1.bf16.msra.mxu1 %v1487_v9 }
  0x4c   : > { %1490 = vmatprep.subr.bf16.mxu1 %v1489_v13 }
  0x4f   : > { %1492 = vmatpush1.bf16.msra.mxu1 %v1491_v18  ;;  %v802_v18 = vld [vmem:[%s1942_s20 + $0x80] sm:$0xff] }
  0x50   : > { %1494 = vmatprep.subr.bf16.mxu1 %v1493_v25 }
  0x53   : > { %1496 = vmatpush1.bf16.msra.mxu1 %v1495_v30  ;;  %v1543_v30 = vpack.c.bf16 %v806_v19, %v802_v18  ;;  %v846_v18 = vld [vmem:[%s1942_s20 + $0x1e0] sm:$0xff]  ;;  %v1561_v19 = vpack.c.bf16 %v847_v12, %v843_v11  ;;  %v887_v11 = vld [vmem:[%s1942_s20 + $0x328] sm:$0xff]  ;;  %v877_v12 = vld [vmem:[%s1942_s20 + $0x2d8] sm:$0xff] }
  0x54   : > { %1534 = vmatprep.subr.bf16.mxu1 %v1533_v41  ;;  %v817_v41 = vld [vmem:[%s1942_s20 + $0xf8] sm:$0xff] }
  0x86   : > { %v504_v46 = vpop.permute.xlu0 %503 }
  0x8a   : > { %v514_v48 = vpop.permute.xlu0 %513 }
  0xeb   : > { %v424_v47 = vpop.f32.mrb[0].mxu0 }
  0xec   : > { %v506_v49 = vmul.f32 %v504_v46, %v424_v47  ;;  %v426_v50 = vpop.f32.mrb[1].mxu0  ;;  %v1645_v47 = vpack.c.bf16 %v817_v41, %v813_v40  ;;  %v857_v40 = vld [vmem:[%s1942_s20 + $0x238] sm:$0xff] }
  0xed   : > { %v507_v51 = vmul.f32 %v504_v46, %v426_v50  ;;  %v827_v50 = vld [vmem:[%s1942_s20 + $0x148] sm:$0xff] }
  0xee   : > { %v516_v52 = vadd.f32 %v514_v48, %v506_v49  ;;  %v816_v49 = vld [vmem:[%s1942_s20 + $0xf0] sm:$0xff] }
  0xef   : > { %v517_v53 = vadd.f32 %v514_v48, %v507_v51  ;;  %v495_v54 = vpop.f32.mrb[2].mxu0  ;;  %v831_v51 = vld [vmem:[%s1942_s20 + $0x168] sm:$0xff] }
  0xf0   : > { %v508_v57 = vmul.f32 %v504_v46, %v495_v54  ;;  %v497_v58 = vpop.f32.mrb[3].mxu0  ;;  %v524_v59 = vmul.f32 0.01, %v516_v52  ;;  %vm520_vm5 = vcmp.ge.f32.partialorder %v516_v52, 0.0  ;;  %v1551_v54 = vpack.c.bf16 %v822_v45, %v818_v44  ;;  %v862_v44 = vld [vmem:[%s1942_s20 + $0x260] sm:$0xff] }
  0xf1   : > { %v509_v62 = vmul.f32 %v504_v46, %v497_v58  ;;  %vm521_vm4 = vcmp.ge.f32.partialorder %v517_v53, 0.0  ;;  %v525_v63 = vmul.f32 0.01, %v517_v53  ;;  %v1549_v46 = vpack.c.bf16 %v823_v39, %v819_v38  ;;  %v863_v38 = vld [vmem:[%s1942_s20 + $0x268] sm:$0xff]  ;;  %v853_v39 = vld [vmem:[%s1942_s20 + $0x218] sm:$0xff] }
  0xf2   : > { %v518_v0 = vadd.f32 %v514_v48, %v508_v57  ;;  %v1965_v10 = vsel %vm520_vm5, %v516_v52, %v524_v59  ;;  %v821_v52 = vld [vmem:[%s1942_s20 + $0x118] sm:$0xff]  ;;  %v830_v57 = vld [vmem:[%s1942_s20 + $0x160] sm:$0xff]  ;;  %v1553_v58 = vpack.c.bf16 %v831_v51, %v827_v50  ;;  %v1569_v45 = vpack.c.bf16 %v863_v38, %v859_v37  ;;  %v871_v50 = vld [vmem:[%s1942_s20 + $0x2a8] sm:$0xff] }
  0xf3   : > { %v519_v3 = vadd.f32 %v514_v48, %v509_v62  ;;  %v529_v4 = vsel %vm521_vm4, %v517_v53, %v525_v63  ;;  %v812_v48 = vld [vmem:[%s1942_s20 + $0xd0] sm:$0xff]  ;;  %v825_v53 = vld [vmem:[%s1942_s20 + $0x138] sm:$0xff]  ;;  %v835_v62 = vld [vmem:[%s1942_s20 + $0x188] sm:$0xff]  ;;  %v1555_v2 = vpack.c.bf16 %v830_v57, %v826_v56 }
  0xf4   : > { %v526_v9 = vmul.f32 0.01, %v518_v0  ;;  %700 = vmatprep.mubr.f32.mxu1 %v529_v4  ;;  %vm522_vm8 = vcmp.ge.f32.partialorder %v518_v0, 0.0  ;;  %v1647_v55 = vpack.c.bf16 %v816_v49, %v812_v48  ;;  %v1649_v59 = vpack.c.bf16 %v825_v53, %v821_v52  ;;  %v839_v63 = vld [vmem:[%s1942_s20 + $0x1a8] sm:$0xff]  ;;  %v856_v48 = vld [vmem:[%s1942_s20 + $0x230] sm:$0xff]  ;;  %v861_v51 = vld [vmem:[%s1942_s20 + $0x258] sm:$0xff] }
  0xf5   : > { %v527_v13 = vmul.f32 0.01, %v519_v3  ;;  %701 = vmatmul.mubr.f32.vlgmr.msra.gmra.mrb[0].mxu1 %v1965_v10  ;;  %vm523_vm7 = vcmp.ge.f32.partialorder %v519_v3, 0.0  ;;  %v1557_v6 = vpack.c.bf16 %v839_v63, %v835_v62  ;;  %v867_v49 = vld [vmem:[%s1942_s20 + $0x288] sm:$0xff]  ;;  %v865_v52 = vld [vmem:[%s1942_s20 + $0x278] sm:$0xff]  ;;  %v870_v56 = vld [vmem:[%s1942_s20 + $0x2a0] sm:$0xff] }
  0xf6   : > { %1536 = vmatpush1.bf16.msra.mxu1 %v1535_v1  ;;  %1050 = vmatprep.mubr.f32.mxu1 %v529_v4  ;;  %v1982_v25 = vsel %vm522_vm8, %v518_v0, %v526_v9  ;;  %v829_v0 = vld [vmem:[%s1942_s20 + $0x158] sm:$0xff]  ;;  %v832_v9 = vld [vmem:[%s1942_s20 + $0x170] sm:$0xff]  ;;  %v1573_v57 = vpack.c.bf16 %v871_v50, %v867_v49  ;;  %v879_v62 = vld [vmem:[%s1942_s20 + $0x2e8] sm:$0xff] }
  0xf7   : > { %v1974_v20 = vsel %vm523_vm7, %v519_v3, %v527_v13  ;;  %1538 = vmatprep.subr.bf16.mxu1 %v1537_v5  ;;  %v833_v1 = vld [vmem:[%s1942_s20 + $0x178] sm:$0xff]  ;;  %v1651_v3 = vpack.c.bf16 %v824_v61, %v820_v60  ;;  %v838_v5 = vld [vmem:[%s1942_s20 + $0x1a0] sm:$0xff]  ;;  %v864_v60 = vld [vmem:[%s1942_s20 + $0x270] sm:$0xff] }
  0xf8   : > { %1413 = vmatprep.mubr.msk.f32.mxu0 %vm632_vm6, %v1974_v20  ;;  %v1653_v7 = vpack.c.bf16 %v833_v1, %v829_v0  ;;  %v837_v13 = vld [vmem:[%s1942_s20 + $0x198] sm:$0xff]  ;;  %v875_v61 = vld [vmem:[%s1942_s20 + $0x2c8] sm:$0xff] }
  0xf9   : > { %772 = vmatmul.mubr.f32.vlgmr.msra.gmra.mrb[4].mxu0 %v1982_v25  ;;  %v869_v63 = vld [vmem:[%s1942_s20 + $0x298] sm:$0xff]  ;;  %v903_v37 = vld [vmem:[%s1942_s20 + $0x3a8] sm:$0xff] }
  0xfa   : > { %1540 = vmatpush1.bf16.msra.mxu1 %v1539_v16  ;;  %1636 = vmatpush1.bf16.msra.mxu0 %v1635_v17  ;;  %v1655_v16 = vpack.c.bf16 %v832_v9, %v828_v8  ;;  %v842_v17 = vld [vmem:[%s1942_s20 + $0x1c0] sm:$0xff]  ;;  %v873_v0 = vld [vmem:[%s1942_s20 + $0x2b8] sm:$0xff]  ;;  %v872_v8 = vld [vmem:[%s1942_s20 + $0x2b0] sm:$0xff] }
  0xfb   : > { %1192 = vmatprep.mubr.f32.mxu0 %v529_v4  ;;  %1542 = vmatprep.subr.bf16.mxu1 %v1541_v21  ;;  %v834_v4 = vld [vmem:[%s1942_s20 + $0x180] sm:$0xff]  ;;  %v1657_v21 = vpack.c.bf16 %v841_v14, %v837_v13  ;;  %v1563_v29 = vpack.c.bf16 %v846_v18, %v842_v17  ;;  %v883_v9 = vld [vmem:[%s1942_s20 + $0x308] sm:$0xff]  ;;  %v881_v13 = vld [vmem:[%s1942_s20 + $0x2f8] sm:$0xff] }
  0xfc   : > { %1638 = vmatprep.subr.bf16.mxu0 %v1637_v26  ;;  %v1559_v15 = vpack.c.bf16 %v838_v5, %v834_v4  ;;  %v855_v26 = vld [vmem:[%s1942_s20 + $0x228] sm:$0xff]  ;;  %v878_v4 = vld [vmem:[%s1942_s20 + $0x2e0] sm:$0xff]  ;;  %v1577_v5 = vpack.c.bf16 %v879_v62, %v875_v61  ;;  %v1581_v18 = vpack.c.bf16 %v887_v11, %v883_v9  ;;  %v893_v38 = vld [vmem:[%s1942_s20 + $0x358] sm:$0xff] }
  0xfd   : > { %v1565_v33 = vpack.c.bf16 %v855_v26, %v851_v24  ;;  %v886_v17 = vld [vmem:[%s1942_s20 + $0x320] sm:$0xff]  ;;  %v895_v24 = vld [vmem:[%s1942_s20 + $0x368] sm:$0xff]  ;;  %v885_v26 = vld [vmem:[%s1942_s20 + $0x318] sm:$0xff] }
  0xfe   : > { %1544 = vmatpush1.bf16.msra.mxu1 %v1543_v30  ;;  %1640 = vmatpush1.bf16.msra.mxu0 %v1639_v31  ;;  %v1659_v30 = vpack.c.bf16 %v840_v23, %v836_v22  ;;  %v850_v31 = vld [vmem:[%s1942_s20 + $0x200] sm:$0xff]  ;;  %v880_v22 = vld [vmem:[%s1942_s20 + $0x2f0] sm:$0xff]  ;;  %v891_v23 = vld [vmem:[%s1942_s20 + $0x348] sm:$0xff] }
  0xff   : > { %1546 = vmatprep.subr.bf16.mxu1 %v1545_v34  ;;  %1642 = vmatprep.subr.bf16.mxu0 %v1641_v35  ;;  %v1661_v34 = vpack.c.bf16 %v849_v28, %v845_v27  ;;  %v844_v35 = vld [vmem:[%s1942_s20 + $0x1d0] sm:$0xff]  ;;  %v1567_v41 = vpack.c.bf16 %v854_v32, %v850_v31  ;;  %v889_v27 = vld [vmem:[%s1942_s20 + $0x338] sm:$0xff]  ;;  %v894_v31 = vld [vmem:[%s1942_s20 + $0x360] sm:$0xff]  ;;  %v1585_v32 = vpack.c.bf16 %v895_v24, %v891_v23 }
 0x100   : > { %v911_v49 = vld [vmem:[%s1942_s20 + $0x3e8] sm:$0xff]  ;;  %v901_v50 = vld [vmem:[%s1942_s20 + $0x398] sm:$0xff] }
 0x101   : > { %v919_v61 = vld [vmem:[%s1942_s20 + $0x428] sm:$0xff]  ;;  %v909_v62 = vld [vmem:[%s1942_s20 + $0x3d8] sm:$0xff] }
 0x102   : > { %1548 = vmatpush1.bf16.msra.mxu1 %v1547_v42  ;;  %1644 = vmatpush1.bf16.msra.mxu0 %v1643_v43  ;;  %v1663_v42 = vpack.c.bf16 %v848_v36, %v844_v35  ;;  %v858_v43 = vld [vmem:[%s1942_s20 + $0x240] sm:$0xff]  ;;  %v888_v35 = vld [vmem:[%s1942_s20 + $0x330] sm:$0xff]  ;;  %v899_v36 = vld [vmem:[%s1942_s20 + $0x388] sm:$0xff] }
 0x103   : > { %1550 = vmatprep.subr.bf16.mxu1 %v1549_v46  ;;  %1646 = vmatprep.subr.bf16.mxu0 %v1645_v47  ;;  %v1665_v46 = vpack.c.bf16 %v857_v40, %v853_v39  ;;  %v852_v47 = vld [vmem:[%s1942_s20 + $0x210] sm:$0xff]  ;;  %v1571_v53 = vpack.c.bf16 %v862_v44, %v858_v43  ;;  %v897_v39 = vld [vmem:[%s1942_s20 + $0x378] sm:$0xff]  ;;  %v902_v43 = vld [vmem:[%s1942_s20 + $0x3a0] sm:$0xff]  ;;  %v1589_v44 = vpack.c.bf16 %v903_v37, %v899_v36 }
 0x104   : > { %v927_v9 = vld [vmem:[%s1942_s20 + $0x468] sm:$0xff]  ;;  %v917_v11 = vld [vmem:[%s1942_s20 + $0x418] sm:$0xff] }
 0x105   : > { %v935_v23 = vld [vmem:[%s1942_s20 + $0x4a8] sm:$0xff]  ;;  %v925_v24 = vld [vmem:[%s1942_s20 + $0x458] sm:$0xff] }
 0x106   : > { %1552 = vmatpush1.bf16.msra.mxu1 %v1551_v54  ;;  %1648 = vmatpush1.bf16.msra.mxu0 %v1647_v55  ;;  %v1667_v54 = vpack.c.bf16 %v856_v48, %v852_v47  ;;  %v866_v55 = vld [vmem:[%s1942_s20 + $0x280] sm:$0xff]  ;;  %v896_v47 = vld [vmem:[%s1942_s20 + $0x370] sm:$0xff]  ;;  %v907_v48 = vld [vmem:[%s1942_s20 + $0x3c8] sm:$0xff] }
 0x107   : > { %1554 = vmatprep.subr.bf16.mxu1 %v1553_v58  ;;  %1650 = vmatprep.subr.bf16.mxu0 %v1649_v59  ;;  %v1669_v58 = vpack.c.bf16 %v865_v52, %v861_v51  ;;  %v860_v59 = vld [vmem:[%s1942_s20 + $0x250] sm:$0xff]  ;;  %v1575_v1 = vpack.c.bf16 %v870_v56, %v866_v55  ;;  %v905_v51 = vld [vmem:[%s1942_s20 + $0x3b8] sm:$0xff]  ;;  %v910_v55 = vld [vmem:[%s1942_s20 + $0x3e0] sm:$0xff]  ;;  %v1593_v56 = vpack.c.bf16 %v911_v49, %v907_v48 }
 0x108   : > { %v943_v36 = vld [vmem:[%s1942_s20 + $0x4e8] sm:$0xff]  ;;  %v933_v37 = vld [vmem:[%s1942_s20 + $0x498] sm:$0xff] }
 0x109   : > { %v941_v48 = vld [vmem:[%s1942_s20 + $0x4d8] sm:$0xff] }
 0x10a   : > { %1556 = vmatpush1.bf16.msra.mxu1 %v1555_v2  ;;  %1652 = vmatpush1.bf16.msra.mxu0 %v1651_v3  ;;  %v1671_v2 = vpack.c.bf16 %v864_v60, %v860_v59  ;;  %v874_v3 = vld [vmem:[%s1942_s20 + $0x2c0] sm:$0xff]  ;;  %v904_v59 = vld [vmem:[%s1942_s20 + $0x3b0] sm:$0xff]  ;;  %v915_v60 = vld [vmem:[%s1942_s20 + $0x408] sm:$0xff] }
 0x10b   : > { %1558 = vmatprep.subr.bf16.mxu1 %v1557_v6  ;;  %1654 = vmatprep.subr.bf16.mxu0 %v1653_v7  ;;  %v1673_v6 = vpack.c.bf16 %v873_v0, %v869_v63  ;;  %v868_v7 = vld [vmem:[%s1942_s20 + $0x290] sm:$0xff]  ;;  %v1579_v14 = vpack.c.bf16 %v878_v4, %v874_v3  ;;  %v913_v63 = vld [vmem:[%s1942_s20 + $0x3f8] sm:$0xff]  ;;  %v914_v4 = vld [vmem:[%s1942_s20 + $0x400] sm:$0xff] }
 0x10c   : > { %v1693_v3 = vpack.c.bf16 %v913_v63, %v909_v62 }
 0x10e   : > { %1560 = vmatpush1.bf16.msra.mxu1 %v1559_v15  ;;  %1656 = vmatpush1.bf16.msra.mxu0 %v1655_v16  ;;  %v1675_v15 = vpack.c.bf16 %v872_v8, %v868_v7  ;;  %v882_v16 = vld [vmem:[%s1942_s20 + $0x300] sm:$0xff]  ;;  %v912_v7 = vld [vmem:[%s1942_s20 + $0x3f0] sm:$0xff]  ;;  %v923_v8 = vld [vmem:[%s1942_s20 + $0x448] sm:$0xff] }
 0x10f   : > { %1562 = vmatprep.subr.bf16.mxu1 %v1561_v19  ;;  %1658 = vmatprep.subr.bf16.mxu0 %v1657_v21  ;;  %v1677_v19 = vpack.c.bf16 %v881_v13, %v877_v12  ;;  %v876_v21 = vld [vmem:[%s1942_s20 + $0x2d0] sm:$0xff]  ;;  %v1583_v28 = vpack.c.bf16 %v886_v17, %v882_v16  ;;  %v921_v12 = vld [vmem:[%s1942_s20 + $0x438] sm:$0xff]  ;;  %v922_v16 = vld [vmem:[%s1942_s20 + $0x440] sm:$0xff] }
 0x110   : > { %v926_v17 = vld [vmem:[%s1942_s20 + $0x460] sm:$0xff] }
 0x112   : > { %1564 = vmatpush1.bf16.msra.mxu1 %v1563_v29  ;;  %1660 = vmatpush1.bf16.msra.mxu0 %v1659_v30  ;;  %v1679_v29 = vpack.c.bf16 %v880_v22, %v876_v21  ;;  %v890_v30 = vld [vmem:[%s1942_s20 + $0x340] sm:$0xff]  ;;  %v920_v21 = vld [vmem:[%s1942_s20 + $0x430] sm:$0xff]  ;;  %v931_v22 = vld [vmem:[%s1942_s20 + $0x488] sm:$0xff] }
 0x113   : > { %1566 = vmatprep.subr.bf16.mxu1 %v1565_v33  ;;  %1662 = vmatprep.subr.bf16.mxu0 %v1661_v34  ;;  %v1681_v33 = vpack.c.bf16 %v889_v27, %v885_v26  ;;  %v884_v34 = vld [vmem:[%s1942_s20 + $0x310] sm:$0xff]  ;;  %v1587_v40 = vpack.c.bf16 %v894_v31, %v890_v30  ;;  %v929_v26 = vld [vmem:[%s1942_s20 + $0x478] sm:$0xff]  ;;  %v1603_v27 = vpack.c.bf16 %v926_v17, %v922_v16  ;;  %v934_v30 = vld [vmem:[%s1942_s20 + $0x4a0] sm:$0xff] }
 0x114   : > { %v924_v31 = vld [vmem:[%s1942_s20 + $0x450] sm:$0xff] }
 0x115   : > { %v960_v17 = vld [vmem:[%s1942_s20 + $0x570] sm:$0xff] }
 0x116   : > { %1568 = vmatpush1.bf16.msra.mxu1 %v1567_v41  ;;  %1664 = vmatpush1.bf16.msra.mxu0 %v1663_v42  ;;  %v1683_v41 = vpack.c.bf16 %v888_v35, %v884_v34  ;;  %v898_v42 = vld [vmem:[%s1942_s20 + $0x380] sm:$0xff]  ;;  %v928_v34 = vld [vmem:[%s1942_s20 + $0x470] sm:$0xff]  ;;  %v939_v35 = vld [vmem:[%s1942_s20 + $0x4c8] sm:$0xff] }
 0x117   : > { %1570 = vmatprep.subr.bf16.mxu1 %v1569_v45  ;;  %1666 = vmatprep.subr.bf16.mxu0 %v1665_v46  ;;  %v1685_v45 = vpack.c.bf16 %v897_v39, %v893_v38  ;;  %v892_v46 = vld [vmem:[%s1942_s20 + $0x350] sm:$0xff]  ;;  %v1591_v52 = vpack.c.bf16 %v902_v43, %v898_v42  ;;  %v937_v38 = vld [vmem:[%s1942_s20 + $0x4b8] sm:$0xff]  ;;  %v938_v42 = vld [vmem:[%s1942_s20 + $0x4c0] sm:$0xff] }
 0x118   : > { %v942_v43 = vld [vmem:[%s1942_s20 + $0x4e0] sm:$0xff] }
 0x119   : > { %v1611_v49 = vpack.c.bf16 %v942_v43, %v938_v42  ;;  %v972_v42 = vld [vmem:[%s1942_s20 + $0x5d0] sm:$0xff] }
 0x11a   : > { %1572 = vmatpush1.bf16.msra.mxu1 %v1571_v53  ;;  %1668 = vmatpush1.bf16.msra.mxu0 %v1667_v54  ;;  %v1687_v53 = vpack.c.bf16 %v896_v47, %v892_v46  ;;  %v906_v54 = vld [vmem:[%s1942_s20 + $0x3c0] sm:$0xff]  ;;  %v947_v46 = vld [vmem:[%s1942_s20 + $0x508] sm:$0xff]  ;;  %v976_v43 = vld [vmem:[%s1942_s20 + $0x5f0] sm:$0xff] }
 0x11b   : > { %1574 = vmatprep.subr.bf16.mxu1 %v1573_v57  ;;  %1670 = vmatprep.subr.bf16.mxu0 %v1669_v58  ;;  %v1689_v57 = vpack.c.bf16 %v905_v51, %v901_v50  ;;  %v900_v58 = vld [vmem:[%s1942_s20 + $0x390] sm:$0xff]  ;;  %v1595_v0 = vpack.c.bf16 %v910_v55, %v906_v54  ;;  %v951_v47 = vld [vmem:[%s1942_s20 + $0x528] sm:$0xff] }
 0x11c   : > { %v1613_v51 = vpack.c.bf16 %v951_v47, %v947_v46  ;;  %v940_v54 = vld [vmem:[%s1942_s20 + $0x4d0] sm:$0xff]  ;;  %v1727_v46 = vpack.c.bf16 %v976_v43, %v972_v42 }
 0x11e   : > { %1576 = vmatpush1.bf16.msra.mxu1 %v1575_v1  ;;  %1672 = vmatpush1.bf16.msra.mxu0 %v1671_v2  ;;  %v1691_v1 = vpack.c.bf16 %v904_v59, %v900_v58  ;;  %v1597_v2 = vpack.c.bf16 %v919_v61, %v915_v60  ;;  %v959_v58 = vld [vmem:[%s1942_s20 + $0x568] sm:$0xff]  ;;  %v949_v59 = vld [vmem:[%s1942_s20 + $0x518] sm:$0xff] }
 0x11f   : > { %1578 = vmatprep.subr.bf16.mxu1 %v1577_v5  ;;  %1674 = vmatprep.subr.bf16.mxu0 %v1673_v6  ;;  %v918_v5 = vld [vmem:[%s1942_s20 + $0x420] sm:$0xff]  ;;  %v908_v6 = vld [vmem:[%s1942_s20 + $0x3d0] sm:$0xff]  ;;  %v953_v60 = vld [vmem:[%s1942_s20 + $0x538] sm:$0xff] }
 0x120   : > { %v1599_v13 = vpack.c.bf16 %v918_v5, %v914_v4  ;;  %v952_v4 = vld [vmem:[%s1942_s20 + $0x530] sm:$0xff]  ;;  %v963_v5 = vld [vmem:[%s1942_s20 + $0x588] sm:$0xff] }
 0x122   : > { %1580 = vmatpush1.bf16.msra.mxu1 %v1579_v14  ;;  %1676 = vmatpush1.bf16.msra.mxu0 %v1675_v15  ;;  %v1695_v14 = vpack.c.bf16 %v912_v7, %v908_v6  ;;  %v1601_v15 = vpack.c.bf16 %v927_v9, %v923_v8  ;;  %v967_v6 = vld [vmem:[%s1942_s20 + $0x5a8] sm:$0xff]  ;;  %v957_v7 = vld [vmem:[%s1942_s20 + $0x558] sm:$0xff] }
 0x123   : > { %1582 = vmatprep.subr.bf16.mxu1 %v1581_v18  ;;  %1678 = vmatprep.subr.bf16.mxu0 %v1677_v19  ;;  %v1697_v18 = vpack.c.bf16 %v921_v12, %v917_v11  ;;  %v916_v19 = vld [vmem:[%s1942_s20 + $0x410] sm:$0xff]  ;;  %v961_v8 = vld [vmem:[%s1942_s20 + $0x578] sm:$0xff]  ;;  %v1621_v12 = vpack.c.bf16 %v967_v6, %v963_v5 }
 0x124   : > { %v1717_v16 = vpack.c.bf16 %v961_v8, %v957_v7 }
 0x126   : > { %1584 = vmatpush1.bf16.msra.mxu1 %v1583_v28  ;;  %1680 = vmatpush1.bf16.msra.mxu0 %v1679_v29  ;;  %v1699_v28 = vpack.c.bf16 %v920_v21, %v916_v19  ;;  %v930_v29 = vld [vmem:[%s1942_s20 + $0x480] sm:$0xff]  ;;  %v975_v19 = vld [vmem:[%s1942_s20 + $0x5e8] sm:$0xff]  ;;  %v965_v21 = vld [vmem:[%s1942_s20 + $0x598] sm:$0xff] }
 0x127   : > { %1586 = vmatprep.subr.bf16.mxu1 %v1585_v32  ;;  %1682 = vmatprep.subr.bf16.mxu0 %v1681_v33  ;;  %v1605_v32 = vpack.c.bf16 %v935_v23, %v931_v22  ;;  %v1701_v33 = vpack.c.bf16 %v929_v26, %v925_v24  ;;  %v1607_v39 = vpack.c.bf16 %v934_v30, %v930_v29  ;;  %v969_v22 = vld [vmem:[%s1942_s20 + $0x5b8] sm:$0xff]  ;;  %v964_v29 = vld [vmem:[%s1942_s20 + $0x590] sm:$0xff] }
 0x128   : > { %v1721_v30 = vpack.c.bf16 %v969_v22, %v965_v21 }
 0x12a   : > { %1588 = vmatpush1.bf16.msra.mxu1 %v1587_v40  ;;  %1684 = vmatpush1.bf16.msra.mxu0 %v1683_v41  ;;  %v1703_v40 = vpack.c.bf16 %v928_v34, %v924_v31  ;;  %v1609_v41 = vpack.c.bf16 %v943_v36, %v939_v35  ;;  %v968_v31 = vld [vmem:[%s1942_s20 + $0x5b0] sm:$0xff]  ;;  %v973_v34 = vld [vmem:[%s1942_s20 + $0x5d8] sm:$0xff] }
 0x12b   : > { %1590 = vmatprep.subr.bf16.mxu1 %v1589_v44  ;;  %1686 = vmatprep.subr.bf16.mxu0 %v1685_v45  ;;  %v932_v44 = vld [vmem:[%s1942_s20 + $0x490] sm:$0xff]  ;;  %v1705_v45 = vpack.c.bf16 %v937_v38, %v933_v37  ;;  %v977_v35 = vld [vmem:[%s1942_s20 + $0x5f8] sm:$0xff]  ;;  %v1723_v37 = vpack.c.bf16 %v968_v31, %v964_v29 }
 0x12e   : > { %1592 = vmatpush1.bf16.msra.mxu1 %v1591_v52  ;;  %1688 = vmatpush1.bf16.msra.mxu0 %v1687_v53  ;;  %v946_v52 = vld [vmem:[%s1942_s20 + $0x500] sm:$0xff] }
 0x12f   : > { %1594 = vmatprep.subr.bf16.mxu1 %v1593_v56  ;;  %1690 = vmatprep.subr.bf16.mxu0 %v1689_v57  ;;  %v950_v53 = vld [vmem:[%s1942_s20 + $0x520] sm:$0xff]  ;;  %v944_v56 = vld [vmem:[%s1942_s20 + $0x4f0] sm:$0xff]  ;;  %v955_v57 = vld [vmem:[%s1942_s20 + $0x548] sm:$0xff] }
 0x130   : > { %v1615_v61 = vpack.c.bf16 %v950_v53, %v946_v52  ;;  %v1711_v62 = vpack.c.bf16 %v944_v56, %v940_v54  ;;  %v1617_v63 = vpack.c.bf16 %v959_v58, %v955_v57 }
 0x132   : > { %1596 = vmatpush1.bf16.msra.mxu1 %v1595_v0  ;;  %1692 = vmatpush1.bf16.msra.mxu0 %v1691_v1  ;;  %v954_v0 = vld [vmem:[%s1942_s20 + $0x540] sm:$0xff] }
 0x133   : > { %1598 = vmatprep.subr.bf16.mxu1 %v1597_v2  ;;  %1694 = vmatprep.subr.bf16.mxu0 %v1693_v3  ;;  %v958_v1 = vld [vmem:[%s1942_s20 + $0x560] sm:$0xff]  ;;  %v948_v2 = vld [vmem:[%s1942_s20 + $0x510] sm:$0xff]  ;;  %v1713_v3 = vpack.c.bf16 %v953_v60, %v949_v59 }
 0x134   : > { %v1619_v9 = vpack.c.bf16 %v958_v1, %v954_v0  ;;  %v1715_v11 = vpack.c.bf16 %v952_v4, %v948_v2 }
 0x135   : > { %1051 = vmatmul.mubr.f32.vlgmr.msra.gmra.mrb[2].mxu1 %v1965_v10 }
 0x136   : > { %1600 = vmatpush1.bf16.msra.mxu1 %v1599_v13  ;;  %1414 = vmatprep.mubr.msk.f32.mxu1 %vm632_vm6, %v1974_v20  ;;  %v962_v13 = vld [vmem:[%s1942_s20 + $0x580] sm:$0xff] }
 0x137   : > { %1696 = vmatpush1.bf16.msra.mxu0 %v1695_v14  ;;  %1602 = vmatprep.subr.bf16.mxu1 %v1601_v15  ;;  %v966_v14 = vld [vmem:[%s1942_s20 + $0x5a0] sm:$0xff]  ;;  %v956_v15 = vld [vmem:[%s1942_s20 + $0x550] sm:$0xff] }
 0x138   : > { %1698 = vmatprep.subr.bf16.mxu0 %v1697_v18  ;;  %v971_v18 = vld [vmem:[%s1942_s20 + $0x5c8] sm:$0xff]  ;;  %v1623_v23 = vpack.c.bf16 %v966_v14, %v962_v13  ;;  %v1719_v24 = vpack.c.bf16 %v960_v17, %v956_v15 }
 0x139   : > { %v1625_v26 = vpack.c.bf16 %v975_v19, %v971_v18 }
 0x13a   : > { %1193 = vmatmul.mubr.f32.vlgmr.msra.gmra.mrb[6].mxu0 %v1965_v10  ;;  %1604 = vmatpush1.bf16.msra.mxu1 %v1603_v27  ;;  %v936_v10 = vld [vmem:[%s1942_s20 + $0x4b0] sm:$0xff]  ;;  %v970_v27 = vld [vmem:[%s1942_s20 + $0x5c0] sm:$0xff] }
 0x13b   : > { %1700 = vmatpush1.bf16.msra.mxu0 %v1699_v28  ;;  %1415 = vmatprep.mubr.msk.f32.mxu0 %vm632_vm6, %v1974_v20  ;;  %v945_v20 = vld [vmem:[%s1942_s20 + $0x4f8] sm:$0xff]  ;;  %v1707_v50 = vpack.c.bf16 %v936_v10, %v932_v44  ;;  %v974_v28 = vld [vmem:[%s1942_s20 + $0x5e0] sm:$0xff] }
 0x13c   : > { %1606 = vmatprep.subr.bf16.mxu1 %v1605_v32  ;;  %1702 = vmatprep.subr.bf16.mxu0 %v1701_v33  ;;  %v1709_v55 = vpack.c.bf16 %v945_v20, %v941_v48  ;;  %v979_v32 = vld [vmem:[%s1942_s20 + $0x608] sm:$0xff]  ;;  %v1627_v36 = vpack.c.bf16 %v974_v28, %v970_v27  ;;  %v981_v44 = vld [vmem:[%s1942_s20 + $0x618] sm:$0xff]  ;;  %v980_v48 = vld [vmem:[%s1942_s20 + $0x610] sm:$0xff] }
 0x13d   : > { %v983_v33 = vld [vmem:[%s1942_s20 + $0x628] sm:$0xff]  ;;  %v984_v20 = vld [vmem:[%s1942_s20 + $0x630] sm:$0xff] }
 0x13e   : > { %1608 = vmatpush1.bf16.msra.mxu1 %v1607_v39  ;;  %v1629_v38 = vpack.c.bf16 %v983_v33, %v979_v32  ;;  %v978_v39 = vld [vmem:[%s1942_s20 + $0x600] sm:$0xff] }
 0x13f   : > { %1704 = vmatpush1.bf16.msra.mxu0 %v1703_v40  ;;  %1610 = vmatprep.subr.bf16.mxu1 %v1609_v41  ;;  %v982_v40 = vld [vmem:[%s1942_s20 + $0x620] sm:$0xff]  ;;  %v1725_v41 = vpack.c.bf16 %v977_v35, %v973_v34 }
 0x140   : > { %1706 = vmatprep.subr.bf16.mxu0 %v1705_v45  ;;  %v985_v45 = vld [vmem:[%s1942_s20 + $0x638] sm:$0xff]  ;;  %v1631_v10 = vpack.c.bf16 %v982_v40, %v978_v39 }
 0x141   : > { %v1729_v47 = vpack.c.bf16 %v985_v45, %v981_v44 }
 0x142   : > { %1612 = vmatpush1.bf16.msra.mxu1 %v1611_v49  ;;  %v1731_v49 = vpack.c.bf16 %v984_v20, %v980_v48 }
 0x143   : > { %1708 = vmatpush1.bf16.msra.mxu0 %v1707_v50  ;;  %1614 = vmatprep.subr.bf16.mxu1 %v1613_v51 }
 0x144   : > { %1710 = vmatprep.subr.bf16.mxu0 %v1709_v55 }
 0x146   : > { %1616 = vmatpush1.bf16.msra.mxu1 %v1615_v61 }
 0x147   : > { %1712 = vmatpush1.bf16.msra.mxu0 %v1711_v62  ;;  %1618 = vmatprep.subr.bf16.mxu1 %v1617_v63 }
 0x148   : > { %1714 = vmatprep.subr.bf16.mxu0 %v1713_v3 }
 0x14a   : > { %1620 = vmatpush1.bf16.msra.mxu1 %v1619_v9 }
 0x14b   : > { %1716 = vmatpush1.bf16.msra.mxu0 %v1715_v11  ;;  %1622 = vmatprep.subr.bf16.mxu1 %v1621_v12 }
 0x14c   : > { %1718 = vmatprep.subr.bf16.mxu0 %v1717_v16 }
 0x14e   : > { %1624 = vmatpush1.bf16.msra.mxu1 %v1623_v23 }
 0x14f   : > { %1720 = vmatpush1.bf16.msra.mxu0 %v1719_v24  ;;  %1626 = vmatprep.subr.bf16.mxu1 %v1625_v26 }
 0x150   : > { %1722 = vmatprep.subr.bf16.mxu0 %v1721_v30 }
 0x152   : > { %1628 = vmatpush1.bf16.msra.mxu1 %v1627_v36 }
 0x153   : > { %1724 = vmatpush1.bf16.msra.mxu0 %v1723_v37  ;;  %1630 = vmatprep.subr.bf16.mxu1 %v1629_v38 }
 0x154   : > { %1726 = vmatprep.subr.bf16.mxu0 %v1725_v41 }
 0x156   : > { %1632 = vmatpush1.bf16.msra.mxu1 %v1631_v10 }
 0x157   : > { %1728 = vmatpush1.bf16.msra.mxu0 %v1727_v46 }
 0x158   : > { %1730 = vmatprep.subr.bf16.mxu0 %v1729_v47 }
 0x159   : > { %1122 = vmatmul.mubr.f32.vlgmr.msra.gmra.mrb[2].mxu1 %v1982_v25 }
 0x15b   : > { %1732 = vmatpush1.bf16.msra.mxu0 %v1731_v49 }
 0x15e   : > { %1264 = vmatmul.mubr.f32.vlgmr.msra.gmra.mrb[6].mxu0 %v1982_v25 }
 0x1c8   : > { %v702_v50 = vpop.f32.mrb[0].mxu1 }
 0x1c9   : > { %v704_v51 = vpop.f32.mrb[1].mxu1 }
 0x1cc   : > { %v773_v52 = vpop.f32.mrb[4].mxu0 }
 0x1cd   : > { %v774_v53 = vadd.f32 %v773_v52, %v702_v50  ;;  %v775_v54 = vpop.f32.mrb[5].mxu0 }
 0x1ce   : > { %v776_v55 = vadd.f32 %v775_v54, %v704_v51 }
 0x1d0   : > { %v780_v56 = vcombine.low %v774_v53, %v776_v55 }
 0x1d2   : > { %785 = vst.msk [vmem:[%s326_s26] sm:$0x77] %vm784_vm11, %v780_v56 }
 0x22c   : > { %v1123_v57 = vpop.f32.mrb[2].mxu1 }
 0x22d   : > { %v1125_v25 = vpop.f32.mrb[3].mxu1 }
 0x22e   : > { %v1274_v58 = vcombine.low %v1123_v57, %v1125_v25 }
 0x230   : > { %1278 = vst [vmem:[%s331_s30] sm:$0x77] %v1274_v58 }
 0x231   : > { %v1265_v59 = vpop.f32.mrb[6].mxu0 }
 0x232   : > { %v1267_v60 = vpop.f32.mrb[7].mxu0 }
 0x233   : > { %v1275_v61 = vcombine.low %v1265_v59, %v1267_v60 }
 0x235   : > { %1281 = vst.msk [vmem:[%s331_s30 + $0x8] sm:$0x77] %vm1280_vm13, %v1275_v61 }
 0x236 PF: > { %s18_s24 = sadd.s32 1, %s1759_s24  }
 0x237   : > { %p15_p4 = scmp.ge.s32.totalorder %s18_s24, 4  }
 0x239   :  { %17 = sbr.rel (!%p15_p4) target bundleno = 1 (0x1), region = 92 }

// kernel: cmodel_forward.6
= control target key start
LH: loop header
LB: loop body
LE: loop exit
PB: predicated region body
PF: predicated region fallthrough
CT: control target
= control target key end

     0   :  { %s2370_s15 = smov 0   ;;  %s2888_s0 = inlined_call_operand.vmem [shape: f32[2,3,150], index: 0, kind: input, shape index: {}]   ;;  %s2889_s1 = inlined_call_operand.vmem [shape: f32[2,3,400], index: 1, kind: input, shape index: {}]   ;;  %s2890_s2 = inlined_call_operand.vmem [shape: f32[2,400,150], index: 2, kind: input, shape index: {}]   ;;  %s2891_s3 = inlined_call_operand.vmem [shape: f32[2,400,400], index: 3, kind: input, shape index: {}]   ;;  %s2892_s4 = inlined_call_operand.vmem [shape: f32[2,3,400], index: 4, kind: output, shape index: {}]  }
   0x1 LB: > { %s2051_s16 = sadd.s32 4294967295, %s2343_s15   ;;  %p2055_p0 = scmp.ge.s32.totalorder %s2343_s15, 1  ;;  %s2343_s15 = sphi %s2370_s15, %s14_s15  }
   0x2   : > { %p192_p1 = scmp.lt.s32.totalorder %s2343_s15, 3 }
   0x4   : > { %p193_p2 = pnand %p2055_p0, %p192_p1 }
   0x5   : > { %p233_p3 = scmp.lt.s32.totalorder (!%p193_p2), %s2051_s16, 1  ;;  %vm566_vm0 = vcmask (!%p193_p2), 130048   ;;  %vm1351_vm1 = vcmask (!%p193_p2), 179200   ;;  %vm1956_vm2 = vcmask (!%p193_p2), 1042432   ;;  %vm1957_vm3 = vcmask (!%p193_p2), 129028  }
   0x6   : > { %196 = sbr.rel (%p193_p2) target bundleno = 661 (0x295), region = 36  ;;  %vm1958_vm4 = vmor (!%p193_p2), %vm1957_vm3, %vm1956_vm2 }
   0xd   : > { %s2894_s16 = smov (!%p233_p3, %s2051_s16), 1 }
   0xe   : > { %s2169_s17 = sshll.u32 %s2894_s16, 4  ;;  %s2324_s21 = smul.u32 1600, %s2894_s16 }
   0xf   : > { %s242_s20 = scalar_lea.vmem %s2889_s1, %s2169_s17  ;;  %s2168_s22 = sshll.u32 %s2894_s16, 3 }
  0x10   : > { %v259_v0 = vld [vmem:[%s242_s20] sm:$0x77]  ;;  %v260_v1 = vld [vmem:[%s242_s20 + $0x8] sm:$0x77]  ;;  %s2391_s25 = scalar_lea.vmem %s2891_s3, %s2324_s21  ;;  %s237_s28 = scalar_lea.vmem %s2888_s0, %s2168_s22 }
  0x11   : > { %v563_v2 = vcombine.high %v259_v0, %v259_v0  ;;  %v564_v3 = vcombine.high %v260_v1, %v260_v1  ;;  %v362_v4 = vld [vmem:[%s2391_s25 + $0x8] sm:$0xff]  ;;  %v364_v5 = vld [vmem:[%s2391_s25 + $0x18] sm:$0xff]  ;;  %v258_v6 = vld [vmem:[%s237_s28] sm:$0x77]  ;;  %s2323_s29 = smul.u32 800, %s2894_s16  ;;  %s257_s9 = scalar_lea.vmem %s2892_s4, %s2169_s17 }
  0x12   : > { %v361_v7 = vld [vmem:[%s2391_s25] sm:$0xff]  ;;  %v363_v8 = vld [vmem:[%s2391_s25 + $0x10] sm:$0xff]  ;;  %v1350_v9 = vcombine.high %v258_v6, %v258_v6  ;;  %783 = vmatprep.mubr.f32.mxu1 %v362_v4  ;;  %2065 = vmatprep.mubr.msk.f32.mxu0 %vm566_vm0, %v364_v5  ;;  %v366_v10 = vld [vmem:[%s2391_s25 + $0x28] sm:$0xff] }
  0x13   : > { %719 = vmatprep.subr.mxu1 %v563_v2  ;;  %2064 = vmatprep.subr.msk.mxu0 %vm566_vm0, %v564_v3  ;;  %v368_v11 = vld [vmem:[%s2391_s25 + $0x38] sm:$0xff]  ;;  %v365_v12 = vld [vmem:[%s2391_s25 + $0x20] sm:$0xff]  ;;  %v367_v13 = vld [vmem:[%s2391_s25 + $0x30] sm:$0xff]  ;;  %s2525_s6 = scalar_lea.vmem %s2890_s2, %s2323_s29 }
  0x14   : > { %720 = vmatpush1.xpose.msra.mxu1 %v259_v0  ;;  %1035 = vmatpush1.xpose.msra.mxu0 %v260_v1  ;;  %v370_v14 = vld [vmem:[%s2391_s25 + $0x48] sm:$0xff]  ;;  %v372_v15 = vld [vmem:[%s2391_s25 + $0x58] sm:$0xff]  ;;  %v369_v16 = vld [vmem:[%s2391_s25 + $0x40] sm:$0xff] }
  0x15   : > { %2171 = vmatprep.subr.msk.mxu1 %vm566_vm0, %v564_v3  ;;  %2115 = vmatprep.subr.msk.mxu0 %vm1351_vm1, %v1350_v9  ;;  %v371_v17 = vld [vmem:[%s2391_s25 + $0x50] sm:$0xff]  ;;  %v374_v18 = vld [vmem:[%s2391_s25 + $0x68] sm:$0xff]  ;;  %v376_v19 = vld [vmem:[%s2391_s25 + $0x78] sm:$0xff] }
  0x16   : > { %v373_v20 = vld [vmem:[%s2391_s25 + $0x60] sm:$0xff]  ;;  %v375_v21 = vld [vmem:[%s2391_s25 + $0x70] sm:$0xff]  ;;  %v378_v22 = vld [vmem:[%s2391_s25 + $0x88] sm:$0xff] }
  0x17   : > { %784 = vmatmul.mubr.f32.vlgmr.msra.gmra.mrb[0].mxu1 %v361_v7  ;;  %1099 = vmatmul.mubr.f32.vlgmr.msra.gmra.mrb[0].mxu0 %v363_v8  ;;  %v380_v23 = vld [vmem:[%s2391_s25 + $0x98] sm:$0xff]  ;;  %v377_v24 = vld [vmem:[%s2391_s25 + $0x80] sm:$0xff]  ;;  %v379_v25 = vld [vmem:[%s2391_s25 + $0x90] sm:$0xff] }
  0x18   : > { %2172 = vmatpush1.xpose.msra.mxu1 %v260_v1  ;;  %1505 = vmatpush1.xpose.msra.mxu0 %v258_v6  ;;  %v382_v26 = vld [vmem:[%s2391_s25 + $0xa8] sm:$0xff]  ;;  %v384_v27 = vld [vmem:[%s2391_s25 + $0xb8] sm:$0xff]  ;;  %v381_v28 = vld [vmem:[%s2391_s25 + $0xa0] sm:$0xff] }
  0x19   : > { %788 = vmatprep.mubr.f32.mxu1 %v366_v10  ;;  %2066 = vmatprep.mubr.msk.f32.mxu0 %vm566_vm0, %v368_v11  ;;  %v383_v29 = vld [vmem:[%s2391_s25 + $0xb0] sm:$0xff]  ;;  %v386_v30 = vld [vmem:[%s2391_s25 + $0xc8] sm:$0xff]  ;;  %v388_v31 = vld [vmem:[%s2391_s25 + $0xd8] sm:$0xff] }
  0x1a   : > { %v385_v32 = vld [vmem:[%s2391_s25 + $0xc0] sm:$0xff]  ;;  %v387_v33 = vld [vmem:[%s2391_s25 + $0xd0] sm:$0xff]  ;;  %v390_v34 = vld [vmem:[%s2391_s25 + $0xe8] sm:$0xff] }
  0x1b   : > { %789 = vmatmul.mubr.f32.gmra.mrb[2].mxu1 %v365_v12  ;;  %1104 = vmatmul.mubr.f32.gmra.mrb[2].mxu0 %v367_v13  ;;  %v392_v35 = vld [vmem:[%s2391_s25 + $0xf8] sm:$0xff]  ;;  %v389_v36 = vld [vmem:[%s2391_s25 + $0xe0] sm:$0xff]  ;;  %v391_v37 = vld [vmem:[%s2391_s25 + $0xf0] sm:$0xff] }
  0x1c   : > { %793 = vmatprep.mubr.f32.mxu1 %v370_v14  ;;  %2067 = vmatprep.mubr.msk.f32.mxu0 %vm566_vm0, %v372_v15  ;;  %v394_v38 = vld [vmem:[%s2391_s25 + $0x108] sm:$0xff]  ;;  %v396_v39 = vld [vmem:[%s2391_s25 + $0x118] sm:$0xff]  ;;  %v393_v40 = vld [vmem:[%s2391_s25 + $0x100] sm:$0xff] }
  0x1d   : > { %v395_v41 = vld [vmem:[%s2391_s25 + $0x110] sm:$0xff]  ;;  %v398_v42 = vld [vmem:[%s2391_s25 + $0x128] sm:$0xff]  ;;  %v400_v43 = vld [vmem:[%s2391_s25 + $0x138] sm:$0xff] }
  0x1e   : > { %v397_v44 = vld [vmem:[%s2391_s25 + $0x120] sm:$0xff]  ;;  %v399_v45 = vld [vmem:[%s2391_s25 + $0x130] sm:$0xff]  ;;  %v402_v46 = vld [vmem:[%s2391_s25 + $0x148] sm:$0xff] }
  0x1f   : > { %794 = vmatmul.mubr.f32.gmra.mrb[4].mxu1 %v369_v16  ;;  %1109 = vmatmul.mubr.f32.gmra.mrb[4].mxu0 %v371_v17  ;;  %v404_v47 = vld [vmem:[%s2391_s25 + $0x158] sm:$0xff]  ;;  %v401_v48 = vld [vmem:[%s2391_s25 + $0x140] sm:$0xff]  ;;  %v403_v49 = vld [vmem:[%s2391_s25 + $0x150] sm:$0xff] }
  0x20   : > { %798 = vmatprep.mubr.f32.mxu1 %v374_v18  ;;  %2068 = vmatprep.mubr.msk.f32.mxu0 %vm566_vm0, %v376_v19  ;;  %v406_v50 = vld [vmem:[%s2391_s25 + $0x168] sm:$0xff]  ;;  %v408_v51 = vld [vmem:[%s2391_s25 + $0x178] sm:$0xff]  ;;  %v405_v52 = vld [vmem:[%s2391_s25 + $0x160] sm:$0xff] }
  0x21   : > { %v407_v53 = vld [vmem:[%s2391_s25 + $0x170] sm:$0xff]  ;;  %v410_v54 = vld [vmem:[%s2391_s25 + $0x188] sm:$0xff]  ;;  %v412_v55 = vld [vmem:[%s2391_s25 + $0x198] sm:$0xff] }
  0x22   : > { %v409_v56 = vld [vmem:[%s2391_s25 + $0x180] sm:$0xff]  ;;  %v411_v57 = vld [vmem:[%s2391_s25 + $0x190] sm:$0xff]  ;;  %v414_v58 = vld [vmem:[%s2391_s25 + $0x1a8] sm:$0xff] }
  0x23   : > { %799 = vmatmul.mubr.f32.gmra.mrb[6].mxu1 %v373_v20  ;;  %1114 = vmatmul.mubr.f32.gmra.mrb[6].mxu0 %v375_v21  ;;  %v416_v59 = vld [vmem:[%s2391_s25 + $0x1b8] sm:$0xff]  ;;  %v413_v60 = vld [vmem:[%s2391_s25 + $0x1a0] sm:$0xff]  ;;  %v415_v61 = vld [vmem:[%s2391_s25 + $0x1b0] sm:$0xff] }
  0x24   : > { %803 = vmatprep.mubr.f32.mxu1 %v378_v22  ;;  %2069 = vmatprep.mubr.msk.f32.mxu0 %vm566_vm0, %v380_v23  ;;  %v418_v62 = vld [vmem:[%s2391_s25 + $0x1c8] sm:$0xff]  ;;  %v420_v63 = vld [vmem:[%s2391_s25 + $0x1d8] sm:$0xff]  ;;  %v417_v0 = vld [vmem:[%s2391_s25 + $0x1c0] sm:$0xff] }
  0x25   : > { %v419_v1 = vld [vmem:[%s2391_s25 + $0x1d0] sm:$0xff]  ;;  %v422_v2 = vld [vmem:[%s2391_s25 + $0x1e8] sm:$0xff]  ;;  %v424_v3 = vld [vmem:[%s2391_s25 + $0x1f8] sm:$0xff] }
  0x26   : > { %v421_v4 = vld [vmem:[%s2391_s25 + $0x1e0] sm:$0xff]  ;;  %v423_v5 = vld [vmem:[%s2391_s25 + $0x1f0] sm:$0xff]  ;;  %v426_v6 = vld [vmem:[%s2391_s25 + $0x208] sm:$0xff] }
  0x27   : > { %804 = vmatmul.mubr.f32.gmra.mrb[8].mxu1 %v377_v24  ;;  %1119 = vmatmul.mubr.f32.gmra.mrb[8].mxu0 %v379_v25  ;;  %v428_v7 = vld [vmem:[%s2391_s25 + $0x218] sm:$0xff]  ;;  %v425_v8 = vld [vmem:[%s2391_s25 + $0x200] sm:$0xff]  ;;  %v427_v9 = vld [vmem:[%s2391_s25 + $0x210] sm:$0xff] }
  0x28   : > { %808 = vmatprep.mubr.f32.mxu1 %v382_v26  ;;  %2070 = vmatprep.mubr.msk.f32.mxu0 %vm566_vm0, %v384_v27  ;;  %v430_v10 = vld [vmem:[%s2391_s25 + $0x228] sm:$0xff]  ;;  %v432_v11 = vld [vmem:[%s2391_s25 + $0x238] sm:$0xff]  ;;  %v429_v12 = vld [vmem:[%s2391_s25 + $0x220] sm:$0xff] }
  0x29   : > { %v431_v13 = vld [vmem:[%s2391_s25 + $0x230] sm:$0xff]  ;;  %v434_v14 = vld [vmem:[%s2391_s25 + $0x248] sm:$0xff]  ;;  %v436_v15 = vld [vmem:[%s2391_s25 + $0x258] sm:$0xff] }
  0x2a   : > { %v433_v16 = vld [vmem:[%s2391_s25 + $0x240] sm:$0xff]  ;;  %v435_v17 = vld [vmem:[%s2391_s25 + $0x250] sm:$0xff]  ;;  %v438_v18 = vld [vmem:[%s2391_s25 + $0x268] sm:$0xff] }
  0x2b   : > { %809 = vmatmul.mubr.f32.gmra.mrb[10].mxu1 %v381_v28  ;;  %1124 = vmatmul.mubr.f32.gmra.mrb[10].mxu0 %v383_v29  ;;  %v440_v19 = vld [vmem:[%s2391_s25 + $0x278] sm:$0xff]  ;;  %v437_v20 = vld [vmem:[%s2391_s25 + $0x260] sm:$0xff]  ;;  %v439_v21 = vld [vmem:[%s2391_s25 + $0x270] sm:$0xff] }
  0x2c   : > { %813 = vmatprep.mubr.f32.mxu1 %v386_v30  ;;  %2071 = vmatprep.mubr.msk.f32.mxu0 %vm566_vm0, %v388_v31  ;;  %v442_v22 = vld [vmem:[%s2391_s25 + $0x288] sm:$0xff]  ;;  %v444_v23 = vld [vmem:[%s2391_s25 + $0x298] sm:$0xff]  ;;  %v441_v24 = vld [vmem:[%s2391_s25 + $0x280] sm:$0xff] }
  0x2d   : > { %v443_v25 = vld [vmem:[%s2391_s25 + $0x290] sm:$0xff]  ;;  %v446_v26 = vld [vmem:[%s2391_s25 + $0x2a8] sm:$0xff]  ;;  %v448_v27 = vld [vmem:[%s2391_s25 + $0x2b8] sm:$0xff] }
  0x2e   : > { %v445_v28 = vld [vmem:[%s2391_s25 + $0x2a0] sm:$0xff]  ;;  %v447_v29 = vld [vmem:[%s2391_s25 + $0x2b0] sm:$0xff]  ;;  %v450_v30 = vld [vmem:[%s2391_s25 + $0x2c8] sm:$0xff] }
  0x2f   : > { %814 = vmatmul.mubr.f32.gmra.mrb[12].mxu1 %v385_v32  ;;  %1129 = vmatmul.mubr.f32.gmra.mrb[12].mxu0 %v387_v33  ;;  %v452_v31 = vld [vmem:[%s2391_s25 + $0x2d8] sm:$0xff]  ;;  %v449_v32 = vld [vmem:[%s2391_s25 + $0x2c0] sm:$0xff]  ;;  %v451_v33 = vld [vmem:[%s2391_s25 + $0x2d0] sm:$0xff] }
  0x30   : > { %818 = vmatprep.mubr.f32.mxu1 %v390_v34  ;;  %2072 = vmatprep.mubr.msk.f32.mxu0 %vm566_vm0, %v392_v35  ;;  %v454_v34 = vld [vmem:[%s2391_s25 + $0x2e8] sm:$0xff]  ;;  %v456_v35 = vld [vmem:[%s2391_s25 + $0x2f8] sm:$0xff] }
  0x33   : > { %819 = vmatmul.mubr.f32.gmra.mrb[14].mxu1 %v389_v36  ;;  %1134 = vmatmul.mubr.f32.gmra.mrb[14].mxu0 %v391_v37  ;;  %v453_v36 = vld [vmem:[%s2391_s25 + $0x2e0] sm:$0xff]  ;;  %v455_v37 = vld [vmem:[%s2391_s25 + $0x2f0] sm:$0xff] }
  0x34   : > { %823 = vmatprep.mubr.f32.mxu1 %v394_v38  ;;  %2073 = vmatprep.mubr.msk.f32.mxu0 %vm566_vm0, %v396_v39  ;;  %v458_v38 = vld [vmem:[%s2391_s25 + $0x308] sm:$0xff]  ;;  %v460_v39 = vld [vmem:[%s2391_s25 + $0x318] sm:$0xff] }
  0x37   : > { %824 = vmatmul.mubr.f32.gmra.mrb[16].mxu1 %v393_v40  ;;  %1139 = vmatmul.mubr.f32.gmra.mrb[16].mxu0 %v395_v41  ;;  %v457_v40 = vld [vmem:[%s2391_s25 + $0x300] sm:$0xff]  ;;  %v459_v41 = vld [vmem:[%s2391_s25 + $0x310] sm:$0xff] }
  0x38   : > { %828 = vmatprep.mubr.f32.mxu1 %v398_v42  ;;  %2074 = vmatprep.mubr.msk.f32.mxu0 %vm566_vm0, %v400_v43  ;;  %v462_v42 = vld [vmem:[%s2391_s25 + $0x328] sm:$0xff] }
  0x39   : > { %v262_v43 = vld [vmem:[%s2525_s6 + $0x8] sm:$0xff] }
  0x3b   : > { %829 = vmatmul.mubr.f32.gmra.mrb[18].mxu1 %v397_v44  ;;  %1144 = vmatmul.mubr.f32.gmra.mrb[18].mxu0 %v399_v45  ;;  %v461_v44 = vld [vmem:[%s2391_s25 + $0x320] sm:$0xff] }
  0x3c   : > { %833 = vmatprep.mubr.f32.mxu1 %v402_v46  ;;  %2075 = vmatprep.mubr.msk.f32.mxu0 %vm566_vm0, %v404_v47  ;;  %v261_v45 = vld [vmem:[%s2525_s6] sm:$0xff]  ;;  %v466_v46 = vld [vmem:[%s2391_s25 + $0x348] sm:$0xff]  ;;  %v264_v47 = vld [vmem:[%s2525_s6 + $0x18] sm:$0xff] }
  0x3f   : > { %834 = vmatmul.mubr.f32.gmra.mrb[20].mxu1 %v401_v48  ;;  %1149 = vmatmul.mubr.f32.gmra.mrb[20].mxu0 %v403_v49  ;;  %v465_v48 = vld [vmem:[%s2391_s25 + $0x340] sm:$0xff]  ;;  %v263_v49 = vld [vmem:[%s2525_s6 + $0x10] sm:$0xff] }
  0x40   : > { %838 = vmatprep.mubr.f32.mxu1 %v406_v50  ;;  %2076 = vmatprep.mubr.msk.f32.mxu0 %vm566_vm0, %v408_v51  ;;  %v470_v50 = vld [vmem:[%s2391_s25 + $0x368] sm:$0xff] }
  0x41   : > { %v266_v51 = vld [vmem:[%s2525_s6 + $0x28] sm:$0xff] }
  0x43   : > { %839 = vmatmul.mubr.f32.gmra.mrb[22].mxu1 %v405_v52  ;;  %1154 = vmatmul.mubr.f32.gmra.mrb[22].mxu0 %v407_v53  ;;  %v469_v52 = vld [vmem:[%s2391_s25 + $0x360] sm:$0xff] }
  0x44   : > { %843 = vmatprep.mubr.f32.mxu1 %v410_v54  ;;  %2077 = vmatprep.mubr.msk.f32.mxu0 %vm566_vm0, %v412_v55  ;;  %v265_v53 = vld [vmem:[%s2525_s6 + $0x20] sm:$0xff]  ;;  %v474_v54 = vld [vmem:[%s2391_s25 + $0x388] sm:$0xff]  ;;  %v268_v55 = vld [vmem:[%s2525_s6 + $0x38] sm:$0xff] }
  0x47   : > { %844 = vmatmul.mubr.f32.gmra.mrb[24].mxu1 %v409_v56  ;;  %1159 = vmatmul.mubr.f32.gmra.mrb[24].mxu0 %v411_v57  ;;  %v473_v56 = vld [vmem:[%s2391_s25 + $0x380] sm:$0xff]  ;;  %v267_v57 = vld [vmem:[%s2525_s6 + $0x30] sm:$0xff] }
  0x48   : > { %848 = vmatprep.mubr.f32.mxu1 %v414_v58  ;;  %2078 = vmatprep.mubr.msk.f32.mxu0 %vm566_vm0, %v416_v59  ;;  %v478_v58 = vld [vmem:[%s2391_s25 + $0x3a8] sm:$0xff] }
  0x49   : > { %v270_v59 = vld [vmem:[%s2525_s6 + $0x48] sm:$0xff] }
  0x4b   : > { %849 = vmatmul.mubr.f32.gmra.mrb[26].mxu1 %v413_v60  ;;  %1164 = vmatmul.mubr.f32.gmra.mrb[26].mxu0 %v415_v61  ;;  %v477_v60 = vld [vmem:[%s2391_s25 + $0x3a0] sm:$0xff] }
  0x4c   : > { %853 = vmatprep.mubr.f32.mxu1 %v418_v62  ;;  %2079 = vmatprep.mubr.msk.f32.mxu0 %vm566_vm0, %v420_v63  ;;  %v269_v61 = vld [vmem:[%s2525_s6 + $0x40] sm:$0xff]  ;;  %v482_v62 = vld [vmem:[%s2391_s25 + $0x3c8] sm:$0xff]  ;;  %v272_v63 = vld [vmem:[%s2525_s6 + $0x58] sm:$0xff] }
  0x4f   : > { %854 = vmatmul.mubr.f32.gmra.mrb[28].mxu1 %v417_v0  ;;  %1169 = vmatmul.mubr.f32.gmra.mrb[28].mxu0 %v419_v1  ;;  %v481_v0 = vld [vmem:[%s2391_s25 + $0x3c0] sm:$0xff]  ;;  %v271_v1 = vld [vmem:[%s2525_s6 + $0x50] sm:$0xff] }
  0x50   : > { %858 = vmatprep.mubr.f32.mxu1 %v422_v2  ;;  %2080 = vmatprep.mubr.msk.f32.mxu0 %vm566_vm0, %v424_v3  ;;  %v486_v2 = vld [vmem:[%s2391_s25 + $0x3e8] sm:$0xff] }
  0x51   : > { %v274_v3 = vld [vmem:[%s2525_s6 + $0x68] sm:$0xff] }
  0x53   : > { %859 = vmatmul.mubr.f32.gmra.mrb[30].mxu1 %v421_v4  ;;  %1174 = vmatmul.mubr.f32.gmra.mrb[30].mxu0 %v423_v5  ;;  %v485_v4 = vld [vmem:[%s2391_s25 + $0x3e0] sm:$0xff] }
  0x54   : > { %863 = vmatprep.mubr.f32.mxu1 %v426_v6  ;;  %2081 = vmatprep.mubr.msk.f32.mxu0 %vm566_vm0, %v428_v7  ;;  %v273_v5 = vld [vmem:[%s2525_s6 + $0x60] sm:$0xff]  ;;  %v490_v6 = vld [vmem:[%s2391_s25 + $0x408] sm:$0xff]  ;;  %v276_v7 = vld [vmem:[%s2525_s6 + $0x78] sm:$0xff] }
  0x57   : > { %864 = vmatmul.mubr.f32.gmra.mrb[32].mxu1 %v425_v8  ;;  %1179 = vmatmul.mubr.f32.gmra.mrb[32].mxu0 %v427_v9  ;;  %v489_v8 = vld [vmem:[%s2391_s25 + $0x400] sm:$0xff]  ;;  %v275_v9 = vld [vmem:[%s2525_s6 + $0x70] sm:$0xff] }
  0x58   : > { %868 = vmatprep.mubr.f32.mxu1 %v430_v10  ;;  %2082 = vmatprep.mubr.msk.f32.mxu0 %vm566_vm0, %v432_v11  ;;  %v494_v10 = vld [vmem:[%s2391_s25 + $0x428] sm:$0xff] }
  0x59   : > { %v278_v11 = vld [vmem:[%s2525_s6 + $0x88] sm:$0xff] }
  0x5b   : > { %869 = vmatmul.mubr.f32.gmra.mrb[34].mxu1 %v429_v12  ;;  %1184 = vmatmul.mubr.f32.gmra.mrb[34].mxu0 %v431_v13  ;;  %v493_v12 = vld [vmem:[%s2391_s25 + $0x420] sm:$0xff] }
  0x5c   : > { %873 = vmatprep.mubr.f32.mxu1 %v434_v14  ;;  %2083 = vmatprep.mubr.msk.f32.mxu0 %vm566_vm0, %v436_v15  ;;  %v277_v13 = vld [vmem:[%s2525_s6 + $0x80] sm:$0xff]  ;;  %v498_v14 = vld [vmem:[%s2391_s25 + $0x448] sm:$0xff]  ;;  %v280_v15 = vld [vmem:[%s2525_s6 + $0x98] sm:$0xff] }
  0x5f   : > { %874 = vmatmul.mubr.f32.gmra.mrb[36].mxu1 %v433_v16  ;;  %1189 = vmatmul.mubr.f32.gmra.mrb[36].mxu0 %v435_v17  ;;  %v497_v16 = vld [vmem:[%s2391_s25 + $0x440] sm:$0xff]  ;;  %v279_v17 = vld [vmem:[%s2525_s6 + $0x90] sm:$0xff] }
  0x60   : > { %878 = vmatprep.mubr.f32.mxu1 %v438_v18  ;;  %2084 = vmatprep.mubr.msk.f32.mxu0 %vm566_vm0, %v440_v19  ;;  %v502_v18 = vld [vmem:[%s2391_s25 + $0x468] sm:$0xff] }
  0x61   : > { %v282_v19 = vld [vmem:[%s2525_s6 + $0xa8] sm:$0xff] }
  0x63   : > { %879 = vmatmul.mubr.f32.gmra.mrb[38].mxu1 %v437_v20  ;;  %1194 = vmatmul.mubr.f32.gmra.mrb[38].mxu0 %v439_v21  ;;  %v501_v20 = vld [vmem:[%s2391_s25 + $0x460] sm:$0xff] }
  0x64   : > { %883 = vmatprep.mubr.f32.mxu1 %v442_v22  ;;  %2085 = vmatprep.mubr.msk.f32.mxu0 %vm566_vm0, %v444_v23  ;;  %v281_v21 = vld [vmem:[%s2525_s6 + $0xa0] sm:$0xff]  ;;  %v506_v22 = vld [vmem:[%s2391_s25 + $0x488] sm:$0xff]  ;;  %v284_v23 = vld [vmem:[%s2525_s6 + $0xb8] sm:$0xff] }
  0x67   : > { %884 = vmatmul.mubr.f32.gmra.mrb[40].mxu1 %v441_v24  ;;  %1199 = vmatmul.mubr.f32.gmra.mrb[40].mxu0 %v443_v25  ;;  %v505_v24 = vld [vmem:[%s2391_s25 + $0x480] sm:$0xff]  ;;  %v283_v25 = vld [vmem:[%s2525_s6 + $0xb0] sm:$0xff] }
  0x68   : > { %888 = vmatprep.mubr.f32.mxu1 %v446_v26  ;;  %2086 = vmatprep.mubr.msk.f32.mxu0 %vm566_vm0, %v448_v27  ;;  %v510_v26 = vld [vmem:[%s2391_s25 + $0x4a8] sm:$0xff] }
  0x69   : > { %v286_v27 = vld [vmem:[%s2525_s6 + $0xc8] sm:$0xff] }
  0x6b   : > { %889 = vmatmul.mubr.f32.gmra.mrb[42].mxu1 %v445_v28  ;;  %1204 = vmatmul.mubr.f32.gmra.mrb[42].mxu0 %v447_v29  ;;  %v509_v28 = vld [vmem:[%s2391_s25 + $0x4a0] sm:$0xff] }
  0x6c   : > { %893 = vmatprep.mubr.f32.mxu1 %v450_v30  ;;  %2087 = vmatprep.mubr.msk.f32.mxu0 %vm566_vm0, %v452_v31  ;;  %v285_v29 = vld [vmem:[%s2525_s6 + $0xc0] sm:$0xff]  ;;  %v514_v30 = vld [vmem:[%s2391_s25 + $0x4c8] sm:$0xff]  ;;  %v288_v31 = vld [vmem:[%s2525_s6 + $0xd8] sm:$0xff] }
  0x6f   : > { %894 = vmatmul.mubr.f32.gmra.mrb[44].mxu1 %v449_v32  ;;  %1209 = vmatmul.mubr.f32.gmra.mrb[44].mxu0 %v451_v33  ;;  %v513_v32 = vld [vmem:[%s2391_s25 + $0x4c0] sm:$0xff]  ;;  %v287_v33 = vld [vmem:[%s2525_s6 + $0xd0] sm:$0xff] }
  0x70   : > { %898 = vmatprep.mubr.f32.mxu1 %v454_v34  ;;  %2088 = vmatprep.mubr.msk.f32.mxu0 %vm566_vm0, %v456_v35  ;;  %v518_v34 = vld [vmem:[%s2391_s25 + $0x4e8] sm:$0xff] }
  0x71   : > { %v290_v35 = vld [vmem:[%s2525_s6 + $0xe8] sm:$0xff] }
  0x73   : > { %899 = vmatmul.mubr.f32.gmra.mrb[46].mxu1 %v453_v36  ;;  %1214 = vmatmul.mubr.f32.gmra.mrb[46].mxu0 %v455_v37  ;;  %v517_v36 = vld [vmem:[%s2391_s25 + $0x4e0] sm:$0xff] }
  0x74   : > { %903 = vmatprep.mubr.f32.mxu1 %v458_v38  ;;  %2089 = vmatprep.mubr.msk.f32.mxu0 %vm566_vm0, %v460_v39  ;;  %v289_v37 = vld [vmem:[%s2525_s6 + $0xe0] sm:$0xff]  ;;  %v522_v38 = vld [vmem:[%s2391_s25 + $0x508] sm:$0xff]  ;;  %v292_v39 = vld [vmem:[%s2525_s6 + $0xf8] sm:$0xff] }
  0x77   : > { %904 = vmatmul.mubr.f32.gmra.mrb[48].mxu1 %v457_v40  ;;  %1219 = vmatmul.mubr.f32.gmra.mrb[48].mxu0 %v459_v41  ;;  %v521_v40 = vld [vmem:[%s2391_s25 + $0x500] sm:$0xff]  ;;  %v291_v41 = vld [vmem:[%s2525_s6 + $0xf0] sm:$0xff] }
  0x78   : > { %908 = vmatprep.mubr.f32.mxu1 %v462_v42  ;;  %2116 = vmatprep.mubr.msk.f32.mxu0 %vm1351_vm1, %v262_v43  ;;  %v526_v42 = vld [vmem:[%s2391_s25 + $0x528] sm:$0xff] }
  0x79   : > { %v294_v43 = vld [vmem:[%s2525_s6 + $0x108] sm:$0xff] }
  0x7b   : > { %909 = vmatmul.mubr.f32.gmra.mrb[50].mxu1 %v461_v44  ;;  %1569 = vmatmul.mubr.f32.vlgmr.msra.gmra.mrb[0].mxu0 %v261_v45  ;;  %v525_v44 = vld [vmem:[%s2391_s25 + $0x520] sm:$0xff] }
  0x7c   : > { %913 = vmatprep.mubr.f32.mxu1 %v466_v46  ;;  %2117 = vmatprep.mubr.msk.f32.mxu0 %vm1351_vm1, %v264_v47  ;;  %v293_v45 = vld [vmem:[%s2525_s6 + $0x100] sm:$0xff]  ;;  %v530_v46 = vld [vmem:[%s2391_s25 + $0x548] sm:$0xff]  ;;  %v296_v47 = vld [vmem:[%s2525_s6 + $0x118] sm:$0xff] }
  0x7f   : > { %914 = vmatmul.mubr.f32.gmra.mrb[52].mxu1 %v465_v48  ;;  %1574 = vmatmul.mubr.f32.gmra.mrb[2].mxu0 %v263_v49  ;;  %v529_v48 = vld [vmem:[%s2391_s25 + $0x540] sm:$0xff]  ;;  %v295_v49 = vld [vmem:[%s2525_s6 + $0x110] sm:$0xff] }
  0x80   : > { %918 = vmatprep.mubr.f32.mxu1 %v470_v50  ;;  %2118 = vmatprep.mubr.msk.f32.mxu0 %vm1351_vm1, %v266_v51  ;;  %v534_v50 = vld [vmem:[%s2391_s25 + $0x568] sm:$0xff] }
  0x81   : > { %v298_v51 = vld [vmem:[%s2525_s6 + $0x128] sm:$0xff] }
  0x83   : > { %919 = vmatmul.mubr.f32.gmra.mrb[54].mxu1 %v469_v52  ;;  %1579 = vmatmul.mubr.f32.gmra.mrb[4].mxu0 %v265_v53  ;;  %v533_v52 = vld [vmem:[%s2391_s25 + $0x560] sm:$0xff] }
  0x84   : > { %923 = vmatprep.mubr.f32.mxu1 %v474_v54  ;;  %2119 = vmatprep.mubr.msk.f32.mxu0 %vm1351_vm1, %v268_v55  ;;  %v297_v53 = vld [vmem:[%s2525_s6 + $0x120] sm:$0xff]  ;;  %v538_v54 = vld [vmem:[%s2391_s25 + $0x588] sm:$0xff]  ;;  %v300_v55 = vld [vmem:[%s2525_s6 + $0x138] sm:$0xff] }
  0x87   : > { %924 = vmatmul.mubr.f32.gmra.mrb[56].mxu1 %v473_v56  ;;  %1584 = vmatmul.mubr.f32.gmra.mrb[6].mxu0 %v267_v57  ;;  %v537_v56 = vld [vmem:[%s2391_s25 + $0x580] sm:$0xff]  ;;  %v299_v57 = vld [vmem:[%s2525_s6 + $0x130] sm:$0xff] }
  0x88   : > { %928 = vmatprep.mubr.f32.mxu1 %v478_v58  ;;  %2120 = vmatprep.mubr.msk.f32.mxu0 %vm1351_vm1, %v270_v59  ;;  %v542_v58 = vld [vmem:[%s2391_s25 + $0x5a8] sm:$0xff] }
  0x89   : > { %v302_v59 = vld [vmem:[%s2525_s6 + $0x148] sm:$0xff] }
  0x8b   : > { %929 = vmatmul.mubr.f32.gmra.mrb[58].mxu1 %v477_v60  ;;  %1589 = vmatmul.mubr.f32.gmra.mrb[8].mxu0 %v269_v61  ;;  %v541_v60 = vld [vmem:[%s2391_s25 + $0x5a0] sm:$0xff] }
  0x8c   : > { %933 = vmatprep.mubr.f32.mxu1 %v482_v62  ;;  %2121 = vmatprep.mubr.msk.f32.mxu0 %vm1351_vm1, %v272_v63  ;;  %v301_v61 = vld [vmem:[%s2525_s6 + $0x140] sm:$0xff]  ;;  %v546_v62 = vld [vmem:[%s2391_s25 + $0x5c8] sm:$0xff]  ;;  %v304_v63 = vld [vmem:[%s2525_s6 + $0x158] sm:$0xff] }
  0x8f   : > { %934 = vmatmul.mubr.f32.gmra.mrb[60].mxu1 %v481_v0  ;;  %1594 = vmatmul.mubr.f32.gmra.mrb[10].mxu0 %v271_v1  ;;  %v545_v0 = vld [vmem:[%s2391_s25 + $0x5c0] sm:$0xff]  ;;  %v303_v1 = vld [vmem:[%s2525_s6 + $0x150] sm:$0xff] }
  0x90   : > { %938 = vmatprep.mubr.f32.mxu1 %v486_v2  ;;  %2122 = vmatprep.mubr.msk.f32.mxu0 %vm1351_vm1, %v274_v3  ;;  %v550_v2 = vld [vmem:[%s2391_s25 + $0x5e8] sm:$0xff] }
  0x91   : > { %v306_v3 = vld [vmem:[%s2525_s6 + $0x168] sm:$0xff] }
  0x93   : > { %939 = vmatmul.mubr.f32.gmra.mrb[62].mxu1 %v485_v4  ;;  %1599 = vmatmul.mubr.f32.gmra.mrb[12].mxu0 %v273_v5  ;;  %v549_v4 = vld [vmem:[%s2391_s25 + $0x5e0] sm:$0xff] }
  0x94   : > { %943 = vmatprep.mubr.f32.mxu1 %v490_v6  ;;  %2123 = vmatprep.mubr.msk.f32.mxu0 %vm1351_vm1, %v276_v7  ;;  %v305_v5 = vld [vmem:[%s2525_s6 + $0x160] sm:$0xff]  ;;  %v554_v6 = vld [vmem:[%s2391_s25 + $0x608] sm:$0xff]  ;;  %v308_v7 = vld [vmem:[%s2525_s6 + $0x178] sm:$0xff] }
  0x97   : > { %944 = vmatmul.mubr.f32.gmra.mrb[64].mxu1 %v489_v8  ;;  %1604 = vmatmul.mubr.f32.gmra.mrb[14].mxu0 %v275_v9  ;;  %v553_v8 = vld [vmem:[%s2391_s25 + $0x600] sm:$0xff]  ;;  %v307_v9 = vld [vmem:[%s2525_s6 + $0x170] sm:$0xff] }
  0x98   : > { %948 = vmatprep.mubr.f32.mxu1 %v494_v10  ;;  %2124 = vmatprep.mubr.msk.f32.mxu0 %vm1351_vm1, %v278_v11  ;;  %v558_v10 = vld [vmem:[%s2391_s25 + $0x628] sm:$0xff] }
  0x99   : > { %v310_v11 = vld [vmem:[%s2525_s6 + $0x188] sm:$0xff] }
  0x9b   : > { %949 = vmatmul.mubr.f32.gmra.mrb[66].mxu1 %v493_v12  ;;  %1609 = vmatmul.mubr.f32.gmra.mrb[16].mxu0 %v277_v13  ;;  %v557_v12 = vld [vmem:[%s2391_s25 + $0x620] sm:$0xff] }
  0x9c   : > { %953 = vmatprep.mubr.f32.mxu1 %v498_v14  ;;  %2125 = vmatprep.mubr.msk.f32.mxu0 %vm1351_vm1, %v280_v15  ;;  %v309_v13 = vld [vmem:[%s2525_s6 + $0x180] sm:$0xff]  ;;  %v464_v14 = vld [vmem:[%s2391_s25 + $0x338] sm:$0xff] }
  0x9d   : > { %v312_v15 = vld [vmem:[%s2525_s6 + $0x198] sm:$0xff] }
  0x9f   : > { %954 = vmatmul.mubr.f32.gmra.mrb[68].mxu1 %v497_v16  ;;  %1614 = vmatmul.mubr.f32.gmra.mrb[18].mxu0 %v279_v17  ;;  %v463_v16 = vld [vmem:[%s2391_s25 + $0x330] sm:$0xff] }
  0xa0   : > { %958 = vmatprep.mubr.f32.mxu1 %v502_v18  ;;  %2126 = vmatprep.mubr.msk.f32.mxu0 %vm1351_vm1, %v282_v19  ;;  %v311_v17 = vld [vmem:[%s2525_s6 + $0x190] sm:$0xff]  ;;  %v468_v18 = vld [vmem:[%s2391_s25 + $0x358] sm:$0xff]  ;;  %v314_v19 = vld [vmem:[%s2525_s6 + $0x1a8] sm:$0xff] }
  0xa3   : > { %959 = vmatmul.mubr.f32.gmra.mrb[70].mxu1 %v501_v20  ;;  %1619 = vmatmul.mubr.f32.gmra.mrb[20].mxu0 %v281_v21  ;;  %v467_v20 = vld [vmem:[%s2391_s25 + $0x350] sm:$0xff]  ;;  %v313_v21 = vld [vmem:[%s2525_s6 + $0x1a0] sm:$0xff] }
  0xa4   : > { %963 = vmatprep.mubr.f32.mxu1 %v506_v22  ;;  %2127 = vmatprep.mubr.msk.f32.mxu0 %vm1351_vm1, %v284_v23  ;;  %v472_v22 = vld [vmem:[%s2391_s25 + $0x378] sm:$0xff] }
  0xa5   : > { %v316_v23 = vld [vmem:[%s2525_s6 + $0x1b8] sm:$0xff] }
  0xa7   : > { %964 = vmatmul.mubr.f32.gmra.mrb[72].mxu1 %v505_v24  ;;  %1624 = vmatmul.mubr.f32.gmra.mrb[22].mxu0 %v283_v25  ;;  %v471_v24 = vld [vmem:[%s2391_s25 + $0x370] sm:$0xff] }
  0xa8   : > { %968 = vmatprep.mubr.f32.mxu1 %v510_v26  ;;  %2128 = vmatprep.mubr.msk.f32.mxu0 %vm1351_vm1, %v286_v27  ;;  %v315_v25 = vld [vmem:[%s2525_s6 + $0x1b0] sm:$0xff]  ;;  %v476_v26 = vld [vmem:[%s2391_s25 + $0x398] sm:$0xff]  ;;  %v318_v27 = vld [vmem:[%s2525_s6 + $0x1c8] sm:$0xff] }
  0xab   : > { %969 = vmatmul.mubr.f32.gmra.mrb[74].mxu1 %v509_v28  ;;  %1629 = vmatmul.mubr.f32.gmra.mrb[24].mxu0 %v285_v29  ;;  %v475_v28 = vld [vmem:[%s2391_s25 + $0x390] sm:$0xff]  ;;  %v317_v29 = vld [vmem:[%s2525_s6 + $0x1c0] sm:$0xff] }
  0xac   : > { %973 = vmatprep.mubr.f32.mxu1 %v514_v30  ;;  %2129 = vmatprep.mubr.msk.f32.mxu0 %vm1351_vm1, %v288_v31  ;;  %v480_v30 = vld [vmem:[%s2391_s25 + $0x3b8] sm:$0xff] }
  0xad   : > { %v320_v31 = vld [vmem:[%s2525_s6 + $0x1d8] sm:$0xff] }
  0xaf   : > { %974 = vmatmul.mubr.f32.gmra.mrb[76].mxu1 %v513_v32  ;;  %1634 = vmatmul.mubr.f32.gmra.mrb[26].mxu0 %v287_v33 }
  0xb0   : > { %978 = vmatprep.mubr.f32.mxu1 %v518_v34  ;;  %2130 = vmatprep.mubr.msk.f32.mxu0 %vm1351_vm1, %v290_v35  ;;  %v479_v34 = vld [vmem:[%s2391_s25 + $0x3b0] sm:$0xff] }
  0xb1   : > { %v319_v35 = vld [vmem:[%s2525_s6 + $0x1d0] sm:$0xff] }
  0xb3   : > { %979 = vmatmul.mubr.f32.gmra.mrb[78].mxu1 %v517_v36  ;;  %1639 = vmatmul.mubr.f32.gmra.mrb[28].mxu0 %v289_v37  ;;  %v484_v36 = vld [vmem:[%s2391_s25 + $0x3d8] sm:$0xff]  ;;  %v322_v37 = vld [vmem:[%s2525_s6 + $0x1e8] sm:$0xff] }
  0xb4   : > { %983 = vmatprep.mubr.f32.mxu1 %v522_v38  ;;  %2131 = vmatprep.mubr.msk.f32.mxu0 %vm1351_vm1, %v292_v39 }
  0xb7   : > { %984 = vmatmul.mubr.f32.gmra.mrb[80].mxu1 %v521_v40  ;;  %1644 = vmatmul.mubr.f32.gmra.mrb[30].mxu0 %v291_v41  ;;  %v483_v40 = vld [vmem:[%s2391_s25 + $0x3d0] sm:$0xff]  ;;  %v321_v41 = vld [vmem:[%s2525_s6 + $0x1e0] sm:$0xff] }
  0xb8   : > { %988 = vmatprep.mubr.f32.mxu1 %v526_v42  ;;  %2132 = vmatprep.mubr.msk.f32.mxu0 %vm1351_vm1, %v294_v43  ;;  %v488_v42 = vld [vmem:[%s2391_s25 + $0x3f8] sm:$0xff] }
  0xb9   : > { %v324_v43 = vld [vmem:[%s2525_s6 + $0x1f8] sm:$0xff] }
  0xbb   : > { %989 = vmatmul.mubr.f32.gmra.mrb[82].mxu1 %v525_v44  ;;  %1649 = vmatmul.mubr.f32.gmra.mrb[32].mxu0 %v293_v45 }
  0xbc   : > { %993 = vmatprep.mubr.f32.mxu1 %v530_v46  ;;  %2133 = vmatprep.mubr.msk.f32.mxu0 %vm1351_vm1, %v296_v47  ;;  %v487_v46 = vld [vmem:[%s2391_s25 + $0x3f0] sm:$0xff] }
  0xbd   : > { %v323_v47 = vld [vmem:[%s2525_s6 + $0x1f0] sm:$0xff] }
  0xbf   : > { %994 = vmatmul.mubr.f32.gmra.mrb[84].mxu1 %v529_v48  ;;  %1654 = vmatmul.mubr.f32.gmra.mrb[34].mxu0 %v295_v49  ;;  %v492_v48 = vld [vmem:[%s2391_s25 + $0x418] sm:$0xff]  ;;  %v326_v49 = vld [vmem:[%s2525_s6 + $0x208] sm:$0xff] }
  0xc0   : > { %998 = vmatprep.mubr.f32.mxu1 %v534_v50  ;;  %2134 = vmatprep.mubr.msk.f32.mxu0 %vm1351_vm1, %v298_v51 }
  0xc3   : > { %999 = vmatmul.mubr.f32.gmra.mrb[86].mxu1 %v533_v52  ;;  %1659 = vmatmul.mubr.f32.gmra.mrb[36].mxu0 %v297_v53  ;;  %v491_v52 = vld [vmem:[%s2391_s25 + $0x410] sm:$0xff]  ;;  %v325_v53 = vld [vmem:[%s2525_s6 + $0x200] sm:$0xff] }
  0xc4   : > { %1003 = vmatprep.mubr.f32.mxu1 %v538_v54  ;;  %2135 = vmatprep.mubr.msk.f32.mxu0 %vm1351_vm1, %v300_v55  ;;  %v496_v54 = vld [vmem:[%s2391_s25 + $0x438] sm:$0xff] }
  0xc5   : > { %v328_v55 = vld [vmem:[%s2525_s6 + $0x218] sm:$0xff] }
  0xc7   : > { %1004 = vmatmul.mubr.f32.gmra.mrb[88].mxu1 %v537_v56  ;;  %1664 = vmatmul.mubr.f32.gmra.mrb[38].mxu0 %v299_v57 }
  0xc8   : > { %1008 = vmatprep.mubr.f32.mxu1 %v542_v58  ;;  %2136 = vmatprep.mubr.msk.f32.mxu0 %vm1351_vm1, %v302_v59  ;;  %v495_v58 = vld [vmem:[%s2391_s25 + $0x430] sm:$0xff] }
  0xc9   : > { %v327_v59 = vld [vmem:[%s2525_s6 + $0x210] sm:$0xff] }
  0xcb   : > { %1009 = vmatmul.mubr.f32.gmra.mrb[90].mxu1 %v541_v60  ;;  %1669 = vmatmul.mubr.f32.gmra.mrb[40].mxu0 %v301_v61  ;;  %v500_v60 = vld [vmem:[%s2391_s25 + $0x458] sm:$0xff]  ;;  %v330_v61 = vld [vmem:[%s2525_s6 + $0x228] sm:$0xff] }
  0xcc   : > { %1013 = vmatprep.mubr.f32.mxu1 %v546_v62  ;;  %2137 = vmatprep.mubr.msk.f32.mxu0 %vm1351_vm1, %v304_v63 }
  0xcf   : > { %1014 = vmatmul.mubr.f32.gmra.mrb[92].mxu1 %v545_v0  ;;  %1674 = vmatmul.mubr.f32.gmra.mrb[42].mxu0 %v303_v1  ;;  %v499_v0 = vld [vmem:[%s2391_s25 + $0x450] sm:$0xff]  ;;  %v329_v1 = vld [vmem:[%s2525_s6 + $0x220] sm:$0xff] }
  0xd0   : > { %1018 = vmatprep.mubr.f32.mxu1 %v550_v2  ;;  %2138 = vmatprep.mubr.msk.f32.mxu0 %vm1351_vm1, %v306_v3  ;;  %v504_v2 = vld [vmem:[%s2391_s25 + $0x478] sm:$0xff] }
  0xd1   : > { %v332_v3 = vld [vmem:[%s2525_s6 + $0x238] sm:$0xff] }
  0xd3   : > { %1019 = vmatmul.mubr.f32.gmra.mrb[94].mxu1 %v549_v4  ;;  %1679 = vmatmul.mubr.f32.gmra.mrb[44].mxu0 %v305_v5 }
  0xd4   : > { %1023 = vmatprep.mubr.f32.mxu1 %v554_v6  ;;  %2139 = vmatprep.mubr.msk.f32.mxu0 %vm1351_vm1, %v308_v7  ;;  %v503_v6 = vld [vmem:[%s2391_s25 + $0x470] sm:$0xff] }
  0xd5   : > { %v331_v7 = vld [vmem:[%s2525_s6 + $0x230] sm:$0xff] }
  0xd7   : > { %1024 = vmatmul.mubr.f32.gmra.mrb[96].mxu1 %v553_v8  ;;  %1684 = vmatmul.mubr.f32.gmra.mrb[46].mxu0 %v307_v9  ;;  %v508_v8 = vld [vmem:[%s2391_s25 + $0x498] sm:$0xff]  ;;  %v334_v9 = vld [vmem:[%s2525_s6 + $0x248] sm:$0xff] }
  0xd8   : > { %1028 = vmatprep.mubr.f32.mxu1 %v558_v10  ;;  %2140 = vmatprep.mubr.msk.f32.mxu0 %vm1351_vm1, %v310_v11 }
  0xdb   : > { %1029 = vmatmul.mubr.f32.gmra.mrb[98].mxu1 %v557_v12  ;;  %1689 = vmatmul.mubr.f32.gmra.mrb[48].mxu0 %v309_v13  ;;  %v507_v12 = vld [vmem:[%s2391_s25 + $0x490] sm:$0xff]  ;;  %v333_v13 = vld [vmem:[%s2525_s6 + $0x240] sm:$0xff] }
  0xdc   : > { %2090 = vmatprep.mubr.msk.f32.mxu1 %vm566_vm0, %v464_v14  ;;  %2141 = vmatprep.mubr.msk.f32.mxu0 %vm1351_vm1, %v312_v15  ;;  %v512_v14 = vld [vmem:[%s2391_s25 + $0x4b8] sm:$0xff] }
  0xdd   : > { %v336_v15 = vld [vmem:[%s2525_s6 + $0x258] sm:$0xff] }
  0xdf   : > { %1224 = vmatmul.mubr.f32.vlgmr.msra.gmra.mrb[50].mxu1 %v463_v16  ;;  %1694 = vmatmul.mubr.f32.gmra.mrb[50].mxu0 %v311_v17 }
  0xe0   : > { %2091 = vmatprep.mubr.msk.f32.mxu1 %vm566_vm0, %v468_v18  ;;  %2142 = vmatprep.mubr.msk.f32.mxu0 %vm1351_vm1, %v314_v19  ;;  %v511_v18 = vld [vmem:[%s2391_s25 + $0x4b0] sm:$0xff] }
  0xe1   : > { %v335_v19 = vld [vmem:[%s2525_s6 + $0x250] sm:$0xff] }
  0xe3   : > { %1229 = vmatmul.mubr.f32.gmra.mrb[52].mxu1 %v467_v20  ;;  %1699 = vmatmul.mubr.f32.gmra.mrb[52].mxu0 %v313_v21  ;;  %v516_v20 = vld [vmem:[%s2391_s25 + $0x4d8] sm:$0xff]  ;;  %v338_v21 = vld [vmem:[%s2525_s6 + $0x268] sm:$0xff] }
  0xe4   : > { %2092 = vmatprep.mubr.msk.f32.mxu1 %vm566_vm0, %v472_v22  ;;  %2143 = vmatprep.mubr.msk.f32.mxu0 %vm1351_vm1, %v316_v23 }
  0xe7   : > { %1234 = vmatmul.mubr.f32.gmra.mrb[54].mxu1 %v471_v24  ;;  %1704 = vmatmul.mubr.f32.gmra.mrb[54].mxu0 %v315_v25  ;;  %v515_v24 = vld [vmem:[%s2391_s25 + $0x4d0] sm:$0xff]  ;;  %v337_v25 = vld [vmem:[%s2525_s6 + $0x260] sm:$0xff] }
  0xe8   : > { %2093 = vmatprep.mubr.msk.f32.mxu1 %vm566_vm0, %v476_v26  ;;  %2144 = vmatprep.mubr.msk.f32.mxu0 %vm1351_vm1, %v318_v27  ;;  %v520_v26 = vld [vmem:[%s2391_s25 + $0x4f8] sm:$0xff] }
  0xe9   : > { %v340_v27 = vld [vmem:[%s2525_s6 + $0x278] sm:$0xff] }
  0xea   : > { %v2681_v32 = vpop.f32.mrb[0].mxu1 }
  0xeb   : > { %v787_v33 = vpop.f32.mrb[1].mxu1  ;;  %1239 = vmatmul.mubr.f32.gmra.mrb[56].mxu1 %v475_v28  ;;  %1709 = vmatmul.mubr.f32.gmra.mrb[56].mxu0 %v317_v29 }
  0xec   : > { %2094 = vmatprep.mubr.msk.f32.mxu1 %vm566_vm0, %v480_v30  ;;  %2145 = vmatprep.mubr.msk.f32.mxu0 %vm1351_vm1, %v320_v31  ;;  %v519_v30 = vld [vmem:[%s2391_s25 + $0x4f0] sm:$0xff]  ;;  %v524_v33 = vld [vmem:[%s2391_s25 + $0x518] sm:$0xff] }
  0xed   : > { %v339_v31 = vld [vmem:[%s2525_s6 + $0x270] sm:$0xff] }
  0xee   : > { %v2689_v38 = vpop.f32.mrb[2].mxu1 }
  0xef   : > { %v792_v39 = vpop.f32.mrb[3].mxu1  ;;  %1244 = vmatmul.mubr.f32.gmra.mrb[58].mxu1 %v479_v34  ;;  %1714 = vmatmul.mubr.f32.gmra.mrb[58].mxu0 %v319_v35  ;;  %v342_v34 = vld [vmem:[%s2525_s6 + $0x288] sm:$0xff] }
  0xf0   : > { %2095 = vmatprep.mubr.msk.f32.mxu1 %vm566_vm0, %v484_v36  ;;  %2146 = vmatprep.mubr.msk.f32.mxu0 %vm1351_vm1, %v322_v37  ;;  %v523_v37 = vld [vmem:[%s2391_s25 + $0x510] sm:$0xff]  ;;  %v341_v39 = vld [vmem:[%s2525_s6 + $0x280] sm:$0xff] }
  0xf2   : > { %v2697_v44 = vpop.f32.mrb[4].mxu1 }
  0xf3   : > { %v797_v45 = vpop.f32.mrb[5].mxu1  ;;  %1249 = vmatmul.mubr.f32.gmra.mrb[60].mxu1 %v483_v40  ;;  %1719 = vmatmul.mubr.f32.gmra.mrb[60].mxu0 %v321_v41  ;;  %v528_v40 = vld [vmem:[%s2391_s25 + $0x538] sm:$0xff] }
  0xf4   : > { %2096 = vmatprep.mubr.msk.f32.mxu1 %vm566_vm0, %v488_v42  ;;  %2147 = vmatprep.mubr.msk.f32.mxu0 %vm1351_vm1, %v324_v43  ;;  %v344_v41 = vld [vmem:[%s2525_s6 + $0x298] sm:$0xff]  ;;  %v527_v45 = vld [vmem:[%s2391_s25 + $0x530] sm:$0xff] }
  0xf6   : > { %v2705_v50 = vpop.f32.mrb[6].mxu1 }
  0xf7   : > { %v802_v51 = vpop.f32.mrb[7].mxu1  ;;  %1254 = vmatmul.mubr.f32.gmra.mrb[62].mxu1 %v487_v46  ;;  %1724 = vmatmul.mubr.f32.gmra.mrb[62].mxu0 %v323_v47  ;;  %v343_v46 = vld [vmem:[%s2525_s6 + $0x290] sm:$0xff]  ;;  %v532_v47 = vld [vmem:[%s2391_s25 + $0x558] sm:$0xff] }
  0xf8   : > { %2097 = vmatprep.mubr.msk.f32.mxu1 %vm566_vm0, %v492_v48  ;;  %2148 = vmatprep.mubr.msk.f32.mxu0 %vm1351_vm1, %v326_v49  ;;  %v346_v48 = vld [vmem:[%s2525_s6 + $0x2a8] sm:$0xff] }
  0xfa   : > { %v2713_v56 = vpop.f32.mrb[8].mxu1 }
  0xfb   : > { %v807_v57 = vpop.f32.mrb[9].mxu1  ;;  %1259 = vmatmul.mubr.f32.gmra.mrb[64].mxu1 %v491_v52  ;;  %1729 = vmatmul.mubr.f32.gmra.mrb[64].mxu0 %v325_v53  ;;  %v531_v52 = vld [vmem:[%s2391_s25 + $0x550] sm:$0xff]  ;;  %v345_v53 = vld [vmem:[%s2525_s6 + $0x2a0] sm:$0xff] }
  0xfc   : > { %2098 = vmatprep.mubr.msk.f32.mxu1 %vm566_vm0, %v496_v54  ;;  %2149 = vmatprep.mubr.msk.f32.mxu0 %vm1351_vm1, %v328_v55  ;;  %v536_v54 = vld [vmem:[%s2391_s25 + $0x578] sm:$0xff] }
  0xfd   : > { %v348_v55 = vld [vmem:[%s2525_s6 + $0x2b8] sm:$0xff] }
  0xfe   : > { %v2721_v62 = vpop.f32.mrb[10].mxu1 }
  0xff   : > { %v812_v63 = vpop.f32.mrb[11].mxu1  ;;  %1264 = vmatmul.mubr.f32.gmra.mrb[66].mxu1 %v495_v58  ;;  %1734 = vmatmul.mubr.f32.gmra.mrb[66].mxu0 %v327_v59  ;;  %v535_v59 = vld [vmem:[%s2391_s25 + $0x570] sm:$0xff] }
 0x100   : > { %2099 = vmatprep.mubr.msk.f32.mxu1 %vm566_vm0, %v500_v60  ;;  %2150 = vmatprep.mubr.msk.f32.mxu0 %vm1351_vm1, %v330_v61  ;;  %v347_v60 = vld [vmem:[%s2525_s6 + $0x2b0] sm:$0xff]  ;;  %v540_v61 = vld [vmem:[%s2391_s25 + $0x598] sm:$0xff]  ;;  %v350_v63 = vld [vmem:[%s2525_s6 + $0x2c8] sm:$0xff] }
 0x102   : > { %v2729_v4 = vpop.f32.mrb[12].mxu1 }
 0x103   : > { %v817_v5 = vpop.f32.mrb[13].mxu1  ;;  %1269 = vmatmul.mubr.f32.gmra.mrb[68].mxu1 %v499_v0  ;;  %1739 = vmatmul.mubr.f32.gmra.mrb[68].mxu0 %v329_v1 }
 0x104   : > { %2100 = vmatprep.mubr.msk.f32.mxu1 %vm566_vm0, %v504_v2  ;;  %2151 = vmatprep.mubr.msk.f32.mxu0 %vm1351_vm1, %v332_v3  ;;  %v539_v2 = vld [vmem:[%s2391_s25 + $0x590] sm:$0xff]  ;;  %v349_v3 = vld [vmem:[%s2525_s6 + $0x2c0] sm:$0xff]  ;;  %v544_v5 = vld [vmem:[%s2391_s25 + $0x5b8] sm:$0xff] }
 0x106   : > { %v2737_v10 = vpop.f32.mrb[14].mxu1 }
 0x107   : > { %v822_v11 = vpop.f32.mrb[15].mxu1  ;;  %1274 = vmatmul.mubr.f32.gmra.mrb[70].mxu1 %v503_v6  ;;  %1744 = vmatmul.mubr.f32.gmra.mrb[70].mxu0 %v331_v7  ;;  %v352_v6 = vld [vmem:[%s2525_s6 + $0x2d8] sm:$0xff] }
 0x108   : > { %2101 = vmatprep.mubr.msk.f32.mxu1 %vm566_vm0, %v508_v8  ;;  %2152 = vmatprep.mubr.msk.f32.mxu0 %vm1351_vm1, %v334_v9  ;;  %v543_v9 = vld [vmem:[%s2391_s25 + $0x5b0] sm:$0xff] }
 0x109   : > { %v351_v11 = vld [vmem:[%s2525_s6 + $0x2d0] sm:$0xff] }
 0x10a   : > { %v2745_v16 = vpop.f32.mrb[16].mxu1 }
 0x10b   : > { %v827_v17 = vpop.f32.mrb[17].mxu1  ;;  %1279 = vmatmul.mubr.f32.gmra.mrb[72].mxu1 %v507_v12  ;;  %1749 = vmatmul.mubr.f32.gmra.mrb[72].mxu0 %v333_v13  ;;  %v548_v12 = vld [vmem:[%s2391_s25 + $0x5d8] sm:$0xff]  ;;  %v354_v13 = vld [vmem:[%s2525_s6 + $0x2e8] sm:$0xff] }
 0x10c   : > { %2102 = vmatprep.mubr.msk.f32.mxu1 %vm566_vm0, %v512_v14  ;;  %2153 = vmatprep.mubr.msk.f32.mxu0 %vm1351_vm1, %v336_v15  ;;  %v547_v17 = vld [vmem:[%s2391_s25 + $0x5d0] sm:$0xff] }
 0x10e   : > { %v2753_v22 = vpop.f32.mrb[18].mxu1 }
 0x10f   : > { %v832_v23 = vpop.f32.mrb[19].mxu1  ;;  %1284 = vmatmul.mubr.f32.gmra.mrb[74].mxu1 %v511_v18  ;;  %1754 = vmatmul.mubr.f32.gmra.mrb[74].mxu0 %v335_v19  ;;  %v353_v18 = vld [vmem:[%s2525_s6 + $0x2e0] sm:$0xff]  ;;  %v552_v19 = vld [vmem:[%s2391_s25 + $0x5f8] sm:$0xff] }
 0x110   : > { %2103 = vmatprep.mubr.msk.f32.mxu1 %vm566_vm0, %v516_v20  ;;  %2154 = vmatprep.mubr.msk.f32.mxu0 %vm1351_vm1, %v338_v21  ;;  %v356_v20 = vld [vmem:[%s2525_s6 + $0x2f8] sm:$0xff] }
 0x112   : > { %v2761_v28 = vpop.f32.mrb[20].mxu1 }
 0x113   : > { %v837_v29 = vpop.f32.mrb[21].mxu1  ;;  %1289 = vmatmul.mubr.f32.gmra.mrb[76].mxu1 %v515_v24  ;;  %1759 = vmatmul.mubr.f32.gmra.mrb[76].mxu0 %v337_v25  ;;  %v551_v24 = vld [vmem:[%s2391_s25 + $0x5f0] sm:$0xff] }
 0x114   : > { %2104 = vmatprep.mubr.msk.f32.mxu1 %vm566_vm0, %v520_v26  ;;  %2155 = vmatprep.mubr.msk.f32.mxu0 %vm1351_vm1, %v340_v27  ;;  %v355_v25 = vld [vmem:[%s2525_s6 + $0x2f0] sm:$0xff]  ;;  %v556_v26 = vld [vmem:[%s2391_s25 + $0x618] sm:$0xff]  ;;  %v358_v27 = vld [vmem:[%s2525_s6 + $0x308] sm:$0xff] }
 0x116   : > { %v2769_v35 = vpop.f32.mrb[22].mxu1 }
 0x117   : > { %v842_v36 = vpop.f32.mrb[23].mxu1  ;;  %1294 = vmatmul.mubr.f32.gmra.mrb[78].mxu1 %v519_v30  ;;  %1764 = vmatmul.mubr.f32.gmra.mrb[78].mxu0 %v339_v31  ;;  %v555_v31 = vld [vmem:[%s2391_s25 + $0x610] sm:$0xff] }
 0x118   : > { %2105 = vmatprep.mubr.msk.f32.mxu1 %vm566_vm0, %v524_v33  ;;  %2156 = vmatprep.mubr.msk.f32.mxu0 %vm1351_vm1, %v342_v34  ;;  %v357_v33 = vld [vmem:[%s2525_s6 + $0x300] sm:$0xff]  ;;  %v560_v34 = vld [vmem:[%s2391_s25 + $0x638] sm:$0xff] }
 0x119   : > { %v360_v36 = vld [vmem:[%s2525_s6 + $0x318] sm:$0xff] }
 0x11a   : > { %v2777_v42 = vpop.f32.mrb[24].mxu1 }
 0x11b   : > { %v847_v43 = vpop.f32.mrb[25].mxu1  ;;  %1299 = vmatmul.mubr.f32.gmra.mrb[80].mxu1 %v523_v37  ;;  %1769 = vmatmul.mubr.f32.gmra.mrb[80].mxu0 %v341_v39 }
 0x11c   : > { %2106 = vmatprep.mubr.msk.f32.mxu1 %vm566_vm0, %v528_v40  ;;  %2157 = vmatprep.mubr.msk.f32.mxu0 %vm1351_vm1, %v344_v41  ;;  %v559_v40 = vld [vmem:[%s2391_s25 + $0x630] sm:$0xff] }
 0x11d   : > { %v359_v41 = vld [vmem:[%s2525_s6 + $0x310] sm:$0xff] }
 0x11e   : > { %v2785_v49 = vpop.f32.mrb[26].mxu1 }
 0x11f   : > { %v852_v51 = vpop.f32.mrb[27].mxu1  ;;  %1304 = vmatmul.mubr.f32.gmra.mrb[82].mxu1 %v527_v45  ;;  %1774 = vmatmul.mubr.f32.gmra.mrb[82].mxu0 %v343_v46 }
 0x120   : > { %2107 = vmatprep.mubr.msk.f32.mxu1 %vm566_vm0, %v532_v47  ;;  %2158 = vmatprep.mubr.msk.f32.mxu0 %vm1351_vm1, %v346_v48 }
 0x122   : > { %v2793_v57 = vpop.f32.mrb[28].mxu1 }
 0x123   : > { %v857_v58 = vpop.f32.mrb[29].mxu1  ;;  %1309 = vmatmul.mubr.f32.gmra.mrb[84].mxu1 %v531_v52  ;;  %1779 = vmatmul.mubr.f32.gmra.mrb[84].mxu0 %v345_v53 }
 0x124   : > { %2108 = vmatprep.mubr.msk.f32.mxu1 %vm566_vm0, %v536_v54  ;;  %2159 = vmatprep.mubr.msk.f32.mxu0 %vm1351_vm1, %v348_v55 }
 0x126   : > { %v2801_v0 = vpop.f32.mrb[30].mxu1 }
 0x127   : > { %v862_v1 = vpop.f32.mrb[31].mxu1  ;;  %1314 = vmatmul.mubr.f32.gmra.mrb[86].mxu1 %v535_v59  ;;  %1784 = vmatmul.mubr.f32.gmra.mrb[86].mxu0 %v347_v60 }
 0x128   : > { %2109 = vmatprep.mubr.msk.f32.mxu1 %vm566_vm0, %v540_v61  ;;  %2160 = vmatprep.mubr.msk.f32.mxu0 %vm1351_vm1, %v350_v63 }
 0x12a   : > { %v2809_v7 = vpop.f32.mrb[32].mxu1 }
 0x12b   : > { %v867_v8 = vpop.f32.mrb[33].mxu1  ;;  %1319 = vmatmul.mubr.f32.gmra.mrb[88].mxu1 %v539_v2  ;;  %1789 = vmatmul.mubr.f32.gmra.mrb[88].mxu0 %v349_v3 }
 0x12c   : > { %2110 = vmatprep.mubr.msk.f32.mxu1 %vm566_vm0, %v544_v5  ;;  %2161 = vmatprep.mubr.msk.f32.mxu0 %vm1351_vm1, %v352_v6 }
 0x12e   : > { %v2817_v14 = vpop.f32.mrb[34].mxu1 }
 0x12f   : > { %v872_v15 = vpop.f32.mrb[35].mxu1  ;;  %1324 = vmatmul.mubr.f32.gmra.mrb[90].mxu1 %v543_v9  ;;  %1794 = vmatmul.mubr.f32.gmra.mrb[90].mxu0 %v351_v11 }
 0x130   : > { %2111 = vmatprep.mubr.msk.f32.mxu1 %vm566_vm0, %v548_v12  ;;  %2162 = vmatprep.mubr.msk.f32.mxu0 %vm1351_vm1, %v354_v13 }
 0x132   : > { %v2825_v21 = vpop.f32.mrb[36].mxu1 }
 0x133   : > { %v877_v23 = vpop.f32.mrb[37].mxu1  ;;  %1329 = vmatmul.mubr.f32.gmra.mrb[92].mxu1 %v547_v17  ;;  %1799 = vmatmul.mubr.f32.gmra.mrb[92].mxu0 %v353_v18 }
 0x134   : > { %2112 = vmatprep.mubr.msk.f32.mxu1 %vm566_vm0, %v552_v19  ;;  %2163 = vmatprep.mubr.msk.f32.mxu0 %vm1351_vm1, %v356_v20 }
 0x136   : > { %v2833_v29 = vpop.f32.mrb[38].mxu1 }
 0x137   : > { %v882_v30 = vpop.f32.mrb[39].mxu1  ;;  %1334 = vmatmul.mubr.f32.gmra.mrb[94].mxu1 %v551_v24  ;;  %1804 = vmatmul.mubr.f32.gmra.mrb[94].mxu0 %v355_v25 }
 0x138   : > { %2113 = vmatprep.mubr.msk.f32.mxu1 %vm566_vm0, %v556_v26  ;;  %2164 = vmatprep.mubr.msk.f32.mxu0 %vm1351_vm1, %v358_v27 }
 0x13a   : > { %v2841_v37 = vpop.f32.mrb[40].mxu1 }
 0x13b   : > { %v887_v39 = vpop.f32.mrb[41].mxu1  ;;  %1339 = vmatmul.mubr.f32.gmra.mrb[96].mxu1 %v555_v31  ;;  %1809 = vmatmul.mubr.f32.gmra.mrb[96].mxu0 %v357_v33 }
 0x13c   : > { %2114 = vmatprep.mubr.msk.f32.mxu1 %vm566_vm0, %v560_v34  ;;  %2165 = vmatprep.mubr.msk.f32.mxu0 %vm1351_vm1, %v360_v36 }
 0x13e   : > { %v2847_v43 = vpop.f32.mrb[42].mxu1 }
 0x13f   : > { %v892_v45 = vpop.f32.mrb[43].mxu1  ;;  %1344 = vmatmul.mubr.f32.gmra.mrb[98].mxu1 %v559_v40  ;;  %1814 = vmatmul.mubr.f32.gmra.mrb[98].mxu0 %v359_v41 }
 0x142   : > { %v2849_v46 = vpop.f32.mrb[44].mxu1 }
 0x143   : > { %v897_v47 = vpop.f32.mrb[45].mxu1 }
 0x146   : > { %v2851_v48 = vpop.f32.mrb[46].mxu1 }
 0x147   : > { %v902_v51 = vpop.f32.mrb[47].mxu1 }
 0x14a   : > { %v2853_v52 = vpop.f32.mrb[48].mxu1 }
 0x14b   : > { %v907_v53 = vpop.f32.mrb[49].mxu1 }
 0x14e   : > { %v1570_v54 = vpop.f32.mrb[0].mxu0 }
 0x14f   : > { %v1572_v55 = vpop.f32.mrb[1].mxu0  ;;  %v2173_v58 = vadd.f32 %v1570_v54, %v2681_v32 }
 0x151   : > { %1819 = vxpose.xlu0.b32.start [1/16] (narrow) %v2173_v58, 8 }
 0x152   : > { %v1575_v59 = vpop.f32.mrb[2].mxu0 }
 0x153   : > { %v2174_v60 = vadd.f32 %v1575_v59, %v2689_v38  ;;  %v1577_v61 = vpop.f32.mrb[3].mxu0 }
 0x155   : > { %1820 = vxpose.xlu0.b32.cont [2/16] (narrow) %v2174_v60, 8 }
 0x156   : > { %v1580_v63 = vpop.f32.mrb[4].mxu0 }
 0x157   : > { %v2175_v1 = vadd.f32 %v1580_v63, %v2697_v44  ;;  %v1582_v2 = vpop.f32.mrb[5].mxu0 }
 0x159   : > { %1821 = vxpose.xlu0.b32.cont [3/16] (narrow) %v2175_v1, 8 }
 0x15a   : > { %v1585_v3 = vpop.f32.mrb[6].mxu0 }
 0x15b   : > { %v2176_v5 = vadd.f32 %v1585_v3, %v2705_v50  ;;  %v1587_v6 = vpop.f32.mrb[7].mxu0 }
 0x15d   : > { %1822 = vxpose.xlu0.b32.cont [4/16] (narrow) %v2176_v5, 8 }
 0x15e   : > { %v1590_v8 = vpop.f32.mrb[8].mxu0 }
 0x15f   : > { %v2177_v9 = vadd.f32 %v1590_v8, %v2713_v56  ;;  %v1592_v32 = vpop.f32.mrb[9].mxu0 }
 0x161   : > { %1823 = vxpose.xlu0.b32.cont [5/16] (narrow) %v2177_v9, 8 }
 0x162   : > { %v1595_v11 = vpop.f32.mrb[10].mxu0 }
 0x163   : > { %v2178_v38 = vadd.f32 %v1595_v11, %v2721_v62  ;;  %v1597_v12 = vpop.f32.mrb[11].mxu0 }
 0x165   : > { %1824 = vxpose.xlu0.b32.cont [6/16] (narrow) %v2178_v38, 8 }
 0x166   : > { %v1600_v13 = vpop.f32.mrb[12].mxu0 }
 0x167   : > { %v2179_v44 = vadd.f32 %v1600_v13, %v2729_v4  ;;  %v1602_v15 = vpop.f32.mrb[13].mxu0 }
 0x169   : > { %1825 = vxpose.xlu0.b32.cont [7/16] (narrow) %v2179_v44, 8 }
 0x16a   : > { %v1605_v17 = vpop.f32.mrb[14].mxu0 }
 0x16b   : > { %v2180_v50 = vadd.f32 %v1605_v17, %v2737_v10  ;;  %v1607_v18 = vpop.f32.mrb[15].mxu0 }
 0x16d   : > { %1826 = vxpose.xlu0.b32.cont [8/16] (narrow) %v2180_v50, 8 }
 0x16e   : > { %v1610_v19 = vpop.f32.mrb[16].mxu0 }
 0x16f   : > { %v2181_v56 = vadd.f32 %v1610_v19, %v2745_v16  ;;  %v1612_v20 = vpop.f32.mrb[17].mxu0 }
 0x171   : > { %1827 = vxpose.xlu0.b32.cont [9/16] (narrow) %v2181_v56, 8 }
 0x172   : > { %v1615_v23 = vpop.f32.mrb[18].mxu0 }
 0x173   : > { %v2182_v62 = vadd.f32 %v1615_v23, %v2753_v22  ;;  %v1617_v24 = vpop.f32.mrb[19].mxu0 }
 0x175   : > { %1828 = vxpose.xlu0.b32.cont [10/16] (narrow) %v2182_v62, 8 }
 0x176   : > { %v1620_v25 = vpop.f32.mrb[20].mxu0 }
 0x177   : > { %v2183_v4 = vadd.f32 %v1620_v25, %v2761_v28  ;;  %v1622_v26 = vpop.f32.mrb[21].mxu0 }
 0x179   : > { %1829 = vxpose.xlu0.b32.cont [11/16] (narrow) %v2183_v4, 8 }
 0x17a   : > { %v1625_v27 = vpop.f32.mrb[22].mxu0 }
 0x17b   : > { %v2184_v10 = vadd.f32 %v1625_v27, %v2769_v35  ;;  %v1627_v30 = vpop.f32.mrb[23].mxu0 }
 0x17d   : > { %1830 = vxpose.xlu0.b32.cont [12/16] (narrow) %v2184_v10, 8 }
 0x17e   : > { %v1630_v31 = vpop.f32.mrb[24].mxu0 }
 0x17f   : > { %v2185_v16 = vadd.f32 %v1630_v31, %v2777_v42  ;;  %v1632_v33 = vpop.f32.mrb[25].mxu0 }
 0x181   : > { %1831 = vxpose.xlu0.b32.cont [13/16] (narrow) %v2185_v16, 8 }
 0x182   : > { %v1635_v34 = vpop.f32.mrb[26].mxu0 }
 0x183   : > { %v2186_v22 = vadd.f32 %v1635_v34, %v2785_v49  ;;  %v1637_v36 = vpop.f32.mrb[27].mxu0 }
 0x185   : > { %1832 = vxpose.xlu0.b32.cont [14/16] (narrow) %v2186_v22, 8 }
 0x186   : > { %v1640_v39 = vpop.f32.mrb[28].mxu0 }
 0x187   : > { %v2187_v28 = vadd.f32 %v1640_v39, %v2793_v57  ;;  %v1642_v40 = vpop.f32.mrb[29].mxu0 }
 0x189   : > { %1833 = vxpose.xlu0.b32.cont [15/16] (narrow) %v2187_v28, 8 }
 0x18a   : > { %v1645_v41 = vpop.f32.mrb[30].mxu0 }
 0x18b   : > { %v2188_v35 = vadd.f32 %v1645_v41, %v2801_v0  ;;  %v1647_v45 = vpop.f32.mrb[31].mxu0 }
 0x18d   : > { %1834 = vxpose.xlu0.b32.end [16/16] (narrow) %v2188_v35, 8 }
 0x18e   : > { %v1650_v47 = vpop.f32.mrb[32].mxu0 }
 0x18f   : > { %v1652_v51 = vpop.f32.mrb[33].mxu0  ;;  %v2189_v42 = vadd.f32 %v1650_v47, %v2809_v7 }
 0x191   : > { %1851 = vxpose.xlu1.b32.start [1/16] (narrow) %v2189_v42, 8 }
 0x192   : > { %v1655_v53 = vpop.f32.mrb[34].mxu0 }
 0x193   : > { %v2190_v49 = vadd.f32 %v1655_v53, %v2817_v14  ;;  %v1657_v54 = vpop.f32.mrb[35].mxu0 }
 0x195   : > { %1852 = vxpose.xlu1.b32.cont [2/16] (narrow) %v2190_v49, 8 }
 0x196   : > { %v1660_v55 = vpop.f32.mrb[36].mxu0 }
 0x197   : > { %v2191_v57 = vadd.f32 %v1660_v55, %v2825_v21  ;;  %v1662_v58 = vpop.f32.mrb[37].mxu0 }
 0x199   : > { %1853 = vxpose.xlu1.b32.cont [3/16] (narrow) %v2191_v57, 8 }
 0x19a   : > { %v1665_v59 = vpop.f32.mrb[38].mxu0 }
 0x19b   : > { %v2192_v0 = vadd.f32 %v1665_v59, %v2833_v29  ;;  %v1667_v60 = vpop.f32.mrb[39].mxu0 }
 0x19d   : > { %1854 = vxpose.xlu1.b32.cont [4/16] (narrow) %v2192_v0, 8 }
 0x19e   : > { %v1670_v61 = vpop.f32.mrb[40].mxu0 }
 0x19f   : > { %v2193_v63 = vadd.f32 %v1670_v61, %v2841_v37  ;;  %v1672_v7 = vpop.f32.mrb[41].mxu0 }
 0x1a1   : > { %1855 = vxpose.xlu1.b32.cont [5/16] (narrow) %v2193_v63, 8 }
 0x1a2   : > { %v1675_v1 = vpop.f32.mrb[42].mxu0 }
 0x1a3   : > { %v2194_v14 = vadd.f32 %v1675_v1, %v2847_v43  ;;  %v1677_v2 = vpop.f32.mrb[43].mxu0 }
 0x1a5   : > { %1856 = vxpose.xlu1.b32.cont [6/16] (narrow) %v2194_v14, 8 }
 0x1a6   : > { %v1680_v3 = vpop.f32.mrb[44].mxu0 }
 0x1a7   : > { %v2195_v21 = vadd.f32 %v1680_v3, %v2849_v46  ;;  %v1682_v5 = vpop.f32.mrb[45].mxu0 }
 0x1a9   : > { %1857 = vxpose.xlu1.b32.cont [7/16] (narrow) %v2195_v21, 8 }
 0x1aa   : > { %v1685_v6 = vpop.f32.mrb[46].mxu0 }
 0x1ab   : > { %v2196_v29 = vadd.f32 %v1685_v6, %v2851_v48  ;;  %v1687_v8 = vpop.f32.mrb[47].mxu0 }
 0x1ad   : > { %1858 = vxpose.xlu1.b32.cont [8/16] (narrow) %v2196_v29, 8 }
 0x1ae   : > { %v1690_v9 = vpop.f32.mrb[48].mxu0 }
 0x1af   : > { %v2197_v37 = vadd.f32 %v1690_v9, %v2853_v52  ;;  %v1692_v32 = vpop.f32.mrb[49].mxu0 }
 0x1b1   : > { %1859 = vxpose.xlu1.b32.cont [9/16] (narrow) %v2197_v37, 8 }
 0x1b2   : > { %v1225_v11 = vpop.f32.mrb[50].mxu1  ;;  %v1695_v38 = vpop.f32.mrb[50].mxu0 }
 0x1b3   : > { %v2198_v43 = vadd.f32 %v1695_v38, %v1225_v11  ;;  %v1227_v12 = vpop.f32.mrb[51].mxu1  ;;  %v1697_v13 = vpop.f32.mrb[51].mxu0 }
 0x1b5   : > { %1860 = vxpose.xlu1.b32.cont [10/16] (narrow) %v2198_v43, 8 }
 0x1b6   : > { %v1230_v44 = vpop.f32.mrb[52].mxu1  ;;  %v1700_v46 = vpop.f32.mrb[52].mxu0 }
 0x1b7   : > { %v2199_v15 = vadd.f32 %v1700_v46, %v1230_v44  ;;  %v1232_v17 = vpop.f32.mrb[53].mxu1  ;;  %v1702_v50 = vpop.f32.mrb[53].mxu0 }
 0x1b9   : > { %1861 = vxpose.xlu1.b32.cont [11/16] (narrow) %v2199_v15, 8 }
 0x1ba   : > { %v1235_v48 = vpop.f32.mrb[54].mxu1  ;;  %v1705_v18 = vpop.f32.mrb[54].mxu0 }
 0x1bb   : > { %v2200_v19 = vadd.f32 %v1705_v18, %v1235_v48  ;;  %v1237_v56 = vpop.f32.mrb[55].mxu1  ;;  %v1707_v20 = vpop.f32.mrb[55].mxu0 }
 0x1bd   : > { %1862 = vxpose.xlu1.b32.cont [12/16] (narrow) %v2200_v19, 8 }
 0x1be   : > { %v1240_v52 = vpop.f32.mrb[56].mxu1  ;;  %v1710_v23 = vpop.f32.mrb[56].mxu0 }
 0x1bf   : > { %v2201_v62 = vadd.f32 %v1710_v23, %v1240_v52  ;;  %v1242_v24 = vpop.f32.mrb[57].mxu1  ;;  %v1712_v25 = vpop.f32.mrb[57].mxu0 }
 0x1c1   : > { %1863 = vxpose.xlu1.b32.cont [13/16] (narrow) %v2201_v62, 8 }
 0x1c2   : > { %v1245_v4 = vpop.f32.mrb[58].mxu1  ;;  %v1715_v26 = vpop.f32.mrb[58].mxu0 }
 0x1c3   : > { %v2202_v27 = vadd.f32 %v1715_v26, %v1245_v4  ;;  %v1247_v10 = vpop.f32.mrb[59].mxu1  ;;  %v1717_v30 = vpop.f32.mrb[59].mxu0 }
 0x1c5   : > { %1864 = vxpose.xlu1.b32.cont [14/16] (narrow) %v2202_v27, 8 }
 0x1c6   : > { %v1250_v31 = vpop.f32.mrb[60].mxu1  ;;  %v1720_v16 = vpop.f32.mrb[60].mxu0 }
 0x1c7   : > { %v2203_v33 = vadd.f32 %v1720_v16, %v1250_v31  ;;  %v1252_v34 = vpop.f32.mrb[61].mxu1  ;;  %v1722_v22 = vpop.f32.mrb[61].mxu0 }
 0x1c9   : > { %1865 = vxpose.xlu1.b32.cont [15/16] (narrow) %v2203_v33, 8 }
 0x1ca   : > { %v1255_v36 = vpop.f32.mrb[62].mxu1  ;;  %v1725_v39 = vpop.f32.mrb[62].mxu0 }
 0x1cb   : > { %v2204_v28 = vadd.f32 %v1725_v39, %v1255_v36  ;;  %v1257_v40 = vpop.f32.mrb[63].mxu1  ;;  %v1727_v41 = vpop.f32.mrb[63].mxu0 }
 0x1cd   : > { %1866 = vxpose.xlu1.b32.end [16/16] (narrow) %v2204_v28, 8 }
 0x1ce   : > { %v1260_v35 = vpop.f32.mrb[64].mxu1  ;;  %v1730_v45 = vpop.f32.mrb[64].mxu0 }
 0x1cf   : > { %v2205_v47 = vadd.f32 %v1730_v45, %v1260_v35  ;;  %v1262_v51 = vpop.f32.mrb[65].mxu1  ;;  %v1732_v42 = vpop.f32.mrb[65].mxu0 }
 0x1d1   : > { %1883 = vxpose.xlu0.b32.start [1/16] (narrow) %v2205_v47, 8 }
 0x1d2   : > { %v1265_v53 = vpop.f32.mrb[66].mxu1  ;;  %v1735_v49 = vpop.f32.mrb[66].mxu0 }
 0x1d3   : > { %v2206_v54 = vadd.f32 %v1735_v49, %v1265_v53  ;;  %v1267_v55 = vpop.f32.mrb[67].mxu1  ;;  %v1737_v57 = vpop.f32.mrb[67].mxu0 }
 0x1d5   : > { %1884 = vxpose.xlu0.b32.cont [2/16] (narrow) %v2206_v54, 8 }
 0x1d6   : > { %v1270_v58 = vpop.f32.mrb[68].mxu1  ;;  %v1740_v59 = vpop.f32.mrb[68].mxu0 }
 0x1d7   : > { %v2207_v0 = vadd.f32 %v1740_v59, %v1270_v58  ;;  %v1272_v60 = vpop.f32.mrb[69].mxu1  ;;  %v1742_v61 = vpop.f32.mrb[69].mxu0 }
 0x1d9   : > { %1885 = vxpose.xlu0.b32.cont [3/16] (narrow) %v2207_v0, 8 }
 0x1da   : > { %v1275_v63 = vpop.f32.mrb[70].mxu1  ;;  %v1745_v7 = vpop.f32.mrb[70].mxu0 }
 0x1db   : > { %v2208_v1 = vadd.f32 %v1745_v7, %v1275_v63  ;;  %v1277_v14 = vpop.f32.mrb[71].mxu1  ;;  %v1747_v2 = vpop.f32.mrb[71].mxu0 }
 0x1dc   : > { %v1835_v7 = vpop.trf.xlu0 }
 0x1dd   : > { %1886 = vxpose.xlu0.b32.cont [4/16] (narrow) %v2208_v1, 8 }
 0x1de   : > { %v1280_v3 = vpop.f32.mrb[72].mxu1  ;;  %v1750_v21 = vpop.f32.mrb[72].mxu0 }
 0x1df   : > { %v2209_v5 = vadd.f32 %v1750_v21, %v1280_v3  ;;  %v1282_v6 = vpop.f32.mrb[73].mxu1  ;;  %v1752_v29 = vpop.f32.mrb[73].mxu0 }
 0x1e1   : > { %1887 = vxpose.xlu0.b32.cont [5/16] (narrow) %v2209_v5, 8 }
 0x1e2   : > { %v1285_v8 = vpop.f32.mrb[74].mxu1  ;;  %v1755_v9 = vpop.f32.mrb[74].mxu0 }
 0x1e3   : > { %v2210_v37 = vadd.f32 %v1755_v9, %v1285_v8  ;;  %v1287_v32 = vpop.f32.mrb[75].mxu1  ;;  %v1757_v11 = vpop.f32.mrb[75].mxu0 }
 0x1e5   : > { %1888 = vxpose.xlu0.b32.cont [6/16] (narrow) %v2210_v37, 8 }
 0x1e6   : > { %v1290_v38 = vpop.f32.mrb[76].mxu1  ;;  %v1760_v43 = vpop.f32.mrb[76].mxu0 }
 0x1e7   : > { %v2211_v12 = vadd.f32 %v1760_v43, %v1290_v38  ;;  %v1292_v13 = vpop.f32.mrb[77].mxu1  ;;  %v1762_v44 = vpop.f32.mrb[77].mxu0 }
 0x1e9   : > { %1889 = vxpose.xlu0.b32.cont [7/16] (narrow) %v2211_v12, 8 }
 0x1ea   : > { %v1295_v46 = vpop.f32.mrb[78].mxu1  ;;  %v1765_v15 = vpop.f32.mrb[78].mxu0 }
 0x1eb   : > { %v2212_v17 = vadd.f32 %v1765_v15, %v1295_v46  ;;  %v1297_v50 = vpop.f32.mrb[79].mxu1  ;;  %v1767_v48 = vpop.f32.mrb[79].mxu0 }
 0x1ed   : > { %1890 = vxpose.xlu0.b32.cont [8/16] (narrow) %v2212_v17, 8 }
 0x1ee   : > { %v1300_v18 = vpop.f32.mrb[80].mxu1  ;;  %v1770_v19 = vpop.f32.mrb[80].mxu0 }
 0x1ef   : > { %v2213_v56 = vadd.f32 %v1770_v19, %v1300_v18  ;;  %v1302_v20 = vpop.f32.mrb[81].mxu1  ;;  %v1772_v52 = vpop.f32.mrb[81].mxu0 }
 0x1f1   : > { %1891 = vxpose.xlu0.b32.cont [9/16] (narrow) %v2213_v56, 8 }
 0x1f2   : > { %v1305_v23 = vpop.f32.mrb[82].mxu1  ;;  %v1775_v62 = vpop.f32.mrb[82].mxu0 }
 0x1f3   : > { %v2214_v24 = vadd.f32 %v1775_v62, %v1305_v23  ;;  %v1307_v25 = vpop.f32.mrb[83].mxu1  ;;  %v1777_v4 = vpop.f32.mrb[83].mxu0 }
 0x1f5   : > { %1892 = vxpose.xlu0.b32.cont [10/16] (narrow) %v2214_v24, 8 }
 0x1f6   : > { %v1310_v26 = vpop.f32.mrb[84].mxu1  ;;  %v1780_v27 = vpop.f32.mrb[84].mxu0 }
 0x1f7   : > { %v2215_v10 = vadd.f32 %v1780_v27, %v1310_v26  ;;  %v1312_v30 = vpop.f32.mrb[85].mxu1  ;;  %v1782_v31 = vpop.f32.mrb[85].mxu0 }
 0x1f9   : > { %1893 = vxpose.xlu0.b32.cont [11/16] (narrow) %v2215_v10, 8 }
 0x1fa   : > { %v1315_v16 = vpop.f32.mrb[86].mxu1  ;;  %v1785_v33 = vpop.f32.mrb[86].mxu0 }
 0x1fb   : > { %v2216_v34 = vadd.f32 %v1785_v33, %v1315_v16  ;;  %v1317_v22 = vpop.f32.mrb[87].mxu1  ;;  %v1787_v36 = vpop.f32.mrb[87].mxu0 }
 0x1fd   : > { %1894 = vxpose.xlu0.b32.cont [12/16] (narrow) %v2216_v34, 8 }
 0x1fe   : > { %v1320_v39 = vpop.f32.mrb[88].mxu1  ;;  %v1790_v28 = vpop.f32.mrb[88].mxu0 }
 0x1ff   : > { %v2217_v40 = vadd.f32 %v1790_v28, %v1320_v39  ;;  %v1322_v41 = vpop.f32.mrb[89].mxu1  ;;  %v1792_v35 = vpop.f32.mrb[89].mxu0 }
 0x201   : > { %1895 = vxpose.xlu0.b32.cont [13/16] (narrow) %v2217_v40, 8 }
 0x202   : > { %v1325_v45 = vpop.f32.mrb[90].mxu1  ;;  %v1795_v47 = vpop.f32.mrb[90].mxu0 }
 0x203   : > { %v2218_v51 = vadd.f32 %v1795_v47, %v1325_v45  ;;  %v1327_v42 = vpop.f32.mrb[91].mxu1  ;;  %v1797_v53 = vpop.f32.mrb[91].mxu0 }
 0x205   : > { %1896 = vxpose.xlu0.b32.cont [14/16] (narrow) %v2218_v51, 8 }
 0x206   : > { %v1330_v49 = vpop.f32.mrb[92].mxu1  ;;  %v1800_v54 = vpop.f32.mrb[92].mxu0 }
 0x207   : > { %v2219_v55 = vadd.f32 %v1800_v54, %v1330_v49  ;;  %v1332_v57 = vpop.f32.mrb[93].mxu1  ;;  %v1802_v58 = vpop.f32.mrb[93].mxu0 }
 0x209   : > { %1897 = vxpose.xlu0.b32.cont [15/16] (narrow) %v2219_v55, 8 }
 0x20a   : > { %v1335_v59 = vpop.f32.mrb[94].mxu1  ;;  %v1805_v0 = vpop.f32.mrb[94].mxu0 }
 0x20b   : > { %v2220_v60 = vadd.f32 %v1805_v0, %v1335_v59  ;;  %v1337_v61 = vpop.f32.mrb[95].mxu1  ;;  %v1807_v63 = vpop.f32.mrb[95].mxu0 }
 0x20d   : > { %1898 = vxpose.xlu0.b32.end [16/16] (narrow) %v2220_v60, 8 }
 0x20e   : > { %v1340_v1 = vpop.f32.mrb[96].mxu1  ;;  %v1810_v14 = vpop.f32.mrb[96].mxu0 }
 0x20f   : > { %v2221_v2 = vadd.f32 %v1810_v14, %v1340_v1  ;;  %v1342_v3 = vpop.f32.mrb[97].mxu1  ;;  %v1812_v21 = vpop.f32.mrb[97].mxu0 }
 0x211   : > { %1915 = vxpose.xlu1.b32.start [1/2] (short) (narrow) %v2221_v2, 8  ;;  %v1867_v5 = vpop.trf.xlu1 }
 0x212   : > { %v1345_v6 = vpop.f32.mrb[98].mxu1  ;;  %v1815_v29 = vpop.f32.mrb[98].mxu0  ;;  %v1951_v8 = vcombine.low %v1835_v7, %v1867_v5 }
 0x213   : > { %v2222_v9 = vadd.f32 %v1815_v29, %v1345_v6  ;;  %v1347_v37 = vpop.f32.mrb[99].mxu1  ;;  %v1817_v32 = vpop.f32.mrb[99].mxu0 }
 0x214   : > { %1955 = vst [vmem:[%s257_s9] sm:$0x77] %v1951_v8 }
 0x215   : > { %1916 = vxpose.xlu1.b32.end [2/2] (short) (narrow) %v2222_v9, 8 }
 0x251   : > { %v1899_v11 = vpop.trf.xlu0 }
 0x291   : > { %v1931_v38 = vpop.trf.xlu1 }
 0x292   : > { %v1952_v43 = vcombine.low %v1899_v11, %v1931_v38 }
 0x294   : > { %1959 = vst.msk [vmem:[%s257_s9 + $0x8] sm:$0x77] %vm1958_vm4, %v1952_v43 }
 0x295 PF: > { %s14_s15 = sadd.s32 1, %s2343_s15  }
 0x296   : > { %p11_p4 = scmp.ge.s32.totalorder %s14_s15, 4  }
 0x298   :  { %13 = sbr.rel (!%p11_p4) target bundleno = 1 (0x1), region = 75 }

// kernel: cmodel_forward.7
= control target key start
LH: loop header
LB: loop body
LE: loop exit
PB: predicated region body
PF: predicated region fallthrough
CT: control target
= control target key end

     0   :  { %vm327_vm0 = vcmask 1042432   ;;  %vm1364_vm1 = vcmask 129028   ;;  %v3049_v3 = vmov 0.0   ;;  %vm176_vm3 = vcmask 23552   ;;  %s3770_s0 = inlined_call_operand.vmem [shape: f32[2,3,400], index: 0, kind: input, shape index: {}]   ;;  %s3771_s1 = inlined_call_operand.vmem [shape: f32[2,3,12], index: 1, kind: input, shape index: {}]   ;;  %s3772_s7 = inlined_call_operand.vmem [shape: f32[2,3,400], index: 7, kind: input, shape index: {}]   ;;  %s3773_s8 = inlined_call_operand.vmem [shape: f32[2,3,400], index: 8, kind: input, shape index: {}]   ;;  %s3774_s9 = inlined_call_operand.vmem [shape: f32[2,3,400], index: 9, kind: output, shape index: {}]   ;;  %s3775_s2 = inlined_call_operand.vmem [shape: f32[2,1,12], index: 2, kind: input, shape index: {}]   ;;  %s3776_s3 = inlined_call_operand.vmem [shape: f32[3,2,12], index: 3, kind: input, shape index: {}]   ;;  %s3777_s4 = inlined_call_operand.vmem [shape: f32[3,2,12], index: 4, kind: input, shape index: {}]   ;;  %s3778_s5 = inlined_call_operand.vmem [shape: f32[3,2,12], index: 5, kind: input, shape index: {}]   ;;  %s3779_s6 = inlined_call_operand.vmem [shape: f32[2,12], index: 6, kind: input, shape index: {}]  }
   0x1   :  { %v32_v0 = vld [vmem:[%s3770_s0] sm:$0x77]  ;;  %1363 = vst [vmem:[%s3774_s9] sm:$0x77] %v3049_v3  ;;  %vm3116_vm2 = vmor %vm1364_vm1, %vm327_vm0  ;;  %v2494_v5 = vld [vmem:[%s3770_s0 + $0x10] sm:$0x77]  ;;  %vm646_vm4 = vcmask 97280  }
   0x2   :  { %40 = vxpose.xlu0.b32.start.end [1/1] (short) %v32_v0, 128  ;;  %v36_v1 = vcombine.high %v32_v0, %v32_v0  ;;  %v168_v2 = vld [vmem:[%s3771_s1] sm:$0x7]  ;;  %1367 = vst [vmem:[%s3774_s9 + $0x10] sm:$0x77] %v3049_v3  ;;  %1366 = vst.msk [vmem:[%s3774_s9 + $0x8] sm:$0x77] %vm3116_vm2, %v3049_v3  ;;  %v702_v6 = vcombine.high %v2494_v5, %v2494_v5 }
   0x3   :  { %2695 = vmatprep.subr.msk.mxu0 %vm327_vm0, %v168_v2  ;;  %1368 = vst.msk [vmem:[%s3774_s9 + $0x18] sm:$0x77] %vm3116_vm2, %v3049_v3  ;;  %v2496_v7 = vld [vmem:[%s3771_s1 + $0x4] sm:$0x7]  ;;  %v33_v8 = vld [vmem:[%s3770_s0 + $0x8] sm:$0x77] }
   0x4   :  { %72 = vxpose.xlu1.b32.start.end [1/1] (short) %v36_v1, 128  ;;  %2696 = vmatpush3.msk.msra.mxu0 %vm327_vm0, %v168_v2  ;;  %v2495_v9 = vld [vmem:[%s3770_s0 + $0x18] sm:$0x77]  ;;  %v37_v36 = vcombine.high %v33_v8, %v33_v8 }
   0x5   :  { %2772 = vmatprep.subr.msk.mxu1 %vm327_vm0, %v2496_v7  ;;  %v703_v38 = vcombine.high %v2495_v9, %v2495_v9 }
   0x6   :  { %2773 = vmatpush3.msk.msra.mxu1 %vm327_vm0, %v2496_v7 }
  0x3f   :  { %706 = vxpose.xlu0.b32.start.end [1/1] (short) %v2494_v5, 128 }
  0x41   :  { %738 = vxpose.xlu1.b32.start.end [1/1] (short) %v702_v6, 128 }
  0x7c   :  { %104 = vxpose.xlu0.b32.start.end [1/1] (short) %v33_v8, 128 }
  0x7e   :  { %770 = vxpose.xlu1.b32.start.end [1/1] (short) %v2495_v9, 128 }
  0x82   :  { %v56_v10 = vpop.trf.xlu0 }
  0x83   :  { %2697 = vmatprep.mubr.msk.f32.mxu0 %vm176_vm3, %v56_v10 }
  0x84   :  { %v88_v11 = vpop.trf.xlu1 }
  0x86   :  { %v57_v12 = vpop.trf.xlu0 }
  0x87   :  { %2698 = vmatmul.mubr.msk.f32.vlgmr.msra.gmra.mrb[0].mxu0 %vm176_vm3, %v57_v12 }
  0x88   :  { %v89_v13 = vpop.trf.xlu1 }
  0x8a   :  { %v58_v14 = vpop.trf.xlu0 }
  0x8b   :  { %2700 = vmatprep.mubr.msk.f32.mxu0 %vm176_vm3, %v58_v14 }
  0x8c   :  { %v90_v15 = vpop.trf.xlu1 }
  0x8e   :  { %v59_v16 = vpop.trf.xlu0 }
  0x8f   :  { %2701 = vmatmul.mubr.msk.f32.gmra.mrb[2].mxu0 %vm176_vm3, %v59_v16 }
  0x90   :  { %v91_v17 = vpop.trf.xlu1 }
  0x92   :  { %v60_v18 = vpop.trf.xlu0 }
  0x93   :  { %2703 = vmatprep.mubr.msk.f32.mxu0 %vm176_vm3, %v60_v18 }
  0x94   :  { %v92_v19 = vpop.trf.xlu1 }
  0x96   :  { %v61_v20 = vpop.trf.xlu0 }
  0x97   :  { %2704 = vmatmul.mubr.msk.f32.gmra.mrb[4].mxu0 %vm176_vm3, %v61_v20 }
  0x98   :  { %v93_v21 = vpop.trf.xlu1 }
  0x9a   :  { %v62_v22 = vpop.trf.xlu0 }
  0x9b   :  { %2706 = vmatprep.mubr.msk.f32.mxu0 %vm176_vm3, %v62_v22 }
  0x9c   :  { %v94_v23 = vpop.trf.xlu1 }
  0x9e   :  { %v63_v24 = vpop.trf.xlu0 }
  0x9f   :  { %2707 = vmatmul.mubr.msk.f32.gmra.mrb[6].mxu0 %vm176_vm3, %v63_v24 }
  0xa0   :  { %v95_v25 = vpop.trf.xlu1 }
  0xa2   :  { %v64_v26 = vpop.trf.xlu0 }
  0xa3   :  { %2709 = vmatprep.mubr.msk.f32.mxu0 %vm176_vm3, %v64_v26 }
  0xa4   :  { %v96_v27 = vpop.trf.xlu1 }
  0xa6   :  { %v65_v28 = vpop.trf.xlu0 }
  0xa7   :  { %2710 = vmatmul.mubr.msk.f32.gmra.mrb[8].mxu0 %vm176_vm3, %v65_v28 }
  0xa8   :  { %v97_v29 = vpop.trf.xlu1 }
  0xaa   :  { %v66_v30 = vpop.trf.xlu0 }
  0xab   :  { %2712 = vmatprep.mubr.msk.f32.mxu0 %vm176_vm3, %v66_v30 }
  0xac   :  { %v98_v31 = vpop.trf.xlu1 }
  0xae   :  { %v67_v32 = vpop.trf.xlu0 }
  0xaf   :  { %2713 = vmatmul.mubr.msk.f32.gmra.mrb[10].mxu0 %vm176_vm3, %v67_v32 }
  0xb0   :  { %v99_v33 = vpop.trf.xlu1 }
  0xb2   :  { %v68_v34 = vpop.trf.xlu0 }
  0xb3   :  { %2715 = vmatprep.mubr.msk.f32.mxu0 %vm176_vm3, %v68_v34 }
  0xb4   :  { %v100_v35 = vpop.trf.xlu1 }
  0xb6   :  { %v69_v37 = vpop.trf.xlu0 }
  0xb7   :  { %2716 = vmatmul.mubr.msk.f32.gmra.mrb[12].mxu0 %vm176_vm3, %v69_v37 }
  0xb8   :  { %v101_v39 = vpop.trf.xlu1 }
  0xb9   :  { %136 = vxpose.xlu0.b32.start.end [1/1] (short) (narrow) %v37_v36, 16 }
  0xba   :  { %v70_v40 = vpop.trf.xlu0 }
  0xbb   :  { %2718 = vmatprep.mubr.msk.f32.mxu0 %vm176_vm3, %v70_v40  ;;  %802 = vxpose.xlu1.b32.start.end [1/1] (short) (narrow) %v703_v38, 16 }
  0xbc   :  { %v102_v41 = vpop.trf.xlu1 }
  0xbe   :  { %v71_v42 = vpop.trf.xlu0 }
  0xbf   :  { %2719 = vmatmul.mubr.msk.f32.gmra.mrb[14].mxu0 %vm176_vm3, %v71_v42 }
  0xc0   :  { %2721 = vmatprep.mubr.msk.f32.mxu0 %vm176_vm3, %v88_v11  ;;  %v103_v43 = vpop.trf.xlu1 }
  0xc2   :  { %v722_v44 = vpop.trf.xlu0 }
  0xc3   :  { %2722 = vmatmul.mubr.msk.f32.gmra.mrb[16].mxu0 %vm176_vm3, %v89_v13  ;;  %2774 = vmatprep.mubr.msk.f32.mxu1 %vm176_vm3, %v722_v44 }
  0xc4   :  { %2724 = vmatprep.mubr.msk.f32.mxu0 %vm176_vm3, %v90_v15  ;;  %v754_v45 = vpop.trf.xlu1 }
  0xc6   :  { %v723_v46 = vpop.trf.xlu0 }
  0xc7   :  { %2725 = vmatmul.mubr.msk.f32.gmra.mrb[18].mxu0 %vm176_vm3, %v91_v17  ;;  %2775 = vmatmul.mubr.msk.f32.vlgmr.msra.gmra.mrb[0].mxu1 %vm176_vm3, %v723_v46 }
  0xc8   :  { %2727 = vmatprep.mubr.msk.f32.mxu0 %vm176_vm3, %v92_v19  ;;  %v755_v47 = vpop.trf.xlu1 }
  0xca   :  { %v724_v48 = vpop.trf.xlu0 }
  0xcb   :  { %2728 = vmatmul.mubr.msk.f32.gmra.mrb[20].mxu0 %vm176_vm3, %v93_v21  ;;  %2777 = vmatprep.mubr.msk.f32.mxu1 %vm176_vm3, %v724_v48 }
  0xcc   :  { %2730 = vmatprep.mubr.msk.f32.mxu0 %vm176_vm3, %v94_v23  ;;  %v756_v49 = vpop.trf.xlu1 }
  0xce   :  { %v725_v50 = vpop.trf.xlu0 }
  0xcf   :  { %2731 = vmatmul.mubr.msk.f32.gmra.mrb[22].mxu0 %vm176_vm3, %v95_v25  ;;  %2778 = vmatmul.mubr.msk.f32.gmra.mrb[2].mxu1 %vm176_vm3, %v725_v50 }
  0xd0   :  { %2733 = vmatprep.mubr.msk.f32.mxu0 %vm176_vm3, %v96_v27  ;;  %v757_v51 = vpop.trf.xlu1 }
  0xd2   :  { %v726_v52 = vpop.trf.xlu0 }
  0xd3   :  { %2734 = vmatmul.mubr.msk.f32.gmra.mrb[24].mxu0 %vm176_vm3, %v97_v29  ;;  %2780 = vmatprep.mubr.msk.f32.mxu1 %vm176_vm3, %v726_v52 }
  0xd4   :  { %2736 = vmatprep.mubr.msk.f32.mxu0 %vm176_vm3, %v98_v31  ;;  %v758_v53 = vpop.trf.xlu1 }
  0xd6   :  { %v727_v54 = vpop.trf.xlu0 }
  0xd7   :  { %2737 = vmatmul.mubr.msk.f32.gmra.mrb[26].mxu0 %vm176_vm3, %v99_v33  ;;  %2781 = vmatmul.mubr.msk.f32.gmra.mrb[4].mxu1 %vm176_vm3, %v727_v54 }
  0xd8   :  { %2739 = vmatprep.mubr.msk.f32.mxu0 %vm176_vm3, %v100_v35  ;;  %v759_v55 = vpop.trf.xlu1 }
  0xda   :  { %v728_v56 = vpop.trf.xlu0 }
  0xdb   :  { %2740 = vmatmul.mubr.msk.f32.gmra.mrb[28].mxu0 %vm176_vm3, %v101_v39  ;;  %2783 = vmatprep.mubr.msk.f32.mxu1 %vm176_vm3, %v728_v56 }
  0xdc   :  { %2742 = vmatprep.mubr.msk.f32.mxu0 %vm176_vm3, %v102_v41  ;;  %v760_v57 = vpop.trf.xlu1 }
  0xde   :  { %v729_v58 = vpop.trf.xlu0 }
  0xdf   :  { %2743 = vmatmul.mubr.msk.f32.gmra.mrb[30].mxu0 %vm176_vm3, %v103_v43  ;;  %2784 = vmatmul.mubr.msk.f32.gmra.mrb[6].mxu1 %vm176_vm3, %v729_v58 }
  0xe0   :  { %v761_v59 = vpop.trf.xlu1 }
  0xe2   :  { %v730_v60 = vpop.trf.xlu0 }
  0xe3   :  { %2786 = vmatprep.mubr.msk.f32.mxu1 %vm176_vm3, %v730_v60 }
  0xe4   :  { %v762_v61 = vpop.trf.xlu1 }
  0xe6   :  { %v731_v62 = vpop.trf.xlu0 }
  0xe7   :  { %2787 = vmatmul.mubr.msk.f32.gmra.mrb[8].mxu1 %vm176_vm3, %v731_v62 }
  0xe8   :  { %v763_v63 = vpop.trf.xlu1 }
  0xea   :  { %v732_v0 = vpop.trf.xlu0 }
  0xeb   :  { %2789 = vmatprep.mubr.msk.f32.mxu1 %vm176_vm3, %v732_v0 }
  0xec   :  { %v764_v1 = vpop.trf.xlu1 }
  0xee   :  { %v733_v2 = vpop.trf.xlu0 }
  0xef   :  { %2790 = vmatmul.mubr.msk.f32.gmra.mrb[10].mxu1 %vm176_vm3, %v733_v2 }
  0xf0   :  { %v765_v3 = vpop.trf.xlu1 }
  0xf2   :  { %v734_v5 = vpop.trf.xlu0 }
  0xf3   :  { %2792 = vmatprep.mubr.msk.f32.mxu1 %vm176_vm3, %v734_v5 }
  0xf4   :  { %v766_v6 = vpop.trf.xlu1 }
  0xf6   :  { %v735_v7 = vpop.trf.xlu0 }
  0xf7   :  { %2793 = vmatmul.mubr.msk.f32.gmra.mrb[12].mxu1 %vm176_vm3, %v735_v7 }
  0xf8   :  { %v767_v8 = vpop.trf.xlu1 }
  0xfa   :  { %v736_v9 = vpop.trf.xlu0 }
  0xfb   :  { %2795 = vmatprep.mubr.msk.f32.mxu1 %vm176_vm3, %v736_v9 }
  0xfc   :  { %v768_v10 = vpop.trf.xlu1 }
  0xfe   :  { %v737_v11 = vpop.trf.xlu0 }
  0xff   :  { %2796 = vmatmul.mubr.msk.f32.gmra.mrb[14].mxu1 %vm176_vm3, %v737_v11 }
 0x100   :  { %2798 = vmatprep.mubr.msk.f32.mxu1 %vm176_vm3, %v754_v45  ;;  %v769_v12 = vpop.trf.xlu1 }
 0x102   :  { %v120_v13 = vpop.trf.xlu0 }
 0x103   :  { %2799 = vmatmul.mubr.msk.f32.gmra.mrb[16].mxu1 %vm176_vm3, %v755_v47  ;;  %2745 = vmatprep.mubr.msk.f32.mxu0 %vm176_vm3, %v120_v13 }
 0x104   :  { %2801 = vmatprep.mubr.msk.f32.mxu1 %vm176_vm3, %v756_v49  ;;  %v786_v14 = vpop.trf.xlu1  ;;  %v3252_v49 = vld [vmem:[%s3775_s2] ss:$0 sm:$0xff] }
 0x106   :  { %v121_v15 = vpop.trf.xlu0 }
 0x107   :  { %2802 = vmatmul.mubr.msk.f32.gmra.mrb[18].mxu1 %vm176_vm3, %v757_v51  ;;  %2746 = vmatmul.mubr.msk.f32.gmra.mrb[32].mxu0 %vm176_vm3, %v121_v15 }
 0x108   :  { %2804 = vmatprep.mubr.msk.f32.mxu1 %vm176_vm3, %v758_v53  ;;  %v787_v16 = vpop.trf.xlu1 }
 0x10a   :  { %v122_v17 = vpop.trf.xlu0 }
 0x10b   :  { %2805 = vmatmul.mubr.msk.f32.gmra.mrb[20].mxu1 %vm176_vm3, %v759_v55  ;;  %2748 = vmatprep.mubr.msk.f32.mxu0 %vm176_vm3, %v122_v17 }
 0x10c   :  { %2807 = vmatprep.mubr.msk.f32.mxu1 %vm176_vm3, %v760_v57  ;;  %v788_v18 = vpop.trf.xlu1 }
 0x10e   :  { %v123_v19 = vpop.trf.xlu0 }
 0x10f   :  { %2808 = vmatmul.mubr.msk.f32.gmra.mrb[22].mxu1 %vm176_vm3, %v761_v59  ;;  %2749 = vmatmul.mubr.msk.f32.gmra.mrb[34].mxu0 %vm176_vm3, %v123_v19 }
 0x110   :  { %2810 = vmatprep.mubr.msk.f32.mxu1 %vm176_vm3, %v762_v61  ;;  %v789_v20 = vpop.trf.xlu1 }
 0x112   :  { %v124_v21 = vpop.trf.xlu0 }
 0x113   :  { %2811 = vmatmul.mubr.msk.f32.gmra.mrb[24].mxu1 %vm176_vm3, %v763_v63  ;;  %2751 = vmatprep.mubr.msk.f32.mxu0 %vm176_vm3, %v124_v21 }
 0x114   :  { %2813 = vmatprep.mubr.msk.f32.mxu1 %vm176_vm3, %v764_v1  ;;  %v790_v22 = vpop.trf.xlu1 }
 0x116   :  { %v125_v23 = vpop.trf.xlu0 }
 0x117   :  { %2814 = vmatmul.mubr.msk.f32.gmra.mrb[26].mxu1 %vm176_vm3, %v765_v3  ;;  %2752 = vmatmul.mubr.msk.f32.gmra.mrb[36].mxu0 %vm176_vm3, %v125_v23  ;;  %v3291_v23 = vld [vmem:[%s3775_s2 + $0x1] ss:$0 sm:$0xff] }
 0x118   :  { %2816 = vmatprep.mubr.msk.f32.mxu1 %vm176_vm3, %v766_v6  ;;  %v791_v24 = vpop.trf.xlu1 }
 0x11a   :  { %v126_v25 = vpop.trf.xlu0 }
 0x11b   :  { %2817 = vmatmul.mubr.msk.f32.gmra.mrb[28].mxu1 %vm176_vm3, %v767_v8  ;;  %2754 = vmatprep.mubr.msk.f32.mxu0 %vm176_vm3, %v126_v25 }
 0x11c   :  { %2819 = vmatprep.mubr.msk.f32.mxu1 %vm176_vm3, %v768_v10  ;;  %v792_v26 = vpop.trf.xlu1 }
 0x11e   :  { %v127_v27 = vpop.trf.xlu0 }
 0x11f   :  { %2820 = vmatmul.mubr.msk.f32.gmra.mrb[30].mxu1 %vm176_vm3, %v769_v12  ;;  %2755 = vmatmul.mubr.msk.f32.gmra.mrb[38].mxu0 %vm176_vm3, %v127_v27 }
 0x120   :  { %2822 = vmatprep.mubr.msk.f32.mxu1 %vm176_vm3, %v786_v14  ;;  %v793_v28 = vpop.trf.xlu1 }
 0x122   :  { %v128_v29 = vpop.trf.xlu0 }
 0x123   :  { %2823 = vmatmul.mubr.msk.f32.gmra.mrb[32].mxu1 %vm176_vm3, %v787_v16  ;;  %2757 = vmatprep.mubr.msk.f32.mxu0 %vm176_vm3, %v128_v29 }
 0x124   :  { %2825 = vmatprep.mubr.msk.f32.mxu1 %vm176_vm3, %v788_v18  ;;  %v794_v30 = vpop.trf.xlu1 }
 0x126   :  { %v129_v31 = vpop.trf.xlu0 }
 0x127   :  { %2826 = vmatmul.mubr.msk.f32.gmra.mrb[34].mxu1 %vm176_vm3, %v789_v20  ;;  %2758 = vmatmul.mubr.msk.f32.gmra.mrb[40].mxu0 %vm176_vm3, %v129_v31 }
 0x128   :  { %2828 = vmatprep.mubr.msk.f32.mxu1 %vm176_vm3, %v790_v22  ;;  %v795_v32 = vpop.trf.xlu1 }
 0x12a   :  { %v130_v33 = vpop.trf.xlu0 }
 0x12b   :  { %2829 = vmatmul.mubr.msk.f32.gmra.mrb[36].mxu1 %vm176_vm3, %v791_v24  ;;  %2760 = vmatprep.mubr.msk.f32.mxu0 %vm176_vm3, %v130_v33 }
 0x12c   :  { %2831 = vmatprep.mubr.msk.f32.mxu1 %vm176_vm3, %v792_v26  ;;  %v796_v34 = vpop.trf.xlu1 }
 0x12e   :  { %v131_v35 = vpop.trf.xlu0 }
 0x12f   :  { %2832 = vmatmul.mubr.msk.f32.gmra.mrb[38].mxu1 %vm176_vm3, %v793_v28  ;;  %2761 = vmatmul.mubr.msk.f32.gmra.mrb[42].mxu0 %vm176_vm3, %v131_v35 }
 0x130   :  { %2834 = vmatprep.mubr.msk.f32.mxu1 %vm176_vm3, %v794_v30  ;;  %v797_v36 = vpop.trf.xlu1 }
 0x132   :  { %v132_v37 = vpop.trf.xlu0 }
 0x133   :  { %2835 = vmatmul.mubr.msk.f32.gmra.mrb[40].mxu1 %vm176_vm3, %v795_v32  ;;  %2763 = vmatprep.mubr.msk.f32.mxu0 %vm176_vm3, %v132_v37  ;;  %v3313_v37 = vld [vmem:[%s3776_s3 + $0x2] sm:$0x3] }
 0x134   :  { %2837 = vmatprep.mubr.msk.f32.mxu1 %vm176_vm3, %v796_v34  ;;  %v798_v38 = vpop.trf.xlu1 }
 0x136   :  { %v133_v39 = vpop.trf.xlu0 }
 0x137   :  { %2838 = vmatmul.mubr.msk.f32.gmra.mrb[42].mxu1 %vm176_vm3, %v797_v36  ;;  %2764 = vmatmul.mubr.msk.f32.gmra.mrb[44].mxu0 %vm176_vm3, %v133_v39  ;;  %v3308_v36 = vld [vmem:[%s3776_s3] sm:$0x3] }
 0x138   :  { %2840 = vmatprep.mubr.msk.f32.mxu1 %vm176_vm3, %v798_v38  ;;  %v799_v40 = vpop.trf.xlu1  ;;  %v3318_v38 = vld [vmem:[%s3776_s3 + $0x4] sm:$0x3]  ;;  %v3324_v39 = vld [vmem:[%s3777_s4] sm:$0x3] }
 0x13a   :  { %v134_v41 = vpop.trf.xlu0 }
 0x13b   :  { %2841 = vmatmul.mubr.msk.f32.gmra.mrb[44].mxu1 %vm176_vm3, %v799_v40  ;;  %2766 = vmatprep.mubr.msk.f32.mxu0 %vm176_vm3, %v134_v41  ;;  %v3329_v40 = vld [vmem:[%s3777_s4 + $0x2] sm:$0x3]  ;;  %v3334_v41 = vld [vmem:[%s3777_s4 + $0x4] sm:$0x3] }
 0x13c   :  { %v800_v42 = vpop.trf.xlu1 }
 0x13d   :  { %2843 = vmatprep.mubr.msk.f32.mxu1 %vm176_vm3, %v800_v42 }
 0x13e   :  { %v135_v43 = vpop.trf.xlu0 }
 0x13f   :  { %2767 = vmatmul.mubr.msk.f32.gmra.mrb[46].mxu0 %vm176_vm3, %v135_v43 }
 0x140   :  { %v801_v44 = vpop.trf.xlu1 }
 0x141   :  { %2844 = vmatmul.mubr.msk.f32.gmra.mrb[46].mxu1 %vm176_vm3, %v801_v44  ;;  %v3340_v44 = vld [vmem:[%s3778_s5] sm:$0x3] }
 0x142   :  { %v152_v45 = vpop.trf.xlu0 }
 0x143   :  { %2769 = vmatprep.mubr.msk.f32.mxu0 %vm176_vm3, %v152_v45  ;;  %v3345_v45 = vld [vmem:[%s3778_s5 + $0x2] sm:$0x3] }
 0x144   :  { %v818_v46 = vpop.trf.xlu1 }
 0x145   :  { %2846 = vmatprep.mubr.msk.f32.mxu1 %vm176_vm3, %v818_v46 }
 0x146   :  { %v153_v47 = vpop.trf.xlu0 }
 0x147   :  { %2770 = vmatmul.mubr.msk.f32.gmra.mrb[48].mxu0 %vm176_vm3, %v153_v47 }
 0x148   :  { %v819_v48 = vpop.trf.xlu1 }
 0x149   :  { %2847 = vmatmul.mubr.msk.f32.gmra.mrb[48].mxu1 %vm176_vm3, %v819_v48 }
 0x15a   :  { %v2699_v50 = vpop.f32.mrb[0].mxu0 }
 0x15b   :  { %v403_v51 = vadd.f32 %v2699_v50, %v3252_v49  ;;  %v397_v52 = vpop.f32.mrb[1].mxu0 }
 0x15c   :  { %v398_v53 = vadd.f32 %v3252_v49, %v397_v52  ;;  %v3357_v52 = vld [vmem:[%s3779_s6] sm:$0x3] }
 0x15d   :  { %648 = vst.msk [vmem:[#allocation2 + $0x8] sm:$0xff] %vm646_vm4, %v403_v51  ;;  %v3352_v51 = vld [vmem:[%s3778_s5 + $0x4] sm:$0x3]  ;;  %s3517_s5 = smov 0  }
 0x15e   :  { %647 = vst.msk [vmem:[#allocation2] sm:$0xff] %vm646_vm4, %v398_v53 }
 0x162   :  { %v2702_v54 = vpop.f32.mrb[2].mxu0 }
 0x163   :  { %v413_v55 = vadd.f32 %v2702_v54, %v3252_v49  ;;  %v407_v56 = vpop.f32.mrb[3].mxu0 }
 0x164   :  { %v408_v57 = vadd.f32 %v3252_v49, %v407_v56 }
 0x165   :  { %650 = vst.msk [vmem:[#allocation2 + $0x18] sm:$0xff] %vm646_vm4, %v413_v55 }
 0x166   :  { %649 = vst.msk [vmem:[#allocation2 + $0x10] sm:$0xff] %vm646_vm4, %v408_v57 }
 0x16a   :  { %v2705_v58 = vpop.f32.mrb[4].mxu0 }
 0x16b   :  { %v423_v59 = vadd.f32 %v2705_v58, %v3252_v49  ;;  %v417_v60 = vpop.f32.mrb[5].mxu0 }
 0x16c   :  { %v418_v61 = vadd.f32 %v3252_v49, %v417_v60 }
 0x16d   :  { %652 = vst.msk [vmem:[#allocation2 + $0x28] sm:$0xff] %vm646_vm4, %v423_v59 }
 0x16e   :  { %651 = vst.msk [vmem:[#allocation2 + $0x20] sm:$0xff] %vm646_vm4, %v418_v61 }
 0x172   :  { %v2708_v62 = vpop.f32.mrb[6].mxu0 }
 0x173   :  { %v433_v63 = vadd.f32 %v2708_v62, %v3252_v49  ;;  %v427_v0 = vpop.f32.mrb[7].mxu0 }
 0x174   :  { %v428_v1 = vadd.f32 %v3252_v49, %v427_v0 }
 0x175   :  { %654 = vst.msk [vmem:[#allocation2 + $0x38] sm:$0xff] %vm646_vm4, %v433_v63 }
 0x176   :  { %653 = vst.msk [vmem:[#allocation2 + $0x30] sm:$0xff] %vm646_vm4, %v428_v1 }
 0x17a   :  { %v2711_v2 = vpop.f32.mrb[8].mxu0 }
 0x17b   :  { %v443_v3 = vadd.f32 %v2711_v2, %v3252_v49  ;;  %v437_v5 = vpop.f32.mrb[9].mxu0 }
 0x17c   :  { %v438_v6 = vadd.f32 %v3252_v49, %v437_v5 }
 0x17d   :  { %656 = vst.msk [vmem:[#allocation2 + $0x48] sm:$0xff] %vm646_vm4, %v443_v3 }
 0x17e   :  { %655 = vst.msk [vmem:[#allocation2 + $0x40] sm:$0xff] %vm646_vm4, %v438_v6 }
 0x182   :  { %v2714_v7 = vpop.f32.mrb[10].mxu0 }
 0x183   :  { %v453_v8 = vadd.f32 %v2714_v7, %v3252_v49  ;;  %v447_v9 = vpop.f32.mrb[11].mxu0 }
 0x184   :  { %v448_v10 = vadd.f32 %v3252_v49, %v447_v9 }
 0x185   :  { %658 = vst.msk [vmem:[#allocation2 + $0x58] sm:$0xff] %vm646_vm4, %v453_v8 }
 0x186   :  { %657 = vst.msk [vmem:[#allocation2 + $0x50] sm:$0xff] %vm646_vm4, %v448_v10 }
 0x18a   :  { %v2717_v11 = vpop.f32.mrb[12].mxu0 }
 0x18b   :  { %v463_v12 = vadd.f32 %v2717_v11, %v3252_v49  ;;  %v457_v13 = vpop.f32.mrb[13].mxu0 }
 0x18c   :  { %v458_v14 = vadd.f32 %v3252_v49, %v457_v13 }
 0x18d   :  { %660 = vst.msk [vmem:[#allocation2 + $0x68] sm:$0xff] %vm646_vm4, %v463_v12 }
 0x18e   :  { %659 = vst.msk [vmem:[#allocation2 + $0x60] sm:$0xff] %vm646_vm4, %v458_v14 }
 0x192   :  { %v2720_v15 = vpop.f32.mrb[14].mxu0 }
 0x193   :  { %v473_v16 = vadd.f32 %v2720_v15, %v3252_v49  ;;  %v467_v17 = vpop.f32.mrb[15].mxu0 }
 0x194   :  { %v468_v18 = vadd.f32 %v3252_v49, %v467_v17 }
 0x195   :  { %662 = vst.msk [vmem:[#allocation2 + $0x78] sm:$0xff] %vm646_vm4, %v473_v16 }
 0x196   :  { %661 = vst.msk [vmem:[#allocation2 + $0x70] sm:$0xff] %vm646_vm4, %v468_v18  ;;  %v2723_v19 = vpop.f32.mrb[16].mxu0 }
 0x197   :  { %v483_v20 = vadd.f32 %v2723_v19, %v3252_v49  ;;  %v477_v21 = vpop.f32.mrb[17].mxu0 }
 0x198   :  { %v478_v22 = vadd.f32 %v3252_v49, %v477_v21 }
 0x199   :  { %664 = vst.msk [vmem:[#allocation2 + $0x88] sm:$0xff] %vm646_vm4, %v483_v20 }
 0x19a   :  { %663 = vst.msk [vmem:[#allocation2 + $0x80] sm:$0xff] %vm646_vm4, %v478_v22  ;;  %v2726_v24 = vpop.f32.mrb[18].mxu0  ;;  %v2776_v25 = vpop.f32.mrb[0].mxu1 }
 0x19b   :  { %v493_v26 = vadd.f32 %v2726_v24, %v3252_v49  ;;  %v487_v27 = vpop.f32.mrb[19].mxu0  ;;  %v1069_v28 = vadd.f32 %v2776_v25, %v3291_v23  ;;  %v1063_v29 = vpop.f32.mrb[1].mxu1 }
 0x19c   :  { %v488_v30 = vadd.f32 %v3252_v49, %v487_v27  ;;  %v1064_v31 = vadd.f32 %v3291_v23, %v1063_v29 }
 0x19d   :  { %666 = vst.msk [vmem:[#allocation2 + $0x98] sm:$0xff] %vm646_vm4, %v493_v26  ;;  %1314 = vst.msk [vmem:[#allocation2 + $0x198] sm:$0xff] %vm646_vm4, %v1069_v28 }
 0x19e   :  { %665 = vst.msk [vmem:[#allocation2 + $0x90] sm:$0xff] %vm646_vm4, %v488_v30  ;;  %1313 = vst.msk [vmem:[#allocation2 + $0x190] sm:$0xff] %vm646_vm4, %v1064_v31  ;;  %v2729_v32 = vpop.f32.mrb[20].mxu0 }
 0x19f   :  { %v503_v33 = vadd.f32 %v2729_v32, %v3252_v49  ;;  %v497_v34 = vpop.f32.mrb[21].mxu0 }
 0x1a0   :  { %v498_v35 = vadd.f32 %v3252_v49, %v497_v34 }
 0x1a1   :  { %668 = vst.msk [vmem:[#allocation2 + $0xa8] sm:$0xff] %vm646_vm4, %v503_v33 }
 0x1a2   :  { %667 = vst.msk [vmem:[#allocation2 + $0xa0] sm:$0xff] %vm646_vm4, %v498_v35  ;;  %v2732_v42 = vpop.f32.mrb[22].mxu0  ;;  %v2779_v43 = vpop.f32.mrb[2].mxu1 }
 0x1a3   :  { %v513_v46 = vadd.f32 %v2732_v42, %v3252_v49  ;;  %v507_v47 = vpop.f32.mrb[23].mxu0  ;;  %v1079_v48 = vadd.f32 %v2779_v43, %v3291_v23  ;;  %v1073_v50 = vpop.f32.mrb[3].mxu1 }
 0x1a4   :  { %v508_v53 = vadd.f32 %v3252_v49, %v507_v47  ;;  %v1074_v54 = vadd.f32 %v3291_v23, %v1073_v50 }
 0x1a5   :  { %670 = vst.msk [vmem:[#allocation2 + $0xb8] sm:$0xff] %vm646_vm4, %v513_v46  ;;  %1316 = vst.msk [vmem:[#allocation2 + $0x1a8] sm:$0xff] %vm646_vm4, %v1079_v48 }
 0x1a6   :  { %669 = vst.msk [vmem:[#allocation2 + $0xb0] sm:$0xff] %vm646_vm4, %v508_v53  ;;  %1315 = vst.msk [vmem:[#allocation2 + $0x1a0] sm:$0xff] %vm646_vm4, %v1074_v54  ;;  %v2735_v55 = vpop.f32.mrb[24].mxu0 }
 0x1a7   :  { %v523_v56 = vadd.f32 %v2735_v55, %v3252_v49  ;;  %v517_v57 = vpop.f32.mrb[25].mxu0 }
 0x1a8   :  { %v518_v58 = vadd.f32 %v3252_v49, %v517_v57 }
 0x1a9   :  { %672 = vst.msk [vmem:[#allocation2 + $0xc8] sm:$0xff] %vm646_vm4, %v523_v56 }
 0x1aa   :  { %671 = vst.msk [vmem:[#allocation2 + $0xc0] sm:$0xff] %vm646_vm4, %v518_v58  ;;  %v2738_v59 = vpop.f32.mrb[26].mxu0  ;;  %v2782_v60 = vpop.f32.mrb[4].mxu1 }
 0x1ab   :  { %v533_v61 = vadd.f32 %v2738_v59, %v3252_v49  ;;  %v527_v62 = vpop.f32.mrb[27].mxu0  ;;  %v1089_v63 = vadd.f32 %v2782_v60, %v3291_v23  ;;  %v1083_v0 = vpop.f32.mrb[5].mxu1 }
 0x1ac   :  { %v528_v1 = vadd.f32 %v3252_v49, %v527_v62  ;;  %v1084_v2 = vadd.f32 %v3291_v23, %v1083_v0 }
 0x1ad   :  { %674 = vst.msk [vmem:[#allocation2 + $0xd8] sm:$0xff] %vm646_vm4, %v533_v61  ;;  %1318 = vst.msk [vmem:[#allocation2 + $0x1b8] sm:$0xff] %vm646_vm4, %v1089_v63 }
 0x1ae   :  { %673 = vst.msk [vmem:[#allocation2 + $0xd0] sm:$0xff] %vm646_vm4, %v528_v1  ;;  %1317 = vst.msk [vmem:[#allocation2 + $0x1b0] sm:$0xff] %vm646_vm4, %v1084_v2  ;;  %v2741_v3 = vpop.f32.mrb[28].mxu0 }
 0x1af   :  { %v543_v5 = vadd.f32 %v2741_v3, %v3252_v49  ;;  %v537_v6 = vpop.f32.mrb[29].mxu0 }
 0x1b0   :  { %v538_v7 = vadd.f32 %v3252_v49, %v537_v6 }
 0x1b1   :  { %676 = vst.msk [vmem:[#allocation2 + $0xe8] sm:$0xff] %vm646_vm4, %v543_v5 }
 0x1b2   :  { %675 = vst.msk [vmem:[#allocation2 + $0xe0] sm:$0xff] %vm646_vm4, %v538_v7  ;;  %v2744_v8 = vpop.f32.mrb[30].mxu0  ;;  %v2785_v9 = vpop.f32.mrb[6].mxu1 }
 0x1b3   :  { %v553_v10 = vadd.f32 %v2744_v8, %v3252_v49  ;;  %v547_v11 = vpop.f32.mrb[31].mxu0  ;;  %v1099_v12 = vadd.f32 %v2785_v9, %v3291_v23  ;;  %v1093_v13 = vpop.f32.mrb[7].mxu1 }
 0x1b4   :  { %v548_v14 = vadd.f32 %v3252_v49, %v547_v11  ;;  %v1094_v15 = vadd.f32 %v3291_v23, %v1093_v13 }
 0x1b5   :  { %678 = vst.msk [vmem:[#allocation2 + $0xf8] sm:$0xff] %vm646_vm4, %v553_v10  ;;  %1320 = vst.msk [vmem:[#allocation2 + $0x1c8] sm:$0xff] %vm646_vm4, %v1099_v12 }
 0x1b6   :  { %677 = vst.msk [vmem:[#allocation2 + $0xf0] sm:$0xff] %vm646_vm4, %v548_v14  ;;  %1319 = vst.msk [vmem:[#allocation2 + $0x1c0] sm:$0xff] %vm646_vm4, %v1094_v15 }
 0x1ba   :  { %v2788_v16 = vpop.f32.mrb[8].mxu1 }
 0x1bb   :  { %v1109_v17 = vadd.f32 %v2788_v16, %v3291_v23  ;;  %v1103_v18 = vpop.f32.mrb[9].mxu1 }
 0x1bc   :  { %v1104_v19 = vadd.f32 %v3291_v23, %v1103_v18 }
 0x1bd   :  { %1322 = vst.msk [vmem:[#allocation2 + $0x1d8] sm:$0xff] %vm646_vm4, %v1109_v17 }
 0x1be   :  { %1321 = vst.msk [vmem:[#allocation2 + $0x1d0] sm:$0xff] %vm646_vm4, %v1104_v19 }
 0x1c2   :  { %v2791_v20 = vpop.f32.mrb[10].mxu1 }
 0x1c3   :  { %v1119_v21 = vadd.f32 %v2791_v20, %v3291_v23  ;;  %v1113_v22 = vpop.f32.mrb[11].mxu1 }
 0x1c4   :  { %v1114_v24 = vadd.f32 %v3291_v23, %v1113_v22 }
 0x1c5   :  { %1324 = vst.msk [vmem:[#allocation2 + $0x1e8] sm:$0xff] %vm646_vm4, %v1119_v21 }
 0x1c6   :  { %1323 = vst.msk [vmem:[#allocation2 + $0x1e0] sm:$0xff] %vm646_vm4, %v1114_v24 }
 0x1ca   :  { %v2794_v25 = vpop.f32.mrb[12].mxu1 }
 0x1cb   :  { %v1129_v26 = vadd.f32 %v2794_v25, %v3291_v23  ;;  %v1123_v27 = vpop.f32.mrb[13].mxu1 }
 0x1cc   :  { %v1124_v28 = vadd.f32 %v3291_v23, %v1123_v27 }
 0x1cd   :  { %1326 = vst.msk [vmem:[#allocation2 + $0x1f8] sm:$0xff] %vm646_vm4, %v1129_v26 }
 0x1ce   :  { %1325 = vst.msk [vmem:[#allocation2 + $0x1f0] sm:$0xff] %vm646_vm4, %v1124_v28 }
 0x1d2   :  { %v2797_v29 = vpop.f32.mrb[14].mxu1 }
 0x1d3   :  { %v1139_v30 = vadd.f32 %v2797_v29, %v3291_v23  ;;  %v1133_v31 = vpop.f32.mrb[15].mxu1 }
 0x1d4   :  { %v1134_v32 = vadd.f32 %v3291_v23, %v1133_v31 }
 0x1d5   :  { %1328 = vst.msk [vmem:[#allocation2 + $0x208] sm:$0xff] %vm646_vm4, %v1139_v30 }
 0x1d6   :  { %1327 = vst.msk [vmem:[#allocation2 + $0x200] sm:$0xff] %vm646_vm4, %v1134_v32  ;;  %v2800_v33 = vpop.f32.mrb[16].mxu1 }
 0x1d7   :  { %v1149_v34 = vadd.f32 %v2800_v33, %v3291_v23  ;;  %v1143_v35 = vpop.f32.mrb[17].mxu1 }
 0x1d8   :  { %v1144_v42 = vadd.f32 %v3291_v23, %v1143_v35 }
 0x1d9   :  { %1330 = vst.msk [vmem:[#allocation2 + $0x218] sm:$0xff] %vm646_vm4, %v1149_v34 }
 0x1da   :  { %1329 = vst.msk [vmem:[#allocation2 + $0x210] sm:$0xff] %vm646_vm4, %v1144_v42  ;;  %v2803_v43 = vpop.f32.mrb[18].mxu1  ;;  %v2747_v46 = vpop.f32.mrb[32].mxu0 }
 0x1db   :  { %v1159_v47 = vadd.f32 %v2803_v43, %v3291_v23  ;;  %v563_v48 = vadd.f32 %v2747_v46, %v3252_v49  ;;  %v1153_v50 = vpop.f32.mrb[19].mxu1  ;;  %v557_v53 = vpop.f32.mrb[33].mxu0 }
 0x1dc   :  { %v1154_v54 = vadd.f32 %v3291_v23, %v1153_v50  ;;  %v558_v55 = vadd.f32 %v3252_v49, %v557_v53 }
 0x1dd   :  { %1332 = vst.msk [vmem:[#allocation2 + $0x228] sm:$0xff] %vm646_vm4, %v1159_v47  ;;  %680 = vst.msk [vmem:[#allocation2 + $0x108] sm:$0xff] %vm646_vm4, %v563_v48 }
 0x1de   :  { %1331 = vst.msk [vmem:[#allocation2 + $0x220] sm:$0xff] %vm646_vm4, %v1154_v54  ;;  %679 = vst.msk [vmem:[#allocation2 + $0x100] sm:$0xff] %vm646_vm4, %v558_v55  ;;  %v2806_v56 = vpop.f32.mrb[20].mxu1 }
 0x1df   :  { %v1169_v57 = vadd.f32 %v2806_v56, %v3291_v23  ;;  %v1163_v58 = vpop.f32.mrb[21].mxu1 }
 0x1e0   :  { %v1164_v59 = vadd.f32 %v3291_v23, %v1163_v58 }
 0x1e1   :  { %1334 = vst.msk [vmem:[#allocation2 + $0x238] sm:$0xff] %vm646_vm4, %v1169_v57 }
 0x1e2   :  { %1333 = vst.msk [vmem:[#allocation2 + $0x230] sm:$0xff] %vm646_vm4, %v1164_v59  ;;  %v2809_v60 = vpop.f32.mrb[22].mxu1  ;;  %v2750_v61 = vpop.f32.mrb[34].mxu0 }
 0x1e3   :  { %v1179_v62 = vadd.f32 %v2809_v60, %v3291_v23  ;;  %v573_v63 = vadd.f32 %v2750_v61, %v3252_v49  ;;  %v1173_v0 = vpop.f32.mrb[23].mxu1  ;;  %v567_v1 = vpop.f32.mrb[35].mxu0 }
 0x1e4   :  { %v1174_v2 = vadd.f32 %v3291_v23, %v1173_v0  ;;  %v568_v3 = vadd.f32 %v3252_v49, %v567_v1 }
 0x1e5   :  { %1336 = vst.msk [vmem:[#allocation2 + $0x248] sm:$0xff] %vm646_vm4, %v1179_v62  ;;  %682 = vst.msk [vmem:[#allocation2 + $0x118] sm:$0xff] %vm646_vm4, %v573_v63 }
 0x1e6   :  { %1335 = vst.msk [vmem:[#allocation2 + $0x240] sm:$0xff] %vm646_vm4, %v1174_v2  ;;  %681 = vst.msk [vmem:[#allocation2 + $0x110] sm:$0xff] %vm646_vm4, %v568_v3  ;;  %v2812_v5 = vpop.f32.mrb[24].mxu1 }
 0x1e7   :  { %v1189_v6 = vadd.f32 %v2812_v5, %v3291_v23  ;;  %v1183_v7 = vpop.f32.mrb[25].mxu1 }
 0x1e8   :  { %v1184_v8 = vadd.f32 %v3291_v23, %v1183_v7 }
 0x1e9   :  { %1338 = vst.msk [vmem:[#allocation2 + $0x258] sm:$0xff] %vm646_vm4, %v1189_v6 }
 0x1ea   :  { %1337 = vst.msk [vmem:[#allocation2 + $0x250] sm:$0xff] %vm646_vm4, %v1184_v8  ;;  %v2815_v9 = vpop.f32.mrb[26].mxu1  ;;  %v2753_v10 = vpop.f32.mrb[36].mxu0 }
 0x1eb   :  { %v1199_v11 = vadd.f32 %v2815_v9, %v3291_v23  ;;  %v583_v12 = vadd.f32 %v2753_v10, %v3252_v49  ;;  %v1193_v13 = vpop.f32.mrb[27].mxu1  ;;  %v577_v14 = vpop.f32.mrb[37].mxu0 }
 0x1ec   :  { %v1194_v15 = vadd.f32 %v3291_v23, %v1193_v13  ;;  %v578_v16 = vadd.f32 %v3252_v49, %v577_v14 }
 0x1ed   :  { %1340 = vst.msk [vmem:[#allocation2 + $0x268] sm:$0xff] %vm646_vm4, %v1199_v11  ;;  %684 = vst.msk [vmem:[#allocation2 + $0x128] sm:$0xff] %vm646_vm4, %v583_v12 }
 0x1ee   :  { %1339 = vst.msk [vmem:[#allocation2 + $0x260] sm:$0xff] %vm646_vm4, %v1194_v15  ;;  %683 = vst.msk [vmem:[#allocation2 + $0x120] sm:$0xff] %vm646_vm4, %v578_v16  ;;  %v2818_v17 = vpop.f32.mrb[28].mxu1 }
 0x1ef   :  { %v1209_v18 = vadd.f32 %v2818_v17, %v3291_v23  ;;  %v1203_v19 = vpop.f32.mrb[29].mxu1 }
 0x1f0   :  { %v1204_v20 = vadd.f32 %v3291_v23, %v1203_v19 }
 0x1f1   :  { %1342 = vst.msk [vmem:[#allocation2 + $0x278] sm:$0xff] %vm646_vm4, %v1209_v18 }
 0x1f2   :  { %1341 = vst.msk [vmem:[#allocation2 + $0x270] sm:$0xff] %vm646_vm4, %v1204_v20  ;;  %v2821_v21 = vpop.f32.mrb[30].mxu1  ;;  %v2756_v22 = vpop.f32.mrb[38].mxu0 }
 0x1f3   :  { %v1219_v24 = vadd.f32 %v2821_v21, %v3291_v23  ;;  %v593_v25 = vadd.f32 %v2756_v22, %v3252_v49  ;;  %v1213_v26 = vpop.f32.mrb[31].mxu1  ;;  %v587_v27 = vpop.f32.mrb[39].mxu0 }
 0x1f4   :  { %v1214_v28 = vadd.f32 %v3291_v23, %v1213_v26  ;;  %v588_v29 = vadd.f32 %v3252_v49, %v587_v27 }
 0x1f5   :  { %1344 = vst.msk [vmem:[#allocation2 + $0x288] sm:$0xff] %vm646_vm4, %v1219_v24  ;;  %686 = vst.msk [vmem:[#allocation2 + $0x138] sm:$0xff] %vm646_vm4, %v593_v25 }
 0x1f6   :  { %1343 = vst.msk [vmem:[#allocation2 + $0x280] sm:$0xff] %vm646_vm4, %v1214_v28  ;;  %685 = vst.msk [vmem:[#allocation2 + $0x130] sm:$0xff] %vm646_vm4, %v588_v29  ;;  %v2824_v30 = vpop.f32.mrb[32].mxu1 }
 0x1f7   :  { %v1229_v31 = vadd.f32 %v2824_v30, %v3291_v23  ;;  %v1223_v32 = vpop.f32.mrb[33].mxu1 }
 0x1f8   :  { %v1224_v33 = vadd.f32 %v3291_v23, %v1223_v32 }
 0x1f9   :  { %1346 = vst.msk [vmem:[#allocation2 + $0x298] sm:$0xff] %vm646_vm4, %v1229_v31 }
 0x1fa   :  { %1345 = vst.msk [vmem:[#allocation2 + $0x290] sm:$0xff] %vm646_vm4, %v1224_v33  ;;  %v2827_v34 = vpop.f32.mrb[34].mxu1  ;;  %v2759_v35 = vpop.f32.mrb[40].mxu0 }
 0x1fb   :  { %v1239_v42 = vadd.f32 %v2827_v34, %v3291_v23  ;;  %v603_v43 = vadd.f32 %v2759_v35, %v3252_v49  ;;  %v1233_v46 = vpop.f32.mrb[35].mxu1  ;;  %v597_v47 = vpop.f32.mrb[41].mxu0  ;;  %v3509_v35 = vmov 0.0  }
 0x1fc   :  { %v1234_v48 = vadd.f32 %v3291_v23, %v1233_v46  ;;  %v598_v50 = vadd.f32 %v3252_v49, %v597_v47 }
 0x1fd   :  { %1348 = vst.msk [vmem:[#allocation2 + $0x2a8] sm:$0xff] %vm646_vm4, %v1239_v42  ;;  %688 = vst.msk [vmem:[#allocation2 + $0x148] sm:$0xff] %vm646_vm4, %v603_v43  ;;  %v3511_v42 = vmov 0.0   ;;  %v3513_v43 = vmov 0.0  }
 0x1fe   :  { %1347 = vst.msk [vmem:[#allocation2 + $0x2a0] sm:$0xff] %vm646_vm4, %v1234_v48  ;;  %687 = vst.msk [vmem:[#allocation2 + $0x140] sm:$0xff] %vm646_vm4, %v598_v50  ;;  %v2830_v53 = vpop.f32.mrb[36].mxu1 }
 0x1ff   :  { %v1249_v54 = vadd.f32 %v2830_v53, %v3291_v23  ;;  %v1243_v55 = vpop.f32.mrb[37].mxu1 }
 0x200   :  { %v1244_v56 = vadd.f32 %v3291_v23, %v1243_v55 }
 0x201   :  { %1350 = vst.msk [vmem:[#allocation2 + $0x2b8] sm:$0xff] %vm646_vm4, %v1249_v54 }
 0x202   :  { %1349 = vst.msk [vmem:[#allocation2 + $0x2b0] sm:$0xff] %vm646_vm4, %v1244_v56  ;;  %v2833_v57 = vpop.f32.mrb[38].mxu1  ;;  %v2762_v58 = vpop.f32.mrb[42].mxu0 }
 0x203   :  { %v1259_v59 = vadd.f32 %v2833_v57, %v3291_v23  ;;  %v613_v60 = vadd.f32 %v2762_v58, %v3252_v49  ;;  %v1253_v61 = vpop.f32.mrb[39].mxu1  ;;  %v607_v62 = vpop.f32.mrb[43].mxu0 }
 0x204   :  { %v1254_v63 = vadd.f32 %v3291_v23, %v1253_v61  ;;  %v608_v0 = vadd.f32 %v3252_v49, %v607_v62 }
 0x205   :  { %1352 = vst.msk [vmem:[#allocation2 + $0x2c8] sm:$0xff] %vm646_vm4, %v1259_v59  ;;  %690 = vst.msk [vmem:[#allocation2 + $0x158] sm:$0xff] %vm646_vm4, %v613_v60 }
 0x206   :  { %1351 = vst.msk [vmem:[#allocation2 + $0x2c0] sm:$0xff] %vm646_vm4, %v1254_v63  ;;  %689 = vst.msk [vmem:[#allocation2 + $0x150] sm:$0xff] %vm646_vm4, %v608_v0  ;;  %v2836_v1 = vpop.f32.mrb[40].mxu1 }
 0x207   :  { %v1269_v2 = vadd.f32 %v2836_v1, %v3291_v23  ;;  %v1263_v3 = vpop.f32.mrb[41].mxu1 }
 0x208   :  { %v1264_v5 = vadd.f32 %v3291_v23, %v1263_v3 }
 0x209   :  { %1354 = vst.msk [vmem:[#allocation2 + $0x2d8] sm:$0xff] %vm646_vm4, %v1269_v2 }
 0x20a   :  { %1353 = vst.msk [vmem:[#allocation2 + $0x2d0] sm:$0xff] %vm646_vm4, %v1264_v5  ;;  %v2839_v6 = vpop.f32.mrb[42].mxu1  ;;  %v2765_v7 = vpop.f32.mrb[44].mxu0 }
 0x20b   :  { %v1279_v8 = vadd.f32 %v2839_v6, %v3291_v23  ;;  %v623_v9 = vadd.f32 %v2765_v7, %v3252_v49  ;;  %v1273_v10 = vpop.f32.mrb[43].mxu1  ;;  %v617_v11 = vpop.f32.mrb[45].mxu0 }
 0x20c   :  { %v1274_v12 = vadd.f32 %v3291_v23, %v1273_v10  ;;  %v618_v13 = vadd.f32 %v3252_v49, %v617_v11 }
 0x20d   :  { %1356 = vst.msk [vmem:[#allocation2 + $0x2e8] sm:$0xff] %vm646_vm4, %v1279_v8  ;;  %692 = vst.msk [vmem:[#allocation2 + $0x168] sm:$0xff] %vm646_vm4, %v623_v9 }
 0x20e   :  { %1355 = vst.msk [vmem:[#allocation2 + $0x2e0] sm:$0xff] %vm646_vm4, %v1274_v12  ;;  %691 = vst.msk [vmem:[#allocation2 + $0x160] sm:$0xff] %vm646_vm4, %v618_v13  ;;  %v2842_v14 = vpop.f32.mrb[44].mxu1 }
 0x20f   :  { %v1289_v15 = vadd.f32 %v2842_v14, %v3291_v23  ;;  %v1283_v16 = vpop.f32.mrb[45].mxu1 }
 0x210   :  { %v1284_v17 = vadd.f32 %v3291_v23, %v1283_v16 }
 0x211   :  { %1358 = vst.msk [vmem:[#allocation2 + $0x2f8] sm:$0xff] %vm646_vm4, %v1289_v15 }
 0x212   :  { %1357 = vst.msk [vmem:[#allocation2 + $0x2f0] sm:$0xff] %vm646_vm4, %v1284_v17  ;;  %v2768_v18 = vpop.f32.mrb[46].mxu0 }
 0x213   :  { %v633_v19 = vadd.f32 %v2768_v18, %v3252_v49  ;;  %v627_v20 = vpop.f32.mrb[47].mxu0 }
 0x214   :  { %v628_v21 = vadd.f32 %v3252_v49, %v627_v20  ;;  %v2845_v22 = vpop.f32.mrb[46].mxu1 }
 0x215   :  { %694 = vst.msk [vmem:[#allocation2 + $0x178] sm:$0xff] %vm646_vm4, %v633_v19  ;;  %v1299_v24 = vadd.f32 %v2845_v22, %v3291_v23  ;;  %v1293_v25 = vpop.f32.mrb[47].mxu1 }
 0x216   :  { %693 = vst.msk [vmem:[#allocation2 + $0x170] sm:$0xff] %vm646_vm4, %v628_v21  ;;  %v1294_v26 = vadd.f32 %v3291_v23, %v1293_v25 }
 0x217   :  { %1360 = vst.msk [vmem:[#allocation2 + $0x308] sm:$0xff] %vm646_vm4, %v1299_v24 }
 0x218   :  { %1359 = vst.msk [vmem:[#allocation2 + $0x300] sm:$0xff] %vm646_vm4, %v1294_v26 }
 0x21a   :  { %v2771_v27 = vpop.f32.mrb[48].mxu0 }
 0x21b   :  { %v643_v28 = vadd.f32 %v2771_v27, %v3252_v49  ;;  %v637_v29 = vpop.f32.mrb[49].mxu0 }
 0x21c   :  { %v638_v30 = vadd.f32 %v3252_v49, %v637_v29  ;;  %v2848_v31 = vpop.f32.mrb[48].mxu1  ;;  %v3515_v49 = vmov 0.0  }
 0x21d   :  { %696 = vst.msk [vmem:[#allocation2 + $0x188] sm:$0xff] %vm646_vm4, %v643_v28  ;;  %v1309_v32 = vadd.f32 %v2848_v31, %v3291_v23  ;;  %v1303_v33 = vpop.f32.mrb[49].mxu1 }
 0x21e   :  { %695 = vst.msk [vmem:[#allocation2 + $0x180] sm:$0xff] %vm646_vm4, %v638_v30  ;;  %v1304_v34 = vadd.f32 %v3291_v23, %v1303_v33 }
 0x21f   :  { %1362 = vst.msk [vmem:[#allocation2 + $0x318] sm:$0xff] %vm646_vm4, %v1309_v32 }
 0x220   :  { %1361 = vst.msk [vmem:[#allocation2 + $0x310] sm:$0xff] %vm646_vm4, %v1304_v34 }
 0x221 LB: > { %v3050_v23 = vmov 6   ;;  %v3051_v46 = vmov 8   ;;  %v3052_v47 = vmov 7   ;;  %s2550_s6 = sshll.u32 %s3047_s5, 2  ;;  %vm1398_vm5 = vcmask 1040384   ;;  %s3053_s28 = smov 119   ;;  %s3047_s5 = sphi %s3517_s5, %s1384_s5   ;;  %v3043_v49 = vphi %v3515_v49, %v3651_v49   ;;  %v3039_v43 = vphi %v3513_v43, %v3645_v43   ;;  %v3035_v42 = vphi %v3511_v42, %v1833_v42   ;;  %v3031_v35 = vphi %v3509_v35, %v1827_v35  }
 0x222   : > { %2912 = vset.pattern.permute.xlu0 %v3050_v23  ;;  %2914 = vset.pattern.permute.xlu1 %v3051_v46  ;;  %s3535_s27 = scalar_lea.vmem [#allocation2], %s2550_s6  ;;  %s3054_s0 = smov 3   ;;  %vm1510_vm6 = vcmask 16384   ;;  %vm1513_vm7 = vcmask 17409  }
 0x223   : > { %1402 = vperm.xlu0 %2912, %v3043_v49   ;;  %1413 = vperm.xlu1 %2914, %v3043_v49   ;;  %s3055_s1 = smov 122   ;;  %s1509_s29 = scalar_lea.vmem [#allocation3], %s2550_s6 }
 0x224   : > { %s1384_s5 = sadd.s32 1, %s3047_s5  }
 0x225   : > { %p1381_p0 = scmp.ge.s32.totalorder %s1384_s5, 100  }
 0x226   :  { %vm2025_vm8 = vcmask (%p1381_p0), 124928  }
 0x227   : > { %2913 = vset.pattern.permute.xlu0 %v3052_v47  ;;  %2915 = vset.pattern.permute.xlu1 %v3050_v23  ;;  %v2552_v50 = vld [vmem:[%s3535_s27 + $0x190] sm:$0x1]  ;;  %v1391_v58 = vld [vmem:[%s3535_s27] sm:$0x1]  ;;  %v2560_v17 = vld [vmem:[%s3535_s27 + $0x191] sm:$0x1] }
 0x228   : > { %1407 = vperm.xlu0 %2913, %v3043_v49   ;;  %v1396_v55 = vrot.slane %v2552_v50, 7  ;;  %v1522_v24 = vrot.slane %v2560_v17, 7  ;;  %v2558_v25 = vld [vmem:[%s3535_s27 + $0x1] sm:$0x1] }
 0x22a   : > { %v1399_v61 = vsel %vm1398_vm5, %v1391_v58, %v1396_v55  ;;  %v1524_v33 = vsel %vm1398_vm5, %v2558_v25, %v1522_v24  ;;  %v2568_v25 = vld [vmem:[%s3535_s27 + $0x2] sm:$0x1] }
 0x2a2   : > { %v1403_v48 = vpop.permute.xlu0 %1402  ;;  %v1414_v53 = vpop.permute.xlu1 %1413 }
 0x2a3   : > { %v1405_v56 = vmul.f32 %v1403_v48, %v3308_v36  ;;  %v1416_v59 = vmul.f32 %v1414_v53, %v3318_v38 }
 0x2a7   : > { %v1408_v54 = vpop.permute.xlu0 %1407 }
 0x2a8   : > { %v1410_v57 = vmul.f32 %v1408_v54, %v3313_v37 }
 0x2aa   : > { %v1411_v60 = vadd.f32 %v1410_v57, %v1405_v56 }
 0x2ac   : > { %v1417_v62 = vadd.f32 %v1416_v59, %v1411_v60 }
 0x2ae   : > { %v1418_v63 = vadd.f32 %v1417_v62, %v1399_v61 }
 0x2b0   : > { %2933 = vtanh.f32 %v1418_v63  ;;  %v2553_v1 = vmul.f32 -1.442695, %v1418_v63 }
 0x2b2   : > { %2935 = vpow2.f32 %v2553_v1 }
 0x2ba   : > { %v2934_v0 = vpop.eup %2933 }
 0x2bb   : > { %1428 = vrot.lane.b32.xlu1 %v2934_v0, %s3053_s28 }
 0x2bc   : > { %v2936_v2 = vpop.eup %2935 }
 0x2bd   : > { %v1422_v3 = vadd.f32 1.0, %v2936_v2 }
 0x2bf   : > { %2937 = vrcp.f32 %v1422_v3 }
 0x2c9   : > { %v2938_v5 = vpop.eup %2937 }
 0x2ca   : > { %v1426_v8 = vmul.f32 %v3039_v43, %v2938_v5 }
 0x32d   : > { %v1429_v6 = vpop.permute.xlu1 %1428 }
 0x32e   : > { %v1431_v7 = vmul.f32 %v2938_v5, %v1429_v6 }
 0x330   : > { %1433 = vrot.lane.b32.xlu1 %v1431_v7, %s3054_s0 }
 0x3a2   : > { %v1434_v9 = vpop.permute.xlu1 %1433 }
 0x3a3   : > { %v3545_v10 = vadd.f32 %v1434_v9, %v1426_v8 }
 0x3a5   : > { %2939 = vtanh.f32 %v3545_v10 }
 0x3af   : > { %v2940_v11 = vpop.eup %2939 }
 0x3b0   : > { %1439 = vrot.lane.b32.xlu0 %v2940_v11, %s3054_s0 }
 0x422   : > { %v1440_v12 = vpop.permute.xlu0 %1439 }
 0x423   : > { %v1442_v13 = vmul.f32 %v2938_v5, %v1440_v12 }
 0x425   : > { %1450 = vperm.xlu0 %2913, %v1442_v13   ;;  %1445 = vperm.xlu1 %2915, %v1442_v13  }
 0x429   : > { %2916 = vset.pattern.permute.xlu0 %v3050_v23  ;;  %2917 = vset.pattern.permute.xlu1 %v3052_v47 }
 0x42a   : > { %1469 = vperm.xlu1 %2917, %v3035_v42   ;;  %1464 = vperm.xlu0 %2916, %v3035_v42  }
 0x42e   : > { %2918 = vset.pattern.permute.xlu1 %v3051_v46 }
 0x42f   : > { %1456 = vperm.xlu1 %2918, %v1442_v13  }
 0x433   : > { %1475 = vperm.xlu1 %2918, %v3035_v42  }
 0x437   : > { %2919 = vset.pattern.permute.xlu1 %v3052_v47 }
 0x4a4   : > { %v1446_v14 = vpop.permute.xlu1 %1445  ;;  %v1451_v15 = vpop.permute.xlu0 %1450 }
 0x4a5   : > { %v1453_v18 = vmul.f32 %v1451_v15, %v3329_v40  ;;  %v1526_v19 = vmul.f32 %v1451_v15, %v3313_v37  ;;  %v1448_v20 = vmul.f32 %v1446_v14, %v3324_v39  ;;  %v1525_v21 = vmul.f32 %v1446_v14, %v3308_v36 }
 0x4a7   : > { %v1454_v26 = vadd.f32 %v1453_v18, %v1448_v20  ;;  %v1527_v27 = vadd.f32 %v1526_v19, %v1525_v21  ;;  %v2570_v20 = vld [vmem:[%s3535_s27 + $0x192] sm:$0x1] }
 0x4a8   : > { %v1631_v24 = vrot.slane %v2570_v20, 7 }
 0x4a9   : > { %v1470_v16 = vpop.permute.xlu1 %1469  ;;  %v1465_v22 = vpop.permute.xlu0 %1464 }
 0x4aa   : > { %v1472_v29 = vmul.f32 %v1470_v16, %v3345_v45  ;;  %v1467_v30 = vmul.f32 %v1465_v22, %v3340_v44 }
 0x4ac   : > { %v1473_v49 = vadd.f32 %v1472_v29, %v1467_v30 }
 0x4ae   : > { %v1457_v28 = vpop.permute.xlu1 %1456 }
 0x4af   : > { %v1459_v31 = vmul.f32 %v1457_v28, %v3334_v41  ;;  %v1528_v32 = vmul.f32 %v1457_v28, %v3318_v38 }
 0x4b1   : > { %v1460_v34 = vadd.f32 %v1459_v31, %v1454_v26  ;;  %v1529_v42 = vadd.f32 %v1528_v32, %v1527_v27  ;;  %v1633_v32 = vsel %vm1398_vm5, %v2568_v25, %v1631_v24 }
 0x4b2   : > { %v1476_v43 = vpop.permute.xlu1 %1475 }
 0x4b3   : > { %v1530_v48 = vadd.f32 %v1529_v42, %v1524_v33  ;;  %v1478_v50 = vmul.f32 %v1476_v43, %v3352_v51  ;;  %v1461_v53 = vadd.f32 %v1460_v34, %v3357_v52 }
 0x4b5   : > { %2941 = vtanh.f32 %v1530_v48  ;;  %v1479_v54 = vadd.f32 %v1478_v50, %v1473_v49  ;;  %v2561_v58 = vmul.f32 -1.442695, %v1530_v48 }
 0x4b7   : > { %v1480_v55 = vadd.f32 %v1479_v54, %v1461_v53 }
 0x4b9   : > { %2943 = vtanh.f32 %v1480_v55  ;;  %v2554_v59 = vmul.f32 -1.442695, %v1480_v55 }
 0x4ba   : > { %2945 = vpow2.f32 %v2561_v58 }
 0x4bb   : > { %2947 = vpow2.f32 %v2554_v59 }
 0x4bf   : > { %v2942_v56 = vpop.eup %2941 }
 0x4c0   : > { %1540 = vrot.lane.b32.xlu0 %v2942_v56, %s3053_s28 }
 0x4c3   : > { %v2944_v57 = vpop.eup %2943 }
 0x4c4   : > { %1490 = vrot.lane.b32.xlu1 %v2944_v57, %s3053_s28  ;;  %v2946_v60 = vpop.eup %2945 }
 0x4c5   : > { %v1534_v61 = vadd.f32 1.0, %v2946_v60  ;;  %v2948_v62 = vpop.eup %2947 }
 0x4c6   : > { %v1484_v63 = vadd.f32 1.0, %v2948_v62 }
 0x4c7   : > { %2949 = vrcp.f32 %v1534_v61 }
 0x4c8   : > { %2951 = vrcp.f32 %v1484_v63 }
 0x4d1   : > { %v2950_v0 = vpop.eup %2949 }
 0x4d2   : > { %v2952_v3 = vpop.eup %2951  ;;  %v1538_v7 = vmul.f32 %v2950_v0, %v3545_v10 }
 0x4d3   : > { %v1488_v11 = vmul.f32 %v3031_v35, %v2952_v3 }
 0x532   : > { %v1541_v1 = vpop.permute.xlu0 %1540 }
 0x533   : > { %v1543_v2 = vmul.f32 %v2950_v0, %v1541_v1 }
 0x535   : > { %1545 = vrot.lane.b32.xlu0 %v1543_v2, %s3054_s0 }
 0x536   : > { %v1491_v5 = vpop.permute.xlu1 %1490 }
 0x537   : > { %v1493_v6 = vmul.f32 %v2952_v3, %v1491_v5 }
 0x539   : > { %1495 = vrot.lane.b32.xlu1 %v1493_v6, %s3054_s0 }
 0x5a7   : > { %v1546_v8 = vpop.permute.xlu0 %1545 }
 0x5a8   : > { %v3571_v9 = vadd.f32 %v1546_v8, %v1538_v7 }
 0x5aa   : > { %2953 = vtanh.f32 %v3571_v9 }
 0x5ab   : > { %v1496_v12 = vpop.permute.xlu1 %1495 }
 0x5ac   : > { %v3575_v13 = vadd.f32 %v1496_v12, %v1488_v11 }
 0x5ae   : > { %2955 = vtanh.f32 %v3575_v13 }
 0x5b4   : > { %v2954_v14 = vpop.eup %2953 }
 0x5b5   : > { %1551 = vrot.lane.b32.xlu0 %v2954_v14, %s3054_s0 }
 0x5b8   : > { %v2956_v15 = vpop.eup %2955 }
 0x5b9   : > { %1501 = vrot.lane.b32.xlu1 %v2956_v15, %s3054_s0 }
 0x627   : > { %v1552_v16 = vpop.permute.xlu0 %1551 }
 0x628   : > { %v1554_v10 = vmul.f32 %v2950_v0, %v1552_v16 }
 0x62a   : > { %1557 = vperm.xlu0 %2916, %v1554_v10   ;;  %1562 = vperm.xlu1 %2919, %v1554_v10  }
 0x62b   : > { %v1502_v17 = vpop.permute.xlu1 %1501 }
 0x62c   : > { %v3580_v18 = vmul.f32 %v2952_v3, %v1502_v17 }
 0x62e   : > { %2920 = vset.pattern.permute.xlu0 %v3051_v46  ;;  %2921 = vset.pattern.permute.xlu1 %v3050_v23 }
 0x62f   : > { %1568 = vperm.xlu0 %2920, %v1554_v10   ;;  %1575 = vperm.xlu1 %2921, %v3580_v18  }
 0x633   : > { %1586 = vperm.xlu0 %2920, %v3580_v18   ;;  %2922 = vset.pattern.permute.xlu1 %v3052_v47 }
 0x634   : > { %1580 = vperm.xlu1 %2922, %v3580_v18  }
 0x637   : > { %2924 = vset.pattern.permute.xlu0 %v3052_v47 }
 0x638   : > { %2923 = vset.pattern.permute.xlu1 %v3050_v23 }
 0x6a9   : > { %v1558_v35 = vpop.permute.xlu0 %1557  ;;  %v1563_v19 = vpop.permute.xlu1 %1562 }
 0x6aa   : > { %v1634_v21 = vmul.f32 %v1558_v35, %v3308_v36  ;;  %v1635_v22 = vmul.f32 %v1563_v19, %v3313_v37  ;;  %v1560_v26 = vmul.f32 %v1558_v35, %v3324_v39  ;;  %v1565_v27 = vmul.f32 %v1563_v19, %v3329_v40 }
 0x6ac   : > { %v1636_v30 = vadd.f32 %v1635_v22, %v1634_v21  ;;  %v1566_v42 = vadd.f32 %v1565_v27, %v1560_v26  ;;  %v2580_v26 = vld [vmem:[%s3535_s27 + $0x193] sm:$0x1] }
 0x6ae   : > { %v1569_v28 = vpop.permute.xlu0 %1568  ;;  %v1576_v29 = vpop.permute.xlu1 %1575 }
 0x6af   : > { %v1637_v31 = vmul.f32 %v1569_v28, %v3318_v38  ;;  %v1571_v33 = vmul.f32 %v1569_v28, %v3334_v41  ;;  %v1578_v53 = vmul.f32 %v1576_v29, %v3340_v44  ;;  %v1740_v29 = vrot.slane %v2580_v26, 7 }
 0x6b1   : > { %v1638_v34 = vadd.f32 %v1637_v31, %v1636_v30  ;;  %v1572_v50 = vadd.f32 %v1571_v33, %v1566_v42  ;;  %v2578_v30 = vld [vmem:[%s3535_s27 + $0x3] sm:$0x1] }
 0x6b2   : > { %v1587_v49 = vpop.permute.xlu0 %1586 }
 0x6b3   : > { %v1639_v43 = vadd.f32 %v1638_v34, %v1633_v32  ;;  %v1581_v48 = vpop.permute.xlu1 %1580  ;;  %v1589_v55 = vmul.f32 %v1587_v49, %v3352_v51  ;;  %v1573_v57 = vadd.f32 %v1572_v50, %v3357_v52 }
 0x6b4   : > { %v1583_v54 = vmul.f32 %v1581_v48, %v3345_v45 }
 0x6b5   : > { %2957 = vtanh.f32 %v1639_v43  ;;  %v2571_v62 = vmul.f32 -1.442695, %v1639_v43 }
 0x6b6   : > { %v1584_v56 = vadd.f32 %v1583_v54, %v1578_v53 }
 0x6b8   : > { %v1590_v58 = vadd.f32 %v1589_v55, %v1584_v56 }
 0x6ba   : > { %v1591_v59 = vadd.f32 %v1590_v58, %v1573_v57 }
 0x6bc   : > { %2959 = vtanh.f32 %v1591_v59  ;;  %v2562_v63 = vmul.f32 -1.442695, %v1591_v59 }
 0x6bd   : > { %2961 = vpow2.f32 %v2571_v62 }
 0x6be   : > { %2963 = vpow2.f32 %v2562_v63 }
 0x6bf   : > { %v2958_v60 = vpop.eup %2957 }
 0x6c0   : > { %1649 = vrot.lane.b32.xlu1 %v2958_v60, %s3053_s28 }
 0x6c6   : > { %v2960_v61 = vpop.eup %2959 }
 0x6c7   : > { %1601 = vrot.lane.b32.xlu0 %v2960_v61, %s3053_s28  ;;  %v2962_v0 = vpop.eup %2961 }
 0x6c8   : > { %v1643_v1 = vadd.f32 1.0, %v2962_v0  ;;  %v2964_v2 = vpop.eup %2963 }
 0x6c9   : > { %v1595_v3 = vadd.f32 1.0, %v2964_v2 }
 0x6ca   : > { %2965 = vrcp.f32 %v1643_v1 }
 0x6cb   : > { %2967 = vrcp.f32 %v1595_v3 }
 0x6d4   : > { %v2966_v5 = vpop.eup %2965 }
 0x6d5   : > { %v2968_v8 = vpop.eup %2967  ;;  %v1647_v14 = vmul.f32 %v2966_v5, %v3571_v9 }
 0x6d6   : > { %v1599_v10 = vmul.f32 %v2968_v8, %v3575_v13 }
 0x732   : > { %v1650_v6 = vpop.permute.xlu1 %1649 }
 0x733   : > { %v1652_v7 = vmul.f32 %v2966_v5, %v1650_v6 }
 0x735   : > { %1654 = vrot.lane.b32.xlu1 %v1652_v7, %s3054_s0 }
 0x739   : > { %v1602_v11 = vpop.permute.xlu0 %1601 }
 0x73a   : > { %v1604_v12 = vmul.f32 %v2968_v8, %v1602_v11 }
 0x73c   : > { %1606 = vrot.lane.b32.xlu0 %v1604_v12, %s3054_s0 }
 0x7a7   : > { %v1655_v15 = vpop.permute.xlu1 %1654 }
 0x7a8   : > { %v3608_v16 = vadd.f32 %v1655_v15, %v1647_v14 }
 0x7aa   : > { %2969 = vtanh.f32 %v3608_v16 }
 0x7ae   : > { %v1607_v17 = vpop.permute.xlu0 %1606 }
 0x7af   : > { %v3612_v35 = vadd.f32 %v1607_v17, %v1599_v10 }
 0x7b1   : > { %2971 = vtanh.f32 %v3612_v35 }
 0x7b4   : > { %v2970_v19 = vpop.eup %2969 }
 0x7b5   : > { %1660 = vrot.lane.b32.xlu1 %v2970_v19, %s3054_s0 }
 0x7bb   : > { %v2972_v20 = vpop.eup %2971 }
 0x7bc   : > { %1612 = vrot.lane.b32.xlu0 %v2972_v20, %s3054_s0 }
 0x827   : > { %v1661_v21 = vpop.permute.xlu1 %1660 }
 0x828   : > { %v1663_v9 = vmul.f32 %v2966_v5, %v1661_v21 }
 0x82a   : > { %1671 = vperm.xlu0 %2924, %v1663_v9   ;;  %1666 = vperm.xlu1 %2923, %v1663_v9  }
 0x82e   : > { %v1613_v22 = vpop.permute.xlu0 %1612  ;;  %2925 = vset.pattern.permute.xlu1 %v3051_v46 }
 0x82f   : > { %v3618_v13 = vmul.f32 %v2968_v8, %v1613_v22  ;;  %1677 = vperm.xlu1 %2925, %v1663_v9  }
 0x831   : > { %1689 = vperm.xlu0 %2924, %v3618_v13  }
 0x833   : > { %2926 = vset.pattern.permute.xlu1 %v3050_v23 }
 0x834   : > { %1684 = vperm.xlu1 %2926, %v3618_v13  }
 0x835   : > { %2928 = vset.pattern.permute.xlu0 %v3050_v23  ;;  %v1742_v23 = vsel %vm1398_vm5, %v2578_v30, %v1740_v29 }
 0x838   : > { %2927 = vset.pattern.permute.xlu1 %v3051_v46 }
 0x839   : > { %1695 = vperm.xlu1 %2927, %v3618_v13  }
 0x83d   : > { %2929 = vset.pattern.permute.xlu1 %v3052_v47 }
 0x8a9   : > { %v1672_v24 = vpop.permute.xlu0 %1671  ;;  %v1667_v25 = vpop.permute.xlu1 %1666 }
 0x8aa   : > { %v1744_v27 = vmul.f32 %v1672_v24, %v3313_v37  ;;  %v1743_v28 = vmul.f32 %v1667_v25, %v3308_v36  ;;  %v1674_v34 = vmul.f32 %v1672_v24, %v3329_v40  ;;  %v1669_v42 = vmul.f32 %v1667_v25, %v3324_v39 }
 0x8ac   : > { %v1745_v32 = vadd.f32 %v1744_v27, %v1743_v28  ;;  %v1675_v54 = vadd.f32 %v1674_v34, %v1669_v42 }
 0x8ae   : > { %v1678_v31 = vpop.permute.xlu1 %1677 }
 0x8af   : > { %v1746_v33 = vmul.f32 %v1678_v31, %v3318_v38  ;;  %v1680_v49 = vmul.f32 %v1678_v31, %v3334_v41 }
 0x8b0   : > { %v1690_v53 = vpop.permute.xlu0 %1689 }
 0x8b1   : > { %v1747_v43 = vadd.f32 %v1746_v33, %v1745_v32  ;;  %v1681_v56 = vadd.f32 %v1680_v49, %v1675_v54  ;;  %v1692_v57 = vmul.f32 %v1690_v53, %v3345_v45 }
 0x8b3   : > { %v1748_v48 = vadd.f32 %v1747_v43, %v1742_v23  ;;  %v1685_v50 = vpop.permute.xlu1 %1684  ;;  %v1682_v61 = vadd.f32 %v1681_v56, %v3357_v52 }
 0x8b4   : > { %v1687_v55 = vmul.f32 %v1685_v50, %v3340_v44 }
 0x8b5   : > { %2973 = vtanh.f32 %v1748_v48  ;;  %v2581_v2 = vmul.f32 -1.442695, %v1748_v48 }
 0x8b6   : > { %v1693_v59 = vadd.f32 %v1692_v57, %v1687_v55 }
 0x8b8   : > { %v1696_v58 = vpop.permute.xlu1 %1695 }
 0x8b9   : > { %v1698_v60 = vmul.f32 %v1696_v58, %v3352_v51 }
 0x8bb   : > { %v1699_v62 = vadd.f32 %v1698_v60, %v1693_v59 }
 0x8bd   : > { %v1700_v63 = vadd.f32 %v1699_v62, %v1682_v61 }
 0x8bf   : > { %v2974_v0 = vpop.eup %2973  ;;  %2975 = vtanh.f32 %v1700_v63  ;;  %v2572_v3 = vmul.f32 -1.442695, %v1700_v63 }
 0x8c0   : > { %1758 = vrot.lane.b32.xlu0 %v2974_v0, %s3053_s28  ;;  %2977 = vpow2.f32 %v2581_v2 }
 0x8c1   : > { %2979 = vpow2.f32 %v2572_v3 }
 0x8c9   : > { %v2976_v1 = vpop.eup %2975 }
 0x8ca   : > { %1710 = vrot.lane.b32.xlu1 %v2976_v1, %s3053_s28  ;;  %v2978_v5 = vpop.eup %2977 }
 0x8cb   : > { %v1752_v6 = vadd.f32 1.0, %v2978_v5  ;;  %v2980_v7 = vpop.eup %2979 }
 0x8cc   : > { %v1704_v8 = vadd.f32 1.0, %v2980_v7 }
 0x8cd   : > { %2981 = vrcp.f32 %v1752_v6 }
 0x8ce   : > { %2983 = vrcp.f32 %v1704_v8 }
 0x8d7   : > { %v2982_v11 = vpop.eup %2981 }
 0x8d8   : > { %v2984_v15 = vpop.eup %2983  ;;  %v1756_v19 = vmul.f32 %v2982_v11, %v3608_v16 }
 0x8d9   : > { %v1708_v21 = vmul.f32 %v2984_v15, %v3612_v35 }
 0x932   : > { %v1759_v12 = vpop.permute.xlu0 %1758 }
 0x933   : > { %v1761_v14 = vmul.f32 %v2982_v11, %v1759_v12 }
 0x935   : > { %1763 = vrot.lane.b32.xlu0 %v1761_v14, %s3054_s0 }
 0x93c   : > { %v1711_v10 = vpop.permute.xlu1 %1710 }
 0x93d   : > { %v1713_v17 = vmul.f32 %v2984_v15, %v1711_v10 }
 0x93f   : > { %1715 = vrot.lane.b32.xlu1 %v1713_v17, %s3054_s0 }
 0x9a7   : > { %v1764_v20 = vpop.permute.xlu0 %1763 }
 0x9a8   : > { %v3645_v43 = vadd.f32 %v1764_v20, %v1756_v19  }
 0x9aa   : > { %2985 = vtanh.f32 %v3645_v43 }
 0x9b1   : > { %v1716_v9 = vpop.permute.xlu1 %1715 }
 0x9b2   : > { %v1718_v22 = vadd.f32 %v1716_v9, %v1708_v21 }
 0x9b4   : > { %v2986_v24 = vpop.eup %2985  ;;  %2987 = vtanh.f32 %v1718_v22 }
 0x9b5   : > { %1769 = vrot.lane.b32.xlu0 %v2986_v24, %s3054_s0 }
 0x9be   : > { %v2988_v25 = vpop.eup %2987 }
 0x9bf   : > { %1721 = vrot.lane.b32.xlu1 %v2988_v25, %s3054_s0 }
 0xa27   : > { %v1770_v26 = vpop.permute.xlu0 %1769 }
 0xa28   : > { %v3651_v49 = vmul.f32 %v2982_v11, %v1770_v26  }
 0xa2a   : > { %1775 = vperm.xlu0 %2928, %v3651_v49   ;;  %1780 = vperm.xlu1 %2929, %v3651_v49  }
 0xa2e   : > { %2930 = vset.pattern.permute.xlu1 %v3051_v46 }
 0xa2f   : > { %1786 = vperm.xlu1 %2930, %v3651_v49  }
 0xa31   : > { %v1722_v16 = vpop.permute.xlu1 %1721 }
 0xa32   : > { %v1724_v35 = vmul.f32 %v2984_v15, %v1722_v16 }
 0xa33   : > { %2931 = vset.pattern.permute.xlu1 %v3052_v47 }
 0xa34   : > { %1798 = vperm.xlu1 %2931, %v1724_v35   ;;  %1793 = vperm.xlu0 %2928, %v1724_v35  }
 0xa38   : > { %2932 = vset.pattern.permute.xlu0 %v3051_v46 }
 0xa39   : > { %1804 = vperm.xlu0 %2932, %v1724_v35  }
 0xaa9   : > { %v1781_v27 = vpop.permute.xlu1 %1780  ;;  %v1776_v28 = vpop.permute.xlu0 %1775 }
 0xaaa   : > { %v1778_v30 = vmul.f32 %v1776_v28, %v3324_v39  ;;  %v1783_v31 = vmul.f32 %v1781_v27, %v3329_v40 }
 0xaac   : > { %v1784_v34 = vadd.f32 %v1783_v31, %v1778_v30 }
 0xaae   : > { %v1787_v29 = vpop.permute.xlu1 %1786 }
 0xaaf   : > { %v1789_v32 = vmul.f32 %v1787_v29, %v3334_v41 }
 0xab1   : > { %v1790_v48 = vadd.f32 %v1789_v32, %v1784_v34 }
 0xab3   : > { %v1794_v33 = vpop.permute.xlu0 %1793  ;;  %v1799_v23 = vpop.permute.xlu1 %1798  ;;  %v1791_v54 = vadd.f32 %v1790_v48, %v3357_v52 }
 0xab4   : > { %v1796_v42 = vmul.f32 %v1794_v33, %v3340_v44  ;;  %v1801_v47 = vmul.f32 %v1799_v23, %v3345_v45 }
 0xab6   : > { %v1802_v46 = vadd.f32 %v1801_v47, %v1796_v42 }
 0xab8   : > { %v1805_v50 = vpop.permute.xlu0 %1804 }
 0xab9   : > { %v1807_v53 = vmul.f32 %v1805_v50, %v3352_v51 }
 0xabb   : > { %v1808_v55 = vadd.f32 %v1807_v53, %v1802_v46 }
 0xabd   : > { %v1809_v56 = vadd.f32 %v1808_v55, %v1791_v54 }
 0xabf   : > { %2989 = vtanh.f32 %v1809_v56  ;;  %v2582_v58 = vmul.f32 -1.442695, %v1809_v56 }
 0xac1   : > { %2991 = vpow2.f32 %v2582_v58 }
 0xac9   : > { %v2990_v57 = vpop.eup %2989 }
 0xaca   : > { %1819 = vrot.lane.b32.xlu1 %v2990_v57, %s3053_s28 }
 0xacb   : > { %v2992_v59 = vpop.eup %2991 }
 0xacc   : > { %v1813_v60 = vadd.f32 1.0, %v2992_v59 }
 0xace   : > { %2993 = vrcp.f32 %v1813_v60 }
 0xad8   : > { %v2994_v61 = vpop.eup %2993 }
 0xad9   : > { %v1817_v0 = vmul.f32 %v2994_v61, %v1718_v22 }
 0xb3c   : > { %v1820_v62 = vpop.permute.xlu1 %1819 }
 0xb3d   : > { %v1822_v63 = vmul.f32 %v2994_v61, %v1820_v62 }
 0xb3f   : > { %1824 = vrot.lane.b32.xlu1 %v1822_v63, %s3054_s0 }
 0xb43   : > { %1506 = vrot.lane.b32.xlu1 %v3580_v18, %s3055_s1 }
 0xb47   : > { %1726 = vrot.lane.b32.xlu1 %v1724_v35, %s3055_s1 }
 0xbb1   : > { %v1825_v1 = vpop.permute.xlu1 %1824 }
 0xbb2   : > { %v1827_v35 = vadd.f32 %v1825_v1, %v1817_v0  }
 0xbb4   : > { %2995 = vtanh.f32 %v1827_v35 }
 0xbb5   : > { %v1507_v2 = vpop.permute.xlu1 %1506 }
 0xbb6   : > { %1511 = vst.msk [vmem:[%s1509_s29] sm:$0x1] %vm1510_vm6, %v1507_v2 }
 0xbb7   : > { %2556 = vst.msk [vmem:[%s1509_s29 + $0x18f] sm:$0x2] %vm1513_vm7, %v1507_v2 }
 0xbb9   : > { %v1727_v3 = vpop.permute.xlu1 %1726 }
 0xbba   : > { %2574 = vst.msk [vmem:[%s1509_s29 + $0x2] sm:$0x1] %vm1510_vm6, %v1727_v3 }
 0xbbb   : > { %2576 = vst.msk [vmem:[%s1509_s29 + $0x191] sm:$0x2] %vm1513_vm7, %v1727_v3 }
 0xbbe   : > { %v2996_v18 = vpop.eup %2995 }
 0xbbf   : > { %1830 = vrot.lane.b32.xlu0 %v2996_v18, %s3054_s0 }
 0xbc3   : > { %1617 = vrot.lane.b32.xlu0 %v3618_v13, %s3055_s1 }
 0xc31   : > { %v1831_v5 = vpop.permute.xlu0 %1830 }
 0xc32   : > { %v1833_v42 = vmul.f32 %v2994_v61, %v1831_v5  }
 0xc34   : > { %1835 = vrot.lane.b32.xlu0 %v1833_v42, %s3055_s1 }
 0xc35   : > { %v1618_v6 = vpop.permute.xlu0 %1617 }
 0xc36   : > { %2564 = vst.msk [vmem:[%s1509_s29 + $0x1] sm:$0x1] %vm1510_vm6, %v1618_v6 }
 0xc37   : > { %2566 = vst.msk [vmem:[%s1509_s29 + $0x190] sm:$0x2] %vm1513_vm7, %v1618_v6 }
 0xca2   :  { %1383 = sbr.rel (!%p1381_p0) target bundleno = 545 (0x221), region = 87 }
 0xca6   : > { %v1836_v7 = vpop.permute.xlu0 %1835 }
 0xca7   : > { %2584 = vst.msk [vmem:[%s1509_s29 + $0x3] sm:$0x1] %vm1510_vm6, %v1836_v7 }
 0xca8   : > { %2586 = vst.msk [vmem:[%s1509_s29 + $0x192] sm:$0x2] %vm1513_vm7, %v1836_v7 }
 0xcaf   :  { %v1842_v13 = vld [vmem:[#allocation3] sm:$0xff]  ;;  %v1843_v11 = vld [vmem:[#allocation3 + $0x8] sm:$0xff]  ;;  %v1844_v14 = vld [vmem:[#allocation3 + $0x10] sm:$0xff] }
 0xcb0   :  { %v1858_v8 = vld [vmem:[#allocation3 + $0x80] sm:$0xff]  ;;  %1892 = vxpose.xlu0.b32.start [1/16] (narrow) %v1842_v13, 8  ;;  %v1859_v12 = vld [vmem:[#allocation3 + $0x88] sm:$0xff]  ;;  %v1860_v15 = vld [vmem:[#allocation3 + $0x90] sm:$0xff] }
 0xcb1   :  { %1924 = vxpose.xlu1.b32.start [1/16] (narrow) %v1858_v8, 8  ;;  %v1845_v10 = vld [vmem:[#allocation3 + $0x18] sm:$0xff]  ;;  %v1846_v49 = vld [vmem:[#allocation3 + $0x20] sm:$0xff]  ;;  %v1847_v36 = vld [vmem:[#allocation3 + $0x28] sm:$0xff] }
 0xcb2   :  { %v1861_v17 = vld [vmem:[#allocation3 + $0x98] sm:$0xff]  ;;  %v1862_v19 = vld [vmem:[#allocation3 + $0xa0] sm:$0xff]  ;;  %v1863_v37 = vld [vmem:[#allocation3 + $0xa8] sm:$0xff] }
 0xcb3   :  { %v1848_v38 = vld [vmem:[#allocation3 + $0x30] sm:$0xff]  ;;  %v1849_v40 = vld [vmem:[#allocation3 + $0x38] sm:$0xff]  ;;  %v1850_v44 = vld [vmem:[#allocation3 + $0x40] sm:$0xff] }
 0xcb4   :  { %1893 = vxpose.xlu0.b32.cont [2/16] (narrow) %v1843_v11, 8  ;;  %v1864_v39 = vld [vmem:[#allocation3 + $0xb0] sm:$0xff]  ;;  %v1865_v41 = vld [vmem:[#allocation3 + $0xb8] sm:$0xff]  ;;  %v1866_v45 = vld [vmem:[#allocation3 + $0xc0] sm:$0xff] }
 0xcb5   :  { %1925 = vxpose.xlu1.b32.cont [2/16] (narrow) %v1859_v12, 8  ;;  %v1851_v51 = vld [vmem:[#allocation3 + $0x48] sm:$0xff]  ;;  %v1852_v43 = vld [vmem:[#allocation3 + $0x50] sm:$0xff]  ;;  %v1853_v21 = vld [vmem:[#allocation3 + $0x58] sm:$0xff] }
 0xcb6   :  { %v1867_v52 = vld [vmem:[#allocation3 + $0xc8] sm:$0xff]  ;;  %v1868_v20 = vld [vmem:[#allocation3 + $0xd0] sm:$0xff]  ;;  %v1869_v9 = vld [vmem:[#allocation3 + $0xd8] sm:$0xff] }
 0xcb7   :  { %v1854_v22 = vld [vmem:[#allocation3 + $0x60] sm:$0xff]  ;;  %v1855_v25 = vld [vmem:[#allocation3 + $0x68] sm:$0xff]  ;;  %v1856_v16 = vld [vmem:[#allocation3 + $0x70] sm:$0xff] }
 0xcb8   :  { %1894 = vxpose.xlu0.b32.cont [3/16] (narrow) %v1844_v14, 8  ;;  %v1870_v24 = vld [vmem:[#allocation3 + $0xe0] sm:$0xff]  ;;  %v1871_v26 = vld [vmem:[#allocation3 + $0xe8] sm:$0xff]  ;;  %v1872_v35 = vld [vmem:[#allocation3 + $0xf0] sm:$0xff] }
 0xcb9   :  { %1926 = vxpose.xlu1.b32.cont [3/16] (narrow) %v1860_v15, 8  ;;  %v1857_v27 = vld [vmem:[#allocation3 + $0x78] sm:$0xff]  ;;  %v1874_v29 = vld [vmem:[#allocation3 + $0x100] sm:$0xff]  ;;  %v1875_v31 = vld [vmem:[#allocation3 + $0x108] sm:$0xff] }
 0xcba   :  { %v1873_v28 = vld [vmem:[#allocation3 + $0xf8] sm:$0xff]  ;;  %v1890_v30 = vld [vmem:[#allocation3 + $0x180] sm:$0xff]  ;;  %v1891_v32 = vld [vmem:[#allocation3 + $0x188] sm:$0xff] }
 0xcbb   :  { %v1876_v33 = vld [vmem:[#allocation3 + $0x110] sm:$0xff]  ;;  %v1877_v23 = vld [vmem:[#allocation3 + $0x118] sm:$0xff]  ;;  %v1878_v34 = vld [vmem:[#allocation3 + $0x120] sm:$0xff] }
 0xcbc   :  { %1895 = vxpose.xlu0.b32.cont [4/16] (narrow) %v1845_v10, 8  ;;  %v1879_v42 = vld [vmem:[#allocation3 + $0x128] sm:$0xff]  ;;  %v1880_v47 = vld [vmem:[#allocation3 + $0x130] sm:$0xff]  ;;  %v1881_v48 = vld [vmem:[#allocation3 + $0x138] sm:$0xff] }
 0xcbd   :  { %1927 = vxpose.xlu1.b32.cont [4/16] (narrow) %v1861_v17, 8  ;;  %v1882_v50 = vld [vmem:[#allocation3 + $0x140] sm:$0xff]  ;;  %v1883_v46 = vld [vmem:[#allocation3 + $0x148] sm:$0xff]  ;;  %v1884_v53 = vld [vmem:[#allocation3 + $0x150] sm:$0xff] }
 0xcbe   :  { %v1885_v54 = vld [vmem:[#allocation3 + $0x158] sm:$0xff]  ;;  %v1886_v55 = vld [vmem:[#allocation3 + $0x160] sm:$0xff]  ;;  %v1887_v56 = vld [vmem:[#allocation3 + $0x168] sm:$0xff] }
 0xcbf   :  { %v1888_v57 = vld [vmem:[#allocation3 + $0x170] sm:$0xff]  ;;  %v1889_v58 = vld [vmem:[#allocation3 + $0x178] sm:$0xff]  ;;  %v2110_v11 = vld [vmem:[#allocation3 + $0x1a0] sm:$0xff] }
 0xcc0   :  { %1896 = vxpose.xlu0.b32.cont [5/16] (narrow) %v1846_v49, 8  ;;  %v2124_v6 = vld [vmem:[#allocation3 + $0x210] sm:$0xff]  ;;  %v2125_v7 = vld [vmem:[#allocation3 + $0x218] sm:$0xff]  ;;  %v2111_v12 = vld [vmem:[#allocation3 + $0x1a8] sm:$0xff] }
 0xcc1   :  { %1928 = vxpose.xlu1.b32.cont [5/16] (narrow) %v1862_v19, 8  ;;  %v2108_v13 = vld [vmem:[#allocation3 + $0x190] sm:$0xff]  ;;  %v2109_v8 = vld [vmem:[#allocation3 + $0x198] sm:$0xff]  ;;  %v2114_v10 = vld [vmem:[#allocation3 + $0x1c0] sm:$0xff] }
 0xcc2   :  { %v2112_v14 = vld [vmem:[#allocation3 + $0x1b0] sm:$0xff]  ;;  %v2113_v15 = vld [vmem:[#allocation3 + $0x1b8] sm:$0xff]  ;;  %v2115_v17 = vld [vmem:[#allocation3 + $0x1c8] sm:$0xff] }
 0xcc3   :  { %v2126_v49 = vld [vmem:[#allocation3 + $0x220] sm:$0xff]  ;;  %v2116_v19 = vld [vmem:[#allocation3 + $0x1d0] sm:$0xff] }
 0xcc4   :  { %1897 = vxpose.xlu0.b32.cont [6/16] (narrow) %v1847_v36, 8  ;;  %v2127_v36 = vld [vmem:[#allocation3 + $0x228] sm:$0xff] }
 0xcc5   :  { %1929 = vxpose.xlu1.b32.cont [6/16] (narrow) %v1863_v37, 8  ;;  %v2117_v37 = vld [vmem:[#allocation3 + $0x1d8] sm:$0xff] }
 0xcc8   :  { %1898 = vxpose.xlu0.b32.cont [7/16] (narrow) %v1848_v38, 8  ;;  %v2128_v38 = vld [vmem:[#allocation3 + $0x230] sm:$0xff] }
 0xcc9   :  { %1930 = vxpose.xlu1.b32.cont [7/16] (narrow) %v1864_v39, 8  ;;  %v2118_v39 = vld [vmem:[#allocation3 + $0x1e0] sm:$0xff] }
 0xccc   :  { %1899 = vxpose.xlu0.b32.cont [8/16] (narrow) %v1849_v40, 8  ;;  %v2129_v40 = vld [vmem:[#allocation3 + $0x238] sm:$0xff] }
 0xccd   :  { %1931 = vxpose.xlu1.b32.cont [8/16] (narrow) %v1865_v41, 8  ;;  %v2119_v41 = vld [vmem:[#allocation3 + $0x1e8] sm:$0xff] }
 0xcd0   :  { %1900 = vxpose.xlu0.b32.cont [9/16] (narrow) %v1850_v44, 8  ;;  %v2130_v44 = vld [vmem:[#allocation3 + $0x240] sm:$0xff] }
 0xcd1   :  { %1932 = vxpose.xlu1.b32.cont [9/16] (narrow) %v1866_v45, 8  ;;  %v2120_v45 = vld [vmem:[#allocation3 + $0x1f0] sm:$0xff] }
 0xcd4   :  { %1901 = vxpose.xlu0.b32.cont [10/16] (narrow) %v1851_v51, 8  ;;  %v2131_v51 = vld [vmem:[#allocation3 + $0x248] sm:$0xff] }
 0xcd5   :  { %1933 = vxpose.xlu1.b32.cont [10/16] (narrow) %v1867_v52, 8  ;;  %v2121_v52 = vld [vmem:[#allocation3 + $0x1f8] sm:$0xff] }
 0xcd8   :  { %1902 = vxpose.xlu0.b32.cont [11/16] (narrow) %v1852_v43, 8  ;;  %v2132_v43 = vld [vmem:[#allocation3 + $0x250] sm:$0xff] }
 0xcd9   :  { %1934 = vxpose.xlu1.b32.cont [11/16] (narrow) %v1868_v20, 8  ;;  %v2122_v20 = vld [vmem:[#allocation3 + $0x200] sm:$0xff] }
 0xcdc   :  { %1903 = vxpose.xlu0.b32.cont [12/16] (narrow) %v1853_v21, 8  ;;  %v2133_v21 = vld [vmem:[#allocation3 + $0x258] sm:$0xff] }
 0xcdd   :  { %1935 = vxpose.xlu1.b32.cont [12/16] (narrow) %v1869_v9, 8  ;;  %v2123_v9 = vld [vmem:[#allocation3 + $0x208] sm:$0xff] }
 0xce0   :  { %1904 = vxpose.xlu0.b32.cont [13/16] (narrow) %v1854_v22, 8  ;;  %v2134_v22 = vld [vmem:[#allocation3 + $0x260] sm:$0xff] }
 0xce1   :  { %1936 = vxpose.xlu1.b32.cont [13/16] (narrow) %v1870_v24, 8  ;;  %v2135_v24 = vld [vmem:[#allocation3 + $0x268] sm:$0xff] }
 0xce4   :  { %1905 = vxpose.xlu0.b32.cont [14/16] (narrow) %v1855_v25, 8  ;;  %v2136_v25 = vld [vmem:[#allocation3 + $0x270] sm:$0xff] }
 0xce5   :  { %1937 = vxpose.xlu1.b32.cont [14/16] (narrow) %v1871_v26, 8  ;;  %v2137_v26 = vld [vmem:[#allocation3 + $0x278] sm:$0xff] }
 0xce8   :  { %1906 = vxpose.xlu0.b32.cont [15/16] (narrow) %v1856_v16, 8  ;;  %v2138_v16 = vld [vmem:[#allocation3 + $0x280] sm:$0xff] }
 0xce9   :  { %1938 = vxpose.xlu1.b32.cont [15/16] (narrow) %v1872_v35, 8  ;;  %v2139_v35 = vld [vmem:[#allocation3 + $0x288] sm:$0xff] }
 0xcec   :  { %1907 = vxpose.xlu0.b32.end [16/16] (narrow) %v1857_v27, 8  ;;  %v2140_v27 = vld [vmem:[#allocation3 + $0x290] sm:$0xff] }
 0xced   :  { %1939 = vxpose.xlu1.b32.end [16/16] (narrow) %v1873_v28, 8  ;;  %v2141_v28 = vld [vmem:[#allocation3 + $0x298] sm:$0xff] }
 0xcf0   :  { %1956 = vxpose.xlu0.b32.start [1/16] (narrow) %v1874_v29, 8 }
 0xcf1   :  { %1988 = vxpose.xlu1.b32.start [1/2] (short) (narrow) %v1890_v30, 8  ;;  %v2142_v30 = vld [vmem:[#allocation3 + $0x2a0] sm:$0xff] }
 0xcf4   :  { %1957 = vxpose.xlu0.b32.cont [2/16] (narrow) %v1875_v31, 8 }
 0xcf5   :  { %1989 = vxpose.xlu1.b32.end [2/2] (short) (narrow) %v1891_v32, 8 }
 0xcf8   :  { %1958 = vxpose.xlu0.b32.cont [3/16] (narrow) %v1876_v33, 8  ;;  %v2143_v33 = vld [vmem:[#allocation3 + $0x2a8] sm:$0xff] }
 0xcfc   :  { %1959 = vxpose.xlu0.b32.cont [4/16] (narrow) %v1877_v23, 8 }
 0xd00   :  { %1960 = vxpose.xlu0.b32.cont [5/16] (narrow) %v1878_v34, 8 }
 0xd04   :  { %1961 = vxpose.xlu0.b32.cont [6/16] (narrow) %v1879_v42, 8  ;;  %v2144_v42 = vld [vmem:[#allocation3 + $0x2b0] sm:$0xff] }
 0xd08   :  { %1962 = vxpose.xlu0.b32.cont [7/16] (narrow) %v1880_v47, 8 }
 0xd0c   :  { %1963 = vxpose.xlu0.b32.cont [8/16] (narrow) %v1881_v48, 8 }
 0xd10   :  { %1964 = vxpose.xlu0.b32.cont [9/16] (narrow) %v1882_v50, 8  ;;  %v2145_v50 = vld [vmem:[#allocation3 + $0x2b8] sm:$0xff] }
 0xd14   :  { %1965 = vxpose.xlu0.b32.cont [10/16] (narrow) %v1883_v46, 8  ;;  %v2146_v46 = vld [vmem:[#allocation3 + $0x2c0] sm:$0xff] }
 0xd18   :  { %1966 = vxpose.xlu0.b32.cont [11/16] (narrow) %v1884_v53, 8  ;;  %v2147_v53 = vld [vmem:[#allocation3 + $0x2c8] sm:$0xff] }
 0xd1c   :  { %1967 = vxpose.xlu0.b32.cont [12/16] (narrow) %v1885_v54, 8  ;;  %v2148_v54 = vld [vmem:[#allocation3 + $0x2d0] sm:$0xff] }
 0xd20   :  { %1968 = vxpose.xlu0.b32.cont [13/16] (narrow) %v1886_v55, 8  ;;  %v2149_v55 = vld [vmem:[#allocation3 + $0x2d8] sm:$0xff] }
 0xd24   :  { %1969 = vxpose.xlu0.b32.cont [14/16] (narrow) %v1887_v56, 8  ;;  %v2150_v56 = vld [vmem:[#allocation3 + $0x2e0] sm:$0xff] }
 0xd28   :  { %1970 = vxpose.xlu0.b32.cont [15/16] (narrow) %v1888_v57, 8  ;;  %v2151_v57 = vld [vmem:[#allocation3 + $0x2e8] sm:$0xff] }
 0xd2c   :  { %1971 = vxpose.xlu0.b32.end [16/16] (narrow) %v1889_v58, 8  ;;  %v2152_v58 = vld [vmem:[#allocation3 + $0x2f0] sm:$0xff] }
 0xd30   :  { %v3696_v60 = vpop.trf.xlu0  ;;  %2190 = vxpose.xlu0.b32.start [1/16] (narrow) %v2124_v6, 8 }
 0xd31   :  { %v3694_v59 = vpop.trf.xlu1  ;;  %v2020_v62 = vsel %vm327_vm0, %v3696_v60, 0.0 }
 0xd32   :  { %v2021_v61 = vsel %vm327_vm0, %v3694_v59, 0.0 }
 0xd33   :  { %v2022_v63 = vadd.f32 %v2021_v61, %v2020_v62  ;;  %v2153_v61 = vld [vmem:[#allocation3 + $0x2f8] sm:$0xff]  ;;  %v2154_v62 = vld [vmem:[#allocation3 + $0x300] sm:$0xff] }
 0xd34   :  { %2191 = vxpose.xlu0.b32.cont [2/16] (narrow) %v2125_v7, 8 }
 0xd38   :  { %2192 = vxpose.xlu0.b32.cont [3/16] (narrow) %v2126_v49, 8 }
 0xd3c   :  { %2193 = vxpose.xlu0.b32.cont [4/16] (narrow) %v2127_v36, 8 }
 0xd40   :  { %2194 = vxpose.xlu0.b32.cont [5/16] (narrow) %v2128_v38, 8 }
 0xd44   :  { %2195 = vxpose.xlu0.b32.cont [6/16] (narrow) %v2129_v40, 8 }
 0xd48   :  { %2196 = vxpose.xlu0.b32.cont [7/16] (narrow) %v2130_v44, 8 }
 0xd4c   :  { %2197 = vxpose.xlu0.b32.cont [8/16] (narrow) %v2131_v51, 8 }
 0xd50   :  { %2198 = vxpose.xlu0.b32.cont [9/16] (narrow) %v2132_v43, 8 }
 0xd54   :  { %2199 = vxpose.xlu0.b32.cont [10/16] (narrow) %v2133_v21, 8 }
 0xd58   :  { %2200 = vxpose.xlu0.b32.cont [11/16] (narrow) %v2134_v22, 8 }
 0xd5c   :  { %2201 = vxpose.xlu0.b32.cont [12/16] (narrow) %v2135_v24, 8 }
 0xd60   :  { %2202 = vxpose.xlu0.b32.cont [13/16] (narrow) %v2136_v25, 8 }
 0xd64   :  { %2203 = vxpose.xlu0.b32.cont [14/16] (narrow) %v2137_v26, 8 }
 0xd68   :  { %2204 = vxpose.xlu0.b32.cont [15/16] (narrow) %v2138_v16, 8  ;;  %v2073_v16 = vld [vmem:[%s3772_s7] sm:$0x77] }
 0xd6c   :  { %2205 = vxpose.xlu0.b32.end [16/16] (narrow) %v2139_v35, 8  ;;  %v2074_v35 = vld [vmem:[%s3772_s7 + $0x8] sm:$0x77] }
 0xd70   :  { %v3702_v0 = vpop.trf.xlu0  ;;  %2222 = vxpose.xlu0.b32.start [1/16] (narrow) %v2140_v27, 8  ;;  %v2085_v27 = vld [vmem:[%s3773_s8] sm:$0x77] }
 0xd71   :  { %v3704_v1 = vpop.trf.xlu1  ;;  %v2023_v2 = vsel %vm327_vm0, %v3702_v0, 0.0 }
 0xd72   :  { %v2026_v3 = vsel %vm2025_vm8, %v3704_v1, 0.0  ;;  %v2024_v18 = vadd.f32 %v2023_v2, %v2022_v63  ;;  %v2155_v63 = vld [vmem:[#allocation3 + $0x308] sm:$0xff] }
 0xd74   :  { %v2027_v5 = vadd.f32 %v2026_v3, %v2024_v18  ;;  %2223 = vxpose.xlu0.b32.cont [2/16] (narrow) %v2141_v28, 8  ;;  %v2086_v28 = vld [vmem:[%s3773_s8 + $0x8] sm:$0x77] }
 0xd76   :  { %2028 = vadd.xlane.f32.xlu1 %v2027_v5 }
 0xd78   :  { %2224 = vxpose.xlu0.b32.cont [3/16] (narrow) %v2142_v30, 8  ;;  %v2078_v30 = vcombine.high %v2074_v35, %v2074_v35 }
 0xd7c   :  { %2225 = vxpose.xlu0.b32.cont [4/16] (narrow) %v2143_v33, 8  ;;  %v2090_v33 = vcombine.high %v2086_v28, %v2086_v28 }
 0xd80   :  { %2226 = vxpose.xlu0.b32.cont [5/16] (narrow) %v2144_v42, 8 }
 0xd84   :  { %2227 = vxpose.xlu0.b32.cont [6/16] (narrow) %v2145_v50, 8 }
 0xd88   :  { %2228 = vxpose.xlu0.b32.cont [7/16] (narrow) %v2146_v46, 8 }
 0xd8c   :  { %2229 = vxpose.xlu0.b32.cont [8/16] (narrow) %v2147_v53, 8 }
 0xd90   :  { %2230 = vxpose.xlu0.b32.cont [9/16] (narrow) %v2148_v54, 8 }
 0xd94   :  { %2231 = vxpose.xlu0.b32.cont [10/16] (narrow) %v2149_v55, 8 }
 0xd98   :  { %2232 = vxpose.xlu0.b32.cont [11/16] (narrow) %v2150_v56, 8 }
 0xd9c   :  { %2233 = vxpose.xlu0.b32.cont [12/16] (narrow) %v2151_v57, 8 }
 0xda0   :  { %2234 = vxpose.xlu0.b32.cont [13/16] (narrow) %v2152_v58, 8 }
 0xda4   :  { %2235 = vxpose.xlu0.b32.cont [14/16] (narrow) %v2153_v61, 8 }
 0xda8   :  { %2236 = vxpose.xlu0.b32.cont [15/16] (narrow) %v2154_v62, 8 }
 0xda9   :  { %2158 = vxpose.xlu1.b32.start [1/16] (narrow) %v2108_v13, 8 }
 0xdac   :  { %2237 = vxpose.xlu0.b32.end [16/16] (narrow) %v2155_v63, 8 }
 0xdad   :  { %2159 = vxpose.xlu1.b32.cont [2/16] (narrow) %v2109_v8, 8 }
 0xdb0   :  { %v2206_v44 = vpop.trf.xlu0 }
 0xdb1   :  { %2160 = vxpose.xlu1.b32.cont [3/16] (narrow) %v2110_v11, 8  ;;  %v2287_v51 = vsel %vm327_vm0, %v2206_v44, 0.0 }
 0xdb5   :  { %2161 = vxpose.xlu1.b32.cont [4/16] (narrow) %v2111_v12, 8 }
 0xdb9   :  { %2162 = vxpose.xlu1.b32.cont [5/16] (narrow) %v2112_v14, 8 }
 0xdbd   :  { %2163 = vxpose.xlu1.b32.cont [6/16] (narrow) %v2113_v15, 8 }
 0xdc1   :  { %2164 = vxpose.xlu1.b32.cont [7/16] (narrow) %v2114_v10, 8 }
 0xdc5   :  { %2165 = vxpose.xlu1.b32.cont [8/16] (narrow) %v2115_v17, 8 }
 0xdc9   :  { %2166 = vxpose.xlu1.b32.cont [9/16] (narrow) %v2116_v19, 8 }
 0xdcd   :  { %2167 = vxpose.xlu1.b32.cont [10/16] (narrow) %v2117_v37, 8 }
 0xdd1   :  { %2168 = vxpose.xlu1.b32.cont [11/16] (narrow) %v2118_v39, 8 }
 0xdd5   :  { %2169 = vxpose.xlu1.b32.cont [12/16] (narrow) %v2119_v41, 8 }
 0xdd9   :  { %2170 = vxpose.xlu1.b32.cont [13/16] (narrow) %v2120_v45, 8 }
 0xddd   :  { %2171 = vxpose.xlu1.b32.cont [14/16] (narrow) %v2121_v52, 8 }
 0xde1   :  { %2172 = vxpose.xlu1.b32.cont [15/16] (narrow) %v2122_v20, 8 }
 0xde5   :  { %2173 = vxpose.xlu1.b32.end [16/16] (narrow) %v2123_v9, 8 }
 0xdf0   :  { %v2238_v52 = vpop.trf.xlu0 }
 0xdf1   :  { %v2289_v20 = vsel %vm327_vm0, %v2238_v52, 0.0 }
 0xe03   :  { %v2029_v29 = vpop.xlane.xlu1 %2028 }
 0xe04   :  { %v2030_v31 = vrot.slane %v2029_v29, 4 }
 0xe06   :  { %v2031_v32 = vadd.f32 %v2030_v31, %v2029_v29  ;;  %v2077_v29 = vcombine.high %v2073_v16, %v2073_v16 }
 0xe08   :  { %v2032_v23 = vrot.slane %v2031_v32, 2 }
 0xe0a   :  { %v2033_v34 = vadd.f32 %v2032_v23, %v2031_v32  ;;  %v2089_v32 = vcombine.high %v2085_v27, %v2085_v27 }
 0xe0c   :  { %v2034_v47 = vrot.slane %v2033_v34, 1 }
 0xe0e   :  { %v2035_v48 = vadd.f32 %v2034_v47, %v2033_v34 }
 0xe10   :  { %2849 = vpush %v2035_v48 }
 0xe41   :  { %s2850_s30 = spop %2849 }
 0xe42   :  { %s2037_s2 = smul.f32 0.00083333335, %s2850_s30 }
 0xe44   :  { %v2038_v2 = vstv %s2037_s2 }
 0xe45   :  { %v2039_v3 = vsub.f32 %v3696_v60, %v2038_v2  ;;  %v2040_v18 = vsub.f32 %v3694_v59, %v2038_v2  ;;  %v2041_v5 = vsub.f32 %v3702_v0, %v2038_v2  ;;  %v2042_v6 = vsub.f32 %v3704_v1, %v2038_v2  ;;  %v2156_v59 = vld [vmem:[#allocation3 + $0x310] sm:$0xff]  ;;  %v2157_v0 = vld [vmem:[#allocation3 + $0x318] sm:$0xff]  ;;  %v3718_v1 = vpop.trf.xlu1 }
 0xe46   :  { %v2286_v45 = vsel %vm327_vm0, %v3718_v1, 0.0 }
 0xe47   :  { %v2043_v7 = vmul.f32 %v2039_v3, %v2039_v3  ;;  %v2044_v13 = vmul.f32 %v2040_v18, %v2040_v18  ;;  %v2045_v8 = vmul.f32 %v2041_v5, %v2041_v5  ;;  %v2046_v11 = vmul.f32 %v2042_v6, %v2042_v6 }
 0xe48   :  { %v2288_v43 = vadd.f32 %v2287_v51, %v2286_v45 }
 0xe49   :  { %v2047_v12 = vsel %vm327_vm0, %v2043_v7, 0.0  ;;  %v2048_v14 = vsel %vm327_vm0, %v2044_v13, 0.0  ;;  %v2050_v10 = vsel %vm327_vm0, %v2045_v8, 0.0  ;;  %v2052_v60 = vsel %vm2025_vm8, %v2046_v11, 0.0 }
 0xe4a   :  { %v2049_v15 = vadd.f32 %v2048_v14, %v2047_v12  ;;  %v2290_v21 = vadd.f32 %v2289_v20, %v2288_v43  ;;  %v2587_v43 = vld [vmem:[%s3772_s7 + $0x10] sm:$0x77]  ;;  %v2588_v20 = vld [vmem:[%s3772_s7 + $0x18] sm:$0x77] }
 0xe4c   :  { %v2051_v17 = vadd.f32 %v2050_v10, %v2049_v15 }
 0xe4e   :  { %v2053_v49 = vadd.f32 %v2052_v60, %v2051_v17 }
 0xe50   :  { %2054 = vadd.xlane.f32.xlu1 %v2053_v49 }
 0xe83   :  { %2254 = vxpose.xlu1.b32.start [1/2] (short) (narrow) %v2156_v59, 8 }
 0xe87   :  { %2255 = vxpose.xlu1.b32.end [2/2] (short) (narrow) %v2157_v0, 8 }
 0xedd   :  { %v2055_v19 = vpop.xlane.xlu1 %2054 }
 0xede   :  { %v2056_v36 = vrot.slane %v2055_v19, 4 }
 0xee0   :  { %v2057_v37 = vadd.f32 %v2056_v36, %v2055_v19 }
 0xee2   :  { %v2058_v38 = vrot.slane %v2057_v37, 2 }
 0xee4   :  { %v2059_v39 = vadd.f32 %v2058_v38, %v2057_v37 }
 0xee6   :  { %v2060_v40 = vrot.slane %v2059_v39, 1 }
 0xee8   :  { %v2061_v41 = vadd.f32 %v2060_v40, %v2059_v39 }
 0xeea   :  { %2851 = vpush %v2061_v41 }
 0xf03   :  { %v2270_v9 = vpop.trf.xlu1 }
 0xf04   :  { %v2291_v22 = vsel %vm2025_vm8, %v2270_v9, 0.0 }
 0xf05   :  { %v2292_v24 = vadd.f32 %v2291_v22, %v2290_v21  ;;  %v2589_v21 = vld [vmem:[%s3773_s8 + $0x10] sm:$0x77]  ;;  %v2343_v22 = vcombine.high %v2587_v43, %v2587_v43 }
 0xf07   :  { %2293 = vadd.xlane.f32.xlu1 %v2292_v24  ;;  %v2344_v24 = vcombine.high %v2588_v20, %v2588_v20 }
 0xf1b   :  { %s2852_s10 = spop %2851 }
 0xf1c   :  { %s2063_s11 = smul.f32 0.00083333335, %s2852_s10 }
 0xf1e   :  { %s2064_s12 = sadd.f32 1e-05, %s2063_s11 }
 0xf20   :  { %v2065_v25 = vstv %s2064_s12 }
 0xf21   :  { %3005 = vrsqrt.f32 %v2065_v25 }
 0xf2b   :  { %v3006_v26 = vpop.eup %3005 }
 0xf2c   :  { %2853 = vpush %v3006_v26  ;;  %v2356_v26 = vcombine.high %v2589_v21, %v2589_v21 }
 0xf5d   :  { %s2854_s3 = spop %2853 }
 0xf5e   :  { %v2068_v31 = vstv %s2854_s3 }
 0xf5f   :  { %v2069_v23 = vmul.f32 %v2068_v31, %v2039_v3  ;;  %v2070_v34 = vmul.f32 %v2068_v31, %v2040_v18  ;;  %v2071_v42 = vmul.f32 %v2068_v31, %v2041_v5  ;;  %v2072_v47 = vmul.f32 %v2068_v31, %v2042_v6 }
 0xf61   :  { %v2081_v48 = vmul.f32 %v2073_v16, %v2069_v23  ;;  %v2082_v50 = vmul.f32 %v2077_v29, %v2070_v34  ;;  %v2083_v46 = vmul.f32 %v2074_v35, %v2071_v42  ;;  %v2084_v53 = vmul.f32 %v2078_v30, %v2072_v47 }
 0xf63   :  { %v2093_v54 = vadd.f32 %v2085_v27, %v2081_v48  ;;  %v2094_v55 = vadd.f32 %v2089_v32, %v2082_v50  ;;  %v2095_v56 = vadd.f32 %v2086_v28, %v2083_v46  ;;  %v2096_v57 = vadd.f32 %v2090_v33, %v2084_v53 }
 0xf65   :  { %v2101_v58 = vcombine.low %v2093_v54, %v2094_v55  ;;  %v2102_v61 = vcombine.low %v2095_v56, %v2096_v57 }
 0xf67   :  { %2105 = vst [vmem:[%s3774_s9] sm:$0x77] %v2101_v58  ;;  %2106 = vst.msk [vmem:[%s3774_s9 + $0x8] sm:$0x77] %vm3116_vm2, %v2102_v61 }
 0xf94   :  { %v2294_v62 = vpop.xlane.xlu1 %2293 }
 0xf95   :  { %v2295_v63 = vrot.slane %v2294_v62, 4 }
 0xf97   :  { %v2296_v2 = vadd.f32 %v2295_v63, %v2294_v62 }
 0xf99   :  { %v2297_v3 = vrot.slane %v2296_v2, 2 }
 0xf9b   :  { %v2298_v18 = vadd.f32 %v2297_v3, %v2296_v2 }
 0xf9d   :  { %v2299_v5 = vrot.slane %v2298_v18, 1 }
 0xf9f   :  { %v2300_v6 = vadd.f32 %v2299_v5, %v2298_v18 }
 0xfa1   :  { %2855 = vpush %v2300_v6 }
 0xfd2   :  { %s2856_s24 = spop %2855 }
 0xfd3   :  { %s2302_s25 = smul.f32 0.00083333335, %s2856_s24 }
 0xfd5   :  { %v2303_v7 = vstv %s2302_s25 }
 0xfd6   :  { %v2304_v13 = vsub.f32 %v3718_v1, %v2303_v7  ;;  %v2305_v8 = vsub.f32 %v2206_v44, %v2303_v7  ;;  %v2306_v11 = vsub.f32 %v2238_v52, %v2303_v7  ;;  %v2307_v12 = vsub.f32 %v2270_v9, %v2303_v7  ;;  %v2590_v9 = vld [vmem:[%s3773_s8 + $0x18] sm:$0x77] }
 0xfd7   :  { %v2357_v16 = vcombine.high %v2590_v9, %v2590_v9 }
 0xfd8   :  { %v2308_v14 = vmul.f32 %v2304_v13, %v2304_v13  ;;  %v2309_v15 = vmul.f32 %v2305_v8, %v2305_v8  ;;  %v2310_v10 = vmul.f32 %v2306_v11, %v2306_v11  ;;  %v2311_v17 = vmul.f32 %v2307_v12, %v2307_v12 }
 0xfda   :  { %v2312_v60 = vsel %vm327_vm0, %v2308_v14, 0.0  ;;  %v2313_v49 = vsel %vm327_vm0, %v2309_v15, 0.0  ;;  %v2315_v0 = vsel %vm327_vm0, %v2310_v10, 0.0  ;;  %v2317_v36 = vsel %vm2025_vm8, %v2311_v17, 0.0 }
 0xfdb   :  { %v2314_v59 = vadd.f32 %v2313_v49, %v2312_v60 }
 0xfdd   :  { %v2316_v19 = vadd.f32 %v2315_v0, %v2314_v59 }
 0xfdf   :  { %v2318_v37 = vadd.f32 %v2317_v36, %v2316_v19 }
 0xfe1   :  { %2319 = vadd.xlane.f32.xlu0 %v2318_v37 }
0x106e   :  { %v2320_v1 = vpop.xlane.xlu0 %2319 }
0x106f   :  { %v2321_v38 = vrot.slane %v2320_v1, 4 }
0x1071   :  { %v2322_v39 = vadd.f32 %v2321_v38, %v2320_v1 }
0x1073   :  { %v2323_v40 = vrot.slane %v2322_v39, 2 }
0x1075   :  { %v2324_v41 = vadd.f32 %v2323_v40, %v2322_v39 }
0x1077   :  { %v2325_v44 = vrot.slane %v2324_v41, 1 }
0x1079   :  { %v2326_v45 = vadd.f32 %v2325_v44, %v2324_v41 }
0x107b   :  { %2857 = vpush %v2326_v45 }
0x10ac   :  { %s2858_s26 = spop %2857 }
0x10ad   :  { %s2328_s5 = smul.f32 0.00083333335, %s2858_s26 }
0x10af   :  { %s2329_s6 = sadd.f32 1e-05, %s2328_s5 }
0x10b1   :  { %v2330_v51 = vstv %s2329_s6 }
0x10b2   :  { %3007 = vrsqrt.f32 %v2330_v51 }
0x10bc   :  { %v3008_v52 = vpop.eup %3007 }
0x10bd   :  { %2859 = vpush %v3008_v52 }
0x10ee   :  { %s2860_s11 = spop %2859 }
0x10ef   :  { %v2333_v25 = vstv %s2860_s11 }
0x10f0   :  { %v2334_v35 = vmul.f32 %v2333_v25, %v2304_v13  ;;  %v2335_v27 = vmul.f32 %v2333_v25, %v2305_v8  ;;  %v2336_v28 = vmul.f32 %v2333_v25, %v2306_v11  ;;  %v2337_v29 = vmul.f32 %v2333_v25, %v2307_v12 }
0x10f2   :  { %v2347_v30 = vmul.f32 %v2587_v43, %v2334_v35  ;;  %v2348_v31 = vmul.f32 %v2343_v22, %v2335_v27  ;;  %v2349_v32 = vmul.f32 %v2588_v20, %v2336_v28  ;;  %v2350_v33 = vmul.f32 %v2344_v24, %v2337_v29 }
0x10f4   :  { %v2360_v23 = vadd.f32 %v2589_v21, %v2347_v30  ;;  %v2361_v34 = vadd.f32 %v2356_v26, %v2348_v31  ;;  %v2362_v42 = vadd.f32 %v2590_v9, %v2349_v32  ;;  %v2363_v47 = vadd.f32 %v2357_v16, %v2350_v33 }
0x10f6   :  { %v2368_v48 = vcombine.low %v2360_v23, %v2361_v34  ;;  %v2369_v50 = vcombine.low %v2362_v42, %v2363_v47 }
0x10f8   :  { %2591 = vst [vmem:[%s3774_s9 + $0x10] sm:$0x77] %v2368_v48  ;;  %2592 = vst.msk [vmem:[%s3774_s9 + $0x18] sm:$0x77] %vm3116_vm2, %v2369_v50 }

// kernel: cmodel_forward.5
= control target key start
LH: loop header
LB: loop body
LE: loop exit
PB: predicated region body
PF: predicated region fallthrough
CT: control target
= control target key end

     0   :  { %vm327_vm0 = vcmask 1042432   ;;  %vm2696_vm1 = vcmask 129028   ;;  %v5228_v3 = vmov 0.0   ;;  %vm176_vm3 = vcmask 23552   ;;  %s6415_s0 = inlined_call_operand.vmem [shape: f32[4,3,400], index: 0, kind: input, shape index: {}]   ;;  %s6416_s1 = inlined_call_operand.vmem [shape: f32[4,3,12], index: 1, kind: input, shape index: {}]   ;;  %s6417_s7 = inlined_call_operand.vmem [shape: f32[4,3,400], index: 7, kind: input, shape index: {}]   ;;  %s6418_s8 = inlined_call_operand.vmem [shape: f32[4,3,400], index: 8, kind: input, shape index: {}]   ;;  %s6419_s9 = inlined_call_operand.vmem [shape: f32[4,3,400], index: 9, kind: output, shape index: {}]   ;;  %s6420_s2 = inlined_call_operand.vmem [shape: f32[4,1,12], index: 2, kind: input, shape index: {}]   ;;  %s6421_s3 = inlined_call_operand.vmem [shape: f32[3,4,12], index: 3, kind: input, shape index: {}]   ;;  %s6422_s4 = inlined_call_operand.vmem [shape: f32[3,4,12], index: 4, kind: input, shape index: {}]   ;;  %s6423_s5 = inlined_call_operand.vmem [shape: f32[3,4,12], index: 5, kind: input, shape index: {}]   ;;  %s6424_s6 = inlined_call_operand.vmem [shape: f32[4,12], index: 6, kind: input, shape index: {}]  }
   0x1   :  { %v32_v0 = vld [vmem:[%s6415_s0] sm:$0x77]  ;;  %2695 = vst [vmem:[%s6419_s9] sm:$0x77] %v5228_v3  ;;  %vm5295_vm2 = vmor %vm2696_vm1, %vm327_vm0  ;;  %v4240_v5 = vld [vmem:[%s6415_s0 + $0x10] sm:$0x77]  ;;  %vm646_vm4 = vcmask 97280  }
   0x2   :  { %40 = vxpose.xlu0.b32.start.end [1/1] (short) %v32_v0, 128  ;;  %v36_v1 = vcombine.high %v32_v0, %v32_v0  ;;  %v168_v2 = vld [vmem:[%s6416_s1] sm:$0x7]  ;;  %2699 = vst [vmem:[%s6419_s9 + $0x10] sm:$0x77] %v5228_v3  ;;  %2701 = vst [vmem:[%s6419_s9 + $0x20] sm:$0x77] %v5228_v3  ;;  %v702_v6 = vcombine.high %v4240_v5, %v4240_v5 }
   0x3   :  { %2703 = vst [vmem:[%s6419_s9 + $0x30] sm:$0x77] %v5228_v3  ;;  %4696 = vmatprep.subr.msk.mxu0 %vm327_vm0, %v168_v2  ;;  %2698 = vst.msk [vmem:[%s6419_s9 + $0x8] sm:$0x77] %vm5295_vm2, %v5228_v3  ;;  %v4242_v7 = vld [vmem:[%s6416_s1 + $0x4] sm:$0x7] }
   0x4   :  { %72 = vxpose.xlu1.b32.start.end [1/1] (short) %v36_v1, 128  ;;  %2700 = vst.msk [vmem:[%s6419_s9 + $0x18] sm:$0x77] %vm5295_vm2, %v5228_v3  ;;  %2702 = vst.msk [vmem:[%s6419_s9 + $0x28] sm:$0x77] %vm5295_vm2, %v5228_v3  ;;  %4697 = vmatpush3.msk.msra.mxu0 %vm327_vm0, %v168_v2  ;;  %v33_v8 = vld [vmem:[%s6415_s0 + $0x8] sm:$0x77] }
   0x5   :  { %2704 = vst.msk [vmem:[%s6419_s9 + $0x38] sm:$0x77] %vm5295_vm2, %v5228_v3  ;;  %4773 = vmatprep.subr.msk.mxu1 %vm327_vm0, %v4242_v7  ;;  %v4241_v9 = vld [vmem:[%s6415_s0 + $0x18] sm:$0x77]  ;;  %v37_v36 = vcombine.high %v33_v8, %v33_v8  ;;  %v5363_v43 = vld [vmem:[%s6415_s0 + $0x20] sm:$0x77] }
   0x6   :  { %4774 = vmatpush3.msk.msra.mxu1 %vm327_vm0, %v4242_v7  ;;  %v703_v38 = vcombine.high %v4241_v9, %v4241_v9  ;;  %v5369_v45 = vld [vmem:[%s6415_s0 + $0x30] sm:$0x77]  ;;  %v4298_v51 = vld [vmem:[%s6416_s1 + $0x8] sm:$0x7]  ;;  %v4354_v52 = vld [vmem:[%s6416_s1 + $0xc] sm:$0x7] }
   0x7   :  { %4850 = vmatprep.subr.msk.mxu0 %vm327_vm0, %v4298_v51  ;;  %4927 = vmatprep.subr.msk.mxu1 %vm327_vm0, %v4354_v52 }
  0x3f   :  { %706 = vxpose.xlu0.b32.start.end [1/1] (short) %v4240_v5, 128 }
  0x41   :  { %738 = vxpose.xlu1.b32.start.end [1/1] (short) %v702_v6, 128 }
  0x7c   :  { %104 = vxpose.xlu0.b32.start.end [1/1] (short) %v33_v8, 128 }
  0x7e   :  { %770 = vxpose.xlu1.b32.start.end [1/1] (short) %v4241_v9, 128 }
  0x82   :  { %v56_v10 = vpop.trf.xlu0 }
  0x83   :  { %4698 = vmatprep.mubr.msk.f32.mxu0 %vm176_vm3, %v56_v10 }
  0x84   :  { %v88_v11 = vpop.trf.xlu1 }
  0x86   :  { %v57_v12 = vpop.trf.xlu0 }
  0x87   :  { %4699 = vmatmul.mubr.msk.f32.vlgmr.msra.gmra.mrb[0].mxu0 %vm176_vm3, %v57_v12 }
  0x88   :  { %v89_v13 = vpop.trf.xlu1  ;;  %4851 = vmatpush3.msk.msra.mxu0 %vm327_vm0, %v4298_v51 }
  0x8a   :  { %v58_v14 = vpop.trf.xlu0 }
  0x8b   :  { %4701 = vmatprep.mubr.msk.f32.mxu0 %vm176_vm3, %v58_v14 }
  0x8c   :  { %v90_v15 = vpop.trf.xlu1 }
  0x8e   :  { %v59_v16 = vpop.trf.xlu0 }
  0x8f   :  { %4702 = vmatmul.mubr.msk.f32.gmra.mrb[2].mxu0 %vm176_vm3, %v59_v16 }
  0x90   :  { %v91_v17 = vpop.trf.xlu1 }
  0x92   :  { %v60_v18 = vpop.trf.xlu0 }
  0x93   :  { %4704 = vmatprep.mubr.msk.f32.mxu0 %vm176_vm3, %v60_v18 }
  0x94   :  { %v92_v19 = vpop.trf.xlu1 }
  0x96   :  { %v61_v20 = vpop.trf.xlu0 }
  0x97   :  { %4705 = vmatmul.mubr.msk.f32.gmra.mrb[4].mxu0 %vm176_vm3, %v61_v20 }
  0x98   :  { %v93_v21 = vpop.trf.xlu1 }
  0x9a   :  { %v62_v22 = vpop.trf.xlu0 }
  0x9b   :  { %4707 = vmatprep.mubr.msk.f32.mxu0 %vm176_vm3, %v62_v22 }
  0x9c   :  { %v94_v23 = vpop.trf.xlu1 }
  0x9e   :  { %v63_v24 = vpop.trf.xlu0 }
  0x9f   :  { %4708 = vmatmul.mubr.msk.f32.gmra.mrb[6].mxu0 %vm176_vm3, %v63_v24 }
  0xa0   :  { %v95_v25 = vpop.trf.xlu1 }
  0xa2   :  { %v64_v26 = vpop.trf.xlu0 }
  0xa3   :  { %4710 = vmatprep.mubr.msk.f32.mxu0 %vm176_vm3, %v64_v26 }
  0xa4   :  { %v96_v27 = vpop.trf.xlu1 }
  0xa6   :  { %v65_v28 = vpop.trf.xlu0 }
  0xa7   :  { %4711 = vmatmul.mubr.msk.f32.gmra.mrb[8].mxu0 %vm176_vm3, %v65_v28 }
  0xa8   :  { %v97_v29 = vpop.trf.xlu1 }
  0xaa   :  { %v66_v30 = vpop.trf.xlu0 }
  0xab   :  { %4713 = vmatprep.mubr.msk.f32.mxu0 %vm176_vm3, %v66_v30 }
  0xac   :  { %v98_v31 = vpop.trf.xlu1 }
  0xae   :  { %v67_v32 = vpop.trf.xlu0 }
  0xaf   :  { %4714 = vmatmul.mubr.msk.f32.gmra.mrb[10].mxu0 %vm176_vm3, %v67_v32 }
  0xb0   :  { %v99_v33 = vpop.trf.xlu1 }
  0xb2   :  { %v68_v34 = vpop.trf.xlu0 }
  0xb3   :  { %4716 = vmatprep.mubr.msk.f32.mxu0 %vm176_vm3, %v68_v34 }
  0xb4   :  { %v100_v35 = vpop.trf.xlu1 }
  0xb6   :  { %v69_v37 = vpop.trf.xlu0 }
  0xb7   :  { %4717 = vmatmul.mubr.msk.f32.gmra.mrb[12].mxu0 %vm176_vm3, %v69_v37 }
  0xb8   :  { %v101_v39 = vpop.trf.xlu1 }
  0xb9   :  { %136 = vxpose.xlu0.b32.start.end [1/1] (short) (narrow) %v37_v36, 16 }
  0xba   :  { %v70_v40 = vpop.trf.xlu0 }
  0xbb   :  { %4719 = vmatprep.mubr.msk.f32.mxu0 %vm176_vm3, %v70_v40  ;;  %802 = vxpose.xlu1.b32.start.end [1/1] (short) (narrow) %v703_v38, 16 }
  0xbc   :  { %v102_v41 = vpop.trf.xlu1 }
  0xbe   :  { %v71_v42 = vpop.trf.xlu0 }
  0xbf   :  { %4720 = vmatmul.mubr.msk.f32.gmra.mrb[14].mxu0 %vm176_vm3, %v71_v42 }
  0xc0   :  { %4722 = vmatprep.mubr.msk.f32.mxu0 %vm176_vm3, %v88_v11  ;;  %v103_v44 = vpop.trf.xlu1 }
  0xc2   :  { %v722_v46 = vpop.trf.xlu0  ;;  %1372 = vxpose.xlu0.b32.start.end [1/1] (short) %v5363_v43, 128 }
  0xc3   :  { %4723 = vmatmul.mubr.msk.f32.gmra.mrb[16].mxu0 %vm176_vm3, %v89_v13  ;;  %4775 = vmatprep.mubr.msk.f32.mxu1 %vm176_vm3, %v722_v46 }
  0xc4   :  { %4725 = vmatprep.mubr.msk.f32.mxu0 %vm176_vm3, %v90_v15  ;;  %v5375_v47 = vpop.trf.xlu1  ;;  %2038 = vxpose.xlu1.b32.start.end [1/1] (short) %v5369_v45, 128  ;;  %v1368_v15 = vcombine.high %v5363_v43, %v5363_v43 }
  0xc6   :  { %v723_v48 = vpop.trf.xlu0 }
  0xc7   :  { %4726 = vmatmul.mubr.msk.f32.gmra.mrb[18].mxu0 %vm176_vm3, %v91_v17  ;;  %4776 = vmatmul.mubr.msk.f32.vlgmr.msra.gmra.mrb[0].mxu1 %vm176_vm3, %v723_v48  ;;  %v2034_v17 = vcombine.high %v5369_v45, %v5369_v45 }
  0xc8   :  { %4728 = vmatprep.mubr.msk.f32.mxu0 %vm176_vm3, %v92_v19  ;;  %v5381_v49 = vpop.trf.xlu1  ;;  %4928 = vmatpush3.msk.msra.mxu1 %vm327_vm0, %v4354_v52  ;;  %v5480_v52 = vld [vmem:[%s6415_s0 + $0x38] sm:$0x77] }
  0xca   :  { %v724_v50 = vpop.trf.xlu0 }
  0xcb   :  { %4729 = vmatmul.mubr.msk.f32.gmra.mrb[20].mxu0 %vm176_vm3, %v93_v21  ;;  %4778 = vmatprep.mubr.msk.f32.mxu1 %vm176_vm3, %v724_v50  ;;  %v5474_v50 = vld [vmem:[%s6415_s0 + $0x28] sm:$0x77] }
  0xcc   :  { %4731 = vmatprep.mubr.msk.f32.mxu0 %vm176_vm3, %v94_v23  ;;  %v756_v53 = vpop.trf.xlu1 }
  0xce   :  { %v725_v54 = vpop.trf.xlu0 }
  0xcf   :  { %4732 = vmatmul.mubr.msk.f32.gmra.mrb[22].mxu0 %vm176_vm3, %v95_v25  ;;  %4779 = vmatmul.mubr.msk.f32.gmra.mrb[2].mxu1 %vm176_vm3, %v725_v54 }
  0xd0   :  { %4734 = vmatprep.mubr.msk.f32.mxu0 %vm176_vm3, %v96_v27  ;;  %v757_v55 = vpop.trf.xlu1 }
  0xd2   :  { %v726_v56 = vpop.trf.xlu0 }
  0xd3   :  { %4735 = vmatmul.mubr.msk.f32.gmra.mrb[24].mxu0 %vm176_vm3, %v97_v29  ;;  %4781 = vmatprep.mubr.msk.f32.mxu1 %vm176_vm3, %v726_v56 }
  0xd4   :  { %4737 = vmatprep.mubr.msk.f32.mxu0 %vm176_vm3, %v98_v31  ;;  %v758_v57 = vpop.trf.xlu1 }
  0xd6   :  { %v727_v58 = vpop.trf.xlu0 }
  0xd7   :  { %4738 = vmatmul.mubr.msk.f32.gmra.mrb[26].mxu0 %vm176_vm3, %v99_v33  ;;  %4782 = vmatmul.mubr.msk.f32.gmra.mrb[4].mxu1 %vm176_vm3, %v727_v58 }
  0xd8   :  { %4740 = vmatprep.mubr.msk.f32.mxu0 %vm176_vm3, %v100_v35  ;;  %v759_v59 = vpop.trf.xlu1 }
  0xda   :  { %v728_v60 = vpop.trf.xlu0 }
  0xdb   :  { %4741 = vmatmul.mubr.msk.f32.gmra.mrb[28].mxu0 %vm176_vm3, %v101_v39  ;;  %4784 = vmatprep.mubr.msk.f32.mxu1 %vm176_vm3, %v728_v60 }
  0xdc   :  { %4743 = vmatprep.mubr.msk.f32.mxu0 %vm176_vm3, %v102_v41  ;;  %v760_v61 = vpop.trf.xlu1 }
  0xde   :  { %v729_v62 = vpop.trf.xlu0 }
  0xdf   :  { %4744 = vmatmul.mubr.msk.f32.gmra.mrb[30].mxu0 %vm176_vm3, %v103_v44  ;;  %4785 = vmatmul.mubr.msk.f32.gmra.mrb[6].mxu1 %vm176_vm3, %v729_v62 }
  0xe0   :  { %v761_v63 = vpop.trf.xlu1 }
  0xe2   :  { %v730_v0 = vpop.trf.xlu0 }
  0xe3   :  { %4787 = vmatprep.mubr.msk.f32.mxu1 %vm176_vm3, %v730_v0 }
  0xe4   :  { %v762_v1 = vpop.trf.xlu1 }
  0xe6   :  { %v731_v2 = vpop.trf.xlu0 }
  0xe7   :  { %4788 = vmatmul.mubr.msk.f32.gmra.mrb[8].mxu1 %vm176_vm3, %v731_v2 }
  0xe8   :  { %v763_v3 = vpop.trf.xlu1 }
  0xea   :  { %v732_v5 = vpop.trf.xlu0 }
  0xeb   :  { %4790 = vmatprep.mubr.msk.f32.mxu1 %vm176_vm3, %v732_v5 }
  0xec   :  { %v764_v6 = vpop.trf.xlu1 }
  0xee   :  { %v733_v7 = vpop.trf.xlu0 }
  0xef   :  { %4791 = vmatmul.mubr.msk.f32.gmra.mrb[10].mxu1 %vm176_vm3, %v733_v7 }
  0xf0   :  { %v765_v8 = vpop.trf.xlu1 }
  0xf2   :  { %v734_v9 = vpop.trf.xlu0 }
  0xf3   :  { %4793 = vmatprep.mubr.msk.f32.mxu1 %vm176_vm3, %v734_v9 }
  0xf4   :  { %v766_v10 = vpop.trf.xlu1 }
  0xf6   :  { %v735_v11 = vpop.trf.xlu0 }
  0xf7   :  { %4794 = vmatmul.mubr.msk.f32.gmra.mrb[12].mxu1 %vm176_vm3, %v735_v11 }
  0xf8   :  { %v767_v12 = vpop.trf.xlu1 }
  0xfa   :  { %v736_v13 = vpop.trf.xlu0 }
  0xfb   :  { %4796 = vmatprep.mubr.msk.f32.mxu1 %vm176_vm3, %v736_v13 }
  0xfc   :  { %v768_v14 = vpop.trf.xlu1 }
  0xfe   :  { %v737_v16 = vpop.trf.xlu0 }
  0xff   :  { %4797 = vmatmul.mubr.msk.f32.gmra.mrb[14].mxu1 %vm176_vm3, %v737_v16 }
 0x100   :  { %4799 = vmatprep.mubr.msk.f32.mxu1 %vm176_vm3, %v5375_v47  ;;  %v769_v18 = vpop.trf.xlu1 }
 0x102   :  { %v120_v19 = vpop.trf.xlu0  ;;  %1404 = vxpose.xlu0.b32.start.end [1/1] (short) %v1368_v15, 128 }
 0x103   :  { %4800 = vmatmul.mubr.msk.f32.gmra.mrb[16].mxu1 %vm176_vm3, %v5381_v49  ;;  %4746 = vmatprep.mubr.msk.f32.mxu0 %vm176_vm3, %v120_v19 }
 0x104   :  { %4802 = vmatprep.mubr.msk.f32.mxu1 %vm176_vm3, %v756_v53  ;;  %v786_v20 = vpop.trf.xlu1  ;;  %2070 = vxpose.xlu1.b32.start.end [1/1] (short) %v2034_v17, 128 }
 0x106   :  { %v121_v21 = vpop.trf.xlu0 }
 0x107   :  { %4803 = vmatmul.mubr.msk.f32.gmra.mrb[18].mxu1 %vm176_vm3, %v757_v55  ;;  %4747 = vmatmul.mubr.msk.f32.gmra.mrb[32].mxu0 %vm176_vm3, %v121_v21 }
 0x108   :  { %4805 = vmatprep.mubr.msk.f32.mxu1 %vm176_vm3, %v758_v57  ;;  %v787_v22 = vpop.trf.xlu1 }
 0x10a   :  { %v122_v23 = vpop.trf.xlu0 }
 0x10b   :  { %4806 = vmatmul.mubr.msk.f32.gmra.mrb[20].mxu1 %vm176_vm3, %v759_v59  ;;  %4749 = vmatprep.mubr.msk.f32.mxu0 %vm176_vm3, %v122_v23 }
 0x10c   :  { %4808 = vmatprep.mubr.msk.f32.mxu1 %vm176_vm3, %v760_v61  ;;  %v788_v24 = vpop.trf.xlu1 }
 0x10e   :  { %v123_v25 = vpop.trf.xlu0 }
 0x10f   :  { %4809 = vmatmul.mubr.msk.f32.gmra.mrb[22].mxu1 %vm176_vm3, %v761_v63  ;;  %4750 = vmatmul.mubr.msk.f32.gmra.mrb[34].mxu0 %vm176_vm3, %v123_v25 }
 0x110   :  { %4811 = vmatprep.mubr.msk.f32.mxu1 %vm176_vm3, %v762_v1  ;;  %v789_v26 = vpop.trf.xlu1  ;;  %v5498_v1 = vld [vmem:[%s6420_s2] ss:$0 sm:$0xff] }
 0x112   :  { %v124_v27 = vpop.trf.xlu0 }
 0x113   :  { %4812 = vmatmul.mubr.msk.f32.gmra.mrb[24].mxu1 %vm176_vm3, %v763_v3  ;;  %4752 = vmatprep.mubr.msk.f32.mxu0 %vm176_vm3, %v124_v27 }
 0x114   :  { %4814 = vmatprep.mubr.msk.f32.mxu1 %vm176_vm3, %v764_v6  ;;  %v790_v28 = vpop.trf.xlu1 }
 0x116   :  { %v125_v29 = vpop.trf.xlu0 }
 0x117   :  { %4815 = vmatmul.mubr.msk.f32.gmra.mrb[26].mxu1 %vm176_vm3, %v765_v8  ;;  %4753 = vmatmul.mubr.msk.f32.gmra.mrb[36].mxu0 %vm176_vm3, %v125_v29 }
 0x118   :  { %4817 = vmatprep.mubr.msk.f32.mxu1 %vm176_vm3, %v766_v10  ;;  %v791_v30 = vpop.trf.xlu1 }
 0x11a   :  { %v126_v31 = vpop.trf.xlu0 }
 0x11b   :  { %4818 = vmatmul.mubr.msk.f32.gmra.mrb[28].mxu1 %vm176_vm3, %v767_v12  ;;  %4755 = vmatprep.mubr.msk.f32.mxu0 %vm176_vm3, %v126_v31 }
 0x11c   :  { %4820 = vmatprep.mubr.msk.f32.mxu1 %vm176_vm3, %v768_v14  ;;  %v792_v32 = vpop.trf.xlu1 }
 0x11e   :  { %v127_v33 = vpop.trf.xlu0 }
 0x11f   :  { %4821 = vmatmul.mubr.msk.f32.gmra.mrb[30].mxu1 %vm176_vm3, %v769_v18  ;;  %4756 = vmatmul.mubr.msk.f32.gmra.mrb[38].mxu0 %vm176_vm3, %v127_v33 }
 0x120   :  { %4823 = vmatprep.mubr.msk.f32.mxu1 %vm176_vm3, %v786_v20  ;;  %v793_v34 = vpop.trf.xlu1 }
 0x122   :  { %v128_v35 = vpop.trf.xlu0 }
 0x123   :  { %4824 = vmatmul.mubr.msk.f32.gmra.mrb[32].mxu1 %vm176_vm3, %v787_v22  ;;  %4758 = vmatprep.mubr.msk.f32.mxu0 %vm176_vm3, %v128_v35 }
 0x124   :  { %4826 = vmatprep.mubr.msk.f32.mxu1 %vm176_vm3, %v788_v24  ;;  %v794_v36 = vpop.trf.xlu1 }
 0x126   :  { %v129_v37 = vpop.trf.xlu0 }
 0x127   :  { %4827 = vmatmul.mubr.msk.f32.gmra.mrb[34].mxu1 %vm176_vm3, %v789_v26  ;;  %4759 = vmatmul.mubr.msk.f32.gmra.mrb[40].mxu0 %vm176_vm3, %v129_v37  ;;  %v1369_v37 = vcombine.high %v5474_v50, %v5474_v50 }
 0x128   :  { %4829 = vmatprep.mubr.msk.f32.mxu1 %vm176_vm3, %v790_v28  ;;  %v795_v38 = vpop.trf.xlu1 }
 0x12a   :  { %v130_v39 = vpop.trf.xlu0 }
 0x12b   :  { %4830 = vmatmul.mubr.msk.f32.gmra.mrb[36].mxu1 %vm176_vm3, %v791_v30  ;;  %4761 = vmatprep.mubr.msk.f32.mxu0 %vm176_vm3, %v130_v39 }
 0x12c   :  { %4832 = vmatprep.mubr.msk.f32.mxu1 %vm176_vm3, %v792_v32  ;;  %v796_v40 = vpop.trf.xlu1 }
 0x12e   :  { %v131_v41 = vpop.trf.xlu0 }
 0x12f   :  { %4833 = vmatmul.mubr.msk.f32.gmra.mrb[38].mxu1 %vm176_vm3, %v793_v34  ;;  %4762 = vmatmul.mubr.msk.f32.gmra.mrb[42].mxu0 %vm176_vm3, %v131_v41 }
 0x130   :  { %4835 = vmatprep.mubr.msk.f32.mxu1 %vm176_vm3, %v794_v36  ;;  %v797_v42 = vpop.trf.xlu1 }
 0x132   :  { %v132_v43 = vpop.trf.xlu0 }
 0x133   :  { %4836 = vmatmul.mubr.msk.f32.gmra.mrb[40].mxu1 %vm176_vm3, %v795_v38  ;;  %4764 = vmatprep.mubr.msk.f32.mxu0 %vm176_vm3, %v132_v43 }
 0x134   :  { %4838 = vmatprep.mubr.msk.f32.mxu1 %vm176_vm3, %v796_v40  ;;  %v798_v44 = vpop.trf.xlu1 }
 0x136   :  { %v133_v45 = vpop.trf.xlu0 }
 0x137   :  { %4839 = vmatmul.mubr.msk.f32.gmra.mrb[42].mxu1 %vm176_vm3, %v797_v42  ;;  %4765 = vmatmul.mubr.msk.f32.gmra.mrb[44].mxu0 %vm176_vm3, %v133_v45  ;;  %v2035_v42 = vcombine.high %v5480_v52, %v5480_v52 }
 0x138   :  { %4841 = vmatprep.mubr.msk.f32.mxu1 %vm176_vm3, %v798_v44  ;;  %v799_v46 = vpop.trf.xlu1 }
 0x13a   :  { %v134_v47 = vpop.trf.xlu0 }
 0x13b   :  { %4842 = vmatmul.mubr.msk.f32.gmra.mrb[44].mxu1 %vm176_vm3, %v799_v46  ;;  %4767 = vmatprep.mubr.msk.f32.mxu0 %vm176_vm3, %v134_v47 }
 0x13c   :  { %v800_v48 = vpop.trf.xlu1 }
 0x13d   :  { %4844 = vmatprep.mubr.msk.f32.mxu1 %vm176_vm3, %v800_v48 }
 0x13e   :  { %v135_v49 = vpop.trf.xlu0 }
 0x13f   :  { %4768 = vmatmul.mubr.msk.f32.gmra.mrb[46].mxu0 %vm176_vm3, %v135_v49 }
 0x140   :  { %v801_v51 = vpop.trf.xlu1 }
 0x141   :  { %4845 = vmatmul.mubr.msk.f32.gmra.mrb[46].mxu1 %vm176_vm3, %v801_v51 }
 0x142   :  { %v152_v53 = vpop.trf.xlu0  ;;  %1436 = vxpose.xlu0.b32.start.end [1/1] (short) %v5474_v50, 128 }
 0x143   :  { %4770 = vmatprep.mubr.msk.f32.mxu0 %vm176_vm3, %v152_v53 }
 0x144   :  { %v818_v54 = vpop.trf.xlu1  ;;  %2102 = vxpose.xlu1.b32.start.end [1/1] (short) %v5480_v52, 128 }
 0x145   :  { %4847 = vmatprep.mubr.msk.f32.mxu1 %vm176_vm3, %v818_v54 }
 0x146   :  { %v153_v55 = vpop.trf.xlu0 }
 0x147   :  { %4771 = vmatmul.mubr.msk.f32.gmra.mrb[48].mxu0 %vm176_vm3, %v153_v55 }
 0x148   :  { %v819_v56 = vpop.trf.xlu1 }
 0x149   :  { %4848 = vmatmul.mubr.msk.f32.gmra.mrb[48].mxu1 %vm176_vm3, %v819_v56 }
 0x14a   :  { %v1388_v57 = vpop.trf.xlu0 }
 0x14b   :  { %4852 = vmatprep.mubr.msk.f32.mxu0 %vm176_vm3, %v1388_v57 }
 0x14c   :  { %v2054_v58 = vpop.trf.xlu1 }
 0x14d   :  { %4929 = vmatprep.mubr.msk.f32.mxu1 %vm176_vm3, %v2054_v58 }
 0x14e   :  { %v1389_v59 = vpop.trf.xlu0 }
 0x14f   :  { %4853 = vmatmul.mubr.msk.f32.vlgmr.msra.gmra.mrb[50].mxu0 %vm176_vm3, %v1389_v59 }
 0x150   :  { %v2055_v60 = vpop.trf.xlu1 }
 0x151   :  { %4930 = vmatmul.mubr.msk.f32.vlgmr.msra.gmra.mrb[50].mxu1 %vm176_vm3, %v2055_v60 }
 0x152   :  { %v1390_v61 = vpop.trf.xlu0 }
 0x153   :  { %4855 = vmatprep.mubr.msk.f32.mxu0 %vm176_vm3, %v1390_v61 }
 0x154   :  { %v2056_v62 = vpop.trf.xlu1 }
 0x155   :  { %4932 = vmatprep.mubr.msk.f32.mxu1 %vm176_vm3, %v2056_v62 }
 0x156   :  { %v1391_v63 = vpop.trf.xlu0 }
 0x157   :  { %4856 = vmatmul.mubr.msk.f32.gmra.mrb[52].mxu0 %vm176_vm3, %v1391_v63 }
 0x158   :  { %v2057_v0 = vpop.trf.xlu1 }
 0x159   :  { %4933 = vmatmul.mubr.msk.f32.gmra.mrb[52].mxu1 %vm176_vm3, %v2057_v0 }
 0x15a   :  { %v4700_v2 = vpop.f32.mrb[0].mxu0  ;;  %v1392_v3 = vpop.trf.xlu0 }
 0x15b   :  { %v403_v5 = vadd.f32 %v4700_v2, %v5498_v1  ;;  %v397_v6 = vpop.f32.mrb[1].mxu0  ;;  %4858 = vmatprep.mubr.msk.f32.mxu0 %vm176_vm3, %v1392_v3 }
 0x15c   :  { %v398_v7 = vadd.f32 %v5498_v1, %v397_v6  ;;  %v2058_v8 = vpop.trf.xlu1 }
 0x15d   :  { %648 = vst.msk [vmem:[#allocation2 + $0x8] sm:$0xff] %vm646_vm4, %v403_v5  ;;  %4935 = vmatprep.mubr.msk.f32.mxu1 %vm176_vm3, %v2058_v8 }
 0x15e   :  { %647 = vst.msk [vmem:[#allocation2] sm:$0xff] %vm646_vm4, %v398_v7  ;;  %v1393_v9 = vpop.trf.xlu0 }
 0x15f   :  { %4859 = vmatmul.mubr.msk.f32.gmra.mrb[54].mxu0 %vm176_vm3, %v1393_v9 }
 0x160   :  { %v2059_v10 = vpop.trf.xlu1 }
 0x161   :  { %4936 = vmatmul.mubr.msk.f32.gmra.mrb[54].mxu1 %vm176_vm3, %v2059_v10 }
 0x162   :  { %v4703_v11 = vpop.f32.mrb[2].mxu0  ;;  %v1394_v12 = vpop.trf.xlu0 }
 0x163   :  { %v413_v13 = vadd.f32 %v4703_v11, %v5498_v1  ;;  %v407_v14 = vpop.f32.mrb[3].mxu0  ;;  %4861 = vmatprep.mubr.msk.f32.mxu0 %vm176_vm3, %v1394_v12  ;;  %v5573_v11 = vld [vmem:[%s6420_s2 + $0x1] ss:$0 sm:$0xff] }
 0x164   :  { %v408_v15 = vadd.f32 %v5498_v1, %v407_v14  ;;  %v2060_v16 = vpop.trf.xlu1 }
 0x165   :  { %650 = vst.msk [vmem:[#allocation2 + $0x18] sm:$0xff] %vm646_vm4, %v413_v13  ;;  %4938 = vmatprep.mubr.msk.f32.mxu1 %vm176_vm3, %v2060_v16 }
 0x166   :  { %649 = vst.msk [vmem:[#allocation2 + $0x10] sm:$0xff] %vm646_vm4, %v408_v15  ;;  %v1395_v17 = vpop.trf.xlu0 }
 0x167   :  { %4862 = vmatmul.mubr.msk.f32.gmra.mrb[56].mxu0 %vm176_vm3, %v1395_v17 }
 0x168   :  { %v2061_v18 = vpop.trf.xlu1 }
 0x169   :  { %4939 = vmatmul.mubr.msk.f32.gmra.mrb[56].mxu1 %vm176_vm3, %v2061_v18 }
 0x16a   :  { %v4706_v19 = vpop.f32.mrb[4].mxu0  ;;  %v1396_v20 = vpop.trf.xlu0 }
 0x16b   :  { %v423_v21 = vadd.f32 %v4706_v19, %v5498_v1  ;;  %v417_v22 = vpop.f32.mrb[5].mxu0  ;;  %4864 = vmatprep.mubr.msk.f32.mxu0 %vm176_vm3, %v1396_v20 }
 0x16c   :  { %v418_v23 = vadd.f32 %v5498_v1, %v417_v22  ;;  %v2062_v24 = vpop.trf.xlu1 }
 0x16d   :  { %652 = vst.msk [vmem:[#allocation2 + $0x28] sm:$0xff] %vm646_vm4, %v423_v21  ;;  %4941 = vmatprep.mubr.msk.f32.mxu1 %vm176_vm3, %v2062_v24 }
 0x16e   :  { %651 = vst.msk [vmem:[#allocation2 + $0x20] sm:$0xff] %vm646_vm4, %v418_v23  ;;  %v1397_v25 = vpop.trf.xlu0 }
 0x16f   :  { %4865 = vmatmul.mubr.msk.f32.gmra.mrb[58].mxu0 %vm176_vm3, %v1397_v25 }
 0x170   :  { %v2063_v26 = vpop.trf.xlu1 }
 0x171   :  { %4942 = vmatmul.mubr.msk.f32.gmra.mrb[58].mxu1 %vm176_vm3, %v2063_v26 }
 0x172   :  { %v4709_v27 = vpop.f32.mrb[6].mxu0  ;;  %v1398_v28 = vpop.trf.xlu0 }
 0x173   :  { %v433_v29 = vadd.f32 %v4709_v27, %v5498_v1  ;;  %v427_v30 = vpop.f32.mrb[7].mxu0  ;;  %4867 = vmatprep.mubr.msk.f32.mxu0 %vm176_vm3, %v1398_v28 }
 0x174   :  { %v428_v31 = vadd.f32 %v5498_v1, %v427_v30  ;;  %v2064_v32 = vpop.trf.xlu1 }
 0x175   :  { %654 = vst.msk [vmem:[#allocation2 + $0x38] sm:$0xff] %vm646_vm4, %v433_v29  ;;  %4944 = vmatprep.mubr.msk.f32.mxu1 %vm176_vm3, %v2064_v32 }
 0x176   :  { %653 = vst.msk [vmem:[#allocation2 + $0x30] sm:$0xff] %vm646_vm4, %v428_v31  ;;  %v1399_v33 = vpop.trf.xlu0 }
 0x177   :  { %4868 = vmatmul.mubr.msk.f32.gmra.mrb[60].mxu0 %vm176_vm3, %v1399_v33 }
 0x178   :  { %v2065_v34 = vpop.trf.xlu1 }
 0x179   :  { %4945 = vmatmul.mubr.msk.f32.gmra.mrb[60].mxu1 %vm176_vm3, %v2065_v34 }
 0x17a   :  { %v4712_v35 = vpop.f32.mrb[8].mxu0  ;;  %v1400_v36 = vpop.trf.xlu0 }
 0x17b   :  { %v443_v38 = vadd.f32 %v4712_v35, %v5498_v1  ;;  %v437_v39 = vpop.f32.mrb[9].mxu0  ;;  %4870 = vmatprep.mubr.msk.f32.mxu0 %vm176_vm3, %v1400_v36 }
 0x17c   :  { %v438_v40 = vadd.f32 %v5498_v1, %v437_v39  ;;  %v2066_v41 = vpop.trf.xlu1 }
 0x17d   :  { %656 = vst.msk [vmem:[#allocation2 + $0x48] sm:$0xff] %vm646_vm4, %v443_v38  ;;  %4947 = vmatprep.mubr.msk.f32.mxu1 %vm176_vm3, %v2066_v41 }
 0x17e   :  { %655 = vst.msk [vmem:[#allocation2 + $0x40] sm:$0xff] %vm646_vm4, %v438_v40  ;;  %v1401_v43 = vpop.trf.xlu0 }
 0x17f   :  { %4871 = vmatmul.mubr.msk.f32.gmra.mrb[62].mxu0 %vm176_vm3, %v1401_v43  ;;  %1468 = vxpose.xlu0.b32.start.end [1/1] (short) (narrow) %v1369_v37, 16 }
 0x180   :  { %v2067_v44 = vpop.trf.xlu1 }
 0x181   :  { %4948 = vmatmul.mubr.msk.f32.gmra.mrb[62].mxu1 %vm176_vm3, %v2067_v44  ;;  %2134 = vxpose.xlu1.b32.start.end [1/1] (short) (narrow) %v2035_v42, 16 }
 0x182   :  { %v4715_v45 = vpop.f32.mrb[10].mxu0  ;;  %v1402_v46 = vpop.trf.xlu0 }
 0x183   :  { %v453_v47 = vadd.f32 %v4715_v45, %v5498_v1  ;;  %v447_v48 = vpop.f32.mrb[11].mxu0  ;;  %4873 = vmatprep.mubr.msk.f32.mxu0 %vm176_vm3, %v1402_v46 }
 0x184   :  { %v448_v49 = vadd.f32 %v5498_v1, %v447_v48  ;;  %v2068_v50 = vpop.trf.xlu1 }
 0x185   :  { %658 = vst.msk [vmem:[#allocation2 + $0x58] sm:$0xff] %vm646_vm4, %v453_v47  ;;  %4950 = vmatprep.mubr.msk.f32.mxu1 %vm176_vm3, %v2068_v50 }
 0x186   :  { %657 = vst.msk [vmem:[#allocation2 + $0x50] sm:$0xff] %vm646_vm4, %v448_v49  ;;  %v1403_v51 = vpop.trf.xlu0 }
 0x187   :  { %4874 = vmatmul.mubr.msk.f32.gmra.mrb[64].mxu0 %vm176_vm3, %v1403_v51 }
 0x188   :  { %v2069_v52 = vpop.trf.xlu1 }
 0x189   :  { %4951 = vmatmul.mubr.msk.f32.gmra.mrb[64].mxu1 %vm176_vm3, %v2069_v52 }
 0x18a   :  { %v4718_v53 = vpop.f32.mrb[12].mxu0  ;;  %v1420_v54 = vpop.trf.xlu0 }
 0x18b   :  { %v463_v55 = vadd.f32 %v4718_v53, %v5498_v1  ;;  %v457_v56 = vpop.f32.mrb[13].mxu0  ;;  %4876 = vmatprep.mubr.msk.f32.mxu0 %vm176_vm3, %v1420_v54 }
 0x18c   :  { %v458_v57 = vadd.f32 %v5498_v1, %v457_v56  ;;  %v2086_v58 = vpop.trf.xlu1 }
 0x18d   :  { %660 = vst.msk [vmem:[#allocation2 + $0x68] sm:$0xff] %vm646_vm4, %v463_v55  ;;  %4953 = vmatprep.mubr.msk.f32.mxu1 %vm176_vm3, %v2086_v58 }
 0x18e   :  { %659 = vst.msk [vmem:[#allocation2 + $0x60] sm:$0xff] %vm646_vm4, %v458_v57  ;;  %v1421_v59 = vpop.trf.xlu0 }
 0x18f   :  { %4877 = vmatmul.mubr.msk.f32.gmra.mrb[66].mxu0 %vm176_vm3, %v1421_v59 }
 0x190   :  { %v2087_v60 = vpop.trf.xlu1 }
 0x191   :  { %4954 = vmatmul.mubr.msk.f32.gmra.mrb[66].mxu1 %vm176_vm3, %v2087_v60 }
 0x192   :  { %v4721_v61 = vpop.f32.mrb[14].mxu0  ;;  %v1422_v62 = vpop.trf.xlu0 }
 0x193   :  { %v473_v63 = vadd.f32 %v4721_v61, %v5498_v1  ;;  %v467_v0 = vpop.f32.mrb[15].mxu0  ;;  %4879 = vmatprep.mubr.msk.f32.mxu0 %vm176_vm3, %v1422_v62 }
 0x194   :  { %v468_v2 = vadd.f32 %v5498_v1, %v467_v0  ;;  %v2088_v3 = vpop.trf.xlu1 }
 0x195   :  { %662 = vst.msk [vmem:[#allocation2 + $0x78] sm:$0xff] %vm646_vm4, %v473_v63  ;;  %4956 = vmatprep.mubr.msk.f32.mxu1 %vm176_vm3, %v2088_v3 }
 0x196   :  { %661 = vst.msk [vmem:[#allocation2 + $0x70] sm:$0xff] %vm646_vm4, %v468_v2  ;;  %v4724_v5 = vpop.f32.mrb[16].mxu0  ;;  %v1423_v6 = vpop.trf.xlu0 }
 0x197   :  { %v483_v7 = vadd.f32 %v4724_v5, %v5498_v1  ;;  %v477_v8 = vpop.f32.mrb[17].mxu0  ;;  %4880 = vmatmul.mubr.msk.f32.gmra.mrb[68].mxu0 %vm176_vm3, %v1423_v6 }
 0x198   :  { %v478_v9 = vadd.f32 %v5498_v1, %v477_v8  ;;  %v2089_v10 = vpop.trf.xlu1 }
 0x199   :  { %664 = vst.msk [vmem:[#allocation2 + $0x88] sm:$0xff] %vm646_vm4, %v483_v7  ;;  %4957 = vmatmul.mubr.msk.f32.gmra.mrb[68].mxu1 %vm176_vm3, %v2089_v10 }
 0x19a   :  { %663 = vst.msk [vmem:[#allocation2 + $0x80] sm:$0xff] %vm646_vm4, %v478_v9  ;;  %v4727_v12 = vpop.f32.mrb[18].mxu0  ;;  %v4777_v13 = vpop.f32.mrb[0].mxu1 }
 0x19b   :  { %v493_v14 = vadd.f32 %v4727_v12, %v5498_v1  ;;  %v1069_v15 = vadd.f32 %v4777_v13, %v5573_v11  ;;  %v1424_v16 = vpop.trf.xlu0  ;;  %v487_v17 = vpop.f32.mrb[19].mxu0 }
 0x19c   :  { %v488_v18 = vadd.f32 %v5498_v1, %v487_v17  ;;  %v1063_v19 = vpop.f32.mrb[1].mxu1  ;;  %v2090_v20 = vpop.trf.xlu1  ;;  %4882 = vmatprep.mubr.msk.f32.mxu0 %vm176_vm3, %v1424_v16 }
 0x19d   :  { %666 = vst.msk [vmem:[#allocation2 + $0x98] sm:$0xff] %vm646_vm4, %v493_v14  ;;  %1314 = vst.msk [vmem:[#allocation2 + $0x198] sm:$0xff] %vm646_vm4, %v1069_v15  ;;  %v1064_v21 = vadd.f32 %v5573_v11, %v1063_v19  ;;  %4959 = vmatprep.mubr.msk.f32.mxu1 %vm176_vm3, %v2090_v20 }
 0x19e   :  { %665 = vst.msk [vmem:[#allocation2 + $0x90] sm:$0xff] %vm646_vm4, %v488_v18  ;;  %v4730_v22 = vpop.f32.mrb[20].mxu0 }
 0x19f   :  { %1313 = vst.msk [vmem:[#allocation2 + $0x190] sm:$0xff] %vm646_vm4, %v1064_v21  ;;  %v503_v23 = vadd.f32 %v4730_v22, %v5498_v1  ;;  %v1425_v24 = vpop.trf.xlu0  ;;  %v497_v25 = vpop.f32.mrb[21].mxu0 }
 0x1a0   :  { %v498_v26 = vadd.f32 %v5498_v1, %v497_v25  ;;  %4883 = vmatmul.mubr.msk.f32.gmra.mrb[70].mxu0 %vm176_vm3, %v1425_v24  ;;  %v2091_v27 = vpop.trf.xlu1 }
 0x1a1   :  { %668 = vst.msk [vmem:[#allocation2 + $0xa8] sm:$0xff] %vm646_vm4, %v503_v23  ;;  %4960 = vmatmul.mubr.msk.f32.gmra.mrb[70].mxu1 %vm176_vm3, %v2091_v27 }
 0x1a2   :  { %667 = vst.msk [vmem:[#allocation2 + $0xa0] sm:$0xff] %vm646_vm4, %v498_v26  ;;  %v4733_v28 = vpop.f32.mrb[22].mxu0  ;;  %v4780_v29 = vpop.f32.mrb[2].mxu1 }
 0x1a3   :  { %v513_v30 = vadd.f32 %v4733_v28, %v5498_v1  ;;  %v1079_v31 = vadd.f32 %v4780_v29, %v5573_v11  ;;  %v1426_v32 = vpop.trf.xlu0  ;;  %v507_v33 = vpop.f32.mrb[23].mxu0 }
 0x1a4   :  { %v508_v34 = vadd.f32 %v5498_v1, %v507_v33  ;;  %v1073_v35 = vpop.f32.mrb[3].mxu1  ;;  %v2092_v36 = vpop.trf.xlu1  ;;  %4885 = vmatprep.mubr.msk.f32.mxu0 %vm176_vm3, %v1426_v32 }
 0x1a5   :  { %670 = vst.msk [vmem:[#allocation2 + $0xb8] sm:$0xff] %vm646_vm4, %v513_v30  ;;  %1316 = vst.msk [vmem:[#allocation2 + $0x1a8] sm:$0xff] %vm646_vm4, %v1079_v31  ;;  %v1074_v37 = vadd.f32 %v5573_v11, %v1073_v35  ;;  %4962 = vmatprep.mubr.msk.f32.mxu1 %vm176_vm3, %v2092_v36 }
 0x1a6   :  { %669 = vst.msk [vmem:[#allocation2 + $0xb0] sm:$0xff] %vm646_vm4, %v508_v34  ;;  %v4736_v38 = vpop.f32.mrb[24].mxu0 }
 0x1a7   :  { %1315 = vst.msk [vmem:[#allocation2 + $0x1a0] sm:$0xff] %vm646_vm4, %v1074_v37  ;;  %v523_v39 = vadd.f32 %v4736_v38, %v5498_v1  ;;  %v1427_v40 = vpop.trf.xlu0  ;;  %v517_v41 = vpop.f32.mrb[25].mxu0 }
 0x1a8   :  { %v518_v42 = vadd.f32 %v5498_v1, %v517_v41  ;;  %4886 = vmatmul.mubr.msk.f32.gmra.mrb[72].mxu0 %vm176_vm3, %v1427_v40  ;;  %v2093_v43 = vpop.trf.xlu1 }
 0x1a9   :  { %672 = vst.msk [vmem:[#allocation2 + $0xc8] sm:$0xff] %vm646_vm4, %v523_v39  ;;  %4963 = vmatmul.mubr.msk.f32.gmra.mrb[72].mxu1 %vm176_vm3, %v2093_v43 }
 0x1aa   :  { %671 = vst.msk [vmem:[#allocation2 + $0xc0] sm:$0xff] %vm646_vm4, %v518_v42  ;;  %v4739_v44 = vpop.f32.mrb[26].mxu0  ;;  %v4783_v45 = vpop.f32.mrb[4].mxu1 }
 0x1ab   :  { %v533_v46 = vadd.f32 %v4739_v44, %v5498_v1  ;;  %v1089_v47 = vadd.f32 %v4783_v45, %v5573_v11  ;;  %v1428_v48 = vpop.trf.xlu0  ;;  %v527_v49 = vpop.f32.mrb[27].mxu0 }
 0x1ac   :  { %v528_v50 = vadd.f32 %v5498_v1, %v527_v49  ;;  %v1083_v51 = vpop.f32.mrb[5].mxu1  ;;  %v2094_v52 = vpop.trf.xlu1  ;;  %4888 = vmatprep.mubr.msk.f32.mxu0 %vm176_vm3, %v1428_v48 }
 0x1ad   :  { %674 = vst.msk [vmem:[#allocation2 + $0xd8] sm:$0xff] %vm646_vm4, %v533_v46  ;;  %1318 = vst.msk [vmem:[#allocation2 + $0x1b8] sm:$0xff] %vm646_vm4, %v1089_v47  ;;  %v1084_v53 = vadd.f32 %v5573_v11, %v1083_v51  ;;  %4965 = vmatprep.mubr.msk.f32.mxu1 %vm176_vm3, %v2094_v52 }
 0x1ae   :  { %673 = vst.msk [vmem:[#allocation2 + $0xd0] sm:$0xff] %vm646_vm4, %v528_v50  ;;  %v4742_v54 = vpop.f32.mrb[28].mxu0 }
 0x1af   :  { %1317 = vst.msk [vmem:[#allocation2 + $0x1b0] sm:$0xff] %vm646_vm4, %v1084_v53  ;;  %v543_v55 = vadd.f32 %v4742_v54, %v5498_v1  ;;  %v1429_v56 = vpop.trf.xlu0  ;;  %v537_v57 = vpop.f32.mrb[29].mxu0 }
 0x1b0   :  { %v538_v58 = vadd.f32 %v5498_v1, %v537_v57  ;;  %4889 = vmatmul.mubr.msk.f32.gmra.mrb[74].mxu0 %vm176_vm3, %v1429_v56  ;;  %v2095_v59 = vpop.trf.xlu1 }
 0x1b1   :  { %676 = vst.msk [vmem:[#allocation2 + $0xe8] sm:$0xff] %vm646_vm4, %v543_v55  ;;  %4966 = vmatmul.mubr.msk.f32.gmra.mrb[74].mxu1 %vm176_vm3, %v2095_v59 }
 0x1b2   :  { %675 = vst.msk [vmem:[#allocation2 + $0xe0] sm:$0xff] %vm646_vm4, %v538_v58  ;;  %v4745_v60 = vpop.f32.mrb[30].mxu0  ;;  %v4786_v61 = vpop.f32.mrb[6].mxu1 }
 0x1b3   :  { %v553_v62 = vadd.f32 %v4745_v60, %v5498_v1  ;;  %v1099_v63 = vadd.f32 %v4786_v61, %v5573_v11  ;;  %v1430_v0 = vpop.trf.xlu0  ;;  %v547_v2 = vpop.f32.mrb[31].mxu0 }
 0x1b4   :  { %v548_v3 = vadd.f32 %v5498_v1, %v547_v2  ;;  %v1093_v5 = vpop.f32.mrb[7].mxu1  ;;  %v2096_v6 = vpop.trf.xlu1  ;;  %4891 = vmatprep.mubr.msk.f32.mxu0 %vm176_vm3, %v1430_v0 }
 0x1b5   :  { %678 = vst.msk [vmem:[#allocation2 + $0xf8] sm:$0xff] %vm646_vm4, %v553_v62  ;;  %1320 = vst.msk [vmem:[#allocation2 + $0x1c8] sm:$0xff] %vm646_vm4, %v1099_v63  ;;  %v1094_v7 = vadd.f32 %v5573_v11, %v1093_v5  ;;  %4968 = vmatprep.mubr.msk.f32.mxu1 %vm176_vm3, %v2096_v6 }
 0x1b6   :  { %677 = vst.msk [vmem:[#allocation2 + $0xf0] sm:$0xff] %vm646_vm4, %v548_v3 }
 0x1b7   :  { %1319 = vst.msk [vmem:[#allocation2 + $0x1c0] sm:$0xff] %vm646_vm4, %v1094_v7  ;;  %v1431_v8 = vpop.trf.xlu0 }
 0x1b8   :  { %4892 = vmatmul.mubr.msk.f32.gmra.mrb[76].mxu0 %vm176_vm3, %v1431_v8  ;;  %v2097_v9 = vpop.trf.xlu1 }
 0x1b9   :  { %4969 = vmatmul.mubr.msk.f32.gmra.mrb[76].mxu1 %vm176_vm3, %v2097_v9 }
 0x1ba   :  { %v4789_v10 = vpop.f32.mrb[8].mxu1 }
 0x1bb   :  { %v1109_v12 = vadd.f32 %v4789_v10, %v5573_v11  ;;  %v1432_v13 = vpop.trf.xlu0  ;;  %v1103_v14 = vpop.f32.mrb[9].mxu1 }
 0x1bc   :  { %v1104_v15 = vadd.f32 %v5573_v11, %v1103_v14  ;;  %v2098_v16 = vpop.trf.xlu1  ;;  %4894 = vmatprep.mubr.msk.f32.mxu0 %vm176_vm3, %v1432_v13 }
 0x1bd   :  { %1322 = vst.msk [vmem:[#allocation2 + $0x1d8] sm:$0xff] %vm646_vm4, %v1109_v12  ;;  %4971 = vmatprep.mubr.msk.f32.mxu1 %vm176_vm3, %v2098_v16 }
 0x1be   :  { %1321 = vst.msk [vmem:[#allocation2 + $0x1d0] sm:$0xff] %vm646_vm4, %v1104_v15 }
 0x1bf   :  { %v1433_v17 = vpop.trf.xlu0 }
 0x1c0   :  { %4895 = vmatmul.mubr.msk.f32.gmra.mrb[78].mxu0 %vm176_vm3, %v1433_v17  ;;  %v2099_v18 = vpop.trf.xlu1 }
 0x1c1   :  { %4972 = vmatmul.mubr.msk.f32.gmra.mrb[78].mxu1 %vm176_vm3, %v2099_v18 }
 0x1c2   :  { %v4792_v19 = vpop.f32.mrb[10].mxu1 }
 0x1c3   :  { %v1119_v20 = vadd.f32 %v4792_v19, %v5573_v11  ;;  %v1434_v21 = vpop.trf.xlu0  ;;  %v1113_v22 = vpop.f32.mrb[11].mxu1 }
 0x1c4   :  { %v1114_v23 = vadd.f32 %v5573_v11, %v1113_v22  ;;  %v2100_v24 = vpop.trf.xlu1  ;;  %4897 = vmatprep.mubr.msk.f32.mxu0 %vm176_vm3, %v1434_v21 }
 0x1c5   :  { %1324 = vst.msk [vmem:[#allocation2 + $0x1e8] sm:$0xff] %vm646_vm4, %v1119_v20  ;;  %4974 = vmatprep.mubr.msk.f32.mxu1 %vm176_vm3, %v2100_v24 }
 0x1c6   :  { %1323 = vst.msk [vmem:[#allocation2 + $0x1e0] sm:$0xff] %vm646_vm4, %v1114_v23 }
 0x1c7   :  { %v1435_v25 = vpop.trf.xlu0 }
 0x1c8   :  { %4898 = vmatmul.mubr.msk.f32.gmra.mrb[80].mxu0 %vm176_vm3, %v1435_v25  ;;  %v2101_v26 = vpop.trf.xlu1 }
 0x1c9   :  { %4975 = vmatmul.mubr.msk.f32.gmra.mrb[80].mxu1 %vm176_vm3, %v2101_v26 }
 0x1ca   :  { %v4795_v27 = vpop.f32.mrb[12].mxu1 }
 0x1cb   :  { %v1129_v28 = vadd.f32 %v4795_v27, %v5573_v11  ;;  %v1452_v29 = vpop.trf.xlu0  ;;  %v1123_v30 = vpop.f32.mrb[13].mxu1 }
 0x1cc   :  { %v1124_v31 = vadd.f32 %v5573_v11, %v1123_v30  ;;  %v2118_v32 = vpop.trf.xlu1  ;;  %4900 = vmatprep.mubr.msk.f32.mxu0 %vm176_vm3, %v1452_v29 }
 0x1cd   :  { %1326 = vst.msk [vmem:[#allocation2 + $0x1f8] sm:$0xff] %vm646_vm4, %v1129_v28  ;;  %4977 = vmatprep.mubr.msk.f32.mxu1 %vm176_vm3, %v2118_v32 }
 0x1ce   :  { %1325 = vst.msk [vmem:[#allocation2 + $0x1f0] sm:$0xff] %vm646_vm4, %v1124_v31 }
 0x1cf   :  { %v1453_v33 = vpop.trf.xlu0 }
 0x1d0   :  { %4901 = vmatmul.mubr.msk.f32.gmra.mrb[82].mxu0 %vm176_vm3, %v1453_v33  ;;  %v2119_v34 = vpop.trf.xlu1 }
 0x1d1   :  { %4978 = vmatmul.mubr.msk.f32.gmra.mrb[82].mxu1 %vm176_vm3, %v2119_v34 }
 0x1d2   :  { %v4798_v35 = vpop.f32.mrb[14].mxu1 }
 0x1d3   :  { %v1139_v36 = vadd.f32 %v4798_v35, %v5573_v11  ;;  %v1454_v37 = vpop.trf.xlu0  ;;  %v1133_v38 = vpop.f32.mrb[15].mxu1 }
 0x1d4   :  { %v1134_v39 = vadd.f32 %v5573_v11, %v1133_v38  ;;  %v2120_v40 = vpop.trf.xlu1  ;;  %4903 = vmatprep.mubr.msk.f32.mxu0 %vm176_vm3, %v1454_v37 }
 0x1d5   :  { %1328 = vst.msk [vmem:[#allocation2 + $0x208] sm:$0xff] %vm646_vm4, %v1139_v36  ;;  %4980 = vmatprep.mubr.msk.f32.mxu1 %vm176_vm3, %v2120_v40 }
 0x1d6   :  { %1327 = vst.msk [vmem:[#allocation2 + $0x200] sm:$0xff] %vm646_vm4, %v1134_v39  ;;  %v4801_v41 = vpop.f32.mrb[16].mxu1 }
 0x1d7   :  { %v1149_v42 = vadd.f32 %v4801_v41, %v5573_v11  ;;  %v1455_v43 = vpop.trf.xlu0  ;;  %v1143_v44 = vpop.f32.mrb[17].mxu1 }
 0x1d8   :  { %v1144_v45 = vadd.f32 %v5573_v11, %v1143_v44  ;;  %4904 = vmatmul.mubr.msk.f32.gmra.mrb[84].mxu0 %vm176_vm3, %v1455_v43  ;;  %v2121_v46 = vpop.trf.xlu1 }
 0x1d9   :  { %1330 = vst.msk [vmem:[#allocation2 + $0x218] sm:$0xff] %vm646_vm4, %v1149_v42  ;;  %4981 = vmatmul.mubr.msk.f32.gmra.mrb[84].mxu1 %vm176_vm3, %v2121_v46 }
 0x1da   :  { %1329 = vst.msk [vmem:[#allocation2 + $0x210] sm:$0xff] %vm646_vm4, %v1144_v45  ;;  %v4804_v47 = vpop.f32.mrb[18].mxu1  ;;  %v4748_v48 = vpop.f32.mrb[32].mxu0 }
 0x1db   :  { %v1159_v49 = vadd.f32 %v4804_v47, %v5573_v11  ;;  %v1456_v50 = vpop.trf.xlu0  ;;  %v563_v51 = vadd.f32 %v4748_v48, %v5498_v1  ;;  %v1153_v52 = vpop.f32.mrb[19].mxu1 }
 0x1dc   :  { %v1154_v53 = vadd.f32 %v5573_v11, %v1153_v52  ;;  %v557_v54 = vpop.f32.mrb[33].mxu0  ;;  %v2122_v55 = vpop.trf.xlu1  ;;  %4906 = vmatprep.mubr.msk.f32.mxu0 %vm176_vm3, %v1456_v50 }
 0x1dd   :  { %1332 = vst.msk [vmem:[#allocation2 + $0x228] sm:$0xff] %vm646_vm4, %v1159_v49  ;;  %680 = vst.msk [vmem:[#allocation2 + $0x108] sm:$0xff] %vm646_vm4, %v563_v51  ;;  %v558_v56 = vadd.f32 %v5498_v1, %v557_v54  ;;  %4983 = vmatprep.mubr.msk.f32.mxu1 %vm176_vm3, %v2122_v55 }
 0x1de   :  { %1331 = vst.msk [vmem:[#allocation2 + $0x220] sm:$0xff] %vm646_vm4, %v1154_v53  ;;  %v4807_v57 = vpop.f32.mrb[20].mxu1 }
 0x1df   :  { %679 = vst.msk [vmem:[#allocation2 + $0x100] sm:$0xff] %vm646_vm4, %v558_v56  ;;  %v1169_v58 = vadd.f32 %v4807_v57, %v5573_v11  ;;  %v1457_v59 = vpop.trf.xlu0  ;;  %v1163_v60 = vpop.f32.mrb[21].mxu1 }
 0x1e0   :  { %v1164_v61 = vadd.f32 %v5573_v11, %v1163_v60  ;;  %4907 = vmatmul.mubr.msk.f32.gmra.mrb[86].mxu0 %vm176_vm3, %v1457_v59  ;;  %v2123_v62 = vpop.trf.xlu1 }
 0x1e1   :  { %1334 = vst.msk [vmem:[#allocation2 + $0x238] sm:$0xff] %vm646_vm4, %v1169_v58  ;;  %4984 = vmatmul.mubr.msk.f32.gmra.mrb[86].mxu1 %vm176_vm3, %v2123_v62 }
 0x1e2   :  { %1333 = vst.msk [vmem:[#allocation2 + $0x230] sm:$0xff] %vm646_vm4, %v1164_v61  ;;  %v4810_v63 = vpop.f32.mrb[22].mxu1  ;;  %v4751_v0 = vpop.f32.mrb[34].mxu0 }
 0x1e3   :  { %v1179_v2 = vadd.f32 %v4810_v63, %v5573_v11  ;;  %v1458_v3 = vpop.trf.xlu0  ;;  %v573_v5 = vadd.f32 %v4751_v0, %v5498_v1  ;;  %v1173_v6 = vpop.f32.mrb[23].mxu1 }
 0x1e4   :  { %v1174_v7 = vadd.f32 %v5573_v11, %v1173_v6  ;;  %v567_v8 = vpop.f32.mrb[35].mxu0  ;;  %v2124_v9 = vpop.trf.xlu1  ;;  %4909 = vmatprep.mubr.msk.f32.mxu0 %vm176_vm3, %v1458_v3 }
 0x1e5   :  { %1336 = vst.msk [vmem:[#allocation2 + $0x248] sm:$0xff] %vm646_vm4, %v1179_v2  ;;  %682 = vst.msk [vmem:[#allocation2 + $0x118] sm:$0xff] %vm646_vm4, %v573_v5  ;;  %v568_v10 = vadd.f32 %v5498_v1, %v567_v8  ;;  %4986 = vmatprep.mubr.msk.f32.mxu1 %vm176_vm3, %v2124_v9 }
 0x1e6   :  { %1335 = vst.msk [vmem:[#allocation2 + $0x240] sm:$0xff] %vm646_vm4, %v1174_v7  ;;  %v4813_v12 = vpop.f32.mrb[24].mxu1 }
 0x1e7   :  { %681 = vst.msk [vmem:[#allocation2 + $0x110] sm:$0xff] %vm646_vm4, %v568_v10  ;;  %v1189_v13 = vadd.f32 %v4813_v12, %v5573_v11  ;;  %v1459_v14 = vpop.trf.xlu0  ;;  %v1183_v15 = vpop.f32.mrb[25].mxu1 }
 0x1e8   :  { %v1184_v16 = vadd.f32 %v5573_v11, %v1183_v15  ;;  %4910 = vmatmul.mubr.msk.f32.gmra.mrb[88].mxu0 %vm176_vm3, %v1459_v14  ;;  %v2125_v17 = vpop.trf.xlu1 }
 0x1e9   :  { %1338 = vst.msk [vmem:[#allocation2 + $0x258] sm:$0xff] %vm646_vm4, %v1189_v13  ;;  %4987 = vmatmul.mubr.msk.f32.gmra.mrb[88].mxu1 %vm176_vm3, %v2125_v17 }
 0x1ea   :  { %1337 = vst.msk [vmem:[#allocation2 + $0x250] sm:$0xff] %vm646_vm4, %v1184_v16  ;;  %v4816_v18 = vpop.f32.mrb[26].mxu1  ;;  %v4754_v19 = vpop.f32.mrb[36].mxu0 }
 0x1eb   :  { %v1199_v20 = vadd.f32 %v4816_v18, %v5573_v11  ;;  %v1460_v21 = vpop.trf.xlu0  ;;  %v583_v22 = vadd.f32 %v4754_v19, %v5498_v1  ;;  %v1193_v23 = vpop.f32.mrb[27].mxu1 }
 0x1ec   :  { %v1194_v24 = vadd.f32 %v5573_v11, %v1193_v23  ;;  %v577_v25 = vpop.f32.mrb[37].mxu0  ;;  %v2126_v26 = vpop.trf.xlu1  ;;  %4912 = vmatprep.mubr.msk.f32.mxu0 %vm176_vm3, %v1460_v21 }
 0x1ed   :  { %1340 = vst.msk [vmem:[#allocation2 + $0x268] sm:$0xff] %vm646_vm4, %v1199_v20  ;;  %684 = vst.msk [vmem:[#allocation2 + $0x128] sm:$0xff] %vm646_vm4, %v583_v22  ;;  %v578_v27 = vadd.f32 %v5498_v1, %v577_v25  ;;  %4989 = vmatprep.mubr.msk.f32.mxu1 %vm176_vm3, %v2126_v26 }
 0x1ee   :  { %1339 = vst.msk [vmem:[#allocation2 + $0x260] sm:$0xff] %vm646_vm4, %v1194_v24  ;;  %v4819_v28 = vpop.f32.mrb[28].mxu1 }
 0x1ef   :  { %683 = vst.msk [vmem:[#allocation2 + $0x120] sm:$0xff] %vm646_vm4, %v578_v27  ;;  %v1209_v29 = vadd.f32 %v4819_v28, %v5573_v11  ;;  %v1461_v30 = vpop.trf.xlu0  ;;  %v1203_v31 = vpop.f32.mrb[29].mxu1 }
 0x1f0   :  { %v1204_v32 = vadd.f32 %v5573_v11, %v1203_v31  ;;  %4913 = vmatmul.mubr.msk.f32.gmra.mrb[90].mxu0 %vm176_vm3, %v1461_v30  ;;  %v2127_v33 = vpop.trf.xlu1 }
 0x1f1   :  { %1342 = vst.msk [vmem:[#allocation2 + $0x278] sm:$0xff] %vm646_vm4, %v1209_v29  ;;  %4990 = vmatmul.mubr.msk.f32.gmra.mrb[90].mxu1 %vm176_vm3, %v2127_v33 }
 0x1f2   :  { %1341 = vst.msk [vmem:[#allocation2 + $0x270] sm:$0xff] %vm646_vm4, %v1204_v32  ;;  %v4822_v34 = vpop.f32.mrb[30].mxu1  ;;  %v4757_v35 = vpop.f32.mrb[38].mxu0 }
 0x1f3   :  { %v1219_v36 = vadd.f32 %v4822_v34, %v5573_v11  ;;  %v1462_v37 = vpop.trf.xlu0  ;;  %v593_v38 = vadd.f32 %v4757_v35, %v5498_v1  ;;  %v1213_v39 = vpop.f32.mrb[31].mxu1 }
 0x1f4   :  { %v1214_v40 = vadd.f32 %v5573_v11, %v1213_v39  ;;  %v587_v41 = vpop.f32.mrb[39].mxu0  ;;  %v2128_v42 = vpop.trf.xlu1  ;;  %4915 = vmatprep.mubr.msk.f32.mxu0 %vm176_vm3, %v1462_v37 }
 0x1f5   :  { %1344 = vst.msk [vmem:[#allocation2 + $0x288] sm:$0xff] %vm646_vm4, %v1219_v36  ;;  %686 = vst.msk [vmem:[#allocation2 + $0x138] sm:$0xff] %vm646_vm4, %v593_v38  ;;  %v588_v43 = vadd.f32 %v5498_v1, %v587_v41  ;;  %4992 = vmatprep.mubr.msk.f32.mxu1 %vm176_vm3, %v2128_v42 }
 0x1f6   :  { %1343 = vst.msk [vmem:[#allocation2 + $0x280] sm:$0xff] %vm646_vm4, %v1214_v40  ;;  %v4825_v44 = vpop.f32.mrb[32].mxu1 }
 0x1f7   :  { %685 = vst.msk [vmem:[#allocation2 + $0x130] sm:$0xff] %vm646_vm4, %v588_v43  ;;  %v1229_v45 = vadd.f32 %v4825_v44, %v5573_v11  ;;  %v1463_v46 = vpop.trf.xlu0  ;;  %v1223_v47 = vpop.f32.mrb[33].mxu1 }
 0x1f8   :  { %v1224_v48 = vadd.f32 %v5573_v11, %v1223_v47  ;;  %4916 = vmatmul.mubr.msk.f32.gmra.mrb[92].mxu0 %vm176_vm3, %v1463_v46  ;;  %v2129_v49 = vpop.trf.xlu1 }
 0x1f9   :  { %1346 = vst.msk [vmem:[#allocation2 + $0x298] sm:$0xff] %vm646_vm4, %v1229_v45  ;;  %4993 = vmatmul.mubr.msk.f32.gmra.mrb[92].mxu1 %vm176_vm3, %v2129_v49 }
 0x1fa   :  { %1345 = vst.msk [vmem:[#allocation2 + $0x290] sm:$0xff] %vm646_vm4, %v1224_v48  ;;  %v4828_v50 = vpop.f32.mrb[34].mxu1  ;;  %v4760_v51 = vpop.f32.mrb[40].mxu0 }
 0x1fb   :  { %v1239_v52 = vadd.f32 %v4828_v50, %v5573_v11  ;;  %v1464_v53 = vpop.trf.xlu0  ;;  %v603_v54 = vadd.f32 %v4760_v51, %v5498_v1  ;;  %v1233_v55 = vpop.f32.mrb[35].mxu1 }
 0x1fc   :  { %v1234_v56 = vadd.f32 %v5573_v11, %v1233_v55  ;;  %v597_v57 = vpop.f32.mrb[41].mxu0  ;;  %v2130_v58 = vpop.trf.xlu1  ;;  %4918 = vmatprep.mubr.msk.f32.mxu0 %vm176_vm3, %v1464_v53  ;;  %v5805_v53 = vld [vmem:[%s6420_s2 + $0x2] ss:$0 sm:$0xff] }
 0x1fd   :  { %1348 = vst.msk [vmem:[#allocation2 + $0x2a8] sm:$0xff] %vm646_vm4, %v1239_v52  ;;  %688 = vst.msk [vmem:[#allocation2 + $0x148] sm:$0xff] %vm646_vm4, %v603_v54  ;;  %v598_v59 = vadd.f32 %v5498_v1, %v597_v57  ;;  %4995 = vmatprep.mubr.msk.f32.mxu1 %vm176_vm3, %v2130_v58  ;;  %v5810_v54 = vld [vmem:[%s6420_s2 + $0x3] ss:$0 sm:$0xff] }
 0x1fe   :  { %1347 = vst.msk [vmem:[#allocation2 + $0x2a0] sm:$0xff] %vm646_vm4, %v1234_v56  ;;  %v4831_v60 = vpop.f32.mrb[36].mxu1 }
 0x1ff   :  { %687 = vst.msk [vmem:[#allocation2 + $0x140] sm:$0xff] %vm646_vm4, %v598_v59  ;;  %v1249_v61 = vadd.f32 %v4831_v60, %v5573_v11  ;;  %v1465_v62 = vpop.trf.xlu0  ;;  %v1243_v63 = vpop.f32.mrb[37].mxu1 }
 0x200   :  { %v1244_v0 = vadd.f32 %v5573_v11, %v1243_v63  ;;  %4919 = vmatmul.mubr.msk.f32.gmra.mrb[94].mxu0 %vm176_vm3, %v1465_v62  ;;  %v2131_v2 = vpop.trf.xlu1 }
 0x201   :  { %1350 = vst.msk [vmem:[#allocation2 + $0x2b8] sm:$0xff] %vm646_vm4, %v1249_v61  ;;  %4996 = vmatmul.mubr.msk.f32.gmra.mrb[94].mxu1 %vm176_vm3, %v2131_v2 }
 0x202   :  { %1349 = vst.msk [vmem:[#allocation2 + $0x2b0] sm:$0xff] %vm646_vm4, %v1244_v0  ;;  %v4834_v3 = vpop.f32.mrb[38].mxu1  ;;  %v4763_v5 = vpop.f32.mrb[42].mxu0 }
 0x203   :  { %v1259_v6 = vadd.f32 %v4834_v3, %v5573_v11  ;;  %v1466_v7 = vpop.trf.xlu0  ;;  %v613_v8 = vadd.f32 %v4763_v5, %v5498_v1  ;;  %v1253_v9 = vpop.f32.mrb[39].mxu1 }
 0x204   :  { %v1254_v10 = vadd.f32 %v5573_v11, %v1253_v9  ;;  %v607_v12 = vpop.f32.mrb[43].mxu0  ;;  %v2132_v13 = vpop.trf.xlu1  ;;  %4921 = vmatprep.mubr.msk.f32.mxu0 %vm176_vm3, %v1466_v7 }
 0x205   :  { %1352 = vst.msk [vmem:[#allocation2 + $0x2c8] sm:$0xff] %vm646_vm4, %v1259_v6  ;;  %690 = vst.msk [vmem:[#allocation2 + $0x158] sm:$0xff] %vm646_vm4, %v613_v8  ;;  %v608_v14 = vadd.f32 %v5498_v1, %v607_v12  ;;  %4998 = vmatprep.mubr.msk.f32.mxu1 %vm176_vm3, %v2132_v13 }
 0x206   :  { %1351 = vst.msk [vmem:[#allocation2 + $0x2c0] sm:$0xff] %vm646_vm4, %v1254_v10  ;;  %v4837_v15 = vpop.f32.mrb[40].mxu1 }
 0x207   :  { %689 = vst.msk [vmem:[#allocation2 + $0x150] sm:$0xff] %vm646_vm4, %v608_v14  ;;  %v1269_v16 = vadd.f32 %v4837_v15, %v5573_v11  ;;  %v1467_v17 = vpop.trf.xlu0  ;;  %v1263_v18 = vpop.f32.mrb[41].mxu1 }
 0x208   :  { %v1264_v19 = vadd.f32 %v5573_v11, %v1263_v18  ;;  %4922 = vmatmul.mubr.msk.f32.gmra.mrb[96].mxu0 %vm176_vm3, %v1467_v17  ;;  %v2133_v20 = vpop.trf.xlu1 }
 0x209   :  { %1354 = vst.msk [vmem:[#allocation2 + $0x2d8] sm:$0xff] %vm646_vm4, %v1269_v16  ;;  %4999 = vmatmul.mubr.msk.f32.gmra.mrb[96].mxu1 %vm176_vm3, %v2133_v20 }
 0x20a   :  { %1353 = vst.msk [vmem:[#allocation2 + $0x2d0] sm:$0xff] %vm646_vm4, %v1264_v19  ;;  %v4840_v21 = vpop.f32.mrb[42].mxu1  ;;  %v4766_v22 = vpop.f32.mrb[44].mxu0 }
 0x20b   :  { %v1279_v23 = vadd.f32 %v4840_v21, %v5573_v11  ;;  %v1484_v24 = vpop.trf.xlu0  ;;  %v623_v25 = vadd.f32 %v4766_v22, %v5498_v1  ;;  %v1273_v26 = vpop.f32.mrb[43].mxu1 }
 0x20c   :  { %v1274_v27 = vadd.f32 %v5573_v11, %v1273_v26  ;;  %v617_v28 = vpop.f32.mrb[45].mxu0  ;;  %v2150_v29 = vpop.trf.xlu1  ;;  %4924 = vmatprep.mubr.msk.f32.mxu0 %vm176_vm3, %v1484_v24 }
 0x20d   :  { %1356 = vst.msk [vmem:[#allocation2 + $0x2e8] sm:$0xff] %vm646_vm4, %v1279_v23  ;;  %692 = vst.msk [vmem:[#allocation2 + $0x168] sm:$0xff] %vm646_vm4, %v623_v25  ;;  %v618_v30 = vadd.f32 %v5498_v1, %v617_v28  ;;  %5001 = vmatprep.mubr.msk.f32.mxu1 %vm176_vm3, %v2150_v29 }
 0x20e   :  { %1355 = vst.msk [vmem:[#allocation2 + $0x2e0] sm:$0xff] %vm646_vm4, %v1274_v27  ;;  %v4843_v31 = vpop.f32.mrb[44].mxu1 }
 0x20f   :  { %691 = vst.msk [vmem:[#allocation2 + $0x160] sm:$0xff] %vm646_vm4, %v618_v30  ;;  %v1289_v32 = vadd.f32 %v4843_v31, %v5573_v11  ;;  %v1485_v33 = vpop.trf.xlu0  ;;  %v1283_v34 = vpop.f32.mrb[45].mxu1 }
 0x210   :  { %v1284_v35 = vadd.f32 %v5573_v11, %v1283_v34  ;;  %4925 = vmatmul.mubr.msk.f32.gmra.mrb[98].mxu0 %vm176_vm3, %v1485_v33  ;;  %v2151_v36 = vpop.trf.xlu1 }
 0x211   :  { %1358 = vst.msk [vmem:[#allocation2 + $0x2f8] sm:$0xff] %vm646_vm4, %v1289_v32  ;;  %5002 = vmatmul.mubr.msk.f32.gmra.mrb[98].mxu1 %vm176_vm3, %v2151_v36 }
 0x212   :  { %1357 = vst.msk [vmem:[#allocation2 + $0x2f0] sm:$0xff] %vm646_vm4, %v1284_v35  ;;  %v4769_v37 = vpop.f32.mrb[46].mxu0 }
 0x213   :  { %v633_v38 = vadd.f32 %v4769_v37, %v5498_v1  ;;  %v627_v39 = vpop.f32.mrb[47].mxu0 }
 0x214   :  { %v628_v40 = vadd.f32 %v5498_v1, %v627_v39  ;;  %v4846_v41 = vpop.f32.mrb[46].mxu1 }
 0x215   :  { %694 = vst.msk [vmem:[#allocation2 + $0x178] sm:$0xff] %vm646_vm4, %v633_v38  ;;  %v1299_v42 = vadd.f32 %v4846_v41, %v5573_v11  ;;  %v1293_v43 = vpop.f32.mrb[47].mxu1 }
 0x216   :  { %693 = vst.msk [vmem:[#allocation2 + $0x170] sm:$0xff] %vm646_vm4, %v628_v40  ;;  %v1294_v44 = vadd.f32 %v5573_v11, %v1293_v43 }
 0x217   :  { %1360 = vst.msk [vmem:[#allocation2 + $0x308] sm:$0xff] %vm646_vm4, %v1299_v42 }
 0x218   :  { %1359 = vst.msk [vmem:[#allocation2 + $0x300] sm:$0xff] %vm646_vm4, %v1294_v44 }
 0x21a   :  { %v4772_v45 = vpop.f32.mrb[48].mxu0 }
 0x21b   :  { %v643_v46 = vadd.f32 %v4772_v45, %v5498_v1  ;;  %v637_v47 = vpop.f32.mrb[49].mxu0 }
 0x21c   :  { %v638_v48 = vadd.f32 %v5498_v1, %v637_v47  ;;  %v4849_v49 = vpop.f32.mrb[48].mxu1 }
 0x21d   :  { %696 = vst.msk [vmem:[#allocation2 + $0x188] sm:$0xff] %vm646_vm4, %v643_v46  ;;  %v1309_v50 = vadd.f32 %v4849_v49, %v5573_v11  ;;  %v1303_v51 = vpop.f32.mrb[49].mxu1 }
 0x21e   :  { %695 = vst.msk [vmem:[#allocation2 + $0x180] sm:$0xff] %vm646_vm4, %v638_v48  ;;  %v1304_v52 = vadd.f32 %v5573_v11, %v1303_v51 }
 0x21f   :  { %1362 = vst.msk [vmem:[#allocation2 + $0x318] sm:$0xff] %vm646_vm4, %v1309_v50 }
 0x220   :  { %1361 = vst.msk [vmem:[#allocation2 + $0x310] sm:$0xff] %vm646_vm4, %v1304_v52 }
 0x222   :  { %v4854_v1 = vpop.f32.mrb[50].mxu0 }
 0x223   :  { %v1735_v55 = vadd.f32 %v4854_v1, %v5805_v53  ;;  %v1729_v56 = vpop.f32.mrb[51].mxu0 }
 0x224   :  { %v1730_v11 = vadd.f32 %v5805_v53, %v1729_v56  ;;  %v4931_v57 = vpop.f32.mrb[50].mxu1 }
 0x225   :  { %1980 = vst.msk [vmem:[#allocation2 + $0x328] sm:$0xff] %vm646_vm4, %v1735_v55  ;;  %v2401_v58 = vadd.f32 %v4931_v57, %v5810_v54  ;;  %v2395_v59 = vpop.f32.mrb[51].mxu1 }
 0x226   :  { %1979 = vst.msk [vmem:[#allocation2 + $0x320] sm:$0xff] %vm646_vm4, %v1730_v11  ;;  %v2396_v60 = vadd.f32 %v5810_v54, %v2395_v59 }
 0x227   :  { %2646 = vst.msk [vmem:[#allocation2 + $0x4b8] sm:$0xff] %vm646_vm4, %v2401_v58 }
 0x228   :  { %2645 = vst.msk [vmem:[#allocation2 + $0x4b0] sm:$0xff] %vm646_vm4, %v2396_v60 }
 0x22a   :  { %v4857_v61 = vpop.f32.mrb[52].mxu0 }
 0x22b   :  { %v1745_v62 = vadd.f32 %v4857_v61, %v5805_v53  ;;  %v1739_v63 = vpop.f32.mrb[53].mxu0 }
 0x22c   :  { %v1740_v0 = vadd.f32 %v5805_v53, %v1739_v63  ;;  %v4934_v2 = vpop.f32.mrb[52].mxu1 }
 0x22d   :  { %1982 = vst.msk [vmem:[#allocation2 + $0x338] sm:$0xff] %vm646_vm4, %v1745_v62  ;;  %v2411_v3 = vadd.f32 %v4934_v2, %v5810_v54  ;;  %v2405_v5 = vpop.f32.mrb[53].mxu1  ;;  %v5892_v2 = vld [vmem:[%s6421_s3 + $0x4] sm:$0xf] }
 0x22e   :  { %1981 = vst.msk [vmem:[#allocation2 + $0x330] sm:$0xff] %vm646_vm4, %v1740_v0  ;;  %v2406_v6 = vadd.f32 %v5810_v54, %v2405_v5  ;;  %v5887_v0 = vld [vmem:[%s6421_s3] sm:$0xf] }
 0x22f   :  { %2648 = vst.msk [vmem:[#allocation2 + $0x4c8] sm:$0xff] %vm646_vm4, %v2411_v3  ;;  %v5897_v3 = vld [vmem:[%s6421_s3 + $0x8] sm:$0xf]  ;;  %v5902_v5 = vld [vmem:[%s6422_s4] sm:$0xf] }
 0x230   :  { %2647 = vst.msk [vmem:[#allocation2 + $0x4c0] sm:$0xff] %vm646_vm4, %v2406_v6  ;;  %v5907_v6 = vld [vmem:[%s6422_s4 + $0x4] sm:$0xf] }
 0x232   :  { %v4860_v7 = vpop.f32.mrb[54].mxu0 }
 0x233   :  { %v1755_v8 = vadd.f32 %v4860_v7, %v5805_v53  ;;  %v1749_v9 = vpop.f32.mrb[55].mxu0  ;;  %v5912_v7 = vld [vmem:[%s6422_s4 + $0x8] sm:$0xf] }
 0x234   :  { %v1750_v10 = vadd.f32 %v5805_v53, %v1749_v9  ;;  %v4937_v12 = vpop.f32.mrb[54].mxu1  ;;  %v5917_v9 = vld [vmem:[%s6423_s5] sm:$0xf] }
 0x235   :  { %1984 = vst.msk [vmem:[#allocation2 + $0x348] sm:$0xff] %vm646_vm4, %v1755_v8  ;;  %v2421_v13 = vadd.f32 %v4937_v12, %v5810_v54  ;;  %v2415_v14 = vpop.f32.mrb[55].mxu1 }
 0x236   :  { %1983 = vst.msk [vmem:[#allocation2 + $0x340] sm:$0xff] %vm646_vm4, %v1750_v10  ;;  %v2416_v15 = vadd.f32 %v5810_v54, %v2415_v14  ;;  %v5922_v10 = vld [vmem:[%s6423_s5 + $0x4] sm:$0xf]  ;;  %v5928_v14 = vld [vmem:[%s6423_s5 + $0x8] sm:$0xf]  ;;  %s6070_s5 = smov 0  }
 0x237   :  { %2650 = vst.msk [vmem:[#allocation2 + $0x4d8] sm:$0xff] %vm646_vm4, %v2421_v13 }
 0x238   :  { %2649 = vst.msk [vmem:[#allocation2 + $0x4d0] sm:$0xff] %vm646_vm4, %v2416_v15  ;;  %v5933_v15 = vld [vmem:[%s6424_s6] sm:$0xf] }
 0x23a   :  { %v4863_v16 = vpop.f32.mrb[56].mxu0 }
 0x23b   :  { %v1765_v17 = vadd.f32 %v4863_v16, %v5805_v53  ;;  %v1759_v18 = vpop.f32.mrb[57].mxu0 }
 0x23c   :  { %v1760_v19 = vadd.f32 %v5805_v53, %v1759_v18  ;;  %v4940_v20 = vpop.f32.mrb[56].mxu1 }
 0x23d   :  { %1986 = vst.msk [vmem:[#allocation2 + $0x358] sm:$0xff] %vm646_vm4, %v1765_v17  ;;  %v2431_v21 = vadd.f32 %v4940_v20, %v5810_v54  ;;  %v2425_v22 = vpop.f32.mrb[57].mxu1 }
 0x23e   :  { %1985 = vst.msk [vmem:[#allocation2 + $0x350] sm:$0xff] %vm646_vm4, %v1760_v19  ;;  %v2426_v23 = vadd.f32 %v5810_v54, %v2425_v22 }
 0x23f   :  { %2652 = vst.msk [vmem:[#allocation2 + $0x4e8] sm:$0xff] %vm646_vm4, %v2431_v21 }
 0x240   :  { %2651 = vst.msk [vmem:[#allocation2 + $0x4e0] sm:$0xff] %vm646_vm4, %v2426_v23 }
 0x242   :  { %v4866_v24 = vpop.f32.mrb[58].mxu0 }
 0x243   :  { %v1775_v25 = vadd.f32 %v4866_v24, %v5805_v53  ;;  %v1769_v26 = vpop.f32.mrb[59].mxu0 }
 0x244   :  { %v1770_v27 = vadd.f32 %v5805_v53, %v1769_v26  ;;  %v4943_v28 = vpop.f32.mrb[58].mxu1 }
 0x245   :  { %1988 = vst.msk [vmem:[#allocation2 + $0x368] sm:$0xff] %vm646_vm4, %v1775_v25  ;;  %v2441_v29 = vadd.f32 %v4943_v28, %v5810_v54  ;;  %v2435_v30 = vpop.f32.mrb[59].mxu1 }
 0x246   :  { %1987 = vst.msk [vmem:[#allocation2 + $0x360] sm:$0xff] %vm646_vm4, %v1770_v27  ;;  %v2436_v31 = vadd.f32 %v5810_v54, %v2435_v30 }
 0x247   :  { %2654 = vst.msk [vmem:[#allocation2 + $0x4f8] sm:$0xff] %vm646_vm4, %v2441_v29 }
 0x248   :  { %2653 = vst.msk [vmem:[#allocation2 + $0x4f0] sm:$0xff] %vm646_vm4, %v2436_v31 }
 0x24a   :  { %v4869_v32 = vpop.f32.mrb[60].mxu0 }
 0x24b   :  { %v1785_v33 = vadd.f32 %v4869_v32, %v5805_v53  ;;  %v1779_v34 = vpop.f32.mrb[61].mxu0 }
 0x24c   :  { %v1780_v35 = vadd.f32 %v5805_v53, %v1779_v34  ;;  %v4946_v36 = vpop.f32.mrb[60].mxu1 }
 0x24d   :  { %1990 = vst.msk [vmem:[#allocation2 + $0x378] sm:$0xff] %vm646_vm4, %v1785_v33  ;;  %v2451_v37 = vadd.f32 %v4946_v36, %v5810_v54  ;;  %v2445_v38 = vpop.f32.mrb[61].mxu1 }
 0x24e   :  { %1989 = vst.msk [vmem:[#allocation2 + $0x370] sm:$0xff] %vm646_vm4, %v1780_v35  ;;  %v2446_v39 = vadd.f32 %v5810_v54, %v2445_v38 }
 0x24f   :  { %2656 = vst.msk [vmem:[#allocation2 + $0x508] sm:$0xff] %vm646_vm4, %v2451_v37 }
 0x250   :  { %2655 = vst.msk [vmem:[#allocation2 + $0x500] sm:$0xff] %vm646_vm4, %v2446_v39 }
 0x252   :  { %v4872_v40 = vpop.f32.mrb[62].mxu0 }
 0x253   :  { %v1795_v41 = vadd.f32 %v4872_v40, %v5805_v53  ;;  %v1789_v42 = vpop.f32.mrb[63].mxu0 }
 0x254   :  { %v1790_v43 = vadd.f32 %v5805_v53, %v1789_v42  ;;  %v4949_v44 = vpop.f32.mrb[62].mxu1 }
 0x255   :  { %1992 = vst.msk [vmem:[#allocation2 + $0x388] sm:$0xff] %vm646_vm4, %v1795_v41  ;;  %v2461_v45 = vadd.f32 %v4949_v44, %v5810_v54  ;;  %v2455_v46 = vpop.f32.mrb[63].mxu1 }
 0x256   :  { %1991 = vst.msk [vmem:[#allocation2 + $0x380] sm:$0xff] %vm646_vm4, %v1790_v43  ;;  %v2456_v47 = vadd.f32 %v5810_v54, %v2455_v46 }
 0x257   :  { %2658 = vst.msk [vmem:[#allocation2 + $0x518] sm:$0xff] %vm646_vm4, %v2461_v45 }
 0x258   :  { %2657 = vst.msk [vmem:[#allocation2 + $0x510] sm:$0xff] %vm646_vm4, %v2456_v47 }
 0x25a   :  { %v4875_v48 = vpop.f32.mrb[64].mxu0 }
 0x25b   :  { %v1805_v49 = vadd.f32 %v4875_v48, %v5805_v53  ;;  %v1799_v50 = vpop.f32.mrb[65].mxu0 }
 0x25c   :  { %v1800_v51 = vadd.f32 %v5805_v53, %v1799_v50  ;;  %v4952_v52 = vpop.f32.mrb[64].mxu1 }
 0x25d   :  { %1994 = vst.msk [vmem:[#allocation2 + $0x398] sm:$0xff] %vm646_vm4, %v1805_v49  ;;  %v2471_v1 = vadd.f32 %v4952_v52, %v5810_v54  ;;  %v2465_v55 = vpop.f32.mrb[65].mxu1 }
 0x25e   :  { %1993 = vst.msk [vmem:[#allocation2 + $0x390] sm:$0xff] %vm646_vm4, %v1800_v51  ;;  %v2466_v56 = vadd.f32 %v5810_v54, %v2465_v55 }
 0x25f   :  { %2660 = vst.msk [vmem:[#allocation2 + $0x528] sm:$0xff] %vm646_vm4, %v2471_v1 }
 0x260   :  { %2659 = vst.msk [vmem:[#allocation2 + $0x520] sm:$0xff] %vm646_vm4, %v2466_v56 }
 0x262   :  { %v4878_v11 = vpop.f32.mrb[66].mxu0 }
 0x263   :  { %v1815_v57 = vadd.f32 %v4878_v11, %v5805_v53  ;;  %v1809_v58 = vpop.f32.mrb[67].mxu0 }
 0x264   :  { %v1810_v59 = vadd.f32 %v5805_v53, %v1809_v58  ;;  %v4955_v60 = vpop.f32.mrb[66].mxu1 }
 0x265   :  { %1996 = vst.msk [vmem:[#allocation2 + $0x3a8] sm:$0xff] %vm646_vm4, %v1815_v57  ;;  %v2481_v61 = vadd.f32 %v4955_v60, %v5810_v54  ;;  %v2475_v62 = vpop.f32.mrb[67].mxu1 }
 0x266   :  { %1995 = vst.msk [vmem:[#allocation2 + $0x3a0] sm:$0xff] %vm646_vm4, %v1810_v59  ;;  %v2476_v63 = vadd.f32 %v5810_v54, %v2475_v62 }
 0x267   :  { %2662 = vst.msk [vmem:[#allocation2 + $0x538] sm:$0xff] %vm646_vm4, %v2481_v61 }
 0x268   :  { %2661 = vst.msk [vmem:[#allocation2 + $0x530] sm:$0xff] %vm646_vm4, %v2476_v63 }
 0x26a   :  { %v4881_v8 = vpop.f32.mrb[68].mxu0 }
 0x26b   :  { %v1825_v12 = vadd.f32 %v4881_v8, %v5805_v53  ;;  %v1819_v13 = vpop.f32.mrb[69].mxu0 }
 0x26c   :  { %v1820_v16 = vadd.f32 %v5805_v53, %v1819_v13  ;;  %v4958_v17 = vpop.f32.mrb[68].mxu1 }
 0x26d   :  { %1998 = vst.msk [vmem:[#allocation2 + $0x3b8] sm:$0xff] %vm646_vm4, %v1825_v12  ;;  %v2491_v18 = vadd.f32 %v4958_v17, %v5810_v54  ;;  %v2485_v19 = vpop.f32.mrb[69].mxu1 }
 0x26e   :  { %1997 = vst.msk [vmem:[#allocation2 + $0x3b0] sm:$0xff] %vm646_vm4, %v1820_v16  ;;  %v2486_v20 = vadd.f32 %v5810_v54, %v2485_v19 }
 0x26f   :  { %2664 = vst.msk [vmem:[#allocation2 + $0x548] sm:$0xff] %vm646_vm4, %v2491_v18 }
 0x270   :  { %2663 = vst.msk [vmem:[#allocation2 + $0x540] sm:$0xff] %vm646_vm4, %v2486_v20 }
 0x273   :  { %v4884_v21 = vpop.f32.mrb[70].mxu0 }
 0x274   :  { %v1835_v22 = vadd.f32 %v4884_v21, %v5805_v53  ;;  %v1829_v23 = vpop.f32.mrb[71].mxu0  ;;  %v4961_v24 = vpop.f32.mrb[70].mxu1 }
 0x275   :  { %v1830_v25 = vadd.f32 %v5805_v53, %v1829_v23  ;;  %v2501_v26 = vadd.f32 %v4961_v24, %v5810_v54  ;;  %v2495_v27 = vpop.f32.mrb[71].mxu1 }
 0x276   :  { %2000 = vst.msk [vmem:[#allocation2 + $0x3c8] sm:$0xff] %vm646_vm4, %v1835_v22  ;;  %v2496_v28 = vadd.f32 %v5810_v54, %v2495_v27 }
 0x277   :  { %1999 = vst.msk [vmem:[#allocation2 + $0x3c0] sm:$0xff] %vm646_vm4, %v1830_v25  ;;  %2666 = vst.msk [vmem:[#allocation2 + $0x558] sm:$0xff] %vm646_vm4, %v2501_v26 }
 0x278   :  { %2665 = vst.msk [vmem:[#allocation2 + $0x550] sm:$0xff] %vm646_vm4, %v2496_v28 }
 0x27b   :  { %v4887_v29 = vpop.f32.mrb[72].mxu0 }
 0x27c   :  { %v1845_v30 = vadd.f32 %v4887_v29, %v5805_v53  ;;  %v1839_v31 = vpop.f32.mrb[73].mxu0  ;;  %v4964_v32 = vpop.f32.mrb[72].mxu1 }
 0x27d   :  { %v1840_v33 = vadd.f32 %v5805_v53, %v1839_v31  ;;  %v2511_v34 = vadd.f32 %v4964_v32, %v5810_v54  ;;  %v2505_v35 = vpop.f32.mrb[73].mxu1 }
 0x27e   :  { %2002 = vst.msk [vmem:[#allocation2 + $0x3d8] sm:$0xff] %vm646_vm4, %v1845_v30  ;;  %v2506_v36 = vadd.f32 %v5810_v54, %v2505_v35 }
 0x27f   :  { %2001 = vst.msk [vmem:[#allocation2 + $0x3d0] sm:$0xff] %vm646_vm4, %v1840_v33  ;;  %2668 = vst.msk [vmem:[#allocation2 + $0x568] sm:$0xff] %vm646_vm4, %v2511_v34 }
 0x280   :  { %2667 = vst.msk [vmem:[#allocation2 + $0x560] sm:$0xff] %vm646_vm4, %v2506_v36 }
 0x283   :  { %v4890_v37 = vpop.f32.mrb[74].mxu0 }
 0x284   :  { %v1855_v38 = vadd.f32 %v4890_v37, %v5805_v53  ;;  %v1849_v39 = vpop.f32.mrb[75].mxu0  ;;  %v4967_v40 = vpop.f32.mrb[74].mxu1 }
 0x285   :  { %v1850_v41 = vadd.f32 %v5805_v53, %v1849_v39  ;;  %v2521_v42 = vadd.f32 %v4967_v40, %v5810_v54  ;;  %v2515_v43 = vpop.f32.mrb[75].mxu1 }
 0x286   :  { %2004 = vst.msk [vmem:[#allocation2 + $0x3e8] sm:$0xff] %vm646_vm4, %v1855_v38  ;;  %v2516_v44 = vadd.f32 %v5810_v54, %v2515_v43 }
 0x287   :  { %2003 = vst.msk [vmem:[#allocation2 + $0x3e0] sm:$0xff] %vm646_vm4, %v1850_v41  ;;  %2670 = vst.msk [vmem:[#allocation2 + $0x578] sm:$0xff] %vm646_vm4, %v2521_v42 }
 0x288   :  { %2669 = vst.msk [vmem:[#allocation2 + $0x570] sm:$0xff] %vm646_vm4, %v2516_v44 }
 0x28b   :  { %v4893_v45 = vpop.f32.mrb[76].mxu0 }
 0x28c   :  { %v1865_v46 = vadd.f32 %v4893_v45, %v5805_v53  ;;  %v1859_v47 = vpop.f32.mrb[77].mxu0  ;;  %v4970_v48 = vpop.f32.mrb[76].mxu1 }
 0x28d   :  { %v1860_v49 = vadd.f32 %v5805_v53, %v1859_v47  ;;  %v2531_v50 = vadd.f32 %v4970_v48, %v5810_v54  ;;  %v2525_v51 = vpop.f32.mrb[77].mxu1 }
 0x28e   :  { %2006 = vst.msk [vmem:[#allocation2 + $0x3f8] sm:$0xff] %vm646_vm4, %v1865_v46  ;;  %v2526_v52 = vadd.f32 %v5810_v54, %v2525_v51 }
 0x28f   :  { %2005 = vst.msk [vmem:[#allocation2 + $0x3f0] sm:$0xff] %vm646_vm4, %v1860_v49  ;;  %2672 = vst.msk [vmem:[#allocation2 + $0x588] sm:$0xff] %vm646_vm4, %v2531_v50 }
 0x290   :  { %2671 = vst.msk [vmem:[#allocation2 + $0x580] sm:$0xff] %vm646_vm4, %v2526_v52 }
 0x293   :  { %v4896_v1 = vpop.f32.mrb[78].mxu0 }
 0x294   :  { %v1875_v55 = vadd.f32 %v4896_v1, %v5805_v53  ;;  %v1869_v56 = vpop.f32.mrb[79].mxu0  ;;  %v4973_v11 = vpop.f32.mrb[78].mxu1 }
 0x295   :  { %v1870_v57 = vadd.f32 %v5805_v53, %v1869_v56  ;;  %v2541_v58 = vadd.f32 %v4973_v11, %v5810_v54  ;;  %v2535_v59 = vpop.f32.mrb[79].mxu1 }
 0x296   :  { %2008 = vst.msk [vmem:[#allocation2 + $0x408] sm:$0xff] %vm646_vm4, %v1875_v55  ;;  %v2536_v60 = vadd.f32 %v5810_v54, %v2535_v59 }
 0x297   :  { %2007 = vst.msk [vmem:[#allocation2 + $0x400] sm:$0xff] %vm646_vm4, %v1870_v57  ;;  %2674 = vst.msk [vmem:[#allocation2 + $0x598] sm:$0xff] %vm646_vm4, %v2541_v58 }
 0x298   :  { %2673 = vst.msk [vmem:[#allocation2 + $0x590] sm:$0xff] %vm646_vm4, %v2536_v60 }
 0x29b   :  { %v4899_v61 = vpop.f32.mrb[80].mxu0 }
 0x29c   :  { %v1885_v62 = vadd.f32 %v4899_v61, %v5805_v53  ;;  %v1879_v63 = vpop.f32.mrb[81].mxu0  ;;  %v4976_v8 = vpop.f32.mrb[80].mxu1 }
 0x29d   :  { %v1880_v12 = vadd.f32 %v5805_v53, %v1879_v63  ;;  %v2551_v13 = vadd.f32 %v4976_v8, %v5810_v54  ;;  %v2545_v16 = vpop.f32.mrb[81].mxu1 }
 0x29e   :  { %2010 = vst.msk [vmem:[#allocation2 + $0x418] sm:$0xff] %vm646_vm4, %v1885_v62  ;;  %v2546_v17 = vadd.f32 %v5810_v54, %v2545_v16 }
 0x29f   :  { %2009 = vst.msk [vmem:[#allocation2 + $0x410] sm:$0xff] %vm646_vm4, %v1880_v12  ;;  %2676 = vst.msk [vmem:[#allocation2 + $0x5a8] sm:$0xff] %vm646_vm4, %v2551_v13 }
 0x2a0   :  { %2675 = vst.msk [vmem:[#allocation2 + $0x5a0] sm:$0xff] %vm646_vm4, %v2546_v17 }
 0x2a3   :  { %v4902_v18 = vpop.f32.mrb[82].mxu0 }
 0x2a4   :  { %v1895_v19 = vadd.f32 %v4902_v18, %v5805_v53  ;;  %v1889_v20 = vpop.f32.mrb[83].mxu0  ;;  %v4979_v21 = vpop.f32.mrb[82].mxu1 }
 0x2a5   :  { %v1890_v22 = vadd.f32 %v5805_v53, %v1889_v20  ;;  %v2561_v23 = vadd.f32 %v4979_v21, %v5810_v54  ;;  %v2555_v24 = vpop.f32.mrb[83].mxu1 }
 0x2a6   :  { %2012 = vst.msk [vmem:[#allocation2 + $0x428] sm:$0xff] %vm646_vm4, %v1895_v19  ;;  %v2556_v25 = vadd.f32 %v5810_v54, %v2555_v24 }
 0x2a7   :  { %2011 = vst.msk [vmem:[#allocation2 + $0x420] sm:$0xff] %vm646_vm4, %v1890_v22  ;;  %2678 = vst.msk [vmem:[#allocation2 + $0x5b8] sm:$0xff] %vm646_vm4, %v2561_v23 }
 0x2a8   :  { %2677 = vst.msk [vmem:[#allocation2 + $0x5b0] sm:$0xff] %vm646_vm4, %v2556_v25 }
 0x2ab   :  { %v4905_v26 = vpop.f32.mrb[84].mxu0 }
 0x2ac   :  { %v1905_v27 = vadd.f32 %v4905_v26, %v5805_v53  ;;  %v1899_v28 = vpop.f32.mrb[85].mxu0  ;;  %v4982_v29 = vpop.f32.mrb[84].mxu1 }
 0x2ad   :  { %v1900_v30 = vadd.f32 %v5805_v53, %v1899_v28  ;;  %v2571_v31 = vadd.f32 %v4982_v29, %v5810_v54  ;;  %v2565_v32 = vpop.f32.mrb[85].mxu1 }
 0x2ae   :  { %2014 = vst.msk [vmem:[#allocation2 + $0x438] sm:$0xff] %vm646_vm4, %v1905_v27  ;;  %v2566_v33 = vadd.f32 %v5810_v54, %v2565_v32 }
 0x2af   :  { %2013 = vst.msk [vmem:[#allocation2 + $0x430] sm:$0xff] %vm646_vm4, %v1900_v30  ;;  %2680 = vst.msk [vmem:[#allocation2 + $0x5c8] sm:$0xff] %vm646_vm4, %v2571_v31 }
 0x2b0   :  { %2679 = vst.msk [vmem:[#allocation2 + $0x5c0] sm:$0xff] %vm646_vm4, %v2566_v33 }
 0x2b3   :  { %v4908_v34 = vpop.f32.mrb[86].mxu0 }
 0x2b4   :  { %v1915_v35 = vadd.f32 %v4908_v34, %v5805_v53  ;;  %v1909_v36 = vpop.f32.mrb[87].mxu0  ;;  %v4985_v37 = vpop.f32.mrb[86].mxu1 }
 0x2b5   :  { %v1910_v38 = vadd.f32 %v5805_v53, %v1909_v36  ;;  %v2581_v39 = vadd.f32 %v4985_v37, %v5810_v54  ;;  %v2575_v40 = vpop.f32.mrb[87].mxu1 }
 0x2b6   :  { %2016 = vst.msk [vmem:[#allocation2 + $0x448] sm:$0xff] %vm646_vm4, %v1915_v35  ;;  %v2576_v41 = vadd.f32 %v5810_v54, %v2575_v40  ;;  %v6064_v40 = vmov 0.0  }
 0x2b7   :  { %2015 = vst.msk [vmem:[#allocation2 + $0x440] sm:$0xff] %vm646_vm4, %v1910_v38  ;;  %2682 = vst.msk [vmem:[#allocation2 + $0x5d8] sm:$0xff] %vm646_vm4, %v2581_v39  ;;  %v6062_v39 = vmov 0.0  }
 0x2b8   :  { %2681 = vst.msk [vmem:[#allocation2 + $0x5d0] sm:$0xff] %vm646_vm4, %v2576_v41  ;;  %v6066_v41 = vmov 0.0  }
 0x2bb   :  { %v4911_v42 = vpop.f32.mrb[88].mxu0 }
 0x2bc   :  { %v1925_v43 = vadd.f32 %v4911_v42, %v5805_v53  ;;  %v1919_v44 = vpop.f32.mrb[89].mxu0  ;;  %v4988_v45 = vpop.f32.mrb[88].mxu1 }
 0x2bd   :  { %v1920_v46 = vadd.f32 %v5805_v53, %v1919_v44  ;;  %v2591_v47 = vadd.f32 %v4988_v45, %v5810_v54  ;;  %v2585_v48 = vpop.f32.mrb[89].mxu1 }
 0x2be   :  { %2018 = vst.msk [vmem:[#allocation2 + $0x458] sm:$0xff] %vm646_vm4, %v1925_v43  ;;  %v2586_v49 = vadd.f32 %v5810_v54, %v2585_v48 }
 0x2bf   :  { %2017 = vst.msk [vmem:[#allocation2 + $0x450] sm:$0xff] %vm646_vm4, %v1920_v46  ;;  %2684 = vst.msk [vmem:[#allocation2 + $0x5e8] sm:$0xff] %vm646_vm4, %v2591_v47 }
 0x2c0   :  { %2683 = vst.msk [vmem:[#allocation2 + $0x5e0] sm:$0xff] %vm646_vm4, %v2586_v49 }
 0x2c3   :  { %v4914_v50 = vpop.f32.mrb[90].mxu0 }
 0x2c4   :  { %v1935_v51 = vadd.f32 %v4914_v50, %v5805_v53  ;;  %v1929_v52 = vpop.f32.mrb[91].mxu0  ;;  %v4991_v1 = vpop.f32.mrb[90].mxu1 }
 0x2c5   :  { %v1930_v55 = vadd.f32 %v5805_v53, %v1929_v52  ;;  %v2601_v56 = vadd.f32 %v4991_v1, %v5810_v54  ;;  %v2595_v11 = vpop.f32.mrb[91].mxu1 }
 0x2c6   :  { %2020 = vst.msk [vmem:[#allocation2 + $0x468] sm:$0xff] %vm646_vm4, %v1935_v51  ;;  %v2596_v57 = vadd.f32 %v5810_v54, %v2595_v11 }
 0x2c7   :  { %2019 = vst.msk [vmem:[#allocation2 + $0x460] sm:$0xff] %vm646_vm4, %v1930_v55  ;;  %2686 = vst.msk [vmem:[#allocation2 + $0x5f8] sm:$0xff] %vm646_vm4, %v2601_v56 }
 0x2c8   :  { %2685 = vst.msk [vmem:[#allocation2 + $0x5f0] sm:$0xff] %vm646_vm4, %v2596_v57 }
 0x2cb   :  { %v4917_v58 = vpop.f32.mrb[92].mxu0 }
 0x2cc   :  { %v1945_v59 = vadd.f32 %v4917_v58, %v5805_v53  ;;  %v1939_v60 = vpop.f32.mrb[93].mxu0  ;;  %v4994_v61 = vpop.f32.mrb[92].mxu1 }
 0x2cd   :  { %v1940_v62 = vadd.f32 %v5805_v53, %v1939_v60  ;;  %v2611_v63 = vadd.f32 %v4994_v61, %v5810_v54  ;;  %v2605_v8 = vpop.f32.mrb[93].mxu1 }
 0x2ce   :  { %2022 = vst.msk [vmem:[#allocation2 + $0x478] sm:$0xff] %vm646_vm4, %v1945_v59  ;;  %v2606_v12 = vadd.f32 %v5810_v54, %v2605_v8 }
 0x2cf   :  { %2021 = vst.msk [vmem:[#allocation2 + $0x470] sm:$0xff] %vm646_vm4, %v1940_v62  ;;  %2688 = vst.msk [vmem:[#allocation2 + $0x608] sm:$0xff] %vm646_vm4, %v2611_v63 }
 0x2d0   :  { %2687 = vst.msk [vmem:[#allocation2 + $0x600] sm:$0xff] %vm646_vm4, %v2606_v12 }
 0x2d3   :  { %v4920_v13 = vpop.f32.mrb[94].mxu0 }
 0x2d4   :  { %v1955_v16 = vadd.f32 %v4920_v13, %v5805_v53  ;;  %v1949_v17 = vpop.f32.mrb[95].mxu0  ;;  %v4997_v18 = vpop.f32.mrb[94].mxu1 }
 0x2d5   :  { %v1950_v19 = vadd.f32 %v5805_v53, %v1949_v17  ;;  %v2621_v20 = vadd.f32 %v4997_v18, %v5810_v54  ;;  %v2615_v21 = vpop.f32.mrb[95].mxu1 }
 0x2d6   :  { %2024 = vst.msk [vmem:[#allocation2 + $0x488] sm:$0xff] %vm646_vm4, %v1955_v16  ;;  %v2616_v22 = vadd.f32 %v5810_v54, %v2615_v21 }
 0x2d7   :  { %2023 = vst.msk [vmem:[#allocation2 + $0x480] sm:$0xff] %vm646_vm4, %v1950_v19  ;;  %2690 = vst.msk [vmem:[#allocation2 + $0x618] sm:$0xff] %vm646_vm4, %v2621_v20 }
 0x2d8   :  { %2689 = vst.msk [vmem:[#allocation2 + $0x610] sm:$0xff] %vm646_vm4, %v2616_v22 }
 0x2db   :  { %v4923_v23 = vpop.f32.mrb[96].mxu0 }
 0x2dc   :  { %v1965_v24 = vadd.f32 %v4923_v23, %v5805_v53  ;;  %v1959_v25 = vpop.f32.mrb[97].mxu0  ;;  %v5000_v26 = vpop.f32.mrb[96].mxu1 }
 0x2dd   :  { %v1960_v27 = vadd.f32 %v5805_v53, %v1959_v25  ;;  %v2631_v28 = vadd.f32 %v5000_v26, %v5810_v54  ;;  %v2625_v29 = vpop.f32.mrb[97].mxu1 }
 0x2de   :  { %2026 = vst.msk [vmem:[#allocation2 + $0x498] sm:$0xff] %vm646_vm4, %v1965_v24  ;;  %v2626_v30 = vadd.f32 %v5810_v54, %v2625_v29 }
 0x2df   :  { %2025 = vst.msk [vmem:[#allocation2 + $0x490] sm:$0xff] %vm646_vm4, %v1960_v27  ;;  %2692 = vst.msk [vmem:[#allocation2 + $0x628] sm:$0xff] %vm646_vm4, %v2631_v28 }
 0x2e0   :  { %2691 = vst.msk [vmem:[#allocation2 + $0x620] sm:$0xff] %vm646_vm4, %v2626_v30 }
 0x2e3   :  { %v4926_v31 = vpop.f32.mrb[98].mxu0 }
 0x2e4   :  { %v1975_v32 = vadd.f32 %v4926_v31, %v5805_v53  ;;  %v1969_v33 = vpop.f32.mrb[99].mxu0  ;;  %v5003_v34 = vpop.f32.mrb[98].mxu1 }
 0x2e5   :  { %v1970_v35 = vadd.f32 %v5805_v53, %v1969_v33  ;;  %v2641_v36 = vadd.f32 %v5003_v34, %v5810_v54  ;;  %v2635_v37 = vpop.f32.mrb[99].mxu1  ;;  %v6068_v53 = vmov 0.0  }
 0x2e6   :  { %2028 = vst.msk [vmem:[#allocation2 + $0x4a8] sm:$0xff] %vm646_vm4, %v1975_v32  ;;  %v2636_v38 = vadd.f32 %v5810_v54, %v2635_v37 }
 0x2e7   :  { %2027 = vst.msk [vmem:[#allocation2 + $0x4a0] sm:$0xff] %vm646_vm4, %v1970_v35  ;;  %2694 = vst.msk [vmem:[#allocation2 + $0x638] sm:$0xff] %vm646_vm4, %v2641_v36 }
 0x2e8   :  { %2693 = vst.msk [vmem:[#allocation2 + $0x630] sm:$0xff] %vm646_vm4, %v2636_v38 }
 0x2e9 LB: > { %v5229_v54 = vmov 6   ;;  %v5230_v42 = vmov 8   ;;  %v5231_v43 = vmov 7   ;;  %s4408_s6 = sshll.u32 %s5226_s5, 2  ;;  %vm2746_vm5 = vcmask 1040384   ;;  %s5232_s29 = smov 119   ;;  %s5226_s5 = sphi %s6070_s5, %s2720_s5   ;;  %v5222_v53 = vphi %v6068_v53, %v6225_v53   ;;  %v5218_v41 = vphi %v6066_v41, %v6219_v41   ;;  %v5214_v40 = vphi %v6064_v40, %v3240_v40   ;;  %v5210_v39 = vphi %v6062_v39, %v3234_v39  }
 0x2ea   : > { %5083 = vset.pattern.permute.xlu0 %v5229_v54  ;;  %5085 = vset.pattern.permute.xlu1 %v5230_v42  ;;  %s6090_s28 = scalar_lea.vmem [#allocation2], %s4408_s6  ;;  %vm2748_vm6 = vcmask 1041408   ;;  %s5233_s30 = smov 3   ;;  %vm2861_vm7 = vcmask 16384   ;;  %vm2864_vm8 = vcmask 17409   ;;  %vm2867_vm9 = vcmask 18434  }
 0x2eb   : > { %2753 = vperm.xlu0 %5083, %v5222_v53   ;;  %2764 = vperm.xlu1 %5085, %v5222_v53   ;;  %s5234_s10 = smov 122   ;;  %vm2870_vm10 = vcmask 19459   ;;  %s2860_s11 = scalar_lea.vmem [#allocation3], %s4408_s6 }
 0x2ec   : > { %s2720_s5 = sadd.s32 1, %s5226_s5  }
 0x2ed   : > { %p2717_p0 = scmp.ge.s32.totalorder %s2720_s5, 100  }
 0x2ee   :  { %vm3337_vm11 = vcmask (%p2717_p0), 174080   ;;  %vm3391_vm12 = vcmask (%p2717_p0), 178180   ;;  %vm3720_vm14 = vcmask (%p2717_p0), 124928  }
 0x2ef   : > { %5084 = vset.pattern.permute.xlu0 %v5231_v43  ;;  %5086 = vset.pattern.permute.xlu1 %v5229_v54  ;;  %v4410_v44 = vld [vmem:[%s6090_s28 + $0x190] sm:$0x1]  ;;  %v4412_v45 = vld [vmem:[%s6090_s28 + $0x320] sm:$0x1]  ;;  %v4426_v25 = vld [vmem:[%s6090_s28 + $0x191] sm:$0x1] }
 0x2f0   : > { %2758 = vperm.xlu0 %5084, %v5222_v53   ;;  %v2738_v46 = vrot.slane %v4410_v44, 7  ;;  %v2727_v48 = vld [vmem:[%s6090_s28] sm:$0x1]  ;;  %v4414_v49 = vld [vmem:[%s6090_s28 + $0x4b0] sm:$0x1]  ;;  %v2741_v50 = vrot.slane %v4412_v45, 6  ;;  %vm6305_vm13 = vmor (%p2717_p0), %vm3391_vm12, %vm327_vm0 }
 0x2f1   : > { %v2744_v55 = vrot.slane %v4414_v49, 5  ;;  %v2885_v27 = vrot.slane %v4426_v25, 7  ;;  %v4424_v29 = vld [vmem:[%s6090_s28 + $0x1] sm:$0x1]  ;;  %v4430_v32 = vld [vmem:[%s6090_s28 + $0x4b1] sm:$0x1] }
 0x2f2   : > { %v2747_v51 = vsel %vm2746_vm5, %v2727_v48, %v2738_v46  ;;  %v4428_v30 = vld [vmem:[%s6090_s28 + $0x321] sm:$0x1] }
 0x2f3   : > { %v2749_v57 = vsel %vm2748_vm6, %v2747_v51, %v2741_v50  ;;  %v2888_v33 = vrot.slane %v4428_v30, 6  ;;  %v2893_v34 = vsel %vm2746_vm5, %v4424_v29, %v2885_v27 }
 0x2f4   : > { %v2750_v60 = vsel %vm327_vm0, %v2749_v57, %v2744_v55 }
 0x2f5   : > { %v2894_v53 = vsel %vm2748_vm6, %v2893_v34, %v2888_v33 }
 0x36a   : > { %v2754_v47 = vpop.permute.xlu0 %2753  ;;  %v2765_v52 = vpop.permute.xlu1 %2764 }
 0x36b   : > { %v2756_v56 = vmul.f32 %v2754_v47, %v5887_v0  ;;  %v2767_v58 = vmul.f32 %v2765_v52, %v5897_v3 }
 0x36f   : > { %v2759_v1 = vpop.permute.xlu0 %2758 }
 0x370   : > { %v2761_v11 = vmul.f32 %v2759_v1, %v5892_v2 }
 0x372   : > { %v2762_v59 = vadd.f32 %v2761_v11, %v2756_v56 }
 0x374   : > { %v2768_v61 = vadd.f32 %v2767_v58, %v2762_v59 }
 0x376   : > { %v2769_v62 = vadd.f32 %v2768_v61, %v2750_v60 }
 0x378   : > { %5104 = vtanh.f32 %v2769_v62  ;;  %v4415_v8 = vmul.f32 -1.442695, %v2769_v62 }
 0x37a   : > { %5106 = vpow2.f32 %v4415_v8 }
 0x382   : > { %v5105_v63 = vpop.eup %5104 }
 0x383   : > { %2779 = vrot.lane.b32.xlu1 %v5105_v63, %s5232_s29 }
 0x384   : > { %v5107_v12 = vpop.eup %5106 }
 0x385   : > { %v2773_v13 = vadd.f32 1.0, %v5107_v12 }
 0x387   : > { %5108 = vrcp.f32 %v2773_v13 }
 0x391   : > { %v5109_v16 = vpop.eup %5108 }
 0x392   : > { %v2777_v19 = vmul.f32 %v5218_v41, %v5109_v16  ;;  %v2891_v41 = vrot.slane %v4430_v32, 5 }
 0x394   : > { %v2895_v51 = vsel %vm327_vm0, %v2894_v53, %v2891_v41  ;;  %v4448_v53 = vld [vmem:[%s6090_s28 + $0x4b2] sm:$0x1] }
 0x3f5   : > { %v2780_v17 = vpop.permute.xlu1 %2779 }
 0x3f6   : > { %v2782_v18 = vmul.f32 %v5109_v16, %v2780_v17 }
 0x3f8   : > { %2784 = vrot.lane.b32.xlu1 %v2782_v18, %s5233_s30 }
 0x46a   : > { %v2785_v20 = vpop.permute.xlu1 %2784 }
 0x46b   : > { %v6104_v21 = vadd.f32 %v2785_v20, %v2777_v19 }
 0x46d   : > { %5110 = vtanh.f32 %v6104_v21 }
 0x477   : > { %v5111_v22 = vpop.eup %5110 }
 0x478   : > { %2790 = vrot.lane.b32.xlu0 %v5111_v22, %s5233_s30 }
 0x4ea   : > { %v2791_v23 = vpop.permute.xlu0 %2790 }
 0x4eb   : > { %v2793_v24 = vmul.f32 %v5109_v16, %v2791_v23 }
 0x4ed   : > { %2801 = vperm.xlu0 %5084, %v2793_v24   ;;  %2796 = vperm.xlu1 %5086, %v2793_v24  }
 0x4f1   : > { %5087 = vset.pattern.permute.xlu0 %v5229_v54  ;;  %5088 = vset.pattern.permute.xlu1 %v5231_v43 }
 0x4f2   : > { %2820 = vperm.xlu1 %5088, %v5214_v40   ;;  %2815 = vperm.xlu0 %5087, %v5214_v40  }
 0x4f6   : > { %5089 = vset.pattern.permute.xlu1 %v5230_v42 }
 0x4f7   : > { %2807 = vperm.xlu1 %5089, %v2793_v24  }
 0x4fb   : > { %2826 = vperm.xlu1 %5089, %v5214_v40  }
 0x4ff   : > { %5090 = vset.pattern.permute.xlu1 %v5231_v43 }
 0x56c   : > { %v2797_v26 = vpop.permute.xlu1 %2796  ;;  %v2802_v28 = vpop.permute.xlu0 %2801 }
 0x56d   : > { %v2804_v35 = vmul.f32 %v2802_v28, %v5907_v6  ;;  %v2897_v36 = vmul.f32 %v2802_v28, %v5892_v2  ;;  %v2799_v37 = vmul.f32 %v2797_v26, %v5902_v5  ;;  %v2896_v38 = vmul.f32 %v2797_v26, %v5887_v0 }
 0x56f   : > { %v2805_v44 = vadd.f32 %v2804_v35, %v2799_v37  ;;  %v2898_v45 = vadd.f32 %v2897_v36, %v2896_v38  ;;  %v4444_v35 = vld [vmem:[%s6090_s28 + $0x192] sm:$0x1]  ;;  %v4446_v36 = vld [vmem:[%s6090_s28 + $0x322] sm:$0x1] }
 0x570   : > { %v3012_v37 = vrot.slane %v4444_v35, 7  ;;  %v4442_v38 = vld [vmem:[%s6090_s28 + $0x2] sm:$0x1] }
 0x571   : > { %v2821_v31 = vpop.permute.xlu1 %2820  ;;  %v2816_v40 = vpop.permute.xlu0 %2815 }
 0x572   : > { %v2823_v47 = vmul.f32 %v2821_v31, %v5922_v10  ;;  %v2818_v48 = vmul.f32 %v2816_v40, %v5917_v9 }
 0x574   : > { %v2824_v56 = vadd.f32 %v2823_v47, %v2818_v48  ;;  %v3018_v48 = vrot.slane %v4448_v53, 5 }
 0x576   : > { %v2808_v46 = vpop.permute.xlu1 %2807 }
 0x577   : > { %v2810_v49 = vmul.f32 %v2808_v46, %v5912_v7  ;;  %v2899_v50 = vmul.f32 %v2808_v46, %v5897_v3 }
 0x579   : > { %v2811_v52 = vadd.f32 %v2810_v49, %v2805_v44  ;;  %v2900_v1 = vadd.f32 %v2899_v50, %v2898_v45  ;;  %v3015_v44 = vrot.slane %v4446_v36, 6  ;;  %v3020_v45 = vsel %vm2746_vm5, %v4442_v38, %v3012_v37 }
 0x57a   : > { %v2827_v55 = vpop.permute.xlu1 %2826 }
 0x57b   : > { %v2901_v11 = vadd.f32 %v2900_v1, %v2895_v51  ;;  %v2829_v57 = vmul.f32 %v2827_v55, %v5928_v14  ;;  %v2812_v58 = vadd.f32 %v2811_v52, %v5933_v15  ;;  %v3021_v49 = vsel %vm2748_vm6, %v3020_v45, %v3015_v44 }
 0x57d   : > { %5112 = vtanh.f32 %v2901_v11  ;;  %v2830_v59 = vadd.f32 %v2829_v57, %v2824_v56  ;;  %v4431_v63 = vmul.f32 -1.442695, %v2901_v11  ;;  %v3022_v11 = vsel %vm327_vm0, %v3021_v49, %v3018_v48  ;;  %v4462_v48 = vld [vmem:[%s6090_s28 + $0x193] sm:$0x1]  ;;  %v4464_v49 = vld [vmem:[%s6090_s28 + $0x323] sm:$0x1] }
 0x57f   : > { %v2831_v60 = vadd.f32 %v2830_v59, %v2812_v58 }
 0x581   : > { %5114 = vtanh.f32 %v2831_v60  ;;  %v4416_v8 = vmul.f32 -1.442695, %v2831_v60 }
 0x582   : > { %5116 = vpow2.f32 %v4431_v63 }
 0x583   : > { %5118 = vpow2.f32 %v4416_v8 }
 0x587   : > { %v5113_v61 = vpop.eup %5112 }
 0x588   : > { %2911 = vrot.lane.b32.xlu0 %v5113_v61, %s5232_s29 }
 0x58b   : > { %v5115_v62 = vpop.eup %5114 }
 0x58c   : > { %2841 = vrot.lane.b32.xlu1 %v5115_v62, %s5232_s29  ;;  %v5117_v12 = vpop.eup %5116 }
 0x58d   : > { %v2905_v13 = vadd.f32 1.0, %v5117_v12  ;;  %v5119_v16 = vpop.eup %5118 }
 0x58e   : > { %v2835_v17 = vadd.f32 1.0, %v5119_v16 }
 0x58f   : > { %5120 = vrcp.f32 %v2905_v13 }
 0x590   : > { %5122 = vrcp.f32 %v2835_v17 }
 0x599   : > { %v5121_v18 = vpop.eup %5120 }
 0x59a   : > { %v5123_v22 = vpop.eup %5122  ;;  %v2909_v25 = vmul.f32 %v5121_v18, %v6104_v21 }
 0x59b   : > { %v2839_v28 = vmul.f32 %v5210_v39, %v5123_v22 }
 0x5fa   : > { %v2912_v19 = vpop.permute.xlu0 %2911 }
 0x5fb   : > { %v2914_v20 = vmul.f32 %v5121_v18, %v2912_v19 }
 0x5fd   : > { %2916 = vrot.lane.b32.xlu0 %v2914_v20, %s5233_s30 }
 0x5fe   : > { %v2842_v23 = vpop.permute.xlu1 %2841 }
 0x5ff   : > { %v2844_v24 = vmul.f32 %v5123_v22, %v2842_v23 }
 0x601   : > { %2846 = vrot.lane.b32.xlu1 %v2844_v24, %s5233_s30 }
 0x66f   : > { %v2917_v26 = vpop.permute.xlu0 %2916 }
 0x670   : > { %v6137_v27 = vadd.f32 %v2917_v26, %v2909_v25 }
 0x672   : > { %5124 = vtanh.f32 %v6137_v27 }
 0x673   : > { %v2847_v29 = vpop.permute.xlu1 %2846 }
 0x674   : > { %v6141_v30 = vadd.f32 %v2847_v29, %v2839_v28 }
 0x676   : > { %5126 = vtanh.f32 %v6141_v30 }
 0x67c   : > { %v5125_v31 = vpop.eup %5124 }
 0x67d   : > { %2922 = vrot.lane.b32.xlu0 %v5125_v31, %s5233_s30 }
 0x680   : > { %v5127_v32 = vpop.eup %5126 }
 0x681   : > { %2852 = vrot.lane.b32.xlu1 %v5127_v32, %s5233_s30 }
 0x6ef   : > { %v2923_v21 = vpop.permute.xlu0 %2922 }
 0x6f0   : > { %v2925_v33 = vmul.f32 %v5121_v18, %v2923_v21 }
 0x6f2   : > { %2928 = vperm.xlu0 %5087, %v2925_v33   ;;  %2933 = vperm.xlu1 %5090, %v2925_v33  }
 0x6f3   : > { %v2853_v34 = vpop.permute.xlu1 %2852 }
 0x6f4   : > { %v6146_v39 = vmul.f32 %v5123_v22, %v2853_v34 }
 0x6f6   : > { %5091 = vset.pattern.permute.xlu0 %v5230_v42  ;;  %5092 = vset.pattern.permute.xlu1 %v5229_v54 }
 0x6f7   : > { %2939 = vperm.xlu0 %5091, %v2925_v33   ;;  %2946 = vperm.xlu1 %5092, %v6146_v39  }
 0x6fb   : > { %2957 = vperm.xlu0 %5091, %v6146_v39   ;;  %5093 = vset.pattern.permute.xlu1 %v5231_v43 }
 0x6fc   : > { %2951 = vperm.xlu1 %5093, %v6146_v39  }
 0x6ff   : > { %5095 = vset.pattern.permute.xlu0 %v5231_v43 }
 0x700   : > { %5094 = vset.pattern.permute.xlu1 %v5229_v54 }
 0x771   : > { %v2929_v40 = vpop.permute.xlu0 %2928  ;;  %v2934_v41 = vpop.permute.xlu1 %2933 }
 0x772   : > { %v3023_v46 = vmul.f32 %v2929_v40, %v5887_v0  ;;  %v3024_v47 = vmul.f32 %v2934_v41, %v5892_v2  ;;  %v2931_v50 = vmul.f32 %v2929_v40, %v5902_v5  ;;  %v2936_v51 = vmul.f32 %v2934_v41, %v5907_v6 }
 0x774   : > { %v3025_v55 = vadd.f32 %v3024_v47, %v3023_v46  ;;  %v2937_v59 = vadd.f32 %v2936_v51, %v2931_v50  ;;  %v3139_v50 = vrot.slane %v4462_v48, 7  ;;  %v4460_v51 = vld [vmem:[%s6090_s28 + $0x3] sm:$0x1] }
 0x776   : > { %v2940_v52 = vpop.permute.xlu0 %2939  ;;  %v2947_v1 = vpop.permute.xlu1 %2946 }
 0x777   : > { %v3026_v56 = vmul.f32 %v2940_v52, %v5897_v3  ;;  %v2942_v57 = vmul.f32 %v2940_v52, %v5912_v7  ;;  %v2949_v8 = vmul.f32 %v2947_v1, %v5917_v9 }
 0x779   : > { %v3027_v58 = vadd.f32 %v3026_v56, %v3025_v55  ;;  %v2943_v63 = vadd.f32 %v2942_v57, %v2937_v59  ;;  %v4466_v55 = vld [vmem:[%s6090_s28 + $0x4b3] sm:$0x1]  ;;  %v3142_v56 = vrot.slane %v4464_v49, 6 }
 0x77a   : > { %v2958_v61 = vpop.permute.xlu0 %2957 }
 0x77b   : > { %v3028_v60 = vadd.f32 %v3027_v58, %v3022_v11  ;;  %v2952_v62 = vpop.permute.xlu1 %2951  ;;  %v2960_v13 = vmul.f32 %v2958_v61, %v5928_v14  ;;  %v2944_v17 = vadd.f32 %v2943_v63, %v5933_v15  ;;  %v3147_v11 = vsel %vm2746_vm5, %v4460_v51, %v3139_v50 }
 0x77c   : > { %v2954_v12 = vmul.f32 %v2952_v62, %v5922_v10  ;;  %v3145_v58 = vrot.slane %v4466_v55, 5  ;;  %v3148_v59 = vsel %vm2748_vm6, %v3147_v11, %v3142_v56 }
 0x77d   : > { %5128 = vtanh.f32 %v3028_v60  ;;  %v4449_v23 = vmul.f32 -1.442695, %v3028_v60 }
 0x77e   : > { %v2955_v16 = vadd.f32 %v2954_v12, %v2949_v8  ;;  %v3149_v63 = vsel %vm327_vm0, %v3148_v59, %v3145_v58 }
 0x780   : > { %v2961_v18 = vadd.f32 %v2960_v13, %v2955_v16 }
 0x782   : > { %v2962_v19 = vadd.f32 %v2961_v18, %v2944_v17 }
 0x784   : > { %5130 = vtanh.f32 %v2962_v19  ;;  %v4432_v24 = vmul.f32 -1.442695, %v2962_v19 }
 0x785   : > { %5132 = vpow2.f32 %v4449_v23 }
 0x786   : > { %5134 = vpow2.f32 %v4432_v24 }
 0x787   : > { %v5129_v20 = vpop.eup %5128 }
 0x788   : > { %3038 = vrot.lane.b32.xlu1 %v5129_v20, %s5232_s29 }
 0x78e   : > { %v5131_v22 = vpop.eup %5130 }
 0x78f   : > { %2972 = vrot.lane.b32.xlu0 %v5131_v22, %s5232_s29  ;;  %v5133_v25 = vpop.eup %5132 }
 0x790   : > { %v3032_v26 = vadd.f32 1.0, %v5133_v25  ;;  %v5135_v28 = vpop.eup %5134 }
 0x791   : > { %v2966_v29 = vadd.f32 1.0, %v5135_v28 }
 0x792   : > { %5136 = vrcp.f32 %v3032_v26 }
 0x793   : > { %5138 = vrcp.f32 %v2966_v29 }
 0x79c   : > { %v5137_v31 = vpop.eup %5136 }
 0x79d   : > { %v5139_v33 = vpop.eup %5138  ;;  %v3036_v36 = vmul.f32 %v5137_v31, %v6137_v27 }
 0x79e   : > { %v2970_v40 = vmul.f32 %v5139_v33, %v6141_v30 }
 0x7fa   : > { %v3039_v32 = vpop.permute.xlu1 %3038 }
 0x7fb   : > { %v3041_v21 = vmul.f32 %v5137_v31, %v3039_v32 }
 0x7fd   : > { %3043 = vrot.lane.b32.xlu1 %v3041_v21, %s5233_s30 }
 0x801   : > { %v2973_v34 = vpop.permute.xlu0 %2972 }
 0x802   : > { %v2975_v35 = vmul.f32 %v5139_v33, %v2973_v34 }
 0x804   : > { %2977 = vrot.lane.b32.xlu0 %v2975_v35, %s5233_s30 }
 0x86f   : > { %v3044_v37 = vpop.permute.xlu1 %3043 }
 0x870   : > { %v6178_v38 = vadd.f32 %v3044_v37, %v3036_v36 }
 0x872   : > { %5140 = vtanh.f32 %v6178_v38 }
 0x876   : > { %v2978_v41 = vpop.permute.xlu0 %2977 }
 0x877   : > { %v6182_v53 = vadd.f32 %v2978_v41, %v2970_v40 }
 0x879   : > { %5142 = vtanh.f32 %v6182_v53 }
 0x87c   : > { %v5141_v44 = vpop.eup %5140 }
 0x87d   : > { %3049 = vrot.lane.b32.xlu1 %v5141_v44, %s5233_s30 }
 0x883   : > { %v5143_v45 = vpop.eup %5142 }
 0x884   : > { %2983 = vrot.lane.b32.xlu0 %v5143_v45, %s5233_s30 }
 0x8ef   : > { %v3050_v27 = vpop.permute.xlu1 %3049 }
 0x8f0   : > { %v3052_v46 = vmul.f32 %v5137_v31, %v3050_v27 }
 0x8f2   : > { %3060 = vperm.xlu0 %5095, %v3052_v46   ;;  %3055 = vperm.xlu1 %5094, %v3052_v46  }
 0x8f6   : > { %v2984_v47 = vpop.permute.xlu0 %2983  ;;  %5096 = vset.pattern.permute.xlu1 %v5230_v42 }
 0x8f7   : > { %v6188_v30 = vmul.f32 %v5139_v33, %v2984_v47  ;;  %3066 = vperm.xlu1 %5096, %v3052_v46  }
 0x8f9   : > { %3078 = vperm.xlu0 %5095, %v6188_v30  }
 0x8fb   : > { %5097 = vset.pattern.permute.xlu1 %v5229_v54 }
 0x8fc   : > { %3073 = vperm.xlu1 %5097, %v6188_v30  }
 0x8fd   : > { %5099 = vset.pattern.permute.xlu0 %v5229_v54 }
 0x900   : > { %5098 = vset.pattern.permute.xlu1 %v5230_v42 }
 0x901   : > { %3084 = vperm.xlu1 %5098, %v6188_v30  }
 0x905   : > { %5100 = vset.pattern.permute.xlu1 %v5231_v43 }
 0x971   : > { %v3061_v52 = vpop.permute.xlu0 %3060  ;;  %v3056_v1 = vpop.permute.xlu1 %3055 }
 0x972   : > { %v3151_v57 = vmul.f32 %v3061_v52, %v5892_v2  ;;  %v3150_v54 = vmul.f32 %v3056_v1, %v5887_v0  ;;  %v3063_v8 = vmul.f32 %v3061_v52, %v5907_v6  ;;  %v3058_v12 = vmul.f32 %v3056_v1, %v5902_v5 }
 0x974   : > { %v3152_v61 = vadd.f32 %v3151_v57, %v3150_v54  ;;  %v3064_v20 = vadd.f32 %v3063_v8, %v3058_v12 }
 0x976   : > { %v3067_v60 = vpop.permute.xlu1 %3066 }
 0x977   : > { %v3153_v62 = vmul.f32 %v3067_v60, %v5897_v3  ;;  %v3069_v16 = vmul.f32 %v3067_v60, %v5912_v7 }
 0x978   : > { %v3079_v19 = vpop.permute.xlu0 %3078 }
 0x979   : > { %v3154_v13 = vadd.f32 %v3153_v62, %v3152_v61  ;;  %v3070_v23 = vadd.f32 %v3069_v16, %v3064_v20  ;;  %v3081_v24 = vmul.f32 %v3079_v19, %v5922_v10 }
 0x97b   : > { %v3155_v17 = vadd.f32 %v3154_v13, %v3149_v63  ;;  %v3074_v18 = vpop.permute.xlu1 %3073  ;;  %v3071_v29 = vadd.f32 %v3070_v23, %v5933_v15 }
 0x97c   : > { %v3076_v22 = vmul.f32 %v3074_v18, %v5917_v9 }
 0x97d   : > { %5144 = vtanh.f32 %v3155_v17  ;;  %v4467_v34 = vmul.f32 -1.442695, %v3155_v17 }
 0x97e   : > { %v3082_v26 = vadd.f32 %v3081_v24, %v3076_v22 }
 0x980   : > { %v3085_v25 = vpop.permute.xlu1 %3084 }
 0x981   : > { %v3087_v28 = vmul.f32 %v3085_v25, %v5928_v14 }
 0x983   : > { %v3088_v31 = vadd.f32 %v3087_v28, %v3082_v26 }
 0x985   : > { %v3089_v32 = vadd.f32 %v3088_v31, %v3071_v29 }
 0x987   : > { %v5145_v21 = vpop.eup %5144  ;;  %5146 = vtanh.f32 %v3089_v32  ;;  %v4450_v35 = vmul.f32 -1.442695, %v3089_v32 }
 0x988   : > { %3165 = vrot.lane.b32.xlu0 %v5145_v21, %s5232_s29  ;;  %5148 = vpow2.f32 %v4467_v34 }
 0x989   : > { %5150 = vpow2.f32 %v4450_v35 }
 0x991   : > { %v5147_v33 = vpop.eup %5146 }
 0x992   : > { %3099 = vrot.lane.b32.xlu1 %v5147_v33, %s5232_s29  ;;  %v5149_v36 = vpop.eup %5148 }
 0x993   : > { %v3159_v37 = vadd.f32 1.0, %v5149_v36  ;;  %v5151_v40 = vpop.eup %5150 }
 0x994   : > { %v3093_v41 = vadd.f32 1.0, %v5151_v40 }
 0x995   : > { %5152 = vrcp.f32 %v3159_v37 }
 0x996   : > { %5154 = vrcp.f32 %v3093_v41 }
 0x99f   : > { %v5153_v44 = vpop.eup %5152 }
 0x9a0   : > { %v5155_v46 = vpop.eup %5154  ;;  %v3163_v49 = vmul.f32 %v5153_v44, %v6178_v38 }
 0x9a1   : > { %v3097_v51 = vmul.f32 %v5155_v46, %v6182_v53 }
 0x9fa   : > { %v3166_v45 = vpop.permute.xlu0 %3165 }
 0x9fb   : > { %v3168_v27 = vmul.f32 %v5153_v44, %v3166_v45 }
 0x9fd   : > { %3170 = vrot.lane.b32.xlu0 %v3168_v27, %s5233_s30 }
 0xa04   : > { %v3100_v47 = vpop.permute.xlu1 %3099 }
 0xa05   : > { %v3102_v48 = vmul.f32 %v5155_v46, %v3100_v47 }
 0xa07   : > { %3104 = vrot.lane.b32.xlu1 %v3102_v48, %s5233_s30 }
 0xa6f   : > { %v3171_v50 = vpop.permute.xlu0 %3170 }
 0xa70   : > { %v6219_v41 = vadd.f32 %v3171_v50, %v3163_v49  }
 0xa72   : > { %5156 = vtanh.f32 %v6219_v41 }
 0xa79   : > { %v3105_v52 = vpop.permute.xlu1 %3104 }
 0xa7a   : > { %v3107_v1 = vadd.f32 %v3105_v52, %v3097_v51 }
 0xa7c   : > { %v5157_v55 = vpop.eup %5156  ;;  %5158 = vtanh.f32 %v3107_v1 }
 0xa7d   : > { %3176 = vrot.lane.b32.xlu0 %v5157_v55, %s5233_s30 }
 0xa86   : > { %v5159_v56 = vpop.eup %5158 }
 0xa87   : > { %3110 = vrot.lane.b32.xlu1 %v5159_v56, %s5233_s30 }
 0xaef   : > { %v3177_v11 = vpop.permute.xlu0 %3176 }
 0xaf0   : > { %v6225_v53 = vmul.f32 %v5153_v44, %v3177_v11  }
 0xaf2   : > { %3182 = vperm.xlu0 %5099, %v6225_v53   ;;  %3187 = vperm.xlu1 %5100, %v6225_v53  }
 0xaf6   : > { %5101 = vset.pattern.permute.xlu1 %v5230_v42 }
 0xaf7   : > { %3193 = vperm.xlu1 %5101, %v6225_v53  }
 0xaf9   : > { %v3111_v38 = vpop.permute.xlu1 %3110 }
 0xafa   : > { %v3113_v57 = vmul.f32 %v5155_v46, %v3111_v38 }
 0xafb   : > { %5102 = vset.pattern.permute.xlu1 %v5231_v43 }
 0xafc   : > { %3205 = vperm.xlu1 %5102, %v3113_v57   ;;  %3200 = vperm.xlu0 %5099, %v3113_v57  }
 0xb00   : > { %5103 = vset.pattern.permute.xlu0 %v5230_v42 }
 0xb01   : > { %3211 = vperm.xlu0 %5103, %v3113_v57  }
 0xb71   : > { %v3188_v54 = vpop.permute.xlu1 %3187  ;;  %v3183_v58 = vpop.permute.xlu0 %3182 }
 0xb72   : > { %v3185_v60 = vmul.f32 %v3183_v58, %v5902_v5  ;;  %v3190_v61 = vmul.f32 %v3188_v54, %v5907_v6 }
 0xb74   : > { %v3191_v12 = vadd.f32 %v3190_v61, %v3185_v60 }
 0xb76   : > { %v3194_v59 = vpop.permute.xlu1 %3193 }
 0xb77   : > { %v3196_v62 = vmul.f32 %v3194_v59, %v5912_v7 }
 0xb79   : > { %v3197_v16 = vadd.f32 %v3196_v62, %v3191_v12 }
 0xb7b   : > { %v3201_v63 = vpop.permute.xlu0 %3200  ;;  %v3206_v8 = vpop.permute.xlu1 %3205  ;;  %v3198_v19 = vadd.f32 %v3197_v16, %v5933_v15 }
 0xb7c   : > { %v3203_v13 = vmul.f32 %v3201_v63, %v5917_v9  ;;  %v3208_v43 = vmul.f32 %v3206_v8, %v5922_v10 }
 0xb7e   : > { %v3209_v42 = vadd.f32 %v3208_v43, %v3203_v13 }
 0xb80   : > { %v3212_v17 = vpop.permute.xlu0 %3211 }
 0xb81   : > { %v3214_v18 = vmul.f32 %v3212_v17, %v5928_v14 }
 0xb83   : > { %v3215_v20 = vadd.f32 %v3214_v18, %v3209_v42 }
 0xb85   : > { %v3216_v22 = vadd.f32 %v3215_v20, %v3198_v19 }
 0xb87   : > { %5160 = vtanh.f32 %v3216_v22  ;;  %v4468_v24 = vmul.f32 -1.442695, %v3216_v22 }
 0xb89   : > { %5162 = vpow2.f32 %v4468_v24 }
 0xb91   : > { %v5161_v23 = vpop.eup %5160 }
 0xb92   : > { %3226 = vrot.lane.b32.xlu1 %v5161_v23, %s5232_s29 }
 0xb93   : > { %v5163_v25 = vpop.eup %5162 }
 0xb94   : > { %v3220_v26 = vadd.f32 1.0, %v5163_v25 }
 0xb96   : > { %5164 = vrcp.f32 %v3220_v26 }
 0xba0   : > { %v5165_v28 = vpop.eup %5164 }
 0xba1   : > { %v3224_v32 = vmul.f32 %v5165_v28, %v3107_v1 }
 0xc04   : > { %v3227_v29 = vpop.permute.xlu1 %3226 }
 0xc05   : > { %v3229_v31 = vmul.f32 %v5165_v28, %v3227_v29 }
 0xc07   : > { %3231 = vrot.lane.b32.xlu1 %v3229_v31, %s5233_s30 }
 0xc0b   : > { %2857 = vrot.lane.b32.xlu1 %v6146_v39, %s5234_s10 }
 0xc0f   : > { %3115 = vrot.lane.b32.xlu1 %v3113_v57, %s5234_s10 }
 0xc79   : > { %v3232_v21 = vpop.permute.xlu1 %3231 }
 0xc7a   : > { %v3234_v39 = vadd.f32 %v3232_v21, %v3224_v32  }
 0xc7c   : > { %5166 = vtanh.f32 %v3234_v39 }
 0xc7d   : > { %v2858_v33 = vpop.permute.xlu1 %2857 }
 0xc7e   : > { %2862 = vst.msk [vmem:[%s2860_s11] sm:$0x1] %vm2861_vm7, %v2858_v33 }
 0xc7f   : > { %4418 = vst.msk [vmem:[%s2860_s11 + $0x18f] sm:$0x2] %vm2864_vm8, %v2858_v33 }
 0xc80   : > { %4420 = vst.msk [vmem:[%s2860_s11 + $0x31e] sm:$0x4] %vm2867_vm9, %v2858_v33 }
 0xc81   : > { %4422 = vst.msk [vmem:[%s2860_s11 + $0x4ad] sm:$0x8] %vm2870_vm10, %v2858_v33  ;;  %v3116_v34 = vpop.permute.xlu1 %3115 }
 0xc82   : > { %4452 = vst.msk [vmem:[%s2860_s11 + $0x2] sm:$0x1] %vm2861_vm7, %v3116_v34 }
 0xc83   : > { %4454 = vst.msk [vmem:[%s2860_s11 + $0x191] sm:$0x2] %vm2864_vm8, %v3116_v34 }
 0xc84   : > { %4456 = vst.msk [vmem:[%s2860_s11 + $0x320] sm:$0x4] %vm2867_vm9, %v3116_v34 }
 0xc85   : > { %4458 = vst.msk [vmem:[%s2860_s11 + $0x4af] sm:$0x8] %vm2870_vm10, %v3116_v34 }
 0xc86   : > { %v5167_v35 = vpop.eup %5166 }
 0xc87   : > { %3237 = vrot.lane.b32.xlu0 %v5167_v35, %s5233_s30 }
 0xc8b   : > { %2988 = vrot.lane.b32.xlu0 %v6188_v30, %s5234_s10 }
 0xcf9   : > { %v3238_v36 = vpop.permute.xlu0 %3237 }
 0xcfa   : > { %v3240_v40 = vmul.f32 %v5165_v28, %v3238_v36  }
 0xcfc   : > { %3242 = vrot.lane.b32.xlu0 %v3240_v40, %s5234_s10 }
 0xcfd   : > { %v2989_v37 = vpop.permute.xlu0 %2988 }
 0xcfe   : > { %4434 = vst.msk [vmem:[%s2860_s11 + $0x1] sm:$0x1] %vm2861_vm7, %v2989_v37 }
 0xcff   : > { %4436 = vst.msk [vmem:[%s2860_s11 + $0x190] sm:$0x2] %vm2864_vm8, %v2989_v37 }
 0xd00   : > { %4438 = vst.msk [vmem:[%s2860_s11 + $0x31f] sm:$0x4] %vm2867_vm9, %v2989_v37 }
 0xd01   : > { %4440 = vst.msk [vmem:[%s2860_s11 + $0x4ae] sm:$0x8] %vm2870_vm10, %v2989_v37 }
 0xd6c   :  { %2719 = sbr.rel (!%p2717_p0) target bundleno = 745 (0x2e9), region = 119 }
 0xd6e   : > { %v3243_v44 = vpop.permute.xlu0 %3242 }
 0xd6f   : > { %4470 = vst.msk [vmem:[%s2860_s11 + $0x3] sm:$0x1] %vm2861_vm7, %v3243_v44 }
 0xd70   : > { %4472 = vst.msk [vmem:[%s2860_s11 + $0x192] sm:$0x2] %vm2864_vm8, %v3243_v44 }
 0xd71   : > { %4474 = vst.msk [vmem:[%s2860_s11 + $0x321] sm:$0x4] %vm2867_vm9, %v3243_v44 }
 0xd72   : > { %4476 = vst.msk [vmem:[%s2860_s11 + $0x4b0] sm:$0x8] %vm2870_vm10, %v3243_v44 }
 0xd79   :  { %v3269_v30 = vld [vmem:[#allocation3 + $0x80] sm:$0xff]  ;;  %v3270_v27 = vld [vmem:[#allocation3 + $0x88] sm:$0xff]  ;;  %v3271_v47 = vld [vmem:[#allocation3 + $0x90] sm:$0x3f] }
 0xd7a   :  { %v3253_v45 = vld [vmem:[#allocation3] sm:$0xff]  ;;  %3304 = vxpose.xlu1.b32.start [1/3] (short) (narrow) %v3269_v30, 8  ;;  %v3254_v46 = vld [vmem:[#allocation3 + $0x8] sm:$0xff]  ;;  %v3255_v48 = vld [vmem:[#allocation3 + $0x10] sm:$0xff] }
 0xd7b   :  { %3272 = vxpose.xlu0.b32.start [1/16] (narrow) %v3253_v45, 8  ;;  %v3256_v49 = vld [vmem:[#allocation3 + $0x18] sm:$0xff]  ;;  %v3257_v50 = vld [vmem:[#allocation3 + $0x20] sm:$0xff]  ;;  %v3258_v53 = vld [vmem:[#allocation3 + $0x28] sm:$0xff] }
 0xd7c   :  { %v3259_v51 = vld [vmem:[#allocation3 + $0x30] sm:$0xff]  ;;  %v3260_v0 = vld [vmem:[#allocation3 + $0x38] sm:$0xff]  ;;  %v3261_v2 = vld [vmem:[#allocation3 + $0x40] sm:$0xff] }
 0xd7d   :  { %v3262_v3 = vld [vmem:[#allocation3 + $0x48] sm:$0xff]  ;;  %v3263_v5 = vld [vmem:[#allocation3 + $0x50] sm:$0xff]  ;;  %v3264_v6 = vld [vmem:[#allocation3 + $0x58] sm:$0xff] }
 0xd7e   :  { %3305 = vxpose.xlu1.b32.cont [2/3] (short) (narrow) %v3270_v27, 8  ;;  %v3265_v7 = vld [vmem:[#allocation3 + $0x60] sm:$0xff]  ;;  %v3266_v9 = vld [vmem:[#allocation3 + $0x68] sm:$0xff]  ;;  %v3267_v10 = vld [vmem:[#allocation3 + $0x70] sm:$0xff] }
 0xd7f   :  { %3273 = vxpose.xlu0.b32.cont [2/16] (narrow) %v3254_v46, 8  ;;  %v3268_v14 = vld [vmem:[#allocation3 + $0x78] sm:$0xff]  ;;  %v3411_v1 = vld [vmem:[#allocation3 + $0x210] sm:$0xff]  ;;  %v3413_v11 = vld [vmem:[#allocation3 + $0x220] sm:$0x3f] }
 0xd80   :  { %v3412_v55 = vld [vmem:[#allocation3 + $0x218] sm:$0xff]  ;;  %v3395_v17 = vld [vmem:[#allocation3 + $0x190] sm:$0xff]  ;;  %v3397_v18 = vld [vmem:[#allocation3 + $0x1a0] sm:$0xff] }
 0xd81   :  { %v3396_v42 = vld [vmem:[#allocation3 + $0x198] sm:$0xff]  ;;  %v3398_v19 = vld [vmem:[#allocation3 + $0x1a8] sm:$0xff]  ;;  %v3399_v20 = vld [vmem:[#allocation3 + $0x1b0] sm:$0xff] }
 0xd82   :  { %3306 = vxpose.xlu1.b32.end [3/3] (short) (narrow) %v3271_v47, 8  ;;  %v3400_v22 = vld [vmem:[#allocation3 + $0x1b8] sm:$0xff]  ;;  %v3401_v23 = vld [vmem:[#allocation3 + $0x1c0] sm:$0xff]  ;;  %v3402_v24 = vld [vmem:[#allocation3 + $0x1c8] sm:$0xff] }
 0xd83   :  { %3274 = vxpose.xlu0.b32.cont [3/16] (narrow) %v3255_v48, 8  ;;  %v3403_v25 = vld [vmem:[#allocation3 + $0x1d0] sm:$0xff]  ;;  %v3404_v26 = vld [vmem:[#allocation3 + $0x1d8] sm:$0xff]  ;;  %v3405_v28 = vld [vmem:[#allocation3 + $0x1e0] sm:$0xff] }
 0xd84   :  { %v3406_v29 = vld [vmem:[#allocation3 + $0x1e8] sm:$0xff]  ;;  %v3407_v31 = vld [vmem:[#allocation3 + $0x1f0] sm:$0xff]  ;;  %v3408_v32 = vld [vmem:[#allocation3 + $0x1f8] sm:$0xff] }
 0xd85   :  { %v3409_v21 = vld [vmem:[#allocation3 + $0x200] sm:$0xff]  ;;  %v3410_v33 = vld [vmem:[#allocation3 + $0x208] sm:$0xff] }
 0xd87   :  { %3275 = vxpose.xlu0.b32.cont [4/16] (narrow) %v3256_v49, 8 }
 0xd8b   :  { %3276 = vxpose.xlu0.b32.cont [5/16] (narrow) %v3257_v50, 8 }
 0xd8f   :  { %3277 = vxpose.xlu0.b32.cont [6/16] (narrow) %v3258_v53, 8  ;;  %v3553_v53 = vld [vmem:[#allocation3 + $0x3a0] sm:$0xff] }
 0xd93   :  { %3278 = vxpose.xlu0.b32.cont [7/16] (narrow) %v3259_v51, 8  ;;  %v3554_v51 = vld [vmem:[#allocation3 + $0x3a8] sm:$0xff] }
 0xd97   :  { %3279 = vxpose.xlu0.b32.cont [8/16] (narrow) %v3260_v0, 8 }
 0xd9b   :  { %3280 = vxpose.xlu0.b32.cont [9/16] (narrow) %v3261_v2, 8  ;;  %v3537_v2 = vld [vmem:[#allocation3 + $0x320] sm:$0xff] }
 0xd9f   :  { %3281 = vxpose.xlu0.b32.cont [10/16] (narrow) %v3262_v3, 8  ;;  %v3538_v3 = vld [vmem:[#allocation3 + $0x328] sm:$0xff] }
 0xda3   :  { %3282 = vxpose.xlu0.b32.cont [11/16] (narrow) %v3263_v5, 8  ;;  %v3539_v5 = vld [vmem:[#allocation3 + $0x330] sm:$0xff] }
 0xda7   :  { %3283 = vxpose.xlu0.b32.cont [12/16] (narrow) %v3264_v6, 8  ;;  %v3540_v6 = vld [vmem:[#allocation3 + $0x338] sm:$0xff] }
 0xdab   :  { %3284 = vxpose.xlu0.b32.cont [13/16] (narrow) %v3265_v7, 8  ;;  %v3541_v7 = vld [vmem:[#allocation3 + $0x340] sm:$0xff] }
 0xdaf   :  { %3285 = vxpose.xlu0.b32.cont [14/16] (narrow) %v3266_v9, 8  ;;  %v3542_v9 = vld [vmem:[#allocation3 + $0x348] sm:$0xff] }
 0xdb3   :  { %3286 = vxpose.xlu0.b32.cont [15/16] (narrow) %v3267_v10, 8  ;;  %v3543_v10 = vld [vmem:[#allocation3 + $0x350] sm:$0xff] }
 0xdb7   :  { %3287 = vxpose.xlu0.b32.end [16/16] (narrow) %v3268_v14, 8  ;;  %v3544_v14 = vld [vmem:[#allocation3 + $0x358] sm:$0xff] }
 0xdbb   :  { %3446 = vxpose.xlu0.b32.start [1/3] (short) (narrow) %v3411_v1, 8  ;;  %v3557_v1 = vld [vmem:[#allocation3 + $0x3c0] sm:$0xff] }
 0xdbf   :  { %3447 = vxpose.xlu0.b32.cont [2/3] (short) (narrow) %v3412_v55, 8  ;;  %v3375_v55 = vld [vmem:[%s6417_s7] sm:$0x77] }
 0xdc3   :  { %3448 = vxpose.xlu0.b32.end [3/3] (short) (narrow) %v3413_v11, 8  ;;  %v3377_v11 = vcombine.high %v3375_v55, %v3375_v55 }
 0xdfa   :  { %v3320_v15 = vpop.trf.xlu1 }
 0xdfb   :  { %v3288_v39 = vpop.trf.xlu0  ;;  %v3338_v40 = vsel %vm3337_vm11, %v3320_v15, 0.0 }
 0xdfc   :  { %v3336_v41 = vsel %vm327_vm0, %v3288_v39, 0.0 }
 0xdfd   :  { %v3339_v52 = vadd.f32 %v3338_v40, %v3336_v41  ;;  %v3546_v40 = vld [vmem:[#allocation3 + $0x368] sm:$0xff]  ;;  %v3556_v41 = vld [vmem:[#allocation3 + $0x3b8] sm:$0xff] }
 0xdff   :  { %3340 = vadd.xlane.f32.xlu1 %v3339_v52  ;;  %v3547_v52 = vld [vmem:[#allocation3 + $0x370] sm:$0xff] }
 0xe3b   :  { %v6288_v27 = vpop.trf.xlu0 }
 0xe3c   :  { %v3479_v46 = vsel %vm3337_vm11, %v6288_v27, 0.0 }
 0xe8c   :  { %v3341_v56 = vpop.xlane.xlu1 %3340 }
 0xe8d   :  { %v3342_v38 = vrot.slane %v3341_v56, 4 }
 0xe8f   :  { %v3343_v57 = vadd.f32 %v3342_v38, %v3341_v56  ;;  %v3381_v56 = vld [vmem:[%s6418_s8] sm:$0x77]  ;;  %v3548_v38 = vld [vmem:[#allocation3 + $0x378] sm:$0xff] }
 0xe91   :  { %v3344_v54 = vrot.slane %v3343_v57, 2 }
 0xe93   :  { %v3345_v58 = vadd.f32 %v3344_v54, %v3343_v57  ;;  %v3558_v57 = vld [vmem:[#allocation3 + $0x3c8] sm:$0xff] }
 0xe95   :  { %v3346_v59 = vrot.slane %v3345_v58, 1 }
 0xe97   :  { %v3347_v60 = vadd.f32 %v3346_v59, %v3345_v58 }
 0xe99   :  { %5004 = vpush %v3347_v60  ;;  %v3383_v60 = vcombine.high %v3381_v56, %v3381_v56 }
 0xeca   :  { %s5005_s12 = spop %5004 }
 0xecb   :  { %s3349_s2 = smul.f32 0.0022222223, %s5005_s12 }
 0xecd   :  { %v3350_v61 = vstv %s3349_s2 }
 0xece   :  { %v6278_v62 = vsub.f32 %v3288_v39, %v3350_v61  ;;  %v6280_v63 = vsub.f32 %v3320_v15, %v3350_v61  ;;  %v3545_v15 = vld [vmem:[#allocation3 + $0x360] sm:$0xff]  ;;  %v3555_v39 = vld [vmem:[#allocation3 + $0x3b0] sm:$0xff] }
 0xed0   :  { %v3354_v8 = vmul.f32 %v6280_v63, %v6280_v63  ;;  %v3353_v12 = vmul.f32 %v6278_v62, %v6278_v62 }
 0xed2   :  { %v3355_v13 = vsel %vm327_vm0, %v3353_v12, 0.0  ;;  %v3356_v43 = vsel %vm3337_vm11, %v3354_v8, 0.0  ;;  %v3549_v12 = vld [vmem:[#allocation3 + $0x380] sm:$0xff] }
 0xed3   :  { %v3357_v16 = vadd.f32 %v3356_v43, %v3355_v13  ;;  %v3559_v13 = vld [vmem:[#allocation3 + $0x3d0] sm:$0xff] }
 0xed5   :  { %3358 = vadd.xlane.f32.xlu1 %v3357_v16 }
 0xf08   :  { %3414 = vxpose.xlu1.b32.start [1/16] (narrow) %v3395_v17, 8  ;;  %v3835_v17 = vld [vmem:[#allocation3 + $0x598] sm:$0xff] }
 0xf0c   :  { %3415 = vxpose.xlu1.b32.cont [2/16] (narrow) %v3396_v42, 8  ;;  %v3550_v42 = vld [vmem:[#allocation3 + $0x388] sm:$0xff] }
 0xf10   :  { %3416 = vxpose.xlu1.b32.cont [3/16] (narrow) %v3397_v18, 8  ;;  %v3551_v18 = vld [vmem:[#allocation3 + $0x390] sm:$0xff] }
 0xf14   :  { %3417 = vxpose.xlu1.b32.cont [4/16] (narrow) %v3398_v19, 8  ;;  %v3561_v19 = vld [vmem:[#allocation3 + $0x3e0] sm:$0xff] }
 0xf18   :  { %3418 = vxpose.xlu1.b32.cont [5/16] (narrow) %v3399_v20, 8  ;;  %v3552_v20 = vld [vmem:[#allocation3 + $0x398] sm:$0xff] }
 0xf1c   :  { %3419 = vxpose.xlu1.b32.cont [6/16] (narrow) %v3400_v22, 8  ;;  %v3562_v22 = vld [vmem:[#allocation3 + $0x3e8] sm:$0xff] }
 0xf20   :  { %3420 = vxpose.xlu1.b32.cont [7/16] (narrow) %v3401_v23, 8  ;;  %v3563_v23 = vld [vmem:[#allocation3 + $0x3f0] sm:$0xff] }
 0xf24   :  { %3421 = vxpose.xlu1.b32.cont [8/16] (narrow) %v3402_v24, 8  ;;  %v3564_v24 = vld [vmem:[#allocation3 + $0x3f8] sm:$0xff] }
 0xf28   :  { %3422 = vxpose.xlu1.b32.cont [9/16] (narrow) %v3403_v25, 8  ;;  %v3565_v25 = vld [vmem:[#allocation3 + $0x400] sm:$0xff] }
 0xf2c   :  { %3423 = vxpose.xlu1.b32.cont [10/16] (narrow) %v3404_v26, 8  ;;  %v3566_v26 = vld [vmem:[#allocation3 + $0x408] sm:$0xff] }
 0xf30   :  { %3424 = vxpose.xlu1.b32.cont [11/16] (narrow) %v3405_v28, 8  ;;  %v3567_v28 = vld [vmem:[#allocation3 + $0x410] sm:$0xff] }
 0xf34   :  { %3425 = vxpose.xlu1.b32.cont [12/16] (narrow) %v3406_v29, 8  ;;  %v3568_v29 = vld [vmem:[#allocation3 + $0x418] sm:$0xff] }
 0xf38   :  { %3426 = vxpose.xlu1.b32.cont [13/16] (narrow) %v3407_v31, 8  ;;  %v3585_v31 = vld [vmem:[#allocation3 + $0x4a0] sm:$0xff] }
 0xf3c   :  { %3427 = vxpose.xlu1.b32.cont [14/16] (narrow) %v3408_v32, 8  ;;  %v3586_v32 = vld [vmem:[#allocation3 + $0x4a8] sm:$0xff] }
 0xf40   :  { %3428 = vxpose.xlu1.b32.cont [15/16] (narrow) %v3409_v21, 8 }
 0xf44   :  { %3429 = vxpose.xlu1.b32.end [16/16] (narrow) %v3410_v33, 8 }
 0xf48   :  { %3619 = vxpose.xlu1.b32.start [1/16] (narrow) %v3553_v53, 8 }
 0xf4c   :  { %3620 = vxpose.xlu1.b32.cont [2/16] (narrow) %v3554_v51, 8 }
 0xf50   :  { %3621 = vxpose.xlu1.b32.cont [3/16] (narrow) %v3555_v39, 8  ;;  %v3581_v39 = vld [vmem:[#allocation3 + $0x480] sm:$0xff] }
 0xf54   :  { %3622 = vxpose.xlu1.b32.cont [4/16] (narrow) %v3556_v41, 8  ;;  %v3583_v41 = vld [vmem:[#allocation3 + $0x490] sm:$0xff] }
 0xf58   :  { %3623 = vxpose.xlu1.b32.cont [5/16] (narrow) %v3557_v1, 8 }
 0xf5c   :  { %3624 = vxpose.xlu1.b32.cont [6/16] (narrow) %v3558_v57, 8 }
 0xf60   :  { %3625 = vxpose.xlu1.b32.cont [7/16] (narrow) %v3559_v13, 8 }
 0xf62   :  { %v3359_v34 = vpop.xlane.xlu1 %3358 }
 0xf63   :  { %v3360_v35 = vrot.slane %v3359_v34, 4 }
 0xf65   :  { %v3361_v36 = vadd.f32 %v3360_v35, %v3359_v34 }
 0xf67   :  { %v3362_v37 = vrot.slane %v3361_v36, 2 }
 0xf69   :  { %v3363_v44 = vadd.f32 %v3362_v37, %v3361_v36 }
 0xf6b   :  { %v3364_v30 = vrot.slane %v3363_v44, 1 }
 0xf6d   :  { %v3365_v45 = vadd.f32 %v3364_v30, %v3363_v44 }
 0xf6f   :  { %5006 = vpush %v3365_v45 }
 0xf88   :  { %v6292_v47 = vpop.trf.xlu1 }
 0xf89   :  { %v3478_v48 = vsel %vm327_vm0, %v6292_v47, 0.0 }
 0xf8a   :  { %v3480_v49 = vadd.f32 %v3479_v46, %v3478_v48 }
 0xf8c   :  { %3481 = vadd.xlane.f32.xlu0 %v3480_v49 }
 0xfa0   :  { %s5007_s13 = spop %5006 }
 0xfa1   :  { %s3367_s14 = smul.f32 0.0022222223, %s5007_s13 }
 0xfa3   :  { %s3368_s15 = sadd.f32 1e-05, %s3367_s14 }
 0xfa5   :  { %v3369_v50 = vstv %s3368_s15 }
 0xfa6   :  { %5180 = vrsqrt.f32 %v3369_v50 }
 0xfb0   :  { %v5181_v0 = vpop.eup %5180 }
 0xfb1   :  { %5008 = vpush %v5181_v0  ;;  %v3569_v0 = vld [vmem:[#allocation3 + $0x420] sm:$0xff] }
 0xfb9   :  { %3587 = vxpose.xlu0.b32.start [1/16] (narrow) %v3537_v2, 8  ;;  %v3570_v2 = vld [vmem:[#allocation3 + $0x428] sm:$0xff] }
 0xfbd   :  { %3588 = vxpose.xlu0.b32.cont [2/16] (narrow) %v3538_v3, 8  ;;  %v3573_v3 = vld [vmem:[#allocation3 + $0x440] sm:$0xff] }
 0xfc1   :  { %3589 = vxpose.xlu0.b32.cont [3/16] (narrow) %v3539_v5, 8  ;;  %v3574_v5 = vld [vmem:[#allocation3 + $0x448] sm:$0xff] }
 0xfc5   :  { %3590 = vxpose.xlu0.b32.cont [4/16] (narrow) %v3540_v6, 8  ;;  %v3575_v6 = vld [vmem:[#allocation3 + $0x450] sm:$0xff] }
 0xfc9   :  { %3591 = vxpose.xlu0.b32.cont [5/16] (narrow) %v3541_v7, 8  ;;  %v3576_v7 = vld [vmem:[#allocation3 + $0x458] sm:$0xff] }
 0xfcd   :  { %3592 = vxpose.xlu0.b32.cont [6/16] (narrow) %v3542_v9, 8  ;;  %v3577_v9 = vld [vmem:[#allocation3 + $0x460] sm:$0xff] }
 0xfd1   :  { %3593 = vxpose.xlu0.b32.cont [7/16] (narrow) %v3543_v10, 8  ;;  %v3578_v10 = vld [vmem:[#allocation3 + $0x468] sm:$0xff] }
 0xfd5   :  { %3594 = vxpose.xlu0.b32.cont [8/16] (narrow) %v3544_v14, 8  ;;  %v3579_v14 = vld [vmem:[#allocation3 + $0x470] sm:$0xff] }
 0xfd9   :  { %3595 = vxpose.xlu0.b32.cont [9/16] (narrow) %v3545_v15, 8  ;;  %v3580_v15 = vld [vmem:[#allocation3 + $0x478] sm:$0xff] }
 0xfdd   :  { %3596 = vxpose.xlu0.b32.cont [10/16] (narrow) %v3546_v40, 8  ;;  %v3582_v40 = vld [vmem:[#allocation3 + $0x488] sm:$0xff] }
 0xfe1   :  { %3597 = vxpose.xlu0.b32.cont [11/16] (narrow) %v3547_v52, 8  ;;  %v3584_v52 = vld [vmem:[#allocation3 + $0x498] sm:$0xff] }
 0xfe2   :  { %s5009_s20 = spop %5008 }
 0xfe3   :  { %v3372_v54 = vstv %s5009_s20 }
 0xfe4   :  { %v3373_v58 = vmul.f32 %v3372_v54, %v6278_v62  ;;  %v3374_v59 = vmul.f32 %v3372_v54, %v6280_v63  ;;  %v3560_v63 = vld [vmem:[#allocation3 + $0x3d8] sm:$0xff] }
 0xfe5   :  { %3598 = vxpose.xlu0.b32.cont [12/16] (narrow) %v3548_v38, 8  ;;  %3626 = vxpose.xlu1.b32.cont [8/16] (narrow) %v3560_v63, 8  ;;  %v3822_v63 = vld [vmem:[#allocation3 + $0x530] sm:$0xff] }
 0xfe6   :  { %v3379_v61 = vmul.f32 %v3375_v55, %v3373_v58  ;;  %v3380_v8 = vmul.f32 %v3377_v11, %v3374_v59 }
 0xfe8   :  { %v3385_v43 = vadd.f32 %v3381_v56, %v3379_v61  ;;  %v3386_v16 = vadd.f32 %v3383_v60, %v3380_v8 }
 0xfe9   :  { %3599 = vxpose.xlu0.b32.cont [13/16] (narrow) %v3549_v12, 8  ;;  %3627 = vxpose.xlu1.b32.cont [9/16] (narrow) %v3561_v19, 8  ;;  %v3823_v19 = vld [vmem:[#allocation3 + $0x538] sm:$0xff] }
 0xfea   :  { %v3389_v62 = vcombine.low %v3385_v43, %v3386_v16 }
 0xfec   :  { %3393 = vst.msk [vmem:[%s6419_s9] sm:$0x77] %vm6305_vm13, %v3389_v62 }
 0xfed   :  { %3600 = vxpose.xlu0.b32.cont [14/16] (narrow) %v3550_v42, 8  ;;  %3628 = vxpose.xlu1.b32.cont [10/16] (narrow) %v3562_v22, 8  ;;  %v3806_v22 = vld [vmem:[#allocation3 + $0x4b0] sm:$0xff] }
 0xff1   :  { %3601 = vxpose.xlu0.b32.cont [15/16] (narrow) %v3551_v18, 8  ;;  %3629 = vxpose.xlu1.b32.cont [11/16] (narrow) %v3563_v23, 8  ;;  %v3807_v23 = vld [vmem:[#allocation3 + $0x4b8] sm:$0xff] }
 0xff5   :  { %3602 = vxpose.xlu0.b32.end [16/16] (narrow) %v3552_v20, 8  ;;  %3630 = vxpose.xlu1.b32.cont [12/16] (narrow) %v3564_v24, 8  ;;  %v3808_v24 = vld [vmem:[#allocation3 + $0x4c0] sm:$0xff] }
 0xff9   :  { %3631 = vxpose.xlu1.b32.cont [13/16] (narrow) %v3565_v25, 8  ;;  %v3809_v25 = vld [vmem:[#allocation3 + $0x4c8] sm:$0xff] }
 0xffd   :  { %3632 = vxpose.xlu1.b32.cont [14/16] (narrow) %v3566_v26, 8  ;;  %v3810_v26 = vld [vmem:[#allocation3 + $0x4d0] sm:$0xff] }
0x1001   :  { %3633 = vxpose.xlu1.b32.cont [15/16] (narrow) %v3567_v28, 8  ;;  %v3811_v28 = vld [vmem:[#allocation3 + $0x4d8] sm:$0xff] }
0x1005   :  { %3634 = vxpose.xlu1.b32.end [16/16] (narrow) %v3568_v29, 8  ;;  %v3812_v29 = vld [vmem:[#allocation3 + $0x4e0] sm:$0xff] }
0x1009   :  { %3683 = vxpose.xlu1.b32.start [1/2] (short) (narrow) %v3585_v31, 8  ;;  %v3813_v31 = vld [vmem:[#allocation3 + $0x4e8] sm:$0xff] }
0x100d   :  { %3684 = vxpose.xlu1.b32.end [2/2] (short) (narrow) %v3586_v32, 8  ;;  %v3824_v32 = vld [vmem:[#allocation3 + $0x540] sm:$0xff] }
0x1019   :  { %v3482_v21 = vpop.xlane.xlu0 %3481 }
0x101a   :  { %v3483_v33 = vrot.slane %v3482_v21, 4 }
0x101c   :  { %v3484_v34 = vadd.f32 %v3483_v33, %v3482_v21  ;;  %v3814_v21 = vld [vmem:[#allocation3 + $0x4f0] sm:$0xff]  ;;  %v3825_v33 = vld [vmem:[#allocation3 + $0x548] sm:$0xff] }
0x101e   :  { %v3485_v35 = vrot.slane %v3484_v34, 2 }
0x1020   :  { %v3486_v36 = vadd.f32 %v3485_v35, %v3484_v34  ;;  %v3815_v34 = vld [vmem:[#allocation3 + $0x4f8] sm:$0xff]  ;;  %v3826_v35 = vld [vmem:[#allocation3 + $0x550] sm:$0xff] }
0x1022   :  { %v3487_v37 = vrot.slane %v3486_v36, 1 }
0x1024   :  { %v3488_v44 = vadd.f32 %v3487_v37, %v3486_v36  ;;  %v4477_v36 = vld [vmem:[%s6417_s7 + $0x10] sm:$0x77]  ;;  %v3816_v37 = vld [vmem:[#allocation3 + $0x500] sm:$0xff] }
0x1026   :  { %5010 = vpush %v3488_v44  ;;  %v4478_v44 = vld [vmem:[%s6418_s8 + $0x10] sm:$0x77] }
0x1039   :  { %v6326_v1 = vpop.trf.xlu0 }
0x103a   :  { %v3715_v60 = vsel %vm327_vm0, %v6326_v1, 0.0 }
0x1049   :  { %v6328_v59 = vpop.trf.xlu1 }
0x104a   :  { %v3716_v61 = vsel %vm327_vm0, %v6328_v59, 0.0 }
0x104b   :  { %v3717_v12 = vadd.f32 %v3716_v61, %v3715_v60  ;;  %v3841_v60 = vld [vmem:[#allocation3 + $0x5c8] sm:$0xff] }
0x1057   :  { %s5011_s23 = spop %5010 }
0x1058   :  { %s3490_s1 = smul.f32 0.0022222223, %s5011_s23 }
0x105a   :  { %v3491_v30 = vstv %s3490_s1 }
0x105b   :  { %v6315_v45 = vsub.f32 %v6292_v47, %v3491_v30  ;;  %v6318_v46 = vsub.f32 %v6288_v27, %v3491_v30  ;;  %v3571_v47 = vld [vmem:[#allocation3 + $0x430] sm:$0xff]  ;;  %v3572_v27 = vld [vmem:[#allocation3 + $0x438] sm:$0xff]  ;;  %v3519_v30 = vcombine.high %v4477_v36, %v4477_v36 }
0x105d   :  { %v3495_v48 = vmul.f32 %v6318_v46, %v6318_v46  ;;  %v3494_v49 = vmul.f32 %v6315_v45, %v6315_v45 }
0x105f   :  { %v3496_v50 = vsel %vm327_vm0, %v3494_v49, 0.0  ;;  %v3497_v53 = vsel %vm3337_vm11, %v3495_v48, 0.0  ;;  %v3827_v48 = vld [vmem:[#allocation3 + $0x558] sm:$0xff] }
0x1060   :  { %v3498_v51 = vadd.f32 %v3497_v53, %v3496_v50 }
0x1062   :  { %3499 = vadd.xlane.f32.xlu0 %v3498_v51  ;;  %v3526_v51 = vcombine.high %v4478_v44, %v4478_v44 }
0x1089   :  { %v6334_v8 = vpop.trf.xlu1 }
0x108a   :  { %v3721_v16 = vsel %vm3720_vm14, %v6334_v8, 0.0 }
0x108f   :  { %3651 = vxpose.xlu0.b32.start [1/16] (narrow) %v3569_v0, 8  ;;  %v3817_v0 = vld [vmem:[#allocation3 + $0x508] sm:$0xff] }
0x1093   :  { %3652 = vxpose.xlu0.b32.cont [2/16] (narrow) %v3570_v2, 8  ;;  %v3828_v2 = vld [vmem:[#allocation3 + $0x560] sm:$0xff] }
0x1097   :  { %3653 = vxpose.xlu0.b32.cont [3/16] (narrow) %v3571_v47, 8 }
0x109b   :  { %3654 = vxpose.xlu0.b32.cont [4/16] (narrow) %v3572_v27, 8 }
0x109f   :  { %3655 = vxpose.xlu0.b32.cont [5/16] (narrow) %v3573_v3, 8 }
0x10a3   :  { %3656 = vxpose.xlu0.b32.cont [6/16] (narrow) %v3574_v5, 8 }
0x10a7   :  { %3657 = vxpose.xlu0.b32.cont [7/16] (narrow) %v3575_v6, 8  ;;  %v3818_v6 = vld [vmem:[#allocation3 + $0x510] sm:$0xff] }
0x10ab   :  { %3658 = vxpose.xlu0.b32.cont [8/16] (narrow) %v3576_v7, 8  ;;  %v3829_v7 = vld [vmem:[#allocation3 + $0x568] sm:$0xff] }
0x10af   :  { %3659 = vxpose.xlu0.b32.cont [9/16] (narrow) %v3577_v9, 8 }
0x10b3   :  { %3660 = vxpose.xlu0.b32.cont [10/16] (narrow) %v3578_v10, 8  ;;  %v3820_v10 = vld [vmem:[#allocation3 + $0x520] sm:$0xff] }
0x10b7   :  { %3661 = vxpose.xlu0.b32.cont [11/16] (narrow) %v3579_v14, 8  ;;  %v3831_v14 = vld [vmem:[#allocation3 + $0x578] sm:$0xff] }
0x10bb   :  { %3662 = vxpose.xlu0.b32.cont [12/16] (narrow) %v3580_v15, 8  ;;  %v3821_v15 = vld [vmem:[#allocation3 + $0x528] sm:$0xff] }
0x10bf   :  { %3663 = vxpose.xlu0.b32.cont [13/16] (narrow) %v3581_v39, 8  ;;  %v3832_v39 = vld [vmem:[#allocation3 + $0x580] sm:$0xff] }
0x10c3   :  { %3664 = vxpose.xlu0.b32.cont [14/16] (narrow) %v3582_v40, 8  ;;  %v3833_v40 = vld [vmem:[#allocation3 + $0x588] sm:$0xff] }
0x10c7   :  { %3665 = vxpose.xlu0.b32.cont [15/16] (narrow) %v3583_v41, 8  ;;  %v3834_v41 = vld [vmem:[#allocation3 + $0x590] sm:$0xff] }
0x10cb   :  { %3666 = vxpose.xlu0.b32.end [16/16] (narrow) %v3584_v52, 8  ;;  %v3836_v52 = vld [vmem:[#allocation3 + $0x5a0] sm:$0xff] }
0x10cf   :  { %3888 = vxpose.xlu0.b32.start [1/16] (narrow) %v3822_v63, 8  ;;  %v3844_v63 = vld [vmem:[#allocation3 + $0x5e0] sm:$0xff] }
0x10d3   :  { %3889 = vxpose.xlu0.b32.cont [2/16] (narrow) %v3823_v19, 8  ;;  %v3846_v19 = vld [vmem:[#allocation3 + $0x5f0] sm:$0xff] }
0x10d7   :  { %3890 = vxpose.xlu0.b32.cont [3/16] (narrow) %v3824_v32, 8 }
0x10db   :  { %3891 = vxpose.xlu0.b32.cont [4/16] (narrow) %v3825_v33, 8 }
0x10df   :  { %3892 = vxpose.xlu0.b32.cont [5/16] (narrow) %v3826_v35, 8 }
0x10e3   :  { %3893 = vxpose.xlu0.b32.cont [6/16] (narrow) %v3827_v48, 8 }
0x10e7   :  { %3894 = vxpose.xlu0.b32.cont [7/16] (narrow) %v3828_v2, 8 }
0x10eb   :  { %3895 = vxpose.xlu0.b32.cont [8/16] (narrow) %v3829_v7, 8 }
0x10ef   :  { %v3500_v55 = vpop.xlane.xlu0 %3499 }
0x10f0   :  { %v3501_v56 = vrot.slane %v3500_v55, 4 }
0x10f2   :  { %v3502_v11 = vadd.f32 %v3501_v56, %v3500_v55  ;;  %v3837_v55 = vld [vmem:[#allocation3 + $0x5a8] sm:$0xff]  ;;  %v3838_v56 = vld [vmem:[#allocation3 + $0x5b0] sm:$0xff] }
0x10f4   :  { %v3503_v38 = vrot.slane %v3502_v11, 2 }
0x10f6   :  { %v3504_v57 = vadd.f32 %v3503_v38, %v3502_v11  ;;  %v3839_v11 = vld [vmem:[#allocation3 + $0x5b8] sm:$0xff] }
0x10f8   :  { %v3505_v54 = vrot.slane %v3504_v57, 1 }
0x10fa   :  { %v3506_v58 = vadd.f32 %v3505_v54, %v3504_v57  ;;  %v3840_v57 = vld [vmem:[#allocation3 + $0x5c0] sm:$0xff] }
0x10fc   :  { %5012 = vpush %v3506_v58 }
0x110f   :  { %v6336_v13 = vpop.trf.xlu0 }
0x1110   :  { %v3718_v43 = vsel %vm327_vm0, %v6336_v13, 0.0 }
0x1111   :  { %v3719_v62 = vadd.f32 %v3718_v43, %v3717_v12  ;;  %v3842_v43 = vld [vmem:[#allocation3 + $0x5d0] sm:$0xff] }
0x1113   :  { %v3722_v42 = vadd.f32 %v3721_v16, %v3719_v62 }
0x1115   :  { %3723 = vadd.xlane.f32.xlu1 %v3722_v42  ;;  %v3843_v42 = vld [vmem:[#allocation3 + $0x5d8] sm:$0xff] }
0x112d   :  { %s5013_s24 = spop %5012 }
0x112e   :  { %s3508_s3 = smul.f32 0.0022222223, %s5013_s24 }
0x1130   :  { %s3509_s25 = sadd.f32 1e-05, %s3508_s3 }
0x1132   :  { %v3510_v18 = vstv %s3509_s25 }
0x1133   :  { %5182 = vrsqrt.f32 %v3510_v18  ;;  %v3845_v18 = vld [vmem:[#allocation3 + $0x5e8] sm:$0xff] }
0x113d   :  { %v5183_v20 = vpop.eup %5182 }
0x113e   :  { %5014 = vpush %v5183_v20  ;;  %v3847_v20 = vld [vmem:[#allocation3 + $0x5f8] sm:$0xff] }
0x1148   :  { %3856 = vxpose.xlu1.b32.start [1/16] (narrow) %v3806_v22, 8  ;;  %v3848_v22 = vld [vmem:[#allocation3 + $0x600] sm:$0xff] }
0x114c   :  { %3857 = vxpose.xlu1.b32.cont [2/16] (narrow) %v3807_v23, 8  ;;  %v3849_v23 = vld [vmem:[#allocation3 + $0x608] sm:$0xff] }
0x1150   :  { %3858 = vxpose.xlu1.b32.cont [3/16] (narrow) %v3808_v24, 8  ;;  %v3850_v24 = vld [vmem:[#allocation3 + $0x610] sm:$0xff] }
0x1154   :  { %3859 = vxpose.xlu1.b32.cont [4/16] (narrow) %v3809_v25, 8  ;;  %v3851_v25 = vld [vmem:[#allocation3 + $0x618] sm:$0xff] }
0x1158   :  { %3860 = vxpose.xlu1.b32.cont [5/16] (narrow) %v3810_v26, 8  ;;  %v3852_v26 = vld [vmem:[#allocation3 + $0x620] sm:$0xff] }
0x115c   :  { %3861 = vxpose.xlu1.b32.cont [6/16] (narrow) %v3811_v28, 8  ;;  %v3853_v28 = vld [vmem:[#allocation3 + $0x628] sm:$0xff] }
0x1160   :  { %3862 = vxpose.xlu1.b32.cont [7/16] (narrow) %v3812_v29, 8 }
0x1164   :  { %3863 = vxpose.xlu1.b32.cont [8/16] (narrow) %v3813_v31, 8 }
0x1168   :  { %3864 = vxpose.xlu1.b32.cont [9/16] (narrow) %v3814_v21, 8 }
0x116c   :  { %3865 = vxpose.xlu1.b32.cont [10/16] (narrow) %v3815_v34, 8 }
0x116f   :  { %s5015_s5 = spop %5014 }
0x1170   :  { %v3513_v49 = vstv %s5015_s5  ;;  %3866 = vxpose.xlu1.b32.cont [11/16] (narrow) %v3816_v37, 8 }
0x1171   :  { %v3514_v50 = vmul.f32 %v3513_v49, %v6315_v45  ;;  %v3515_v53 = vmul.f32 %v3513_v49, %v6318_v46  ;;  %v3819_v45 = vld [vmem:[#allocation3 + $0x518] sm:$0xff]  ;;  %v3830_v46 = vld [vmem:[#allocation3 + $0x570] sm:$0xff] }
0x1172   :  { %3896 = vxpose.xlu0.b32.cont [9/16] (narrow) %v3830_v46, 8 }
0x1173   :  { %v3521_v47 = vmul.f32 %v4477_v36, %v3514_v50  ;;  %v3522_v27 = vmul.f32 %v3519_v30, %v3515_v53 }
0x1174   :  { %3867 = vxpose.xlu1.b32.cont [12/16] (narrow) %v3817_v0, 8 }
0x1175   :  { %v3528_v3 = vadd.f32 %v4478_v44, %v3521_v47  ;;  %v3529_v5 = vadd.f32 %v3526_v51, %v3522_v27 }
0x1176   :  { %3897 = vxpose.xlu0.b32.cont [10/16] (narrow) %v3831_v14, 8 }
0x1177   :  { %v3532_v9 = vcombine.low %v3528_v3, %v3529_v5 }
0x1178   :  { %3868 = vxpose.xlu1.b32.cont [13/16] (narrow) %v3818_v6, 8 }
0x1179   :  { %4479 = vst.msk [vmem:[%s6419_s9 + $0x10] sm:$0x77] %vm6305_vm13, %v3532_v9 }
0x117a   :  { %3898 = vxpose.xlu0.b32.cont [11/16] (narrow) %v3832_v39, 8 }
0x117c   :  { %3869 = vxpose.xlu1.b32.cont [14/16] (narrow) %v3819_v45, 8 }
0x117e   :  { %3899 = vxpose.xlu0.b32.cont [12/16] (narrow) %v3833_v40, 8 }
0x1180   :  { %3870 = vxpose.xlu1.b32.cont [15/16] (narrow) %v3820_v10, 8 }
0x1182   :  { %3900 = vxpose.xlu0.b32.cont [13/16] (narrow) %v3834_v41, 8 }
0x1184   :  { %3871 = vxpose.xlu1.b32.end [16/16] (narrow) %v3821_v15, 8 }
0x1186   :  { %3901 = vxpose.xlu0.b32.cont [14/16] (narrow) %v3835_v17, 8 }
0x118a   :  { %3902 = vxpose.xlu0.b32.cont [15/16] (narrow) %v3836_v52, 8  ;;  %v4480_v52 = vld [vmem:[%s6417_s7 + $0x20] sm:$0x77] }
0x118e   :  { %3903 = vxpose.xlu0.b32.end [16/16] (narrow) %v3837_v55, 8  ;;  %v4481_v55 = vld [vmem:[%s6417_s7 + $0x28] sm:$0x77] }
0x1192   :  { %3920 = vxpose.xlu0.b32.start [1/16] (narrow) %v3838_v56, 8  ;;  %v4482_v56 = vld [vmem:[%s6418_s8 + $0x20] sm:$0x77] }
0x1196   :  { %3921 = vxpose.xlu0.b32.cont [2/16] (narrow) %v3839_v11, 8  ;;  %v4483_v11 = vld [vmem:[%s6418_s8 + $0x28] sm:$0x77] }
0x119a   :  { %3922 = vxpose.xlu0.b32.cont [3/16] (narrow) %v3840_v57, 8  ;;  %v3774_v57 = vcombine.high %v4481_v55, %v4481_v55 }
0x119e   :  { %3923 = vxpose.xlu0.b32.cont [4/16] (narrow) %v3841_v60, 8  ;;  %v3787_v60 = vcombine.high %v4483_v11, %v4483_v11 }
0x11a2   :  { %v3724_v38 = vpop.xlane.xlu1 %3723  ;;  %3924 = vxpose.xlu0.b32.cont [5/16] (narrow) %v3842_v43, 8 }
0x11a3   :  { %v3725_v54 = vrot.slane %v3724_v38, 4 }
0x11a5   :  { %v3726_v58 = vadd.f32 %v3725_v54, %v3724_v38  ;;  %v3773_v38 = vcombine.high %v4480_v52, %v4480_v52 }
0x11a6   :  { %3925 = vxpose.xlu0.b32.cont [6/16] (narrow) %v3843_v42, 8 }
0x11a7   :  { %v3727_v61 = vrot.slane %v3726_v58, 2 }
0x11a9   :  { %v3728_v12 = vadd.f32 %v3727_v61, %v3726_v58  ;;  %v3786_v58 = vcombine.high %v4482_v56, %v4482_v56 }
0x11aa   :  { %3926 = vxpose.xlu0.b32.cont [7/16] (narrow) %v3844_v63, 8 }
0x11ab   :  { %v3729_v16 = vrot.slane %v3728_v12, 1 }
0x11ad   :  { %v3730_v62 = vadd.f32 %v3729_v16, %v3728_v12 }
0x11ae   :  { %3927 = vxpose.xlu0.b32.cont [8/16] (narrow) %v3845_v18, 8 }
0x11af   :  { %5016 = vpush %v3730_v62 }
0x11b2   :  { %3928 = vxpose.xlu0.b32.cont [9/16] (narrow) %v3846_v19, 8 }
0x11b6   :  { %3929 = vxpose.xlu0.b32.cont [10/16] (narrow) %v3847_v20, 8 }
0x11ba   :  { %3930 = vxpose.xlu0.b32.cont [11/16] (narrow) %v3848_v22, 8 }
0x11be   :  { %3931 = vxpose.xlu0.b32.cont [12/16] (narrow) %v3849_v23, 8 }
0x11c2   :  { %3932 = vxpose.xlu0.b32.cont [13/16] (narrow) %v3850_v24, 8 }
0x11c6   :  { %3933 = vxpose.xlu0.b32.cont [14/16] (narrow) %v3851_v25, 8 }
0x11ca   :  { %3934 = vxpose.xlu0.b32.cont [15/16] (narrow) %v3852_v26, 8 }
0x11ce   :  { %3935 = vxpose.xlu0.b32.end [16/16] (narrow) %v3853_v28, 8 }
0x11d2   :  { %v3904_v6 = vpop.trf.xlu0 }
0x11d3   :  { %v3985_v9 = vsel %vm327_vm0, %v3904_v6, 0.0 }
0x11e0   :  { %s5017_s29 = spop %5016 }
0x11e1   :  { %s3732_s30 = smul.f32 0.00083333335, %s5017_s29 }
0x11e3   :  { %v3733_v29 = vstv %s3732_s30 }
0x11e4   :  { %v3734_v31 = vsub.f32 %v6326_v1, %v3733_v29  ;;  %v3735_v32 = vsub.f32 %v6328_v59, %v3733_v29  ;;  %v3736_v21 = vsub.f32 %v6336_v13, %v3733_v29  ;;  %v3737_v33 = vsub.f32 %v6334_v8, %v3733_v29  ;;  %v3854_v59 = vld [vmem:[#allocation3 + $0x630] sm:$0xff]  ;;  %v3855_v13 = vld [vmem:[#allocation3 + $0x638] sm:$0xff]  ;;  %v6363_v8 = vpop.trf.xlu1 }
0x11e5   :  { %v3984_v7 = vsel %vm327_vm0, %v6363_v8, 0.0 }
0x11e6   :  { %v3738_v34 = vmul.f32 %v3734_v31, %v3734_v31  ;;  %v3739_v35 = vmul.f32 %v3735_v32, %v3735_v32  ;;  %v3740_v36 = vmul.f32 %v3736_v21, %v3736_v21  ;;  %v3741_v37 = vmul.f32 %v3737_v33, %v3737_v33 }
0x11e7   :  { %v3986_v46 = vadd.f32 %v3985_v9, %v3984_v7 }
0x11e8   :  { %v3742_v44 = vsel %vm327_vm0, %v3738_v34, 0.0  ;;  %v3743_v30 = vsel %vm327_vm0, %v3739_v35, 0.0  ;;  %v3745_v49 = vsel %vm327_vm0, %v3740_v36, 0.0  ;;  %v3747_v1 = vsel %vm3720_vm14, %v3741_v37, 0.0 }
0x11e9   :  { %v3744_v48 = vadd.f32 %v3743_v30, %v3742_v44 }
0x11eb   :  { %v3746_v50 = vadd.f32 %v3745_v49, %v3744_v48 }
0x11ed   :  { %v3748_v53 = vadd.f32 %v3747_v1, %v3746_v50 }
0x11ef   :  { %3749 = vadd.xlane.f32.xlu1 %v3748_v53 }
0x1212   :  { %v3936_v45 = vpop.trf.xlu0 }
0x1213   :  { %v3987_v10 = vsel %vm327_vm0, %v3936_v45, 0.0 }
0x1214   :  { %v3988_v14 = vadd.f32 %v3987_v10, %v3986_v46  ;;  %v4486_v46 = vld [vmem:[%s6417_s7 + $0x30] sm:$0x77]  ;;  %v4487_v10 = vld [vmem:[%s6417_s7 + $0x38] sm:$0x77] }
0x1222   :  { %3952 = vxpose.xlu1.b32.start [1/2] (short) (narrow) %v3854_v59, 8 }
0x1226   :  { %3953 = vxpose.xlu1.b32.end [2/2] (short) (narrow) %v3855_v13, 8 }
0x127c   :  { %v3750_v51 = vpop.xlane.xlu1 %3749 }
0x127d   :  { %v3751_v0 = vrot.slane %v3750_v51, 4 }
0x127f   :  { %v3752_v2 = vadd.f32 %v3751_v0, %v3750_v51 }
0x1281   :  { %v3753_v47 = vrot.slane %v3752_v2, 2 }
0x1283   :  { %v3754_v27 = vadd.f32 %v3753_v47, %v3752_v2 }
0x1285   :  { %v3755_v3 = vrot.slane %v3754_v27, 1 }
0x1287   :  { %v3756_v5 = vadd.f32 %v3755_v3, %v3754_v27 }
0x1289   :  { %5018 = vpush %v3756_v5 }
0x12a2   :  { %v3968_v15 = vpop.trf.xlu1 }
0x12a3   :  { %v3989_v39 = vsel %vm3720_vm14, %v3968_v15, 0.0 }
0x12a4   :  { %v3990_v40 = vadd.f32 %v3989_v39, %v3988_v14  ;;  %v4488_v14 = vld [vmem:[%s6418_s8 + $0x30] sm:$0x77]  ;;  %v4041_v39 = vcombine.high %v4486_v46, %v4486_v46 }
0x12a6   :  { %3991 = vadd.xlane.f32.xlu1 %v3990_v40  ;;  %v4042_v40 = vcombine.high %v4487_v10, %v4487_v10 }
0x12ba   :  { %s5019_s10 = spop %5018 }
0x12bb   :  { %s3758_s11 = smul.f32 0.00083333335, %s5019_s10 }
0x12bd   :  { %s3759_s12 = sadd.f32 1e-05, %s3758_s11 }
0x12bf   :  { %v3760_v41 = vstv %s3759_s12 }
0x12c0   :  { %5184 = vrsqrt.f32 %v3760_v41 }
0x12ca   :  { %v5185_v17 = vpop.eup %5184 }
0x12cb   :  { %5020 = vpush %v5185_v17  ;;  %v4054_v17 = vcombine.high %v4488_v14, %v4488_v14 }
0x12fc   :  { %s5021_s20 = spop %5020 }
0x12fd   :  { %v3763_v54 = vstv %s5021_s20 }
0x12fe   :  { %v3764_v61 = vmul.f32 %v3763_v54, %v3734_v31  ;;  %v3765_v12 = vmul.f32 %v3763_v54, %v3735_v32  ;;  %v3766_v43 = vmul.f32 %v3763_v54, %v3736_v21  ;;  %v3767_v16 = vmul.f32 %v3763_v54, %v3737_v33 }
0x1300   :  { %v3777_v62 = vmul.f32 %v4480_v52, %v3764_v61  ;;  %v3778_v42 = vmul.f32 %v3773_v38, %v3765_v12  ;;  %v3779_v63 = vmul.f32 %v4481_v55, %v3766_v43  ;;  %v3780_v18 = vmul.f32 %v3774_v57, %v3767_v16 }
0x1302   :  { %v3790_v19 = vadd.f32 %v4482_v56, %v3777_v62  ;;  %v3791_v20 = vadd.f32 %v3786_v58, %v3778_v42  ;;  %v3792_v22 = vadd.f32 %v4483_v11, %v3779_v63  ;;  %v3793_v23 = vadd.f32 %v3787_v60, %v3780_v18 }
0x1304   :  { %v3798_v24 = vcombine.low %v3790_v19, %v3791_v20  ;;  %v3799_v25 = vcombine.low %v3792_v22, %v3793_v23 }
0x1306   :  { %4484 = vst [vmem:[%s6419_s9 + $0x20] sm:$0x77] %v3798_v24  ;;  %4485 = vst.msk [vmem:[%s6419_s9 + $0x28] sm:$0x77] %vm5295_vm2, %v3799_v25 }
0x1333   :  { %v3992_v26 = vpop.xlane.xlu1 %3991 }
0x1334   :  { %v3993_v28 = vrot.slane %v3992_v26, 4 }
0x1336   :  { %v3994_v29 = vadd.f32 %v3993_v28, %v3992_v26 }
0x1338   :  { %v3995_v31 = vrot.slane %v3994_v29, 2 }
0x133a   :  { %v3996_v32 = vadd.f32 %v3995_v31, %v3994_v29 }
0x133c   :  { %v3997_v21 = vrot.slane %v3996_v32, 1 }
0x133e   :  { %v3998_v33 = vadd.f32 %v3997_v21, %v3996_v32 }
0x1340   :  { %5022 = vpush %v3998_v33 }
0x1371   :  { %s5023_s24 = spop %5022 }
0x1372   :  { %s4000_s3 = smul.f32 0.00083333335, %s5023_s24 }
0x1374   :  { %v4001_v34 = vstv %s4000_s3 }
0x1375   :  { %v4002_v35 = vsub.f32 %v6363_v8, %v4001_v34  ;;  %v4003_v36 = vsub.f32 %v3904_v6, %v4001_v34  ;;  %v4004_v37 = vsub.f32 %v3936_v45, %v4001_v34  ;;  %v4005_v44 = vsub.f32 %v3968_v15, %v4001_v34  ;;  %v4489_v15 = vld [vmem:[%s6418_s8 + $0x38] sm:$0x77] }
0x1376   :  { %v4055_v52 = vcombine.high %v4489_v15, %v4489_v15 }
0x1377   :  { %v4006_v30 = vmul.f32 %v4002_v35, %v4002_v35  ;;  %v4007_v48 = vmul.f32 %v4003_v36, %v4003_v36  ;;  %v4008_v49 = vmul.f32 %v4004_v37, %v4004_v37  ;;  %v4009_v50 = vmul.f32 %v4005_v44, %v4005_v44 }
0x1379   :  { %v4010_v1 = vsel %vm327_vm0, %v4006_v30, 0.0  ;;  %v4011_v53 = vsel %vm327_vm0, %v4007_v48, 0.0  ;;  %v4013_v13 = vsel %vm327_vm0, %v4008_v49, 0.0  ;;  %v4015_v0 = vsel %vm3720_vm14, %v4009_v50, 0.0 }
0x137a   :  { %v4012_v59 = vadd.f32 %v4011_v53, %v4010_v1 }
0x137c   :  { %v4014_v51 = vadd.f32 %v4013_v13, %v4012_v59 }
0x137e   :  { %v4016_v2 = vadd.f32 %v4015_v0, %v4014_v51 }
0x1380   :  { %4017 = vadd.xlane.f32.xlu0 %v4016_v2 }
0x140d   :  { %v4018_v8 = vpop.xlane.xlu0 %4017 }
0x140e   :  { %v4019_v47 = vrot.slane %v4018_v8, 4 }
0x1410   :  { %v4020_v27 = vadd.f32 %v4019_v47, %v4018_v8 }
0x1412   :  { %v4021_v3 = vrot.slane %v4020_v27, 2 }
0x1414   :  { %v4022_v5 = vadd.f32 %v4021_v3, %v4020_v27 }
0x1416   :  { %v4023_v6 = vrot.slane %v4022_v5, 1 }
0x1418   :  { %v4024_v7 = vadd.f32 %v4023_v6, %v4022_v5 }
0x141a   :  { %5024 = vpush %v4024_v7 }
0x144b   :  { %s5025_s25 = spop %5024 }
0x144c   :  { %s4026_s26 = smul.f32 0.00083333335, %s5025_s25 }
0x144e   :  { %s4027_s0 = sadd.f32 1e-05, %s4026_s26 }
0x1450   :  { %v4028_v9 = vstv %s4027_s0 }
0x1451   :  { %5186 = vrsqrt.f32 %v4028_v9 }
0x145b   :  { %v5187_v45 = vpop.eup %5186 }
0x145c   :  { %5026 = vpush %v5187_v45 }
0x148d   :  { %s5027_s11 = spop %5026 }
0x148e   :  { %v4031_v41 = vstv %s5027_s11 }
0x148f   :  { %v4032_v55 = vmul.f32 %v4031_v41, %v4002_v35  ;;  %v4033_v56 = vmul.f32 %v4031_v41, %v4003_v36  ;;  %v4034_v11 = vmul.f32 %v4031_v41, %v4004_v37  ;;  %v4035_v38 = vmul.f32 %v4031_v41, %v4005_v44 }
0x1491   :  { %v4045_v57 = vmul.f32 %v4486_v46, %v4032_v55  ;;  %v4046_v54 = vmul.f32 %v4041_v39, %v4033_v56  ;;  %v4047_v58 = vmul.f32 %v4487_v10, %v4034_v11  ;;  %v4048_v60 = vmul.f32 %v4042_v40, %v4035_v38 }
0x1493   :  { %v4058_v61 = vadd.f32 %v4488_v14, %v4045_v57  ;;  %v4059_v12 = vadd.f32 %v4054_v17, %v4046_v54  ;;  %v4060_v43 = vadd.f32 %v4489_v15, %v4047_v58  ;;  %v4061_v16 = vadd.f32 %v4055_v52, %v4048_v60 }
0x1495   :  { %v4066_v62 = vcombine.low %v4058_v61, %v4059_v12  ;;  %v4067_v42 = vcombine.low %v4060_v43, %v4061_v16 }
0x1497   :  { %4490 = vst [vmem:[%s6419_s9 + $0x30] sm:$0x77] %v4066_v62  ;;  %4491 = vst.msk [vmem:[%s6419_s9 + $0x38] sm:$0x77] %vm5295_vm2, %v4067_v42 }

</bundles_post_ra>
